<compile_context>
chip_gen: v5e
topology: v5e:2x2
jax: 0.10.0
libtpu: 0.0.40
codegen_flags: <defaults>
</compile_context>

<pallas_src>
import functools

import jax
import jax.numpy as jnp
from jax.experimental import pallas as pl
from jax.experimental.pallas import tpu as pltpu


def _round_up(x, m):
    return (x + m - 1) // m * m


_COMPILER_PARAMS = pltpu.CompilerParams(
    dimension_semantics=("parallel",),
    vmem_limit_bytes=32 * 1024 * 1024,
)


# ---------------------------------------------------------------------------
# Fused Pallas kernel: conv (block-diag im2col matmul) + 3-layer fc head
# ---------------------------------------------------------------------------
def _fused_convnet_kernel(cols_ref, wc_ref, bc_ref, w1_ref, b1_ref,
                          w2_ref, b2_ref, w3_ref, b3_ref, o_ref):
    # All matmuls: bf16 MXU operands, f32 accumulation; f32 bias/ReLU epilogues.
    # The conv activation (TB, P*Cout) lives only in VMEM/registers.
    act = jnp.dot(cols_ref[...], wc_ref[...], preferred_element_type=jnp.float32)
    act = jnp.maximum(act + bc_ref[...], 0.0).astype(jnp.bfloat16)
    h = jnp.dot(act, w1_ref[...], preferred_element_type=jnp.float32)
    h = jnp.maximum(h + b1_ref[...], 0.0).astype(jnp.bfloat16)
    h = jnp.dot(h, w2_ref[...], preferred_element_type=jnp.float32)
    h = jnp.maximum(h + b2_ref[...], 0.0).astype(jnp.bfloat16)
    o = jnp.dot(h, w3_ref[...], preferred_element_type=jnp.float32)
    o_ref[...] = (o + b3_ref[...]).astype(o_ref.dtype)


def fused_convnet(cols, wc, bc, w1, b1, w2, b2, w3, b3, *, tile_rows):
    """out = fc3(relu(fc2(relu(fc1(relu(cols @ wc + bc)))))) , tiled over rows."""
    M, KT = cols.shape
    F = wc.shape[1]
    H1 = w1.shape[1]
    H2 = w2.shape[1]
    O = w3.shape[1]
    assert M % tile_rows == 0 and tile_rows % 8 == 0

    def const(shape):   # weight/bias blocks: constant index map -> VMEM resident
        return pl.BlockSpec(shape, lambda i: (0,) * len(shape))

    return pl.pallas_call(
        _fused_convnet_kernel,
        out_shape=jax.ShapeDtypeStruct((M, O), jnp.float32),
        grid=(M // tile_rows,),
        in_specs=[
            pl.BlockSpec((tile_rows, KT), lambda i: (i, 0)),   # streamed im2col rows
            const((KT, F)), const((1, F)),                      # block-diag conv W,b
            const((F, H1)), const((1, H1)),
            const((H1, H2)), const((1, H2)),
            const((H2, O)), const((1, O)),
        ],
        out_specs=pl.BlockSpec((tile_rows, O), lambda i: (i, 0)),
        compiler_params=_COMPILER_PARAMS,
    )(cols, wc, bc, w1, b1, w2, b2, w3, b3)


# ---------------------------------------------------------------------------
# Config / params (torch layouts) and one-time kernel-layout prep
# ---------------------------------------------------------------------------
def make_config(input_dim, output_dim, filters=((16, 4, 2),), hidden_dim=256):
    # TODO(synk): only the default single conv block (filters=[(16,4,2)]) is
    # implemented; deeper filter stacks would chain additional fused stages.
    assert len(filters) == 1
    cout, ksz, stride = filters[0]
    cin = input_dim[2]
    H, W = input_dim[0], input_dim[1]
    OH = (H - ksz) // stride + 1
    OW = (W - ksz) // stride + 1
    K = cin * ksz * ksz          # im2col features per spatial position
    P = OH * OW                  # spatial positions per sample
    KT = P * K                   # im2col features per sample
    return dict(
        cin=cin, cout=cout, ksz=ksz, stride=stride, H=H, W=W, OH=OH, OW=OW,
        K=K, P=P, KT=KT, KT_pad=_round_up(KT, 128),
        F=P * cout,              # conv_rep (torch flatten size)
        output_dim=output_dim, O_pad=_round_up(output_dim, 128),
        hidden_dim=hidden_dim,
    )


def init_params(key, cfg):
    """PyTorch-layout parameters (Conv2d: (O,I,KH,KW); Linear: (out,in))."""
    cout, cin, ksz = cfg["cout"], cfg["cin"], cfg["ksz"]
    conv_rep = cfg["F"]
    hd, od = cfg["hidden_dim"], cfg["output_dim"]
    keys = jax.random.split(key, 8)
    s = 0.1
    return {
        "w_conv": s * jax.random.normal(keys[0], (cout, cin, ksz, ksz), jnp.float32),
        "b_conv": s * jax.random.normal(keys[1], (cout,), jnp.float32),
        "w_fc1": s * jax.random.normal(keys[2], (hd, conv_rep), jnp.float32),
        "b_fc1": s * jax.random.normal(keys[3], (hd,), jnp.float32),
        "w_fc2": s * jax.random.normal(keys[4], (hd, hd), jnp.float32),
        "b_fc2": s * jax.random.normal(keys[5], (hd,), jnp.float32),
        "w_fc3": s * jax.random.normal(keys[6], (od, hd), jnp.float32),
        "b_fc3": s * jax.random.normal(keys[7], (od,), jnp.float32),
    }


def prepare_params(params, cfg):
    """One-time weight re-layout (never per forward call).

    * Conv weight -> block-diagonal (KT_pad, F): spatial position p owns rows
      [p*K,(p+1)*K) and columns [p*Cout,(p+1)*Cout); trailing KT_pad-KT rows are
      zero (lane alignment of the im2col stream).  The conv matmul therefore
      emits the flattened per-sample feature vector directly, lane-dense.
    * fc1 rows absorb the torch NCHW flatten permutation: torch order is
      c*P + p, our activation order is p*Cout + c.
    * fc3 output padded to 128 lanes for dense stores; sliced back outside.
    """
    cout, K, P = cfg["cout"], cfg["K"], cfg["P"]
    KT, KT_pad, F = cfg["KT"], cfg["KT_pad"], cfg["F"]
    OH, OW = cfg["OH"], cfg["OW"]
    O, O_pad = cfg["output_dim"], cfg["O_pad"]
    H1 = params["w_fc1"].shape[0]
    H2 = params["w_fc2"].shape[0]

    # (Cout, Cin, KH, KW) -> (K, Cout), rows in (Cin, KH, KW) order — identical
    # to the feature order produced by conv_general_dilated_patches.
    w_kc = params["w_conv"].reshape(cout, K).T.astype(jnp.float32)
    eye_p = jnp.eye(P, dtype=jnp.float32)
    w_big = jnp.einsum("pq,kc->pkqc", eye_p, w_kc).reshape(KT, F)
    w_big = jnp.pad(w_big, ((0, KT_pad - KT), (0, 0))).astype(jnp.bfloat16)
    b_big = jnp.tile(params["b_conv"].astype(jnp.float32), P).reshape(1, F)

    w1 = params["w_fc1"].reshape(H1, cout, OH, OW).transpose(0, 2, 3, 1)
    w1 = w1.reshape(H1, F).T.astype(jnp.bfloat16)                  # (F, H1)
    b1 = params["b_fc1"].reshape(1, H1).astype(jnp.float32)

    w2 = params["w_fc2"].T.astype(jnp.bfloat16)                    # (H1, H2)
    b2 = params["b_fc2"].reshape(1, H2).astype(jnp.float32)

    w3 = jnp.pad(params["w_fc3"].T, ((0, 0), (0, O_pad - O))).astype(jnp.bfloat16)
    b3 = jnp.pad(params["b_fc3"], (0, O_pad - O)).reshape(1, O_pad).astype(jnp.float32)

    return dict(w_big=w_big, b_big=b_big, w1=w1, b1=b1, w2=w2, b2=b2,
                w3=w3, b3=b3)


# ---------------------------------------------------------------------------
# Forward
# ---------------------------------------------------------------------------
def _choose_batch_tile(n):
    """Batch tile: multiple of 8, divides round_up(n, 8) (no extra batch pad),
    capped at 256, and leaving >=2 grid steps whenever there is enough work so
    the v7x second TensorCore and DMA/compute overlap are actually used."""
    n8 = _round_up(n, 8)
    if n8 <= 8:
        return 8, 8            # cannot split below one 8-row sublane group
    tb = 8
    cap = min(256, n8 // 2)    # guarantee >= 2 grid steps
    d = 8
    while d <= cap:
        if n8 % d == 0:
            tb = d
        d += 8
    return tb, n8


def convnet_forward(x_nchw, prep, cfg):
    N = x_nchw.shape[0]
    TB, N_pad = _choose_batch_tile(N)

    # im2col patches via XLA (layout plumbing only). Feature order (C, KH, KW)
    # matches the torch Conv2d weight reshape used in prepare_params.
    # TODO(synk): the bf16 patches are still materialized once in HBM by XLA;
    # building them in-kernel from the raw NCHW tile would need strided
    # in-kernel gathers/relayouts and is not worth the complexity here.
    patches = jax.lax.conv_general_dilated_patches(
        x_nchw.astype(jnp.bfloat16),
        (cfg["ksz"], cfg["ksz"]), (cfg["stride"], cfg["stride"]),
        "VALID", dimension_numbers=("NCHW", "OIHW", "NHWC"))      # (N, OH, OW, K)
    cols = patches.reshape(N, cfg["KT"])                          # (N, P*K), free
    cols = jnp.pad(cols, ((0, N_pad - N), (0, cfg["KT_pad"] - cfg["KT"])))

    out = fused_convnet(cols, prep["w_big"], prep["b_big"],
                        prep["w1"], prep["b1"], prep["w2"], prep["b2"],
                        prep["w3"], prep["b3"], tile_rows=TB)
    return out[:N, :cfg["output_dim"]]


# ---------------------------------------------------------------------------
def _reference_forward(x, params, cfg):
    """Pure-JAX f32 reference reproducing the PyTorch forward for validation."""
    s = cfg["stride"]
    y = jax.lax.conv_general_dilated(
        x, params["w_conv"], (s, s), "VALID",
        dimension_numbers=("NCHW", "OIHW", "NCHW"))
    y = jnp.maximum(y + params["b_conv"][None, :, None, None], 0.0)
    y = y.reshape(y.shape[0], -1)                       # torch.flatten(x, 1, -1)
    y = jnp.maximum(y @ params["w_fc1"].T + params["b_fc1"], 0.0)
    y = jnp.maximum(y @ params["w_fc2"].T + params["b_fc2"], 0.0)
    y = y @ params["w_fc3"].T + params["b_fc3"]
    return y


if __name__ == "__main__":
    # Small shapes consistent with the module:
    #   input_dim=(H=16, W=16, C=4), filters=[(16,4,2)], hidden_dim=32,
    #   output_dim=8, batch=2.  conv_rep = 7*7*16 = 784.
    batch = 2
    input_dim = (16, 16, 4)
    output_dim = 8
    hidden_dim = 32
    filters = ((16, 4, 2),)

    key = jax.random.PRNGKey(0)
    kx, kp = jax.random.split(key)
    x = jax.random.normal(
        kx, (batch, input_dim[2], input_dim[0], input_dim[1]), jnp.float32)  # NCHW

    cfg = make_config(input_dim, output_dim, filters, hidden_dim)
    params = init_params(kp, cfg)
    prep = prepare_params(params, cfg)           # one-time weight layout prep

    fwd = jax.jit(functools.partial(convnet_forward, cfg=cfg))
    out = jax.block_until_ready(fwd(x, prep))
    assert out.shape == (batch, output_dim), out.shape

    ref = jax.block_until_ready(_reference_forward(x, params, cfg))
    # bf16 MXU operands with f32 accumulation: 2e-2 tolerance.
    assert jnp.allclose(out, ref, rtol=2e-2, atol=2e-2), (out, ref)

    print("KERNEL_OK")
</pallas_src>

<mosaic_0001>
module attributes {stable_mosaic.version = 11 : i64} {
  func.func @_fused_convnet_kernel(%arg0: i32, %arg1: memref<8x3200xbf16, #tpu.memory_space<vmem>>, %arg2: memref<3200x784xbf16, #tpu.memory_space<vmem>>, %arg3: memref<1x784xf32, #tpu.memory_space<vmem>>, %arg4: memref<784x32xbf16, #tpu.memory_space<vmem>>, %arg5: memref<1x32xf32, #tpu.memory_space<vmem>>, %arg6: memref<32x32xbf16, #tpu.memory_space<vmem>>, %arg7: memref<1x32xf32, #tpu.memory_space<vmem>>, %arg8: memref<32x128xbf16, #tpu.memory_space<vmem>>, %arg9: memref<1x128xf32, #tpu.memory_space<vmem>>, %arg10: memref<8x128xf32, #tpu.memory_space<vmem>>) attributes {dimension_semantics = [#tpu.dimension_semantics<parallel>], iteration_bounds = array<i64: 1>, scalar_prefetch = 0 : i64, scratch_operands = 0 : i64, tpu.core_type = #tpu.core_type<tc>, window_params = [{transform_indices = @transform_0, window_bounds = array<i64: 8, 3200>}, {pipeline_mode = #tpu.pipeline_mode<synchronous>, transform_indices = @transform_1, window_bounds = array<i64: 3200, 784>}, {pipeline_mode = #tpu.pipeline_mode<synchronous>, transform_indices = @transform_2, window_bounds = array<i64: 1, 784>}, {pipeline_mode = #tpu.pipeline_mode<synchronous>, transform_indices = @transform_3, window_bounds = array<i64: 784, 32>}, {pipeline_mode = #tpu.pipeline_mode<synchronous>, transform_indices = @transform_4, window_bounds = array<i64: 1, 32>}, {pipeline_mode = #tpu.pipeline_mode<synchronous>, transform_indices = @transform_5, window_bounds = array<i64: 32, 32>}, {pipeline_mode = #tpu.pipeline_mode<synchronous>, transform_indices = @transform_6, window_bounds = array<i64: 1, 32>}, {pipeline_mode = #tpu.pipeline_mode<synchronous>, transform_indices = @transform_7, window_bounds = array<i64: 32, 128>}, {pipeline_mode = #tpu.pipeline_mode<synchronous>, transform_indices = @transform_8, window_bounds = array<i64: 1, 128>}, {transform_indices = @transform_9, window_bounds = array<i64: 8, 128>}]} {
    %c0 = arith.constant 0 : index
    %c0_0 = arith.constant 0 : index
    %0 = vector.load %arg1[%c0, %c0_0] : memref<8x3200xbf16, #tpu.memory_space<vmem>>, vector<8x3200xbf16>
    %c0_1 = arith.constant 0 : index
    %c0_2 = arith.constant 0 : index
    %1 = vector.load %arg2[%c0_1, %c0_2] : memref<3200x784xbf16, #tpu.memory_space<vmem>>, vector<3200x784xbf16>
    %cst = arith.constant dense<0.000000e+00> : vector<8x784xf32>
    %2 = tpu.matmul %0, %1, %cst {dimension_numbers = #tpu.dot_dimension_numbers<[1], [0], [0], [1], [0, 0, 1, 1], [], []>} : vector<8x3200xbf16>, vector<3200x784xbf16>, vector<8x784xf32> -> vector<8x784xf32>
    %c0_3 = arith.constant 0 : index
    %c0_4 = arith.constant 0 : index
    %3 = vector.load %arg3[%c0_3, %c0_4] : memref<1x784xf32, #tpu.memory_space<vmem>>, vector<1x784xf32>
    %4 = vector.broadcast %3 : vector<1x784xf32> to vector<8x784xf32>
    %5 = arith.addf %2, %4 : vector<8x784xf32>
    %cst_5 = arith.constant 0.000000e+00 : f32
    %6 = vector.broadcast %cst_5 : f32 to vector<8x784xf32>
    %7 = arith.maximumf %5, %6 : vector<8x784xf32>
    %8 = arith.truncf %7 : vector<8x784xf32> to vector<8x784xbf16>
    %c0_6 = arith.constant 0 : index
    %c0_7 = arith.constant 0 : index
    %9 = vector.load %arg4[%c0_6, %c0_7] : memref<784x32xbf16, #tpu.memory_space<vmem>>, vector<784x32xbf16>
    %cst_8 = arith.constant dense<0.000000e+00> : vector<8x32xf32>
    %10 = tpu.matmul %8, %9, %cst_8 {dimension_numbers = #tpu.dot_dimension_numbers<[1], [0], [0], [1], [0, 0, 1, 1], [], []>} : vector<8x784xbf16>, vector<784x32xbf16>, vector<8x32xf32> -> vector<8x32xf32>
    %c0_9 = arith.constant 0 : index
    %c0_10 = arith.constant 0 : index
    %11 = vector.load %arg5[%c0_9, %c0_10] : memref<1x32xf32, #tpu.memory_space<vmem>>, vector<1x32xf32>
    %12 = vector.broadcast %11 : vector<1x32xf32> to vector<8x32xf32>
    %13 = arith.addf %10, %12 : vector<8x32xf32>
    %cst_11 = arith.constant 0.000000e+00 : f32
    %14 = vector.broadcast %cst_11 : f32 to vector<8x32xf32>
    %15 = arith.maximumf %13, %14 : vector<8x32xf32>
    %16 = arith.truncf %15 : vector<8x32xf32> to vector<8x32xbf16>
    %c0_12 = arith.constant 0 : index
    %c0_13 = arith.constant 0 : index
    %17 = vector.load %arg6[%c0_12, %c0_13] : memref<32x32xbf16, #tpu.memory_space<vmem>>, vector<32x32xbf16>
    %cst_14 = arith.constant dense<0.000000e+00> : vector<8x32xf32>
    %18 = tpu.matmul %16, %17, %cst_14 {dimension_numbers = #tpu.dot_dimension_numbers<[1], [0], [0], [1], [0, 0, 1, 1], [], []>} : vector<8x32xbf16>, vector<32x32xbf16>, vector<8x32xf32> -> vector<8x32xf32>
    %c0_15 = arith.constant 0 : index
    %c0_16 = arith.constant 0 : index
    %19 = vector.load %arg7[%c0_15, %c0_16] : memref<1x32xf32, #tpu.memory_space<vmem>>, vector<1x32xf32>
    %20 = vector.broadcast %19 : vector<1x32xf32> to vector<8x32xf32>
    %21 = arith.addf %18, %20 : vector<8x32xf32>
    %cst_17 = arith.constant 0.000000e+00 : f32
    %22 = vector.broadcast %cst_17 : f32 to vector<8x32xf32>
    %23 = arith.maximumf %21, %22 : vector<8x32xf32>
    %24 = arith.truncf %23 : vector<8x32xf32> to vector<8x32xbf16>
    %c0_18 = arith.constant 0 : index
    %c0_19 = arith.constant 0 : index
    %25 = vector.load %arg8[%c0_18, %c0_19] : memref<32x128xbf16, #tpu.memory_space<vmem>>, vector<32x128xbf16>
    %cst_20 = arith.constant dense<0.000000e+00> : vector<8x128xf32>
    %26 = tpu.matmul %24, %25, %cst_20 {dimension_numbers = #tpu.dot_dimension_numbers<[1], [0], [0], [1], [0, 0, 1, 1], [], []>} : vector<8x32xbf16>, vector<32x128xbf16>, vector<8x128xf32> -> vector<8x128xf32>
    %c0_21 = arith.constant 0 : index
    %c0_22 = arith.constant 0 : index
    %27 = vector.load %arg9[%c0_21, %c0_22] : memref<1x128xf32, #tpu.memory_space<vmem>>, vector<1x128xf32>
    %28 = vector.broadcast %27 : vector<1x128xf32> to vector<8x128xf32>
    %29 = arith.addf %26, %28 : vector<8x128xf32>
    %c0_23 = arith.constant 0 : index
    %c0_24 = arith.constant 0 : index
    %30 = vector.load %arg10[%c0_23, %c0_24] : memref<8x128xf32, #tpu.memory_space<vmem>>, vector<8x128xf32>
    tpu.vector_store %arg10[%c0_23, %c0_24], %29 {strides = array<i32>} : memref<8x128xf32, #tpu.memory_space<vmem>>, vector<8x128xf32>,
    return
  }
  func.func @transform_0(%arg0: i32) -> (i32, i32) {
    %c0_i32 = arith.constant 0 : i32
    %c0_i32_0 = arith.constant 0 : i32
    return %arg0, %c0_i32 : i32, i32
  }
  func.func @transform_1(%arg0: i32) -> (i32, i32) {
    %c0_i32 = arith.constant 0 : i32
    %c0_i32_0 = arith.constant 0 : i32
    %c0_i32_1 = arith.constant 0 : i32
    return %c0_i32, %c0_i32_0 : i32, i32
  }
  func.func @transform_2(%arg0: i32) -> (i32, i32) {
    %c0_i32 = arith.constant 0 : i32
    %c0_i32_0 = arith.constant 0 : i32
    %c0_i32_1 = arith.constant 0 : i32
    return %c0_i32, %c0_i32_0 : i32, i32
  }
  func.func @transform_3(%arg0: i32) -> (i32, i32) {
    %c0_i32 = arith.constant 0 : i32
    %c0_i32_0 = arith.constant 0 : i32
    %c0_i32_1 = arith.constant 0 : i32
    return %c0_i32, %c0_i32_0 : i32, i32
  }
  func.func @transform_4(%arg0: i32) -> (i32, i32) {
    %c0_i32 = arith.constant 0 : i32
    %c0_i32_0 = arith.constant 0 : i32
    %c0_i32_1 = arith.constant 0 : i32
    return %c0_i32, %c0_i32_0 : i32, i32
  }
  func.func @transform_5(%arg0: i32) -> (i32, i32) {
    %c0_i32 = arith.constant 0 : i32
    %c0_i32_0 = arith.constant 0 : i32
    %c0_i32_1 = arith.constant 0 : i32
    return %c0_i32, %c0_i32_0 : i32, i32
  }
  func.func @transform_6(%arg0: i32) -> (i32, i32) {
    %c0_i32 = arith.constant 0 : i32
    %c0_i32_0 = arith.constant 0 : i32
    %c0_i32_1 = arith.constant 0 : i32
    return %c0_i32, %c0_i32_0 : i32, i32
  }
  func.func @transform_7(%arg0: i32) -> (i32, i32) {
    %c0_i32 = arith.constant 0 : i32
    %c0_i32_0 = arith.constant 0 : i32
    %c0_i32_1 = arith.constant 0 : i32
    return %c0_i32, %c0_i32_0 : i32, i32
  }
  func.func @transform_8(%arg0: i32) -> (i32, i32) {
    %c0_i32 = arith.constant 0 : i32
    %c0_i32_0 = arith.constant 0 : i32
    %c0_i32_1 = arith.constant 0 : i32
    return %c0_i32, %c0_i32_0 : i32, i32
  }
  func.func @transform_9(%arg0: i32) -> (i32, i32) {
    %c0_i32 = arith.constant 0 : i32
    %c0_i32_0 = arith.constant 0 : i32
    return %arg0, %c0_i32 : i32, i32
  }
}

</mosaic_0001>

<bundles_post_ra>
// kernel: convnet_forward.1
= control target key start
LH: loop header
LB: loop body
LE: loop exit
PB: predicated region body
PF: predicated region fallthrough
CT: control target
= control target key end

     0   :  { %vm11635_vm0 = vcmask 130048   ;;  %vm11752_vm1 = vcmask 261120   ;;  %s28127_s1 = inlined_call_operand.vmem [shape: bf16[3200,784], index: 1, kind: input, shape index: {}]   ;;  %s28128_s0 = inlined_call_operand.vmem [shape: bf16[8,3200], index: 0, kind: input, shape index: {}]   ;;  %s28129_s2 = inlined_call_operand.vmem [shape: f32[1,784], index: 2, kind: input, shape index: {}]   ;;  %s28130_s3 = inlined_call_operand.vmem [shape: bf16[784,32], index: 3, kind: input, shape index: {}]   ;;  %s28131_s4 = inlined_call_operand.vmem [shape: f32[1,32], index: 4, kind: input, shape index: {}]   ;;  %s28132_s6 = inlined_call_operand.vmem [shape: f32[1,32], index: 6, kind: input, shape index: {}]   ;;  %s28133_s5 = inlined_call_operand.vmem [shape: bf16[32,32], index: 5, kind: input, shape index: {}]   ;;  %s28134_s7 = inlined_call_operand.vmem [shape: bf16[32,128], index: 7, kind: input, shape index: {}]   ;;  %s28135_s8 = inlined_call_operand.vmem [shape: f32[1,128], index: 8, kind: input, shape index: {}]   ;;  %s28136_s9 = inlined_call_operand.vmem [shape: f32[8,128], index: 9, kind: output, shape index: {}]  }
   0x1   :  { %v12010_v0 = vld [vmem:[%s28127_s1 + $0x188] sm:$0xf]  ;;  %v17679_v1 = vld [vmem:[%s28127_s1 + $0x1a0] sm:$0xf0]  ;;  %v11982_v11 = vld [vmem:[%s28127_s1 + $0x150] sm:$0xf] }
   0x2   :  { %v12234_v2 = vld [vmem:[%s28127_s1 + $0x348] sm:$0xf]  ;;  %v12011_v3 = vor.u32 %v17679_v1, %v12010_v0  ;;  %v17735_v4 = vld [vmem:[%s28127_s1 + $0x360] sm:$0xf0]  ;;  %v17672_v13 = vld [vmem:[%s28127_s1 + $0x168] sm:$0xf0] }
   0x3   :  { %v12458_v5 = vld [vmem:[%s28127_s1 + $0x508] sm:$0xf]  ;;  %v17791_v6 = vld [vmem:[%s28127_s1 + $0x520] sm:$0xf0]  ;;  %v12235_v7 = vor.u32 %v17735_v4, %v12234_v2  ;;  %v12206_v14 = vld [vmem:[%s28127_s1 + $0x310] sm:$0xf]  ;;  %v11983_v16 = vor.u32 %v17672_v13, %v11982_v11 }
   0x4   :  { %v12459_v8 = vor.u32 %v17791_v6, %v12458_v5  ;;  %v12682_v9 = vld [vmem:[%s28127_s1 + $0x6c8] sm:$0xf]  ;;  %v17847_v10 = vld [vmem:[%s28127_s1 + $0x6e0] sm:$0xf0]  ;;  %8950 = vmatpush.bf16.msra.mxu0 %v12011_v3  ;;  %v17728_v15 = vld [vmem:[%s28127_s1 + $0x328] sm:$0xf0] }
   0x5   :  { %v12683_v12 = vor.u32 %v17847_v10, %v12682_v9  ;;  %8963 = vmatpush.bf16.msra.mxu1 %v12235_v7  ;;  %v12207_v17 = vor.u32 %v17728_v15, %v12206_v14  ;;  %v12430_v18 = vld [vmem:[%s28127_s1 + $0x4d0] sm:$0xf]  ;;  %v17784_v19 = vld [vmem:[%s28127_s1 + $0x4e8] sm:$0xf0]  ;;  %v11954_v23 = vld [vmem:[%s28127_s1 + $0x118] sm:$0xf] }
   0x6   :  { %8976 = vmatpush.bf16.msra.mxu2 %v12459_v8  ;;  %v12654_v20 = vld [vmem:[%s28127_s1 + $0x690] sm:$0xf]  ;;  %v12431_v21 = vor.u32 %v17784_v19, %v12430_v18  ;;  %v17840_v22 = vld [vmem:[%s28127_s1 + $0x6a8] sm:$0xf0]  ;;  %v17665_v24 = vld [vmem:[%s28127_s1 + $0x130] sm:$0xf0] }
   0x7   :  { %8989 = vmatpush.bf16.msra.mxu3 %v12683_v12  ;;  %v12655_v25 = vor.u32 %v17840_v22, %v12654_v20  ;;  %v12178_v26 = vld [vmem:[%s28127_s1 + $0x2d8] sm:$0xf]  ;;  %v17721_v27 = vld [vmem:[%s28127_s1 + $0x2f0] sm:$0xf0]  ;;  %v11955_v29 = vor.u32 %v17665_v24, %v11954_v23  ;;  %v11926_v35 = vld [vmem:[%s28127_s1 + $0xe0] sm:$0xf] }
   0x8   :  { %v12402_v28 = vld [vmem:[%s28127_s1 + $0x498] sm:$0xf]  ;;  %8951 = vmatpush.bf16.msra.mxu0 %v11983_v16  ;;  %v17777_v30 = vld [vmem:[%s28127_s1 + $0x4b0] sm:$0xf0]  ;;  %v12179_v33 = vor.u32 %v17721_v27, %v12178_v26  ;;  %v17658_v36 = vld [vmem:[%s28127_s1 + $0xf8] sm:$0xf0] }
   0x9   :  { %v12626_v31 = vld [vmem:[%s28127_s1 + $0x658] sm:$0xf]  ;;  %v17833_v32 = vld [vmem:[%s28127_s1 + $0x670] sm:$0xf0]  ;;  %8964 = vmatpush.bf16.msra.mxu1 %v12207_v17  ;;  %v12403_v34 = vor.u32 %v17777_v30, %v12402_v28  ;;  %v12150_v37 = vld [vmem:[%s28127_s1 + $0x2a0] sm:$0xf]  ;;  %v11927_v44 = vor.u32 %v17658_v36, %v11926_v35 }
   0xa   :  { %8977 = vmatpush.bf16.msra.mxu2 %v12431_v21  ;;  %v12627_v38 = vor.u32 %v17833_v32, %v12626_v31  ;;  %v17714_v39 = vld [vmem:[%s28127_s1 + $0x2b8] sm:$0xf0]  ;;  %v12374_v40 = vld [vmem:[%s28127_s1 + $0x460] sm:$0xf]  ;;  %v11898_v47 = vld [vmem:[%s28127_s1 + $0xa8] sm:$0xf] }
   0xb   :  { %8990 = vmatpush.bf16.msra.mxu3 %v12655_v25  ;;  %v17770_v41 = vld [vmem:[%s28127_s1 + $0x478] sm:$0xf0]  ;;  %v12598_v42 = vld [vmem:[%s28127_s1 + $0x620] sm:$0xf]  ;;  %v12151_v45 = vor.u32 %v17714_v39, %v12150_v37  ;;  %v17651_v48 = vld [vmem:[%s28127_s1 + $0xc0] sm:$0xf0] }
   0xc   :  { %v17826_v43 = vld [vmem:[%s28127_s1 + $0x638] sm:$0xf0]  ;;  %8952 = vmatpush.bf16.msra.mxu0 %v11955_v29  ;;  %v12375_v46 = vor.u32 %v17770_v41, %v12374_v40  ;;  %v12122_v49 = vld [vmem:[%s28127_s1 + $0x268] sm:$0xf]  ;;  %v17707_v51 = vld [vmem:[%s28127_s1 + $0x280] sm:$0xf0]  ;;  %v11899_v56 = vor.u32 %v17651_v48, %v11898_v47 }
   0xd   :  { %8965 = vmatpush.bf16.msra.mxu1 %v12179_v33  ;;  %v12599_v50 = vor.u32 %v17826_v43, %v12598_v42  ;;  %v12346_v52 = vld [vmem:[%s28127_s1 + $0x428] sm:$0xf]  ;;  %v17763_v53 = vld [vmem:[%s28127_s1 + $0x440] sm:$0xf0]  ;;  %v12123_v57 = vor.u32 %v17707_v51, %v12122_v49  ;;  %v11870_v59 = vld [vmem:[%s28127_s1 + $0x70] sm:$0xf] }
   0xe   :  { %8978 = vmatpush.bf16.msra.mxu2 %v12403_v34  ;;  %v12570_v54 = vld [vmem:[%s28127_s1 + $0x5e8] sm:$0xf]  ;;  %v17819_v55 = vld [vmem:[%s28127_s1 + $0x600] sm:$0xf0]  ;;  %v12347_v58 = vor.u32 %v17763_v53, %v12346_v52  ;;  %v17644_v60 = vld [vmem:[%s28127_s1 + $0x88] sm:$0xf0] }
   0xf   :  { %8991 = vmatpush.bf16.msra.mxu3 %v12627_v38  ;;  %v12094_v61 = vld [vmem:[%s28127_s1 + $0x230] sm:$0xf]  ;;  %v12571_v62 = vor.u32 %v17819_v55, %v12570_v54  ;;  %v17700_v63 = vld [vmem:[%s28127_s1 + $0x248] sm:$0xf0]  ;;  %v11871_v4 = vor.u32 %v17644_v60, %v11870_v59  ;;  %v11842_v7 = vld [vmem:[%s28127_s1 + $0x38] sm:$0xf] }
  0x10   :  { %8953 = vmatpush.bf16.msra.mxu0 %v11927_v44  ;;  %v12318_v0 = vld [vmem:[%s28127_s1 + $0x3f0] sm:$0xf]  ;;  %v17756_v1 = vld [vmem:[%s28127_s1 + $0x408] sm:$0xf0]  ;;  %v12095_v5 = vor.u32 %v17700_v63, %v12094_v61  ;;  %v17637_v8 = vld [vmem:[%s28127_s1 + $0x50] sm:$0xf0] }
  0x11   :  { %8966 = vmatpush.bf16.msra.mxu1 %v12151_v45  ;;  %v12542_v2 = vld [vmem:[%s28127_s1 + $0x5b0] sm:$0xf]  ;;  %v17812_v3 = vld [vmem:[%s28127_s1 + $0x5c8] sm:$0xf0]  ;;  %v12319_v6 = vor.u32 %v17756_v1, %v12318_v0  ;;  %v12066_v9 = vld [vmem:[%s28127_s1 + $0x1f8] sm:$0xf]  ;;  %v11843_v16 = vor.u32 %v17637_v8, %v11842_v7 }
  0x12   :  { %8979 = vmatpush.bf16.msra.mxu2 %v12375_v46  ;;  %v12543_v10 = vor.u32 %v17812_v3, %v12542_v2  ;;  %v17693_v11 = vld [vmem:[%s28127_s1 + $0x210] sm:$0xf0]  ;;  %v12290_v12 = vld [vmem:[%s28127_s1 + $0x3b8] sm:$0xf]  ;;  %v11814_v17 = vld [vmem:[%s28127_s1] sm:$0xf] }
  0x13   :  { %8992 = vmatpush.bf16.msra.mxu3 %v12599_v50  ;;  %v17749_v13 = vld [vmem:[%s28127_s1 + $0x3d0] sm:$0xf0]  ;;  %v12514_v14 = vld [vmem:[%s28127_s1 + $0x578] sm:$0xf]  ;;  %v17630_v18 = vld [vmem:[%s28127_s1 + $0x18] sm:$0xf0]  ;;  %v12067_v19 = vor.u32 %v17693_v11, %v12066_v9 }
  0x14   :  { %8954 = vmatpush.bf16.msra.mxu0 %v11899_v56  ;;  %v17805_v15 = vld [vmem:[%s28127_s1 + $0x590] sm:$0xf0]  ;;  %v12291_v20 = vor.u32 %v17749_v13, %v12290_v12  ;;  %v12038_v21 = vld [vmem:[%s28127_s1 + $0x1c0] sm:$0xf]  ;;  %v17686_v22 = vld [vmem:[%s28127_s1 + $0x1d8] sm:$0xf0]  ;;  %v11815_v31 = vor.u32 %v17630_v18, %v11814_v17 }
  0x15   :  { %8967 = vmatpush.bf16.msra.mxu1 %v12123_v57  ;;  %v12262_v23 = vld [vmem:[%s28127_s1 + $0x380] sm:$0xf]  ;;  %v12515_v24 = vor.u32 %v17805_v15, %v12514_v14  ;;  %v17742_v25 = vld [vmem:[%s28127_s1 + $0x398] sm:$0xf0]  ;;  %v12906_v28 = vld [vmem:[%s28127_s1 + $0x888] sm:$0xf]  ;;  %v12039_v35 = vor.u32 %v17686_v22, %v12038_v21 }
  0x16   :  { %8980 = vmatpush.bf16.msra.mxu2 %v12347_v58  ;;  %v12486_v26 = vld [vmem:[%s28127_s1 + $0x540] sm:$0xf]  ;;  %v17798_v27 = vld [vmem:[%s28127_s1 + $0x558] sm:$0xf0]  ;;  %v17903_v29 = vld [vmem:[%s28127_s1 + $0x8a0] sm:$0xf0]  ;;  %v12263_v36 = vor.u32 %v17742_v25, %v12262_v23 }
  0x17   :  { %8993 = vmatpush.bf16.msra.mxu3 %v12571_v62  ;;  %v13130_v30 = vld [vmem:[%s28127_s1 + $0xa48] sm:$0xf]  ;;  %v17959_v32 = vld [vmem:[%s28127_s1 + $0xa60] sm:$0xf0]  ;;  %v12487_v39 = vor.u32 %v17798_v27, %v12486_v26  ;;  %v12907_v40 = vor.u32 %v17903_v29, %v12906_v28  ;;  %v12878_v43 = vld [vmem:[%s28127_s1 + $0x850] sm:$0xf] }
  0x18   :  { %8955 = vmatpush.bf16.msra.mxu0 %v11871_v4  ;;  %v13354_v33 = vld [vmem:[%s28127_s1 + $0xc08] sm:$0xf]  ;;  %v18015_v34 = vld [vmem:[%s28127_s1 + $0xc20] sm:$0xf0]  ;;  %v13131_v41 = vor.u32 %v17959_v32, %v13130_v30  ;;  %v17896_v44 = vld [vmem:[%s28127_s1 + $0x868] sm:$0xf0] }
  0x19   :  { %8968 = vmatpush.bf16.msra.mxu1 %v12095_v5  ;;  %v13578_v37 = vld [vmem:[%s28127_s1 + $0xdc8] sm:$0xf]  ;;  %v18071_v38 = vld [vmem:[%s28127_s1 + $0xde0] sm:$0xf0]  ;;  %v13355_v42 = vor.u32 %v18015_v34, %v13354_v33  ;;  %v13102_v45 = vld [vmem:[%s28127_s1 + $0xa10] sm:$0xf]  ;;  %v12879_v52 = vor.u32 %v17896_v44, %v12878_v43 }
  0x1a   :  { %8981 = vmatpush.bf16.msra.mxu2 %v12319_v6  ;;  %v13579_v46 = vor.u32 %v18071_v38, %v13578_v37  ;;  %v17952_v47 = vld [vmem:[%s28127_s1 + $0xa28] sm:$0xf0]  ;;  %v13326_v48 = vld [vmem:[%s28127_s1 + $0xbd0] sm:$0xf]  ;;  %v12850_v53 = vld [vmem:[%s28127_s1 + $0x818] sm:$0xf] }
  0x1b   :  { %8994 = vmatpush.bf16.msra.mxu3 %v12543_v10  ;;  %v18008_v49 = vld [vmem:[%s28127_s1 + $0xbe8] sm:$0xf0]  ;;  %v13550_v50 = vld [vmem:[%s28127_s1 + $0xd90] sm:$0xf]  ;;  %v13103_v54 = vor.u32 %v17952_v47, %v13102_v45  ;;  %v17889_v56 = vld [vmem:[%s28127_s1 + $0x830] sm:$0xf0] }
  0x1c   :  { %8956 = vmatpush.bf16.msra.mxu0 %v11843_v16  ;;  %v18064_v51 = vld [vmem:[%s28127_s1 + $0xda8] sm:$0xf0]  ;;  %v13327_v55 = vor.u32 %v18008_v49, %v13326_v48  ;;  %v13074_v57 = vld [vmem:[%s28127_s1 + $0x9d8] sm:$0xf]  ;;  %v17945_v58 = vld [vmem:[%s28127_s1 + $0x9f0] sm:$0xf0]  ;;  %v12851_v0 = vor.u32 %v17889_v56, %v12850_v53 }
  0x1d   :  { %8969 = vmatpush.bf16.msra.mxu1 %v12067_v19  ;;  %v13551_v59 = vor.u32 %v18064_v51, %v13550_v50  ;;  %v13298_v60 = vld [vmem:[%s28127_s1 + $0xb98] sm:$0xf]  ;;  %v18001_v61 = vld [vmem:[%s28127_s1 + $0xbb0] sm:$0xf0]  ;;  %v13075_v1 = vor.u32 %v17945_v58, %v13074_v57  ;;  %v34_v2 = vld [vmem:[%s28128_s0 + $0x8] sm:$0xff] }
  0x1e   :  { %8982 = vmatpush.bf16.msra.mxu2 %v12291_v20  ;;  %v13522_v62 = vld [vmem:[%s28127_s1 + $0xd58] sm:$0xf]  ;;  %v18057_v63 = vld [vmem:[%s28127_s1 + $0xd70] sm:$0xf0]  ;;  %v33_v3 = vld [vmem:[%s28128_s0] sm:$0xff]  ;;  %v13299_v4 = vor.u32 %v18001_v61, %v13298_v60  ;;  %v1677_v8 = vunpack.c.l.b16 %v34_v2  ;;  %v1678_v10 = vunpack.c.h.b16 %v34_v2 }
  0x1f   :  { %8995 = vmatpush.bf16.msra.mxu3 %v12515_v24  ;;  %v12822_v5 = vld [vmem:[%s28127_s1 + $0x7e0] sm:$0xf]  ;;  %v17882_v6 = vld [vmem:[%s28127_s1 + $0x7f8] sm:$0xf0]  ;;  %v1675_v9 = vunpack.c.l.b16 %v33_v3  ;;  %v13523_v11 = vor.u32 %v18057_v63, %v13522_v62  ;;  %v1676_v15 = vunpack.c.h.b16 %v33_v3  ;;  %v12794_v25 = vld [vmem:[%s28127_s1 + $0x7a8] sm:$0xf] }
  0x20   :  { %8957 = vmatpush.bf16.msra.mxu0 %v11815_v31  ;;  %v13046_v7 = vld [vmem:[%s28127_s1 + $0x9a0] sm:$0xf]  ;;  %v17938_v12 = vld [vmem:[%s28127_s1 + $0x9b8] sm:$0xf0]  ;;  %v19433_v18 = vpack.c.b16 %v1677_v8, %v1677_v8  ;;  %v19437_v20 = vpack.c.b16 %v1678_v10, %v1678_v10  ;;  %v12823_v21 = vor.u32 %v17882_v6, %v12822_v5  ;;  %v17875_v26 = vld [vmem:[%s28127_s1 + $0x7c0] sm:$0xf0] }
  0x21   :  { %8970 = vmatpush.bf16.msra.mxu1 %v12039_v35  ;;  %v13270_v13 = vld [vmem:[%s28127_s1 + $0xb60] sm:$0xf]  ;;  %v17994_v14 = vld [vmem:[%s28127_s1 + $0xb78] sm:$0xf0]  ;;  %v19435_v19 = vpack.c.b16 %v1675_v9, %v1675_v9  ;;  %v19439_v22 = vpack.c.b16 %v1676_v15, %v1676_v15  ;;  %v13047_v23 = vor.u32 %v17938_v12, %v13046_v7  ;;  %v13018_v27 = vld [vmem:[%s28127_s1 + $0x968] sm:$0xf]  ;;  %v12795_v34 = vor.u32 %v17875_v26, %v12794_v25 }
  0x22   :  { %8983 = vmatpush.bf16.msra.mxu2 %v12263_v36  ;;  %v13494_v16 = vld [vmem:[%s28127_s1 + $0xd20] sm:$0xf]  ;;  %v18050_v17 = vld [vmem:[%s28127_s1 + $0xd38] sm:$0xf0]  ;;  %v13271_v24 = vor.u32 %v17994_v14, %v13270_v13  ;;  %v17931_v29 = vld [vmem:[%s28127_s1 + $0x980] sm:$0xf0] }
  0x23   :  { %8996 = vmatpush.bf16.msra.mxu3 %v12487_v39  ;;  %v13495_v28 = vor.u32 %v18050_v17, %v13494_v16  ;;  %v13242_v30 = vld [vmem:[%s28127_s1 + $0xb28] sm:$0xf]  ;;  %v17987_v31 = vld [vmem:[%s28127_s1 + $0xb40] sm:$0xf0]  ;;  %8958 = vmatmul.bf16.vlgmr.msra.gmra.mxu0 %v19435_v19  ;;  %v13019_v35 = vor.u32 %v17931_v29, %v13018_v27  ;;  %v12766_v37 = vld [vmem:[%s28127_s1 + $0x770] sm:$0xf] }
  0x24   :  { %9002 = vmatpush.bf16.msrb.mxu0 %v12907_v40  ;;  %v13466_v32 = vld [vmem:[%s28127_s1 + $0xce8] sm:$0xf]  ;;  %v18043_v33 = vld [vmem:[%s28127_s1 + $0xd00] sm:$0xf0]  ;;  %8971 = vmatmul.bf16.vlgmr.msra.gmra.mxu1 %v19439_v22  ;;  %v13243_v36 = vor.u32 %v17987_v31, %v13242_v30  ;;  %v17868_v38 = vld [vmem:[%s28127_s1 + $0x788] sm:$0xf0] }
  0x25   :  { %9015 = vmatpush.bf16.msrb.mxu1 %v13131_v41  ;;  %8984 = vmatmul.bf16.vlgmr.msra.gmra.mxu2 %v19433_v18  ;;  %v12990_v39 = vld [vmem:[%s28127_s1 + $0x930] sm:$0xf]  ;;  %v13467_v40 = vor.u32 %v18043_v33, %v13466_v32  ;;  %v17924_v41 = vld [vmem:[%s28127_s1 + $0x948] sm:$0xf0]  ;;  %v12738_v49 = vld [vmem:[%s28127_s1 + $0x738] sm:$0xf] }
  0x26   :  { %9028 = vmatpush.bf16.msrb.mxu2 %v13355_v42  ;;  %8997 = vmatmul.bf16.vlgmr.msra.gmra.mxu3 %v19437_v20  ;;  %v13214_v42 = vld [vmem:[%s28127_s1 + $0xaf0] sm:$0xf]  ;;  %v17980_v43 = vld [vmem:[%s28127_s1 + $0xb08] sm:$0xf0]  ;;  %v12991_v47 = vor.u32 %v17924_v41, %v12990_v39  ;;  %v17861_v50 = vld [vmem:[%s28127_s1 + $0x750] sm:$0xf0] }
  0x27   :  { %9041 = vmatpush.bf16.msrb.mxu3 %v13579_v46  ;;  %v13438_v44 = vld [vmem:[%s28127_s1 + $0xcb0] sm:$0xf]  ;;  %v18036_v45 = vld [vmem:[%s28127_s1 + $0xcc8] sm:$0xf0]  ;;  %v12767_v46 = vor.u32 %v17868_v38, %v12766_v37  ;;  %v13215_v48 = vor.u32 %v17980_v43, %v13214_v42  ;;  %v12962_v51 = vld [vmem:[%s28127_s1 + $0x8f8] sm:$0xf] }
  0x28   :  { %9003 = vmatpush.bf16.msrb.mxu0 %v12879_v52  ;;  %v13439_v52 = vor.u32 %v18036_v45, %v13438_v44  ;;  %v17917_v53 = vld [vmem:[%s28127_s1 + $0x910] sm:$0xf0]  ;;  %v13410_v56 = vld [vmem:[%s28127_s1 + $0xc78] sm:$0xf]  ;;  %v12710_v58 = vld [vmem:[%s28127_s1 + $0x700] sm:$0xf] }
  0x29   :  { %9016 = vmatpush.bf16.msrb.mxu1 %v13103_v54  ;;  %v13186_v54 = vld [vmem:[%s28127_s1 + $0xab8] sm:$0xf]  ;;  %v18029_v57 = vld [vmem:[%s28127_s1 + $0xc90] sm:$0xf0]  ;;  %v17854_v60 = vld [vmem:[%s28127_s1 + $0x718] sm:$0xf0]  ;;  %v12963_v63 = vor.u32 %v17917_v53, %v12962_v51 }
  0x2a   :  { %9029 = vmatpush.bf16.msrb.mxu2 %v13327_v55  ;;  %v17973_v55 = vld [vmem:[%s28127_s1 + $0xad0] sm:$0xf0]  ;;  %v12934_v61 = vld [vmem:[%s28127_s1 + $0x8c0] sm:$0xf]  ;;  %v17910_v62 = vld [vmem:[%s28127_s1 + $0x8d8] sm:$0xf0] }
  0x2b   :  { %9042 = vmatpush.bf16.msrb.mxu3 %v13551_v59  ;;  %v12739_v59 = vor.u32 %v17861_v50, %v12738_v49  ;;  %v17966_v2 = vld [vmem:[%s28127_s1 + $0xa98] sm:$0xf0]  ;;  %v13382_v5 = vld [vmem:[%s28127_s1 + $0xc40] sm:$0xf]  ;;  %v35_v7 = vld [vmem:[%s28128_s0 + $0x10] sm:$0xff]  ;;  %v12935_v16 = vor.u32 %v17910_v62, %v12934_v61 }
  0x2c   :  { %9004 = vmatpush.bf16.msrb.mxu0 %v12851_v0  ;;  %v13187_v0 = vor.u32 %v17973_v55, %v13186_v54  ;;  %v36_v3 = vld [vmem:[%s28128_s0 + $0x18] sm:$0xff]  ;;  %v13802_v8 = vld [vmem:[%s28127_s1 + $0xf88] sm:$0xf]  ;;  %v18127_v9 = vld [vmem:[%s28127_s1 + $0xfa0] sm:$0xf0] }
  0x2d   :  { %9017 = vmatpush.bf16.msrb.mxu1 %v13075_v1  ;;  %v13158_v1 = vld [vmem:[%s28127_s1 + $0xa80] sm:$0xf]  ;;  %v18022_v6 = vld [vmem:[%s28127_s1 + $0xc58] sm:$0xf0]  ;;  %v14026_v10 = vld [vmem:[%s28127_s1 + $0x1148] sm:$0xf]  ;;  %v1681_v15 = vunpack.c.l.b16 %v36_v3  ;;  %v1682_v25 = vunpack.c.h.b16 %v36_v3  ;;  %v13803_v27 = vor.u32 %v18127_v9, %v13802_v8 }
  0x2e   :  { %9030 = vmatpush.bf16.msrb.mxu2 %v13299_v4  ;;  %v13411_v4 = vor.u32 %v18029_v57, %v13410_v56  ;;  %v18183_v12 = vld [vmem:[%s28127_s1 + $0x1160] sm:$0xf0]  ;;  %v14250_v13 = vld [vmem:[%s28127_s1 + $0x1308] sm:$0xf]  ;;  %v13159_v17 = vor.u32 %v17966_v2, %v13158_v1  ;;  %v13383_v26 = vor.u32 %v18022_v6, %v13382_v5  ;;  %v13774_v31 = vld [vmem:[%s28127_s1 + $0xf50] sm:$0xf] }
  0x2f   :  { %9043 = vmatpush.bf16.msrb.mxu3 %v13523_v11  ;;  %v12711_v11 = vor.u32 %v17854_v60, %v12710_v58  ;;  %v18239_v14 = vld [vmem:[%s28127_s1 + $0x1320] sm:$0xf0]  ;;  %v14027_v29 = vor.u32 %v18183_v12, %v14026_v10  ;;  %v18120_v32 = vld [vmem:[%s28127_s1 + $0xf68] sm:$0xf0]  ;;  %v13998_v33 = vld [vmem:[%s28127_s1 + $0x1110] sm:$0xf]  ;;  %v19589_v38 = vpack.c.b16 %v1681_v15, %v1681_v15  ;;  %v19599_v42 = vpack.c.b16 %v1682_v25, %v1682_v25 }
  0x30   :  { %9005 = vmatpush.bf16.msrb.mxu0 %v12823_v21  ;;  %v14474_v21 = vld [vmem:[%s28127_s1 + $0x14c8] sm:$0xf]  ;;  %v14251_v30 = vor.u32 %v18239_v14, %v14250_v13  ;;  %v18232_v37 = vld [vmem:[%s28127_s1 + $0x12e8] sm:$0xf0]  ;;  %v14446_v39 = vld [vmem:[%s28127_s1 + $0x1490] sm:$0xf]  ;;  %v13775_v43 = vor.u32 %v18120_v32, %v13774_v31 }
  0x31   :  { %9018 = vmatpush.bf16.msrb.mxu1 %v13047_v23  ;;  %v18295_v23 = vld [vmem:[%s28127_s1 + $0x14e0] sm:$0xf0]  ;;  %v13970_v49 = vld [vmem:[%s28127_s1 + $0x10d8] sm:$0xf]  ;;  %v18169_v51 = vld [vmem:[%s28127_s1 + $0x10f0] sm:$0xf0] }
  0x32   :  { %9031 = vmatpush.bf16.msrb.mxu2 %v13271_v24  ;;  %v1679_v24 = vunpack.c.l.b16 %v35_v7  ;;  %v18225_v53 = vld [vmem:[%s28127_s1 + $0x12b0] sm:$0xf0]  ;;  %v14418_v54 = vld [vmem:[%s28127_s1 + $0x1458] sm:$0xf]  ;;  %v13971_v57 = vor.u32 %v18169_v51, %v13970_v49  ;;  %v18106_v60 = vld [vmem:[%s28127_s1 + $0xef8] sm:$0xf0] }
  0x33   :  { %9044 = vmatpush.bf16.msrb.mxu3 %v13495_v28  ;;  %v1680_v28 = vunpack.c.h.b16 %v35_v7  ;;  %v18281_v55 = vld [vmem:[%s28127_s1 + $0x1470] sm:$0xf0]  ;;  %v13942_v61 = vld [vmem:[%s28127_s1 + $0x10a0] sm:$0xf]  ;;  %v18218_v1 = vld [vmem:[%s28127_s1 + $0x1278] sm:$0xf0] }
  0x34   :  { %9006 = vmatpush.bf16.msrb.mxu0 %v12795_v34  ;;  %v14475_v34 = vor.u32 %v18295_v23, %v14474_v21  ;;  %v19597_v41 = vpack.c.b16 %v1679_v24, %v1679_v24  ;;  %v14419_v62 = vor.u32 %v18281_v55, %v14418_v54  ;;  %v14390_v2 = vld [vmem:[%s28127_s1 + $0x1420] sm:$0xf]  ;;  %v18274_v3 = vld [vmem:[%s28127_s1 + $0x1438] sm:$0xf0]  ;;  %v13690_v7 = vld [vmem:[%s28127_s1 + $0xea8] sm:$0xf] }
  0x35   :  { %9019 = vmatpush.bf16.msrb.mxu1 %v13019_v35  ;;  %v18176_v35 = vld [vmem:[%s28127_s1 + $0x1128] sm:$0xf0]  ;;  %v19601_v44 = vpack.c.b16 %v1680_v28, %v1680_v28  ;;  %v18099_v8 = vld [vmem:[%s28127_s1 + $0xec0] sm:$0xf0]  ;;  %v13914_v9 = vld [vmem:[%s28127_s1 + $0x1068] sm:$0xf]  ;;  %v14391_v10 = vor.u32 %v18274_v3, %v14390_v2 }
  0x36   :  { %9032 = vmatpush.bf16.msrb.mxu2 %v13243_v36  ;;  %v14222_v36 = vld [vmem:[%s28127_s1 + $0x12d0] sm:$0xf]  ;;  %v13999_v45 = vor.u32 %v18176_v35, %v13998_v33  ;;  %v14138_v12 = vld [vmem:[%s28127_s1 + $0x1228] sm:$0xf]  ;;  %v18211_v13 = vld [vmem:[%s28127_s1 + $0x1240] sm:$0xf0] }
  0x37   :  { %9045 = vmatpush.bf16.msrb.mxu3 %v13467_v40  ;;  %v18288_v40 = vld [vmem:[%s28127_s1 + $0x14a8] sm:$0xf0]  ;;  %v14362_v14 = vld [vmem:[%s28127_s1 + $0x13e8] sm:$0xf]  ;;  %v18267_v15 = vld [vmem:[%s28127_s1 + $0x1400] sm:$0xf0]  ;;  %v14139_v21 = vor.u32 %v18211_v13, %v14138_v12 }
  0x38   :  { %9007 = vmatpush.bf16.msrb.mxu0 %v12767_v46  ;;  %v14223_v46 = vor.u32 %v18232_v37, %v14222_v36  ;;  %v14447_v50 = vor.u32 %v18288_v40, %v14446_v39  ;;  %v13662_v23 = vld [vmem:[%s28127_s1 + $0xe70] sm:$0xf]  ;;  %v18092_v24 = vld [vmem:[%s28127_s1 + $0xe88] sm:$0xf0]  ;;  %v13634_v35 = vld [vmem:[%s28127_s1 + $0xe38] sm:$0xf] }
  0x39   :  { %9020 = vmatpush.bf16.msrb.mxu1 %v12991_v47  ;;  %v13746_v47 = vld [vmem:[%s28127_s1 + $0xf18] sm:$0xf]  ;;  %v13886_v25 = vld [vmem:[%s28127_s1 + $0x1030] sm:$0xf]  ;;  %v18260_v31 = vld [vmem:[%s28127_s1 + $0x13c8] sm:$0xf0]  ;;  %v13663_v32 = vor.u32 %v18092_v24, %v13662_v23 }
  0x3a   :  { %9033 = vmatpush.bf16.msrb.mxu2 %v13215_v48  ;;  %v18113_v48 = vld [vmem:[%s28127_s1 + $0xf30] sm:$0xf0]  ;;  %v14110_v28 = vld [vmem:[%s28127_s1 + $0x11f0] sm:$0xf]  ;;  %v13858_v37 = vld [vmem:[%s28127_s1 + $0xff8] sm:$0xf] }
  0x3b   :  { %9046 = vmatpush.bf16.msrb.mxu3 %v13439_v52  ;;  %v14194_v52 = vld [vmem:[%s28127_s1 + $0x1298] sm:$0xf]  ;;  %v13747_v56 = vor.u32 %v18113_v48, %v13746_v47  ;;  %v18085_v36 = vld [vmem:[%s28127_s1 + $0xe50] sm:$0xf0]  ;;  %v13606_v48 = vld [vmem:[%s28127_s1 + $0xe00] sm:$0xf] }
  0x3c   :  { %9008 = vmatpush.bf16.msrb.mxu0 %v12739_v59  ;;  %v14195_v58 = vor.u32 %v18225_v53, %v14194_v52  ;;  %v13718_v59 = vld [vmem:[%s28127_s1 + $0xee0] sm:$0xf]  ;;  %v18141_v40 = vld [vmem:[%s28127_s1 + $0x1010] sm:$0xf0]  ;;  %v13635_v49 = vor.u32 %v18085_v36, %v13634_v35  ;;  %v18134_v52 = vld [vmem:[%s28127_s1 + $0xfd8] sm:$0xf0] }
  0x3d   :  { %9021 = vmatpush.bf16.msrb.mxu1 %v12963_v63  ;;  %v18162_v63 = vld [vmem:[%s28127_s1 + $0x10b8] sm:$0xf0]  ;;  %v18253_v47 = vld [vmem:[%s28127_s1 + $0x1390] sm:$0xf0]  ;;  %v13830_v51 = vld [vmem:[%s28127_s1 + $0xfc0] sm:$0xf]  ;;  %v13859_v53 = vor.u32 %v18141_v40, %v13858_v37 }
  0x3e   :  { %9034 = vmatpush.bf16.msrb.mxu2 %v13187_v0  ;;  %v14166_v0 = vld [vmem:[%s28127_s1 + $0x1260] sm:$0xf]  ;;  %v13943_v5 = vor.u32 %v18162_v63, %v13942_v61  ;;  %v38_v61 = vld [vmem:[%s28128_s0 + $0x28] sm:$0xff]  ;;  %v18351_v63 = vld [vmem:[%s28127_s1 + $0x16a0] sm:$0xf0] }
  0x3f   :  { %9047 = vmatpush.bf16.msrb.mxu3 %v13411_v4  ;;  %v13719_v4 = vor.u32 %v18106_v60, %v13718_v59  ;;  %v14167_v6 = vor.u32 %v18218_v1, %v14166_v0  ;;  %v14054_v55 = vld [vmem:[%s28127_s1 + $0x1180] sm:$0xf]  ;;  %v18246_v60 = vld [vmem:[%s28127_s1 + $0x1358] sm:$0xf0]  ;;  %v14922_v0 = vld [vmem:[%s28127_s1 + $0x1848] sm:$0xf] }
  0x40   :  { %9009 = vmatpush.bf16.msrb.mxu0 %v12711_v11  ;;  %v18155_v11 = vld [vmem:[%s28127_s1 + $0x1080] sm:$0xf0]  ;;  %v14278_v59 = vld [vmem:[%s28127_s1 + $0x1340] sm:$0xf]  ;;  %v15146_v3 = vld [vmem:[%s28127_s1 + $0x1a08] sm:$0xf] }
  0x41   :  { %9022 = vmatpush.bf16.msrb.mxu1 %v12935_v16  ;;  %v13691_v16 = vor.u32 %v18099_v8, %v13690_v7  ;;  %v18407_v2 = vld [vmem:[%s28127_s1 + $0x1860] sm:$0xf0]  ;;  %v15370_v8 = vld [vmem:[%s28127_s1 + $0x1bc8] sm:$0xf]  ;;  %v14279_v12 = vor.u32 %v18246_v60, %v14278_v59  ;;  %v14894_v23 = vld [vmem:[%s28127_s1 + $0x1810] sm:$0xf] }
  0x42   :  { %9035 = vmatpush.bf16.msrb.mxu2 %v13159_v17  ;;  %v13915_v17 = vor.u32 %v18155_v11, %v13914_v9  ;;  %v18519_v9 = vld [vmem:[%s28127_s1 + $0x1be0] sm:$0xf0]  ;;  %v14642_v37 = vld [vmem:[%s28127_s1 + $0x1618] sm:$0xf]  ;;  %v18442_v59 = vld [vmem:[%s28127_s1 + $0x1978] sm:$0xf0] }
  0x43   :  { %9048 = vmatpush.bf16.msrb.mxu3 %v13383_v26  ;;  %9010 = vmatmul.bf16.vlgmr.msrb.gmra.mxu0 %v19597_v41  ;;  %v14363_v26 = vor.u32 %v18267_v15, %v14362_v14  ;;  %v1686_v14 = vunpack.c.h.b16 %v38_v61  ;;  %v14923_v15 = vor.u32 %v18407_v2, %v14922_v0  ;;  %v15371_v24 = vor.u32 %v18519_v9, %v15370_v8  ;;  %v14866_v40 = vld [vmem:[%s28127_s1 + $0x17d8] sm:$0xf]  ;;  %v15286_v60 = vld [vmem:[%s28127_s1 + $0x1b20] sm:$0xf]  ;;  %v18323_v2 = vld [vmem:[%s28127_s1 + $0x15c0] sm:$0xf0] }
  0x44   :  { %9054 = vmatpush.bf16.msra.mxu0 %v13803_v27  ;;  %9023 = vmatmul.bf16.vlgmr.msrb.gmra.mxu1 %v19601_v44  ;;  %v18148_v27 = vld [vmem:[%s28127_s1 + $0x1048] sm:$0xf0]  ;;  %v15258_v8 = vld [vmem:[%s28127_s1 + $0x1ae8] sm:$0xf]  ;;  %v18491_v9 = vld [vmem:[%s28127_s1 + $0x1b00] sm:$0xf0] }
  0x45   :  { %9067 = vmatpush.bf16.msra.mxu1 %v14027_v29  ;;  %9036 = vmatmul.bf16.vlgmr.msrb.gmra.mxu2 %v19589_v38  ;;  %v18204_v29 = vld [vmem:[%s28127_s1 + $0x1208] sm:$0xf0]  ;;  %v13887_v33 = vor.u32 %v18148_v27, %v13886_v25  ;;  %v15118_v27 = vld [vmem:[%s28127_s1 + $0x19d0] sm:$0xf] }
  0x46   :  { %9080 = vmatpush.bf16.msra.mxu2 %v14251_v30  ;;  %9049 = vmatmul.bf16.vlgmr.msrb.gmra.mxu3 %v19599_v42  ;;  %v14334_v30 = vld [vmem:[%s28127_s1 + $0x13b0] sm:$0xf] }
  0x47   :  { %9093 = vmatpush.bf16.msra.mxu3 %v14475_v34  ;;  %v14111_v34 = vor.u32 %v18204_v29, %v14110_v28  ;;  %v14335_v39 = vor.u32 %v18260_v31, %v14334_v30  ;;  %v18456_v28 = vld [vmem:[%s28127_s1 + $0x19e8] sm:$0xf0]  ;;  %v15342_v31 = vld [vmem:[%s28127_s1 + $0x1b90] sm:$0xf] }
  0x48   :  { %9055 = vmatpush.bf16.msra.mxu0 %v13775_v43  ;;  %v14082_v43 = vld [vmem:[%s28127_s1 + $0x11b8] sm:$0xf]  ;;  %v15119_v36 = vor.u32 %v18456_v28, %v15118_v27 }
  0x49   :  { %9068 = vmatpush.bf16.msra.mxu1 %v13999_v45  ;;  %v18197_v45 = vld [vmem:[%s28127_s1 + $0x11d0] sm:$0xf0] }
  0x4a   :  { %9081 = vmatpush.bf16.msra.mxu2 %v14223_v46  ;;  %v14306_v46 = vld [vmem:[%s28127_s1 + $0x1378] sm:$0xf]  ;;  %v14083_v54 = vor.u32 %v18197_v45, %v14082_v43  ;;  %v18393_v45 = vld [vmem:[%s28127_s1 + $0x17f0] sm:$0xf0] }
  0x4b   :  { %9094 = vmatpush.bf16.msra.mxu3 %v14447_v50  ;;  %v18078_v50 = vld [vmem:[%s28127_s1 + $0xe18] sm:$0xf0] }
  0x4c   :  { %9056 = vmatpush.bf16.msra.mxu0 %v13747_v56  ;;  %v18190_v56 = vld [vmem:[%s28127_s1 + $0x1198] sm:$0xf0]  ;;  %v13607_v1 = vor.u32 %v18078_v50, %v13606_v48  ;;  %v15314_v48 = vld [vmem:[%s28127_s1 + $0x1b58] sm:$0xf] }
  0x4d   :  { %9069 = vmatpush.bf16.msra.mxu1 %v13971_v57  ;;  %v37_v57 = vld [vmem:[%s28128_s0 + $0x20] sm:$0xff]  ;;  %v14055_v7 = vor.u32 %v18190_v56, %v14054_v55 }
  0x4e   :  { %9082 = vmatpush.bf16.msra.mxu2 %v14195_v58  ;;  %v14307_v58 = vor.u32 %v18253_v47, %v14306_v46  ;;  %v1684_v11 = vunpack.c.h.b16 %v37_v57  ;;  %v15090_v46 = vld [vmem:[%s28127_s1 + $0x1998] sm:$0xf]  ;;  %v18449_v47 = vld [vmem:[%s28127_s1 + $0x19b0] sm:$0xf0]  ;;  %v14838_v55 = vld [vmem:[%s28127_s1 + $0x17a0] sm:$0xf] }
  0x4f   :  { %9095 = vmatpush.bf16.msra.mxu3 %v14419_v62  ;;  %v14698_v62 = vld [vmem:[%s28127_s1 + $0x1688] sm:$0xf] }
  0x50   :  { %9057 = vmatpush.bf16.msra.mxu0 %v13719_v4  ;;  %v18463_v4 = vld [vmem:[%s28127_s1 + $0x1a20] sm:$0xf0]  ;;  %v14699_v13 = vor.u32 %v18351_v63, %v14698_v62  ;;  %v19803_v30 = vpack.c.b16 %v1684_v11, %v1684_v11 }
  0x51   :  { %9070 = vmatpush.bf16.msra.mxu1 %v13943_v5  ;;  %v1683_v5 = vunpack.c.l.b16 %v37_v57  ;;  %v18386_v57 = vld [vmem:[%s28127_s1 + $0x17b8] sm:$0xf0] }
  0x52   :  { %9083 = vmatpush.bf16.msra.mxu2 %v14167_v6  ;;  %v13831_v6 = vor.u32 %v18134_v52, %v13830_v51  ;;  %v14867_v51 = vor.u32 %v18393_v45, %v14866_v40  ;;  %v15091_v52 = vor.u32 %v18449_v47, %v15090_v46  ;;  %v14839_v63 = vor.u32 %v18386_v57, %v14838_v55  ;;  %v18421_v40 = vld [vmem:[%s28127_s1 + $0x18d0] sm:$0xf0]  ;;  %v14502_v46 = vld [vmem:[%s28127_s1 + $0x1500] sm:$0xf] }
  0x53   :  { %9096 = vmatpush.bf16.msra.mxu3 %v14391_v10  ;;  %v1685_v10 = vunpack.c.l.b16 %v38_v61  ;;  %v19790_v25 = vpack.c.b16 %v1683_v5, %v1683_v5  ;;  %v18498_v61 = vld [vmem:[%s28127_s1 + $0x1b38] sm:$0xf0]  ;;  %v18379_v5 = vld [vmem:[%s28127_s1 + $0x1780] sm:$0xf0]  ;;  %v18477_v45 = vld [vmem:[%s28127_s1 + $0x1a90] sm:$0xf0] }
  0x54   :  { %9058 = vmatpush.bf16.msra.mxu0 %v13691_v16  ;;  %v15147_v16 = vor.u32 %v18463_v4, %v15146_v3  ;;  %v14810_v3 = vld [vmem:[%s28127_s1 + $0x1768] sm:$0xf]  ;;  %v15287_v4 = vor.u32 %v18498_v61, %v15286_v60  ;;  %v39_v55 = vld [vmem:[%s28128_s0 + $0x30] sm:$0xff]  ;;  %v15174_v57 = vld [vmem:[%s28127_s1 + $0x1a40] sm:$0xf] }
  0x55   :  { %9071 = vmatpush.bf16.msra.mxu1 %v13915_v17  ;;  %v14670_v17 = vld [vmem:[%s28127_s1 + $0x1650] sm:$0xf]  ;;  %v19801_v29 = vpack.c.b16 %v1685_v10, %v1685_v10  ;;  %v14811_v11 = vor.u32 %v18379_v5, %v14810_v3  ;;  %v15594_v60 = vld [vmem:[%s28127_s1 + $0x1d88] sm:$0xf]  ;;  %v18575_v61 = vld [vmem:[%s28127_s1 + $0x1da0] sm:$0xf0]  ;;  %v1687_v3 = vunpack.c.l.b16 %v39_v55 }
  0x56   :  { %9084 = vmatpush.bf16.msra.mxu2 %v14139_v21  ;;  %v18344_v21 = vld [vmem:[%s28127_s1 + $0x1668] sm:$0xf0] }
  0x57   :  { %9097 = vmatpush.bf16.msra.mxu3 %v14363_v26  ;;  %v18400_v26 = vld [vmem:[%s28127_s1 + $0x1828] sm:$0xf0] }
  0x58   :  { %9059 = vmatpush.bf16.msra.mxu0 %v13663_v32  ;;  %v18512_v32 = vld [vmem:[%s28127_s1 + $0x1ba8] sm:$0xf0]  ;;  %v14895_v35 = vor.u32 %v18400_v26, %v14894_v23 }
  0x59   :  { %9072 = vmatpush.bf16.msra.mxu1 %v13887_v33  ;;  %v19811_v33 = vpack.c.b16 %v1686_v14, %v1686_v14  ;;  %v15343_v43 = vor.u32 %v18512_v32, %v15342_v31  ;;  %v18316_v14 = vld [vmem:[%s28127_s1 + $0x1588] sm:$0xf0]  ;;  %v14530_v32 = vld [vmem:[%s28127_s1 + $0x1538] sm:$0xf] }
  0x5a   :  { %9085 = vmatpush.bf16.msra.mxu2 %v14111_v34  ;;  %v14671_v34 = vor.u32 %v18344_v21, %v14670_v17  ;;  %v18372_v17 = vld [vmem:[%s28127_s1 + $0x1748] sm:$0xf0]  ;;  %v15006_v21 = vld [vmem:[%s28127_s1 + $0x18f0] sm:$0xf] }
  0x5b   :  { %9098 = vmatpush.bf16.msra.mxu3 %v14335_v39  ;;  %v18337_v39 = vld [vmem:[%s28127_s1 + $0x1630] sm:$0xf0]  ;;  %v18428_v23 = vld [vmem:[%s28127_s1 + $0x1908] sm:$0xf0] }
  0x5c   :  { %9060 = vmatpush.bf16.msra.mxu0 %v13635_v49  ;;  %v18505_v49 = vld [vmem:[%s28127_s1 + $0x1b70] sm:$0xf0]  ;;  %v14643_v50 = vor.u32 %v18337_v39, %v14642_v37  ;;  %v18484_v26 = vld [vmem:[%s28127_s1 + $0x1ac8] sm:$0xf0]  ;;  %v15007_v31 = vor.u32 %v18428_v23, %v15006_v21  ;;  %v14978_v39 = vld [vmem:[%s28127_s1 + $0x18b8] sm:$0xf]  ;;  %v20000_v23 = vpack.c.b16 %v1687_v3, %v1687_v3 }
  0x5d   :  { %9073 = vmatpush.bf16.msra.mxu1 %v13859_v53  ;;  %v14614_v53 = vld [vmem:[%s28127_s1 + $0x15e0] sm:$0xf]  ;;  %v15315_v56 = vor.u32 %v18505_v49, %v15314_v48  ;;  %v18365_v37 = vld [vmem:[%s28127_s1 + $0x1710] sm:$0xf0]  ;;  %v18302_v48 = vld [vmem:[%s28127_s1 + $0x1518] sm:$0xf0] }
  0x5e   :  { %9086 = vmatpush.bf16.msra.mxu2 %v14083_v54  ;;  %v18330_v54 = vld [vmem:[%s28127_s1 + $0x15f8] sm:$0xf0]  ;;  %v14726_v49 = vld [vmem:[%s28127_s1 + $0x16c0] sm:$0xf]  ;;  %v15482_v3 = vld [vmem:[%s28127_s1 + $0x1ca8] sm:$0xf] }
  0x5f   :  { %9099 = vmatpush.bf16.msra.mxu3 %v14307_v58  ;;  %v15062_v58 = vld [vmem:[%s28127_s1 + $0x1960] sm:$0xf]  ;;  %v14615_v62 = vor.u32 %v18330_v54, %v14614_v53  ;;  %v18414_v54 = vld [vmem:[%s28127_s1 + $0x1898] sm:$0xf0] }
  0x60   :  { %9061 = vmatpush.bf16.msra.mxu0 %v13607_v1  ;;  %v15063_v0 = vor.u32 %v18442_v59, %v15062_v58  ;;  %v14586_v1 = vld [vmem:[%s28127_s1 + $0x15a8] sm:$0xf]  ;;  %v14950_v53 = vld [vmem:[%s28127_s1 + $0x1880] sm:$0xf]  ;;  %v18470_v58 = vld [vmem:[%s28127_s1 + $0x1a58] sm:$0xf0] }
  0x61   :  { %9074 = vmatpush.bf16.msra.mxu1 %v13831_v6  ;;  %v15034_v6 = vld [vmem:[%s28127_s1 + $0x1928] sm:$0xf]  ;;  %v14587_v10 = vor.u32 %v18323_v2, %v14586_v1  ;;  %v40_v59 = vld [vmem:[%s28128_s0 + $0x38] sm:$0xff]  ;;  %v18687_v2 = vld [vmem:[%s28127_s1 + $0x2120] sm:$0xf0]  ;;  %v14951_v5 = vor.u32 %v18414_v54, %v14950_v53 }
  0x62   :  { %9087 = vmatpush.bf16.msra.mxu2 %v14055_v7  ;;  %v18435_v7 = vld [vmem:[%s28127_s1 + $0x1940] sm:$0xf0]  ;;  %v16042_v1 = vld [vmem:[%s28127_s1 + $0x2108] sm:$0xf] }
  0x63   :  { %9100 = vmatpush.bf16.msra.mxu3 %v14279_v12  ;;  %9062 = vmatmul.bf16.vlgmr.msra.gmra.mxu0 %v19790_v25  ;;  %v15035_v12 = vor.u32 %v18435_v7, %v15034_v6  ;;  %v16266_v6 = vld [vmem:[%s28127_s1 + $0x22c8] sm:$0xf]  ;;  %v18743_v7 = vld [vmem:[%s28127_s1 + $0x22e0] sm:$0xf0] }
  0x64   :  { %9106 = vmatpush.bf16.msrb.mxu0 %v14699_v13  ;;  %9075 = vmatmul.bf16.vlgmr.msra.gmra.mxu1 %v19803_v30  ;;  %v14558_v13 = vld [vmem:[%s28127_s1 + $0x1570] sm:$0xf]  ;;  %v16267_v21 = vor.u32 %v18743_v7, %v16266_v6  ;;  %v18603_v7 = vld [vmem:[%s28127_s1 + $0x1e80] sm:$0xf0] }
  0x65   :  { %9119 = vmatpush.bf16.msrb.mxu1 %v14923_v15  ;;  %9088 = vmatmul.bf16.vlgmr.msra.gmra.mxu2 %v19801_v29  ;;  %v14782_v15 = vld [vmem:[%s28127_s1 + $0x1730] sm:$0xf]  ;;  %v14559_v27 = vor.u32 %v18316_v14, %v14558_v13  ;;  %v16043_v14 = vor.u32 %v18687_v2, %v16042_v1 }
  0x66   :  { %9132 = vmatpush.bf16.msrb.mxu2 %v15147_v16  ;;  %9101 = vmatmul.bf16.vlgmr.msra.gmra.mxu3 %v19811_v33  ;;  %v15259_v16 = vor.u32 %v18491_v9, %v15258_v8  ;;  %v14783_v28 = vor.u32 %v18372_v17, %v14782_v15  ;;  %v1689_v8 = vunpack.c.l.b16 %v40_v59  ;;  %v1688_v9 = vunpack.c.h.b16 %v39_v55  ;;  %v15566_v15 = vld [vmem:[%s28127_s1 + $0x1d50] sm:$0xf]  ;;  %v15510_v55 = vld [vmem:[%s28127_s1 + $0x1ce0] sm:$0xf] }
  0x67   :  { %9145 = vmatpush.bf16.msrb.mxu3 %v15371_v24  ;;  %v15230_v24 = vld [vmem:[%s28127_s1 + $0x1ab0] sm:$0xf] }
  0x68   :  { %9107 = vmatpush.bf16.msrb.mxu0 %v14671_v34  ;;  %v18309_v34 = vld [vmem:[%s28127_s1 + $0x1550] sm:$0xf0]  ;;  %v15790_v17 = vld [vmem:[%s28127_s1 + $0x1f10] sm:$0xf] }
  0x69   :  { %9120 = vmatpush.bf16.msrb.mxu1 %v14895_v35  ;;  %v14754_v35 = vld [vmem:[%s28127_s1 + $0x16f8] sm:$0xf]  ;;  %v14531_v47 = vor.u32 %v18309_v34, %v14530_v32  ;;  %v16238_v32 = vld [vmem:[%s28127_s1 + $0x2290] sm:$0xf]  ;;  %v18736_v34 = vld [vmem:[%s28127_s1 + $0x22a8] sm:$0xf0] }
  0x6a   :  { %9133 = vmatpush.bf16.msrb.mxu2 %v15119_v36  ;;  %v15231_v36 = vor.u32 %v18484_v26, %v15230_v24  ;;  %v18624_v24 = vld [vmem:[%s28127_s1 + $0x1f28] sm:$0xf0]  ;;  %v16014_v26 = vld [vmem:[%s28127_s1 + $0x20d0] sm:$0xf] }
  0x6b   :  { %9146 = vmatpush.bf16.msrb.mxu3 %v15343_v43  ;;  %v15202_v43 = vld [vmem:[%s28127_s1 + $0x1a78] sm:$0xf] }
  0x6c   :  { %9108 = vmatpush.bf16.msrb.mxu0 %v14643_v50  ;;  %v18358_v50 = vld [vmem:[%s28127_s1 + $0x16d8] sm:$0xf0] }
  0x6d   :  { %9121 = vmatpush.bf16.msrb.mxu1 %v14867_v51  ;;  %v14755_v51 = vor.u32 %v18365_v37, %v14754_v35  ;;  %v15791_v37 = vor.u32 %v18624_v24, %v15790_v17  ;;  %v15678_v17 = vld [vmem:[%s28127_s1 + $0x1e30] sm:$0xf]  ;;  %v18596_v24 = vld [vmem:[%s28127_s1 + $0x1e48] sm:$0xf0] }
  0x6e   :  { %9134 = vmatpush.bf16.msrb.mxu2 %v15091_v52  ;;  %v14979_v52 = vor.u32 %v18421_v40, %v14978_v39  ;;  %v15538_v40 = vld [vmem:[%s28127_s1 + $0x1d18] sm:$0xf] }
  0x6f   :  { %9147 = vmatpush.bf16.msrb.mxu3 %v15315_v56  ;;  %v15203_v56 = vor.u32 %v18477_v45, %v15202_v43  ;;  %v18561_v43 = vld [vmem:[%s28127_s1 + $0x1d30] sm:$0xf0]  ;;  %v15762_v45 = vld [vmem:[%s28127_s1 + $0x1ed8] sm:$0xf] }
  0x70   :  { %9109 = vmatpush.bf16.msrb.mxu0 %v14615_v62  ;;  %v15818_v62 = vld [vmem:[%s28127_s1 + $0x1f48] sm:$0xf] }
  0x71   :  { %9122 = vmatpush.bf16.msrb.mxu1 %v14839_v63  ;;  %v14503_v63 = vor.u32 %v18302_v48, %v14502_v46  ;;  %v16239_v46 = vor.u32 %v18736_v34, %v16238_v32  ;;  %v15986_v48 = vld [vmem:[%s28127_s1 + $0x2098] sm:$0xf]  ;;  %v16126_v32 = vld [vmem:[%s28127_s1 + $0x21b0] sm:$0xf]  ;;  %v18708_v34 = vld [vmem:[%s28127_s1 + $0x21c8] sm:$0xf0] }
  0x72   :  { %9135 = vmatpush.bf16.msrb.mxu2 %v15063_v0  ;;  %v18631_v0 = vld [vmem:[%s28127_s1 + $0x1f60] sm:$0xf0] }
  0x73   :  { %9148 = vmatpush.bf16.msrb.mxu3 %v15287_v4  ;;  %v14727_v4 = vor.u32 %v18358_v50, %v14726_v49  ;;  %v15819_v13 = vor.u32 %v18631_v0, %v15818_v62  ;;  %v18673_v49 = vld [vmem:[%s28127_s1 + $0x20b0] sm:$0xf0]  ;;  %v16210_v50 = vld [vmem:[%s28127_s1 + $0x2258] sm:$0xf]  ;;  %v16182_v62 = vld [vmem:[%s28127_s1 + $0x2220] sm:$0xf] }
  0x74   :  { %9110 = vmatpush.bf16.msrb.mxu0 %v14587_v10  ;;  %v15175_v10 = vor.u32 %v18470_v58, %v15174_v57  ;;  %v15987_v54 = vor.u32 %v18673_v49, %v15986_v48  ;;  %v15734_v57 = vld [vmem:[%s28127_s1 + $0x1ea0] sm:$0xf]  ;;  %v15874_v48 = vld [vmem:[%s28127_s1 + $0x1fb8] sm:$0xf]  ;;  %v18645_v49 = vld [vmem:[%s28127_s1 + $0x1fd0] sm:$0xf0] }
  0x75   :  { %9123 = vmatpush.bf16.msrb.mxu1 %v14811_v11  ;;  %v15595_v11 = vor.u32 %v18575_v61, %v15594_v60  ;;  %v15958_v60 = vld [vmem:[%s28127_s1 + $0x2060] sm:$0xf]  ;;  %v18666_v61 = vld [vmem:[%s28127_s1 + $0x2078] sm:$0xf0] }
  0x76   :  { %9136 = vmatpush.bf16.msrb.mxu2 %v15035_v12  ;;  %v1690_v12 = vunpack.c.h.b16 %v40_v59  ;;  %v18610_v59 = vld [vmem:[%s28127_s1 + $0x1eb8] sm:$0xf0]  ;;  %v15959_v2 = vor.u32 %v18666_v61, %v15958_v60  ;;  %v41_v61 = vld [vmem:[%s28128_s0 + $0x40] sm:$0xff] }
  0x77   :  { %9149 = vmatpush.bf16.msrb.mxu3 %v15259_v16  ;;  %v18568_v16 = vld [vmem:[%s28127_s1 + $0x1d68] sm:$0xf0]  ;;  %v15735_v1 = vor.u32 %v18610_v59, %v15734_v57  ;;  %v15846_v59 = vld [vmem:[%s28127_s1 + $0x1f80] sm:$0xf]  ;;  %v18638_v60 = vld [vmem:[%s28127_s1 + $0x1f98] sm:$0xf0] }
  0x78   :  { %9111 = vmatpush.bf16.msrb.mxu0 %v14559_v27  ;;  %v18680_v27 = vld [vmem:[%s28127_s1 + $0x20e8] sm:$0xf0]  ;;  %v20021_v35 = vpack.c.b16 %v1690_v12, %v1690_v12 }
  0x79   :  { %9124 = vmatpush.bf16.msrb.mxu1 %v14783_v28  ;;  %v20011_v28 = vpack.c.b16 %v1689_v8, %v1689_v8  ;;  %v16015_v39 = vor.u32 %v18680_v27, %v16014_v26  ;;  %v15930_v8 = vld [vmem:[%s28127_s1 + $0x2028] sm:$0xf]  ;;  %v15902_v26 = vld [vmem:[%s28127_s1 + $0x1ff0] sm:$0xf]  ;;  %v18652_v27 = vld [vmem:[%s28127_s1 + $0x2008] sm:$0xf0] }
  0x7a   :  { %9137 = vmatpush.bf16.msrb.mxu2 %v15007_v31  ;;  %v20013_v31 = vpack.c.b16 %v1688_v9, %v1688_v9  ;;  %v18659_v9 = vld [vmem:[%s28127_s1 + $0x2040] sm:$0xf0] }
  0x7b   :  { %9150 = vmatpush.bf16.msrb.mxu3 %v15231_v36  ;;  %v15567_v36 = vor.u32 %v18568_v16, %v15566_v15  ;;  %v15454_v15 = vld [vmem:[%s28127_s1 + $0x1c70] sm:$0xf]  ;;  %v18540_v16 = vld [vmem:[%s28127_s1 + $0x1c88] sm:$0xf0] }
  0x7c   :  { %9112 = vmatpush.bf16.msrb.mxu0 %v14531_v47  ;;  %v18617_v47 = vld [vmem:[%s28127_s1 + $0x1ef0] sm:$0xf0] }
  0x7d   :  { %9125 = vmatpush.bf16.msrb.mxu1 %v14755_v51  ;;  %v18729_v51 = vld [vmem:[%s28127_s1 + $0x2270] sm:$0xf0]  ;;  %v15763_v53 = vor.u32 %v18617_v47, %v15762_v45  ;;  %v15650_v45 = vld [vmem:[%s28127_s1 + $0x1df8] sm:$0xf] }
  0x7e   :  { %9138 = vmatpush.bf16.msrb.mxu2 %v14979_v52  ;;  %v15539_v52 = vor.u32 %v18561_v43, %v15538_v40  ;;  %v16211_v58 = vor.u32 %v18729_v51, %v16210_v50  ;;  %v15426_v40 = vld [vmem:[%s28127_s1 + $0x1c38] sm:$0xf]  ;;  %v18533_v43 = vld [vmem:[%s28127_s1 + $0x1c50] sm:$0xf0] }
  0x7f   :  { %9151 = vmatpush.bf16.msrb.mxu3 %v15203_v56  ;;  %v18554_v56 = vld [vmem:[%s28127_s1 + $0x1cf8] sm:$0xf0]  ;;  %v18589_v47 = vld [vmem:[%s28127_s1 + $0x1e10] sm:$0xf0]  ;;  %v16098_v50 = vld [vmem:[%s28127_s1 + $0x2178] sm:$0xf] }
  0x80   :  { %9113 = vmatpush.bf16.msrb.mxu0 %v14503_v63  ;;  %v18722_v63 = vld [vmem:[%s28127_s1 + $0x2238] sm:$0xf0]  ;;  %v15511_v0 = vor.u32 %v18554_v56, %v15510_v55  ;;  %v18701_v51 = vld [vmem:[%s28127_s1 + $0x2190] sm:$0xf0]  ;;  %v15622_v55 = vld [vmem:[%s28127_s1 + $0x1dc0] sm:$0xf]  ;;  %v15651_v57 = vor.u32 %v18589_v47, %v15650_v45 }
  0x81   :  { %9126 = vmatpush.bf16.msrb.mxu1 %v14727_v4  ;;  %v18547_v4 = vld [vmem:[%s28127_s1 + $0x1cc0] sm:$0xf0]  ;;  %v16183_v6 = vor.u32 %v18722_v63, %v16182_v62  ;;  %v18582_v56 = vld [vmem:[%s28127_s1 + $0x1dd8] sm:$0xf0]  ;;  %v16099_v62 = vor.u32 %v18701_v51, %v16098_v50  ;;  %v16070_v63 = vld [vmem:[%s28127_s1 + $0x2140] sm:$0xf] }
  0x82   :  { %9139 = vmatpush.bf16.msrb.mxu2 %v14951_v5  ;;  %v15706_v5 = vld [vmem:[%s28127_s1 + $0x1e68] sm:$0xf]  ;;  %v15483_v12 = vor.u32 %v18547_v4, %v15482_v3  ;;  %v18799_v3 = vld [vmem:[%s28127_s1 + $0x24a0] sm:$0xf0]  ;;  %v17134_v47 = vld [vmem:[%s28127_s1 + $0x2990] sm:$0xf] }
  0x83   :  { %9152 = vmatpush.bf16.msrb.mxu3 %v15175_v10  ;;  %9114 = vmatmul.bf16.vlgmr.msrb.gmra.mxu0 %v20000_v23  ;;  %v16154_v10 = vld [vmem:[%s28127_s1 + $0x21e8] sm:$0xf] }
  0x84   :  { %9158 = vmatpush.bf16.msra.mxu0 %v15595_v11  ;;  %9127 = vmatmul.bf16.vlgmr.msrb.gmra.mxu1 %v20013_v31  ;;  %v18715_v11 = vld [vmem:[%s28127_s1 + $0x2200] sm:$0xf0]  ;;  %v16714_v4 = vld [vmem:[%s28127_s1 + $0x2648] sm:$0xf] }
  0x85   :  { %9171 = vmatpush.bf16.msra.mxu1 %v15819_v13  ;;  %9140 = vmatmul.bf16.vlgmr.msrb.gmra.mxu2 %v20011_v28  ;;  %v15707_v13 = vor.u32 %v18603_v7, %v15706_v5  ;;  %v16938_v7 = vld [vmem:[%s28127_s1 + $0x2808] sm:$0xf] }
  0x86   :  { %9184 = vmatpush.bf16.msra.mxu2 %v16043_v14  ;;  %9153 = vmatmul.bf16.vlgmr.msrb.gmra.mxu3 %v20021_v35  ;;  %v15931_v14 = vor.u32 %v18659_v9, %v15930_v8  ;;  %v18911_v8 = vld [vmem:[%s28127_s1 + $0x2820] sm:$0xf0]  ;;  %v1691_v9 = vunpack.c.l.b16 %v41_v61 }
  0x87   :  { %9197 = vmatpush.bf16.msra.mxu3 %v16267_v21  ;;  %v16155_v21 = vor.u32 %v18715_v11, %v16154_v10  ;;  %v15623_v10 = vor.u32 %v18582_v56, %v15622_v55  ;;  %v15847_v11 = vor.u32 %v18638_v60, %v15846_v59  ;;  %v16658_v55 = vld [vmem:[%s28127_s1 + $0x25d8] sm:$0xf]  ;;  %v18897_v59 = vld [vmem:[%s28127_s1 + $0x27b0] sm:$0xf0] }
  0x88   :  { %9159 = vmatpush.bf16.msra.mxu0 %v15567_v36  ;;  %v15455_v36 = vor.u32 %v18540_v16, %v15454_v15  ;;  %v1692_v15 = vunpack.c.h.b16 %v41_v61  ;;  %v17106_v60 = vld [vmem:[%s28127_s1 + $0x2958] sm:$0xf]  ;;  %v18953_v61 = vld [vmem:[%s28127_s1 + $0x2970] sm:$0xf0] }
  0x89   :  { %9172 = vmatpush.bf16.msra.mxu1 %v15791_v37  ;;  %v15679_v37 = vor.u32 %v18596_v24, %v15678_v17 }
  0x8a   :  { %9185 = vmatpush.bf16.msra.mxu2 %v16015_v39  ;;  %v15903_v39 = vor.u32 %v18652_v27, %v15902_v26  ;;  %v16939_v26 = vor.u32 %v18911_v8, %v16938_v7  ;;  %v16462_v27 = vld [vmem:[%s28127_s1 + $0x2450] sm:$0xf]  ;;  %v18890_v7 = vld [vmem:[%s28127_s1 + $0x2778] sm:$0xf0]  ;;  %v17078_v8 = vld [vmem:[%s28127_s1 + $0x2920] sm:$0xf] }
  0x8b   :  { %9198 = vmatpush.bf16.msra.mxu3 %v16239_v46  ;;  %v16127_v46 = vor.u32 %v18708_v34, %v16126_v32  ;;  %v18792_v32 = vld [vmem:[%s28127_s1 + $0x2468] sm:$0xf0]  ;;  %v16686_v34 = vld [vmem:[%s28127_s1 + $0x2610] sm:$0xf] }
  0x8c   :  { %9160 = vmatpush.bf16.msra.mxu0 %v15539_v52  ;;  %v15398_v52 = vld [vmem:[%s28127_s1 + $0x1c00] sm:$0xf]  ;;  %v16463_v50 = vor.u32 %v18792_v32, %v16462_v27  ;;  %v17050_v27 = vld [vmem:[%s28127_s1 + $0x28e8] sm:$0xf]  ;;  %v18939_v32 = vld [vmem:[%s28127_s1 + $0x2900] sm:$0xf0] }
  0x8d   :  { %9173 = vmatpush.bf16.msra.mxu1 %v15763_v53  ;;  %v15427_v53 = vor.u32 %v18533_v43, %v15426_v40  ;;  %v16910_v40 = vld [vmem:[%s28127_s1 + $0x27d0] sm:$0xf]  ;;  %v18904_v43 = vld [vmem:[%s28127_s1 + $0x27e8] sm:$0xf0] }
  0x8e   :  { %9186 = vmatpush.bf16.msra.mxu2 %v15987_v54  ;;  %v18526_v54 = vld [vmem:[%s28127_s1 + $0x1c18] sm:$0xf0] }
  0x8f   :  { %9199 = vmatpush.bf16.msra.mxu3 %v16211_v58  ;;  %v15875_v58 = vor.u32 %v18645_v49, %v15874_v48  ;;  %v15399_v5 = vor.u32 %v18526_v54, %v15398_v52  ;;  %v18960_v48 = vld [vmem:[%s28127_s1 + $0x29a8] sm:$0xf0]  ;;  %v16911_v52 = vor.u32 %v18904_v43, %v16910_v40  ;;  %v18785_v54 = vld [vmem:[%s28127_s1 + $0x2430] sm:$0xf0] }
  0x90   :  { %9161 = vmatpush.bf16.msra.mxu0 %v15511_v0  ;;  %v18694_v0 = vld [vmem:[%s28127_s1 + $0x2158] sm:$0xf0]  ;;  %v17135_v56 = vor.u32 %v18960_v48, %v17134_v47  ;;  %v18764_v43 = vld [vmem:[%s28127_s1 + $0x2388] sm:$0xf0]  ;;  %v16574_v47 = vld [vmem:[%s28127_s1 + $0x2530] sm:$0xf] }
  0x91   :  { %9174 = vmatpush.bf16.msra.mxu1 %v15735_v1  ;;  %v42_v1 = vld [vmem:[%s28128_s0 + $0x48] sm:$0xff]  ;;  %v16071_v16 = vor.u32 %v18694_v0, %v16070_v63 }
  0x92   :  { %9187 = vmatpush.bf16.msra.mxu2 %v15959_v2  ;;  %v16490_v2 = vld [vmem:[%s28127_s1 + $0x2488] sm:$0xf] }
  0x93   :  { %9200 = vmatpush.bf16.msra.mxu3 %v16183_v6  ;;  %v18855_v6 = vld [vmem:[%s28127_s1 + $0x2660] sm:$0xf0]  ;;  %v16491_v17 = vor.u32 %v18799_v3, %v16490_v2  ;;  %v18778_v2 = vld [vmem:[%s28127_s1 + $0x23f8] sm:$0xf0]  ;;  %v16630_v3 = vld [vmem:[%s28127_s1 + $0x25a0] sm:$0xf] }
  0x94   :  { %9162 = vmatpush.bf16.msra.mxu0 %v15483_v12  ;;  %v17162_v12 = vld [vmem:[%s28127_s1 + $0x29c8] sm:$0xf]  ;;  %v16715_v24 = vor.u32 %v18855_v6, %v16714_v4  ;;  %v17107_v4 = vor.u32 %v18953_v61, %v17106_v60  ;;  %v16854_v6 = vld [vmem:[%s28127_s1 + $0x2760] sm:$0xf]  ;;  %v16322_v60 = vld [vmem:[%s28127_s1 + $0x2338] sm:$0xf] }
  0x95   :  { %9175 = vmatpush.bf16.msra.mxu1 %v15707_v13  ;;  %v18967_v13 = vld [vmem:[%s28127_s1 + $0x29e0] sm:$0xf0]  ;;  %v18757_v61 = vld [vmem:[%s28127_s1 + $0x2350] sm:$0xf0] }
  0x96   :  { %9188 = vmatpush.bf16.msra.mxu2 %v15931_v14  ;;  %v1693_v14 = vunpack.c.l.b16 %v42_v1 }
  0x97   :  { %9201 = vmatpush.bf16.msra.mxu3 %v16155_v21  ;;  %v1694_v21 = vunpack.c.h.b16 %v42_v1  ;;  %v16406_v1 = vld [vmem:[%s28127_s1 + $0x23e0] sm:$0xf] }
  0x98   :  { %9163 = vmatpush.bf16.msra.mxu0 %v15455_v36  ;;  %v17163_v36 = vor.u32 %v18967_v13, %v17162_v12  ;;  %v20221_v45 = vpack.c.b16 %v1693_v14, %v1693_v14  ;;  %v16855_v13 = vor.u32 %v18890_v7, %v16854_v6  ;;  %v18771_v14 = vld [vmem:[%s28127_s1 + $0x23c0] sm:$0xf0]  ;;  %v18925_v6 = vld [vmem:[%s28127_s1 + $0x2890] sm:$0xf0]  ;;  %v16294_v7 = vld [vmem:[%s28127_s1 + $0x2300] sm:$0xf] }
  0x99   :  { %9176 = vmatpush.bf16.msra.mxu1 %v15679_v37  ;;  %v20210_v37 = vpack.c.b16 %v1691_v9, %v1691_v9  ;;  %v20231_v49 = vpack.c.b16 %v1694_v21, %v1694_v21  ;;  %v18946_v9 = vld [vmem:[%s28127_s1 + $0x2938] sm:$0xf0]  ;;  %v16826_v21 = vld [vmem:[%s28127_s1 + $0x2728] sm:$0xf] }
  0x9a   :  { %9189 = vmatpush.bf16.msra.mxu2 %v15903_v39  ;;  %v18848_v39 = vld [vmem:[%s28127_s1 + $0x2628] sm:$0xf0] }
  0x9b   :  { %9202 = vmatpush.bf16.msra.mxu3 %v16127_v46  ;;  %v20223_v46 = vpack.c.b16 %v1692_v15, %v1692_v15  ;;  %v16687_v51 = vor.u32 %v18848_v39, %v16686_v34  ;;  %v16602_v15 = vld [vmem:[%s28127_s1 + $0x2568] sm:$0xf] }
  0x9c   :  { %9164 = vmatpush.bf16.msra.mxu0 %v15427_v53  ;;  %v16434_v53 = vld [vmem:[%s28127_s1 + $0x2418] sm:$0xf] }
  0x9d   :  { %9177 = vmatpush.bf16.msra.mxu1 %v15651_v57  ;;  %v18841_v57 = vld [vmem:[%s28127_s1 + $0x25f0] sm:$0xf0] }
  0x9e   :  { %9190 = vmatpush.bf16.msra.mxu2 %v15875_v58  ;;  %v16882_v58 = vld [vmem:[%s28127_s1 + $0x2798] sm:$0xf]  ;;  %v16659_v63 = vor.u32 %v18841_v57, %v16658_v55  ;;  %v18932_v55 = vld [vmem:[%s28127_s1 + $0x28c8] sm:$0xf0] }
  0x9f   :  { %9203 = vmatpush.bf16.msra.mxu3 %v16099_v62  ;;  %v16435_v62 = vor.u32 %v18785_v54, %v16434_v53  ;;  %v16883_v0 = vor.u32 %v18897_v59, %v16882_v58  ;;  %v18876_v53 = vld [vmem:[%s28127_s1 + $0x2708] sm:$0xf0]  ;;  %v17022_v54 = vld [vmem:[%s28127_s1 + $0x28b0] sm:$0xf] }
  0xa0   :  { %9165 = vmatpush.bf16.msra.mxu0 %v15399_v5  ;;  %v18834_v5 = vld [vmem:[%s28127_s1 + $0x25b8] sm:$0xf0]  ;;  %v8959_v57 = vpop.f32.mrf.mxu0 }
  0xa1   :  { %9178 = vmatpush.bf16.msra.mxu1 %v15623_v10  ;;  %v16407_v10 = vor.u32 %v18778_v2, %v16406_v1  ;;  %v16631_v12 = vor.u32 %v18834_v5, %v16630_v3  ;;  %v17023_v1 = vor.u32 %v18932_v55, %v17022_v54  ;;  %v18813_v2 = vld [vmem:[%s28127_s1 + $0x2510] sm:$0xf0]  ;;  %v16770_v3 = vld [vmem:[%s28127_s1 + $0x26b8] sm:$0xf] }
  0xa2   :  { %9191 = vmatpush.bf16.msra.mxu2 %v15847_v11  ;;  %v16378_v11 = vld [vmem:[%s28127_s1 + $0x23a8] sm:$0xf]  ;;  %v16994_v5 = vld [vmem:[%s28127_s1 + $0x2878] sm:$0xf] }
  0xa3   :  { %9204 = vmatpush.bf16.msra.mxu3 %v16071_v16  ;;  %9166 = vmatmul.bf16.vlgmr.msra.gmra.mxu0 %v20210_v37  ;;  %v18827_v16 = vld [vmem:[%s28127_s1 + $0x2580] sm:$0xf0]  ;;  %v16379_v34 = vor.u32 %v18771_v14, %v16378_v11  ;;  %v16518_v11 = vld [vmem:[%s28127_s1 + $0x24c0] sm:$0xf] }
  0xa4   :  { %9210 = vmatpush.bf16.msrb.mxu0 %v16491_v17  ;;  %9179 = vmatmul.bf16.vlgmr.msra.gmra.mxu1 %v20223_v46  ;;  %v17079_v17 = vor.u32 %v18946_v9, %v17078_v8  ;;  %v16603_v39 = vor.u32 %v18827_v16, %v16602_v15  ;;  %v16323_v9 = vor.u32 %v18757_v61, %v16322_v60  ;;  %v16742_v15 = vld [vmem:[%s28127_s1 + $0x2680] sm:$0xf]  ;;  %v18862_v16 = vld [vmem:[%s28127_s1 + $0x2698] sm:$0xf0] }
  0xa5   :  { %9223 = vmatpush.bf16.msrb.mxu1 %v16715_v24  ;;  %9192 = vmatmul.bf16.vlgmr.msra.gmra.mxu2 %v20221_v45  ;;  %v18883_v24 = vld [vmem:[%s28127_s1 + $0x2740] sm:$0xf0] }
  0xa6   :  { %9236 = vmatpush.bf16.msrb.mxu2 %v16939_v26  ;;  %9205 = vmatmul.bf16.vlgmr.msra.gmra.mxu3 %v20231_v49  ;;  %v1646_v26 = vld [vmem:[%s28129_s2] sm:$0x7f]  ;;  %v16827_v40 = vor.u32 %v18883_v24, %v16826_v21  ;;  %v16995_v24 = vor.u32 %v18925_v6, %v16994_v5  ;;  %v17669_v5 = vld [vmem:[%s28127_s1 + $0x154] sm:$0xf] }
  0xa7   :  { %9249 = vmatpush.bf16.msrb.mxu3 %v17163_v36  ;;  %v16350_v36 = vld [vmem:[%s28127_s1 + $0x2370] sm:$0xf]  ;;  %v1648_v48 = vperm.slane %v1646_v26, 0  ;;  %v16966_v26 = vld [vmem:[%s28127_s1 + $0x2840] sm:$0xf] }
  0xa8   :  { %9211 = vmatpush.bf16.msrb.mxu0 %v16463_v50  ;;  %v17051_v50 = vor.u32 %v18939_v32, %v17050_v27  ;;  %v8985_v21 = vpop.f32.mrf.mxu2  ;;  %v18918_v27 = vld [vmem:[%s28127_s1 + $0x2858] sm:$0xf0]  ;;  %v8961_v54 = vpop.f32.mrf.mxu0 }
  0xa9   :  { %9224 = vmatpush.bf16.msrb.mxu1 %v16687_v51  ;;  %v18820_v51 = vld [vmem:[%s28127_s1 + $0x2548] sm:$0xf0]  ;;  %v44_v32 = vld [vmem:[%s28128_s0 + $0x58] sm:$0xff]  ;;  %v17302_v54 = vld [vmem:[%s28127_s1 + $0x2ae0] sm:$0xf] }
  0xaa   :  { %9237 = vmatpush.bf16.msrb.mxu2 %v16911_v52  ;;  %v16798_v52 = vld [vmem:[%s28127_s1 + $0x26f0] sm:$0xf]  ;;  %v16575_v58 = vor.u32 %v18820_v51, %v16574_v47  ;;  %v12236_v51 = vld [vmem:[%s28127_s1 + $0x364] sm:$0xf0] }
  0xab   :  { %9250 = vmatpush.bf16.msrb.mxu3 %v17135_v56  ;;  %v16351_v56 = vor.u32 %v18764_v43, %v16350_v36  ;;  %v16799_v59 = vor.u32 %v18876_v53, %v16798_v52  ;;  %v8998_v36 = vpop.f32.mrf.mxu3  ;;  %v17676_v43 = vld [vmem:[%s28127_s1 + $0x18c] sm:$0xf] }
  0xac   :  { %9212 = vmatpush.bf16.msrb.mxu0 %v16435_v62  ;;  %v16546_v62 = vld [vmem:[%s28127_s1 + $0x24f8] sm:$0xf] }
  0xad   :  { %9225 = vmatpush.bf16.msrb.mxu1 %v16659_v63  ;;  %v8960_v63 = vadd.f32 %v8959_v57, %v1648_v48  ;;  %v12012_v48 = vld [vmem:[%s28127_s1 + $0x1a4] sm:$0xf0]  ;;  %v17788_v57 = vld [vmem:[%s28127_s1 + $0x50c] sm:$0xf] }
  0xae   :  { %9238 = vmatpush.bf16.msrb.mxu2 %v16883_v0  ;;  %v8972_v0 = vpop.f32.mrf.mxu1 }
  0xaf   :  { %9251 = vmatpush.bf16.msrb.mxu3 %v17107_v4  ;;  %v18869_v4 = vld [vmem:[%s28127_s1 + $0x26d0] sm:$0xf0]  ;;  %v8973_v8 = vadd.f32 %v8972_v0, %v8960_v63  ;;  %v1698_v0 = vunpack.c.h.b16 %v44_v32 }
  0xb0   :  { %9213 = vmatpush.bf16.msrb.mxu0 %v16407_v10  ;;  %v18750_v10 = vld [vmem:[%s28127_s1 + $0x2318] sm:$0xf0]  ;;  %v16771_v14 = vor.u32 %v18869_v4, %v16770_v3  ;;  %v17358_v3 = vld [vmem:[%s28127_s1 + $0x2b50] sm:$0xf]  ;;  %v19016_v4 = vld [vmem:[%s28127_s1 + $0x2b68] sm:$0xf0] }
  0xb1   :  { %9226 = vmatpush.bf16.msrb.mxu1 %v16631_v12  ;;  %v18806_v12 = vld [vmem:[%s28127_s1 + $0x24d8] sm:$0xf0]  ;;  %v16295_v47 = vor.u32 %v18750_v10, %v16294_v7  ;;  %v12208_v10 = vld [vmem:[%s28127_s1 + $0x32c] sm:$0xf0] }
  0xb2   :  { %9239 = vmatpush.bf16.msrb.mxu2 %v16855_v13  ;;  %v16547_v13 = vor.u32 %v18813_v2, %v16546_v62  ;;  %v16519_v55 = vor.u32 %v18806_v12, %v16518_v11  ;;  %v16967_v62 = vor.u32 %v18918_v27, %v16966_v26  ;;  %v17330_v27 = vld [vmem:[%s28127_s1 + $0x2b18] sm:$0xf] }
  0xb3   :  { %9252 = vmatpush.bf16.msrb.mxu3 %v17079_v17  ;;  %v43_v17 = vld [vmem:[%s28128_s0 + $0x50] sm:$0xff] }
  0xb4   :  { %9214 = vmatpush.bf16.msrb.mxu0 %v16379_v34  ;;  %v8986_v34 = vadd.f32 %v8985_v21, %v8973_v8  ;;  %v1695_v52 = vunpack.c.l.b16 %v43_v17  ;;  %v1696_v60 = vunpack.c.h.b16 %v43_v17  ;;  %v11984_v8 = vld [vmem:[%s28127_s1 + $0x16c] sm:$0xf0]  ;;  %v17359_v17 = vor.u32 %v19016_v4, %v17358_v3  ;;  %v9000_v21 = vpop.f32.mrf.mxu3  ;;  %v17274_v3 = vld [vmem:[%s28127_s1 + $0x2aa8] sm:$0xf]  ;;  %v18995_v4 = vld [vmem:[%s28127_s1 + $0x2ac0] sm:$0xf0] }
  0xb5   :  { %9227 = vmatpush.bf16.msrb.mxu1 %v16603_v39  ;;  %v17386_v39 = vld [vmem:[%s28127_s1 + $0x2b88] sm:$0xf]  ;;  %v17275_v21 = vor.u32 %v18995_v4, %v17274_v3  ;;  %v17746_v3 = vld [vmem:[%s28127_s1 + $0x3bc] sm:$0xf]  ;;  %v12292_v4 = vld [vmem:[%s28127_s1 + $0x3d4] sm:$0xf0] }
  0xb6   :  { %9240 = vmatpush.bf16.msrb.mxu2 %v16827_v40  ;;  %v19023_v40 = vld [vmem:[%s28127_s1 + $0x2ba0] sm:$0xf0]  ;;  %v20408_v53 = vadd.f32 %v8998_v36, %v8986_v34  ;;  %v8974_v61 = vpop.f32.mrf.mxu1  ;;  %v20425_v7 = vpack.c.b16 %v1695_v52, %v1695_v52  ;;  %v20438_v12 = vpack.c.b16 %v1696_v60, %v1696_v60  ;;  %v17662_v34 = vld [vmem:[%s28127_s1 + $0x11c] sm:$0xf]  ;;  %v12152_v60 = vld [vmem:[%s28127_s1 + $0x2bc] sm:$0xf0] }
  0xb7   :  { %9253 = vmatpush.bf16.msrb.mxu3 %v17051_v50  ;;  %v17732_v50 = vld [vmem:[%s28127_s1 + $0x34c] sm:$0xf]  ;;  %v17387_v63 = vor.u32 %v19023_v40, %v17386_v39  ;;  %v11956_v39 = vld [vmem:[%s28127_s1 + $0x134] sm:$0xf0]  ;;  %v17718_v40 = vld [vmem:[%s28127_s1 + $0x2dc] sm:$0xf] }
  0xb8   :  { %9215 = vmatpush.bf16.msrb.mxu0 %v16351_v56  ;;  %v16743_v56 = vor.u32 %v18862_v16, %v16742_v15  ;;  %v12239_v2 = vor.u32 %v17732_v50, %v12236_v51  ;;  %v8987_v15 = vpop.f32.mrf.mxu2  ;;  %v20446_v16 = vpack.c.b16 %v1698_v0, %v1698_v0  ;;  %v11959_v51 = vor.u32 %v17662_v34, %v11956_v39  ;;  %v17767_v61 = vld [vmem:[%s28127_s1 + $0x464] sm:$0xf]  ;;  %v17641_v34 = vld [vmem:[%s28127_s1 + $0x74] sm:$0xf] }
  0xb9   :  { %9228 = vmatpush.bf16.msrb.mxu1 %v16575_v58  ;;  %v12460_v58 = vld [vmem:[%s28127_s1 + $0x524] sm:$0xf0]  ;;  %v17760_v15 = vld [vmem:[%s28127_s1 + $0x42c] sm:$0xf] }
  0xba   :  { %9241 = vmatpush.bf16.msrb.mxu2 %v16799_v59  ;;  %v1697_v59 = vunpack.c.l.b16 %v44_v32  ;;  %v12463_v6 = vor.u32 %v17788_v57, %v12460_v58  ;;  %v19009_v32 = vld [vmem:[%s28127_s1 + $0x2b30] sm:$0xf0]  ;;  %v11928_v58 = vld [vmem:[%s28127_s1 + $0xfc] sm:$0xf0] }
  0xbb   :  { %9254 = vmatpush.bf16.msrb.mxu3 %v17023_v1  ;;  %v12015_v1 = vor.u32 %v17676_v43, %v12012_v48  ;;  %v12180_v43 = vld [vmem:[%s28127_s1 + $0x2f4] sm:$0xf0]  ;;  %v17331_v50 = vor.u32 %v19009_v32, %v17330_v27  ;;  %v17246_v27 = vld [vmem:[%s28127_s1 + $0x2a70] sm:$0xf]  ;;  %v18988_v32 = vld [vmem:[%s28127_s1 + $0x2a88] sm:$0xf0] }
  0xbc   :  { %9216 = vmatpush.bf16.msrb.mxu0 %v16323_v9  ;;  %v17725_v9 = vld [vmem:[%s28127_s1 + $0x314] sm:$0xf]  ;;  %v20436_v11 = vpack.c.b16 %v1697_v59, %v1697_v59  ;;  %v12404_v48 = vld [vmem:[%s28127_s1 + $0x4b4] sm:$0xf0]  ;;  %v12183_v52 = vor.u32 %v17718_v40, %v12180_v43  ;;  %v17711_v59 = vld [vmem:[%s28127_s1 + $0x2a4] sm:$0xf] }
  0xbd   :  { %9229 = vmatpush.bf16.msrb.mxu1 %v16547_v13  ;;  %v17781_v13 = vld [vmem:[%s28127_s1 + $0x4d4] sm:$0xf]  ;;  %v12211_v26 = vor.u32 %v17725_v9, %v12208_v10  ;;  %v11900_v10 = vld [vmem:[%s28127_s1 + $0xc4] sm:$0xf0]  ;;  %v11872_v40 = vld [vmem:[%s28127_s1 + $0x8c] sm:$0xf0] }
  0xbe   :  { %9242 = vmatpush.bf16.msrb.mxu2 %v16771_v14  ;;  %v12432_v14 = vld [vmem:[%s28127_s1 + $0x4ec] sm:$0xf0]  ;;  %v17697_v43 = vld [vmem:[%s28127_s1 + $0x234] sm:$0xf] }
  0xbf   :  { %9255 = vmatpush.bf16.msrb.mxu3 %v16995_v24  ;;  %v11987_v24 = vor.u32 %v17669_v5, %v11984_v8  ;;  %v12435_v36 = vor.u32 %v17781_v13, %v12432_v14  ;;  %v17648_v5 = vld [vmem:[%s28127_s1 + $0xac] sm:$0xf]  ;;  %v12124_v14 = vld [vmem:[%s28127_s1 + $0x284] sm:$0xf0] }
  0xc0   :  { %9217 = vmatpush.bf16.msrb.mxu0 %v16295_v47  ;;  %v17774_v47 = vld [vmem:[%s28127_s1 + $0x49c] sm:$0xf]  ;;  %v9011_v0 = vpop.f32.mrf.mxu0  ;;  %v17704_v13 = vld [vmem:[%s28127_s1 + $0x26c] sm:$0xf] }
  0xc1   :  { %9230 = vmatpush.bf16.msrb.mxu1 %v16519_v55  ;;  %v19002_v55 = vld [vmem:[%s28127_s1 + $0x2af8] sm:$0xf0]  ;;  %v12407_v57 = vor.u32 %v17774_v47, %v12404_v48  ;;  %v9024_v8 = vpop.f32.mrf.mxu1  ;;  %v12096_v47 = vld [vmem:[%s28127_s1 + $0x24c] sm:$0xf0] }
  0xc2   :  { %9243 = vmatpush.bf16.msrb.mxu2 %v16743_v56  ;;  %v17655_v56 = vld [vmem:[%s28127_s1 + $0xe4] sm:$0xf] }
  0xc3   :  { %9256 = vmatpush.bf16.msrb.mxu3 %v16967_v62  ;;  %9218 = vmatmul.bf16.vlgmr.msrb.gmra.mxu0 %v20425_v7  ;;  %v12376_v62 = vld [vmem:[%s28127_s1 + $0x47c] sm:$0xf0] }
  0xc4   :  { %9262 = vmatpush.bf16.msra.mxu0 %v17387_v63  ;;  %9231 = vmatmul.bf16.vlgmr.msrb.gmra.mxu1 %v20438_v12  ;;  %v17303_v63 = vor.u32 %v19002_v55, %v17302_v54  ;;  %v12379_v9 = vor.u32 %v17767_v61, %v12376_v62  ;;  %v17247_v54 = vor.u32 %v18988_v32, %v17246_v27  ;;  %v17634_v61 = vld [vmem:[%s28127_s1 + $0x3c] sm:$0xf]  ;;  %v12264_v27 = vld [vmem:[%s28127_s1 + $0x39c] sm:$0xf0] }
  0xc5   :  { %9275 = vmatpush.bf16.msra.mxu1 %v12015_v1  ;;  %9244 = vmatmul.bf16.vlgmr.msrb.gmra.mxu2 %v20436_v11  ;;  %v11931_v1 = vor.u32 %v17655_v56, %v11928_v58  ;;  %v12099_v58 = vor.u32 %v17697_v43, %v12096_v47  ;;  %v12908_v43 = vld [vmem:[%s28127_s1 + $0x8a4] sm:$0xf0]  ;;  %v17956_v47 = vld [vmem:[%s28127_s1 + $0xa4c] sm:$0xf] }
  0xc6   :  { %9288 = vmatpush.bf16.msra.mxu2 %v12239_v2  ;;  %9257 = vmatmul.bf16.vlgmr.msrb.gmra.mxu3 %v20446_v16  ;;  %v12155_v2 = vor.u32 %v17711_v59, %v12152_v60  ;;  %v17218_v59 = vld [vmem:[%s28127_s1 + $0x2a38] sm:$0xf]  ;;  %v18981_v60 = vld [vmem:[%s28127_s1 + $0x2a50] sm:$0xf0] }
  0xc7   :  { %9301 = vmatpush.bf16.msra.mxu3 %v12463_v6  ;;  %v9012_v6 = vadd.f32 %v9011_v0, %v20408_v53  ;;  %v12348_v53 = vld [vmem:[%s28127_s1 + $0x444] sm:$0xf0]  ;;  %v11844_v0 = vld [vmem:[%s28127_s1 + $0x54] sm:$0xf0] }
  0xc8   :  { %9263 = vmatpush.bf16.msra.mxu0 %v17359_v17  ;;  %v12351_v39 = vor.u32 %v17760_v15, %v12348_v53  ;;  %v9013_v56 = vpop.f32.mrf.mxu0  ;;  %v17683_v15 = vld [vmem:[%s28127_s1 + $0x1c4] sm:$0xf]  ;;  %v45_v53 = vld [vmem:[%s28128_s0 + $0x60] sm:$0xf] }
  0xc9   :  { %9276 = vmatpush.bf16.msra.mxu1 %v11987_v24  ;;  %v9025_v17 = vadd.f32 %v9024_v8, %v9012_v6  ;;  %v11903_v24 = vor.u32 %v17648_v5, %v11900_v10  ;;  %v9026_v62 = vpop.f32.mrf.mxu1  ;;  %v17219_v5 = vor.u32 %v18981_v60, %v17218_v59  ;;  %v17190_v6 = vld [vmem:[%s28127_s1 + $0x2a00] sm:$0xf]  ;;  %v18974_v8 = vld [vmem:[%s28127_s1 + $0x2a18] sm:$0xf0]  ;;  %v11847_v10 = vor.u32 %v17634_v61, %v11844_v0  ;;  %v13356_v56 = vld [vmem:[%s28127_s1 + $0xc24] sm:$0xf0] }
  0xca   :  { %9289 = vmatpush.bf16.msra.mxu2 %v12211_v26  ;;  %v12127_v26 = vor.u32 %v17704_v13, %v12124_v14  ;;  %v11816_v14 = vld [vmem:[%s28127_s1 + $0x1c] sm:$0xf0]  ;;  %v17837_v61 = vld [vmem:[%s28127_s1 + $0x694] sm:$0xf]  ;;  %v12656_v62 = vld [vmem:[%s28127_s1 + $0x6ac] sm:$0xf0] }
  0xcb   :  { %9302 = vmatpush.bf16.msra.mxu3 %v12435_v36  ;;  %v9037_v36 = vpop.f32.mrf.mxu2 }
  0xcc   :  { %9264 = vmatpush.bf16.msra.mxu0 %v17331_v50  ;;  %v9038_v48 = vadd.f32 %v9037_v36, %v9025_v17  ;;  %v9050_v50 = vpop.f32.mrf.mxu3  ;;  %v12684_v36 = vld [vmem:[%s28127_s1 + $0x6e4] sm:$0xf0] }
  0xcd   :  { %9277 = vmatpush.bf16.msra.mxu1 %v11959_v51  ;;  %v17753_v51 = vld [vmem:[%s28127_s1 + $0x3f4] sm:$0xf] }
  0xce   :  { %9290 = vmatpush.bf16.msra.mxu2 %v12183_v52  ;;  %v12320_v52 = vld [vmem:[%s28127_s1 + $0x40c] sm:$0xf0]  ;;  %v20549_v55 = vadd.f32 %v9050_v50, %v9038_v48  ;;  %v13132_v48 = vld [vmem:[%s28127_s1 + $0xa64] sm:$0xf0]  ;;  %v1699_v50 = vunpack.c.l.b16 %v45_v53 }
  0xcf   :  { %9303 = vmatpush.bf16.msra.mxu3 %v12407_v57  ;;  %v11875_v57 = vor.u32 %v17641_v34, %v11872_v40  ;;  %v17844_v34 = vld [vmem:[%s28127_s1 + $0x6cc] sm:$0xf]  ;;  %v17191_v40 = vor.u32 %v18974_v8, %v17190_v6  ;;  %v13135_v60 = vor.u32 %v17956_v47, %v13132_v48  ;;  %v13328_v6 = vld [vmem:[%s28127_s1 + $0xbec] sm:$0xf0]  ;;  %v12659_v8 = vor.u32 %v17837_v61, %v12656_v62  ;;  %v12824_v48 = vld [vmem:[%s28127_s1 + $0x7fc] sm:$0xf0] }
  0xd0   :  { %9265 = vmatpush.bf16.msra.mxu0 %v17303_v63  ;;  %v12323_v63 = vor.u32 %v17753_v51, %v12320_v52  ;;  %v17816_v62 = vld [vmem:[%s28127_s1 + $0x5ec] sm:$0xf] }
  0xd1   :  { %9278 = vmatpush.bf16.msra.mxu1 %v11931_v1  ;;  %v17690_v1 = vld [vmem:[%s28127_s1 + $0x1fc] sm:$0xf] }
  0xd2   :  { %9291 = vmatpush.bf16.msra.mxu2 %v12155_v2  ;;  %v12068_v2 = vld [vmem:[%s28127_s1 + $0x214] sm:$0xf0] }
  0xd3   :  { %9304 = vmatpush.bf16.msra.mxu3 %v12379_v9  ;;  %v17627_v9 = vld [vmem:[%s28127_s1 + $0x4] sm:$0xf]  ;;  %v12071_v13 = vor.u32 %v17690_v1, %v12068_v2  ;;  %v9039_v17 = vpop.f32.mrf.mxu2  ;;  %v20635_v1 = vpack.c.b16 %v1699_v50, %v1699_v50  ;;  %v12880_v2 = vld [vmem:[%s28127_s1 + $0x86c] sm:$0xf0] }
  0xd4   :  { %9266 = vmatpush.bf16.msra.mxu0 %v17275_v21  ;;  %v12295_v21 = vor.u32 %v17746_v3, %v12292_v4  ;;  %v9052_v32 = vpop.f32.mrf.mxu3  ;;  %v11819_v51 = vor.u32 %v17627_v9, %v11816_v14  ;;  %v17949_v3 = vld [vmem:[%s28127_s1 + $0xa14] sm:$0xf]  ;;  %v13104_v4 = vld [vmem:[%s28127_s1 + $0xa2c] sm:$0xf0]  ;;  %v12628_v14 = vld [vmem:[%s28127_s1 + $0x674] sm:$0xf0] }
  0xd5   :  { %9279 = vmatpush.bf16.msra.mxu1 %v11903_v24  ;;  %v12040_v24 = vld [vmem:[%s28127_s1 + $0x1dc] sm:$0xf0]  ;;  %v12852_v17 = vld [vmem:[%s28127_s1 + $0x834] sm:$0xf0]  ;;  %v17935_v50 = vld [vmem:[%s28127_s1 + $0x9a4] sm:$0xf] }
  0xd6   :  { %9292 = vmatpush.bf16.msra.mxu2 %v12127_v26  ;;  %v17739_v26 = vld [vmem:[%s28127_s1 + $0x384] sm:$0xf]  ;;  %v12043_v52 = vor.u32 %v17683_v15, %v12040_v24  ;;  %v17886_v15 = vld [vmem:[%s28127_s1 + $0x81c] sm:$0xf]  ;;  %v13076_v24 = vld [vmem:[%s28127_s1 + $0x9f4] sm:$0xf0] }
  0xd7   :  { %9305 = vmatpush.bf16.msra.mxu3 %v12351_v39  ;;  %v17900_v39 = vld [vmem:[%s28127_s1 + $0x88c] sm:$0xf] }
  0xd8   :  { %9267 = vmatpush.bf16.msra.mxu0 %v17247_v54  ;;  %v18012_v54 = vld [vmem:[%s28127_s1 + $0xc0c] sm:$0xf]  ;;  %v12911_v59 = vor.u32 %v17900_v39, %v12908_v43  ;;  %v17823_v39 = vld [vmem:[%s28127_s1 + $0x624] sm:$0xf] }
  0xd9   :  { %9280 = vmatpush.bf16.msra.mxu1 %v11875_v57  ;;  %v12267_v57 = vor.u32 %v17739_v26, %v12264_v27  ;;  %v13359_v0 = vor.u32 %v18012_v54, %v13356_v56  ;;  %v17998_v26 = vld [vmem:[%s28127_s1 + $0xb9c] sm:$0xf]  ;;  %v13300_v27 = vld [vmem:[%s28127_s1 + $0xbb4] sm:$0xf0]  ;;  %v17879_v43 = vld [vmem:[%s28127_s1 + $0x7e4] sm:$0xf] }
  0xda   :  { %9293 = vmatpush.bf16.msra.mxu2 %v12099_v58  ;;  %v12687_v58 = vor.u32 %v17844_v34, %v12684_v36  ;;  %v12855_v34 = vor.u32 %v17886_v15, %v12852_v17  ;;  %v13303_v47 = vor.u32 %v17998_v26, %v13300_v27  ;;  %v17991_v54 = vld [vmem:[%s28127_s1 + $0xb64] sm:$0xf]  ;;  %v13272_v56 = vld [vmem:[%s28127_s1 + $0xb7c] sm:$0xf0]  ;;  %v12544_v15 = vld [vmem:[%s28127_s1 + $0x5cc] sm:$0xf0] }
  0xdb   :  { %9306 = vmatpush.bf16.msra.mxu3 %v12323_v63  ;;  %v17893_v63 = vld [vmem:[%s28127_s1 + $0x854] sm:$0xf]  ;;  %v12992_v27 = vld [vmem:[%s28127_s1 + $0x94c] sm:$0xf0] }
  0xdc   :  { %9268 = vmatpush.bf16.msra.mxu0 %v17219_v5  ;;  %v18005_v5 = vld [vmem:[%s28127_s1 + $0xbd4] sm:$0xf]  ;;  %v12883_v9 = vor.u32 %v17893_v63, %v12880_v2  ;;  %v12572_v63 = vld [vmem:[%s28127_s1 + $0x604] sm:$0xf0] }
  0xdd   :  { %9281 = vmatpush.bf16.msra.mxu1 %v11847_v10  ;;  %v13107_v10 = vor.u32 %v17949_v3, %v13104_v4  ;;  %v13331_v53 = vor.u32 %v18005_v5, %v13328_v6  ;;  %v12796_v3 = vld [vmem:[%s28127_s1 + $0x7c4] sm:$0xf0]  ;;  %v17928_v4 = vld [vmem:[%s28127_s1 + $0x96c] sm:$0xf]  ;;  %v17921_v26 = vld [vmem:[%s28127_s1 + $0x934] sm:$0xf] }
  0xde   :  { %9294 = vmatpush.bf16.msra.mxu2 %v12071_v13  ;;  %v17830_v13 = vld [vmem:[%s28127_s1 + $0x65c] sm:$0xf]  ;;  %v13020_v5 = vld [vmem:[%s28127_s1 + $0x984] sm:$0xf0]  ;;  %v17984_v6 = vld [vmem:[%s28127_s1 + $0xb2c] sm:$0xf] }
  0xdf   :  { %9307 = vmatpush.bf16.msra.mxu3 %v12295_v21  ;;  %v17942_v21 = vld [vmem:[%s28127_s1 + $0x9dc] sm:$0xf]  ;;  %v12631_v32 = vor.u32 %v17830_v13, %v12628_v14  ;;  %v13023_v13 = vor.u32 %v17928_v4, %v13020_v5  ;;  %v17809_v14 = vld [vmem:[%s28127_s1 + $0x5b4] sm:$0xf]  ;;  %v17851_v4 = vld [vmem:[%s28127_s1 + $0x704] sm:$0xf] }
  0xe0   :  { %9269 = vmatpush.bf16.msra.mxu0 %v17191_v40  ;;  %v13079_v36 = vor.u32 %v17942_v21, %v13076_v24  ;;  %v12600_v40 = vld [vmem:[%s28127_s1 + $0x63c] sm:$0xf0]  ;;  %v12768_v24 = vld [vmem:[%s28127_s1 + $0x78c] sm:$0xf0] }
  0xe1   :  { %9282 = vmatpush.bf16.msra.mxu1 %v11819_v51  ;;  %v13048_v51 = vld [vmem:[%s28127_s1 + $0x9bc] sm:$0xf0] }
  0xe2   :  { %9295 = vmatpush.bf16.msra.mxu2 %v12043_v52  ;;  %v9063_v52 = vpop.f32.mrf.mxu0  ;;  %v13051_v61 = vor.u32 %v17935_v50, %v13048_v51  ;;  %v12995_v51 = vor.u32 %v17921_v26, %v12992_v27  ;;  %v12712_v5 = vld [vmem:[%s28127_s1 + $0x71c] sm:$0xf0]  ;;  %v13804_v26 = vld [vmem:[%s28127_s1 + $0xfa4] sm:$0xf0]  ;;  %v18180_v27 = vld [vmem:[%s28127_s1 + $0x114c] sm:$0xf] }
  0xe3   :  { %9308 = vmatpush.bf16.msra.mxu3 %v12267_v57  ;;  %9270 = vmatmul.bf16.vlgmr.msra.gmra.mxu0 %v20635_v1  ;;  %v9064_v57 = vadd.f32 %v9063_v52, %v20549_v55  ;;  %v13275_v55 = vor.u32 %v17991_v54, %v13272_v56  ;;  %v17802_v52 = vld [vmem:[%s28127_s1 + $0x57c] sm:$0xf]  ;;  %v12516_v54 = vld [vmem:[%s28127_s1 + $0x594] sm:$0xf0] }
  0xe4   :  { %9314 = vmatpush.bf16.msrb.mxu0 %v12687_v58  ;;  %9283 = vmatmul.bf16.vlgmr.msra.gmra.mxu1 %v19435_v19  ;;  %v12603_v58 = vor.u32 %v17823_v39, %v12600_v40  ;;  %v13216_v39 = vld [vmem:[%s28127_s1 + $0xb0c] sm:$0xf0]  ;;  %v17858_v56 = vld [vmem:[%s28127_s1 + $0x73c] sm:$0xf] }
  0xe5   :  { %9327 = vmatpush.bf16.msrb.mxu1 %v12911_v59  ;;  %9296 = vmatmul.bf16.vlgmr.msra.gmra.mxu2 %v19439_v22  ;;  %v9076_v59 = vpop.f32.mrf.mxu1 }
  0xe6   :  { %9340 = vmatpush.bf16.msrb.mxu2 %v13135_v60  ;;  %9309 = vmatmul.bf16.vlgmr.msra.gmra.mxu3 %v19433_v18  ;;  %v12827_v60 = vor.u32 %v17879_v43, %v12824_v48  ;;  %v9077_v2 = vadd.f32 %v9076_v59, %v9064_v57  ;;  %v12547_v43 = vor.u32 %v17809_v14, %v12544_v15  ;;  %v17914_v59 = vld [vmem:[%s28127_s1 + $0x8fc] sm:$0xf]  ;;  %v18068_v15 = vld [vmem:[%s28127_s1 + $0xdcc] sm:$0xf] }
  0xe7   :  { %9353 = vmatpush.bf16.msrb.mxu3 %v13359_v0  ;;  %v17872_v0 = vld [vmem:[%s28127_s1 + $0x7ac] sm:$0xf] }
  0xe8   :  { %9315 = vmatpush.bf16.msrb.mxu0 %v12659_v8  ;;  %v13244_v8 = vld [vmem:[%s28127_s1 + $0xb44] sm:$0xf0]  ;;  %v9089_v21 = vpop.f32.mrf.mxu2 }
  0xe9   :  { %9328 = vmatpush.bf16.msrb.mxu1 %v12883_v9  ;;  %v12575_v9 = vor.u32 %v17816_v62, %v12572_v63  ;;  %v13247_v17 = vor.u32 %v17984_v6, %v13244_v8  ;;  %v13188_v62 = vld [vmem:[%s28127_s1 + $0xad4] sm:$0xf0]  ;;  %v12519_v63 = vor.u32 %v17802_v52, %v12516_v54  ;;  %v17907_v6 = vld [vmem:[%s28127_s1 + $0x8c4] sm:$0xf]  ;;  %v18061_v52 = vld [vmem:[%s28127_s1 + $0xd94] sm:$0xf] }
  0xea   :  { %9341 = vmatpush.bf16.msrb.mxu2 %v13107_v10  ;;  %v12799_v10 = vor.u32 %v17872_v0, %v12796_v3  ;;  %v9065_v40 = vpop.f32.mrf.mxu0  ;;  %v17795_v0 = vld [vmem:[%s28127_s1 + $0x544] sm:$0xf]  ;;  %v13552_v54 = vld [vmem:[%s28127_s1 + $0xdac] sm:$0xf0] }
  0xeb   :  { %9354 = vmatpush.bf16.msrb.mxu3 %v13331_v53  ;;  %v17865_v53 = vld [vmem:[%s28127_s1 + $0x774] sm:$0xf]  ;;  %v14252_v40 = vld [vmem:[%s28127_s1 + $0x1324] sm:$0xf0] }
  0xec   :  { %9316 = vmatpush.bf16.msrb.mxu0 %v12631_v32  ;;  %v9090_v32 = vadd.f32 %v9089_v21, %v9077_v2  ;;  %v12771_v50 = vor.u32 %v17865_v53, %v12768_v24  ;;  %v13580_v53 = vld [vmem:[%s28127_s1 + $0xde4] sm:$0xf0] }
  0xed   :  { %9329 = vmatpush.bf16.msrb.mxu1 %v12855_v34  ;;  %v9102_v34 = vpop.f32.mrf.mxu3 }
  0xee   :  { %9342 = vmatpush.bf16.msrb.mxu2 %v13079_v36  ;;  %v17977_v36 = vld [vmem:[%s28127_s1 + $0xaf4] sm:$0xf]  ;;  %v20753_v48 = vadd.f32 %v9102_v34, %v9090_v32  ;;  %v14028_v32 = vld [vmem:[%s28127_s1 + $0x1164] sm:$0xf0]  ;;  %v12715_v34 = vor.u32 %v17851_v4, %v12712_v5  ;;  %v18110_v4 = vld [vmem:[%s28127_s1 + $0xf1c] sm:$0xf] }
  0xef   :  { %9355 = vmatpush.bf16.msrb.mxu3 %v13303_v47  ;;  %v9078_v47 = vpop.f32.mrf.mxu1  ;;  %v13219_v57 = vor.u32 %v17977_v36, %v13216_v39  ;;  %v18236_v39 = vld [vmem:[%s28127_s1 + $0x130c] sm:$0xf] }
  0xf0   :  { %9317 = vmatpush.bf16.msrb.mxu0 %v12603_v58  ;;  %v12740_v58 = vld [vmem:[%s28127_s1 + $0x754] sm:$0xf0]  ;;  %v9091_v14 = vpop.f32.mrf.mxu2  ;;  %v13583_v47 = vor.u32 %v18068_v15, %v13580_v53 }
  0xf1   :  { %9330 = vmatpush.bf16.msrb.mxu1 %v12827_v60  ;;  %v12964_v60 = vld [vmem:[%s28127_s1 + $0x914] sm:$0xf0]  ;;  %v12743_v2 = vor.u32 %v17858_v56, %v12740_v58  ;;  %v18117_v56 = vld [vmem:[%s28127_s1 + $0xf54] sm:$0xf]  ;;  %v13776_v58 = vld [vmem:[%s28127_s1 + $0xf6c] sm:$0xf0] }
  0xf2   :  { %9343 = vmatpush.bf16.msrb.mxu2 %v13051_v61  ;;  %v17970_v61 = vld [vmem:[%s28127_s1 + $0xabc] sm:$0xf]  ;;  %v12967_v3 = vor.u32 %v17914_v59, %v12964_v60  ;;  %v18173_v59 = vld [vmem:[%s28127_s1 + $0x1114] sm:$0xf]  ;;  %v14000_v60 = vld [vmem:[%s28127_s1 + $0x112c] sm:$0xf0] }
  0xf3   :  { %9356 = vmatpush.bf16.msrb.mxu3 %v13275_v55  ;;  %v12488_v55 = vld [vmem:[%s28127_s1 + $0x55c] sm:$0xf0]  ;;  %v13191_v8 = vor.u32 %v17970_v61, %v13188_v62  ;;  %v18229_v61 = vld [vmem:[%s28127_s1 + $0x12d4] sm:$0xf]  ;;  %v14224_v62 = vld [vmem:[%s28127_s1 + $0x12ec] sm:$0xf0] }
  0xf4   :  { %9318 = vmatpush.bf16.msrb.mxu0 %v12575_v9  ;;  %v12936_v9 = vld [vmem:[%s28127_s1 + $0x8dc] sm:$0xf0]  ;;  %v12491_v24 = vor.u32 %v17795_v0, %v12488_v55  ;;  %v13779_v0 = vor.u32 %v18117_v56, %v13776_v58  ;;  %v14003_v55 = vor.u32 %v18173_v59, %v14000_v60  ;;  %v14227_v5 = vor.u32 %v18229_v61, %v14224_v62  ;;  %v13468_v56 = vld [vmem:[%s28127_s1 + $0xd04] sm:$0xf0]  ;;  %v18152_v60 = vld [vmem:[%s28127_s1 + $0x106c] sm:$0xf] }
  0xf5   :  { %9331 = vmatpush.bf16.msrb.mxu1 %v12799_v10  ;;  %v17963_v10 = vld [vmem:[%s28127_s1 + $0xa84] sm:$0xf]  ;;  %v9104_v21 = vpop.f32.mrf.mxu3  ;;  %v12939_v36 = vor.u32 %v17907_v6, %v12936_v9  ;;  %v13748_v6 = vld [vmem:[%s28127_s1 + $0xf34] sm:$0xf0]  ;;  %v13692_v59 = vld [vmem:[%s28127_s1 + $0xec4] sm:$0xf0] }
  0xf6   :  { %9344 = vmatpush.bf16.msrb.mxu2 %v13023_v13  ;;  %v13160_v13 = vld [vmem:[%s28127_s1 + $0xa9c] sm:$0xf0]  ;;  %v13972_v9 = vld [vmem:[%s28127_s1 + $0x10f4] sm:$0xf0]  ;;  %v13751_v15 = vor.u32 %v18110_v4, %v13748_v6  ;;  %v13916_v61 = vld [vmem:[%s28127_s1 + $0x1084] sm:$0xf0] }
  0xf7   :  { %9357 = vmatpush.bf16.msrb.mxu3 %v13247_v17  ;;  %v18124_v17 = vld [vmem:[%s28127_s1 + $0xf8c] sm:$0xf]  ;;  %v13496_v21 = vld [vmem:[%s28127_s1 + $0xd3c] sm:$0xf0]  ;;  %v13440_v4 = vld [vmem:[%s28127_s1 + $0xccc] sm:$0xf0] }
  0xf8   :  { %9319 = vmatpush.bf16.msrb.mxu0 %v12547_v43  ;;  %v13163_v43 = vor.u32 %v17963_v10, %v13160_v13  ;;  %v18222_v10 = vld [vmem:[%s28127_s1 + $0x129c] sm:$0xf]  ;;  %v14196_v13 = vld [vmem:[%s28127_s1 + $0x12b4] sm:$0xf0]  ;;  %v18208_v62 = vld [vmem:[%s28127_s1 + $0x122c] sm:$0xf] }
  0xf9   :  { %9332 = vmatpush.bf16.msrb.mxu1 %v12771_v50  ;;  %v13807_v50 = vor.u32 %v18124_v17, %v13804_v26  ;;  %v18047_v17 = vld [vmem:[%s28127_s1 + $0xd24] sm:$0xf]  ;;  %v14199_v26 = vor.u32 %v18222_v10, %v14196_v13  ;;  %v18145_v10 = vld [vmem:[%s28127_s1 + $0x1034] sm:$0xf]  ;;  %v13888_v13 = vld [vmem:[%s28127_s1 + $0x104c] sm:$0xf0] }
  0xfa   :  { %9345 = vmatpush.bf16.msrb.mxu2 %v12995_v51  ;;  %v14031_v51 = vor.u32 %v18180_v27, %v14028_v32  ;;  %v13720_v27 = vld [vmem:[%s28127_s1 + $0xefc] sm:$0xf0]  ;;  %v18159_v32 = vld [vmem:[%s28127_s1 + $0x10a4] sm:$0xf] }
  0xfb   :  { %9358 = vmatpush.bf16.msrb.mxu3 %v13219_v57  ;;  %v14255_v57 = vor.u32 %v18236_v39, %v14252_v40  ;;  %v18215_v39 = vld [vmem:[%s28127_s1 + $0x1264] sm:$0xf]  ;;  %v14168_v40 = vld [vmem:[%s28127_s1 + $0x127c] sm:$0xf0] }
  0xfc   :  { %9320 = vmatpush.bf16.msrb.mxu0 %v12519_v63  ;;  %v13555_v63 = vor.u32 %v18061_v52, %v13552_v54  ;;  %v18040_v54 = vld [vmem:[%s28127_s1 + $0xcec] sm:$0xf] }
  0xfd   :  { %9333 = vmatpush.bf16.msrb.mxu1 %v12743_v2  ;;  %v18054_v2 = vld [vmem:[%s28127_s1 + $0xd5c] sm:$0xf] }
  0xfe   :  { %9346 = vmatpush.bf16.msrb.mxu2 %v12967_v3  ;;  %v13524_v3 = vld [vmem:[%s28127_s1 + $0xd74] sm:$0xf0] }
  0xff   :  { %9359 = vmatpush.bf16.msrb.mxu3 %v13191_v8  ;;  %v18166_v8 = vld [vmem:[%s28127_s1 + $0x10dc] sm:$0xf]  ;;  %v13527_v14 = vor.u32 %v18054_v2, %v13524_v3  ;;  %v13919_v2 = vor.u32 %v18152_v60, %v13916_v61  ;;  %v18033_v3 = vld [vmem:[%s28127_s1 + $0xcb4] sm:$0xf]  ;;  %v18075_v60 = vld [vmem:[%s28127_s1 + $0xe04] sm:$0xf] }
 0x100   :  { %9321 = vmatpush.bf16.msrb.mxu0 %v12491_v24  ;;  %v13975_v53 = vor.u32 %v18166_v8, %v13972_v9  ;;  %v18103_v24 = vld [vmem:[%s28127_s1 + $0xee4] sm:$0xf]  ;;  %v13664_v9 = vld [vmem:[%s28127_s1 + $0xe8c] sm:$0xf0]  ;;  %v13608_v61 = vld [vmem:[%s28127_s1 + $0xe1c] sm:$0xf0] }
 0x101   :  { %9334 = vmatpush.bf16.msrb.mxu1 %v12715_v34  ;;  %v13944_v34 = vld [vmem:[%s28127_s1 + $0x10bc] sm:$0xf0] }
 0x102   :  { %9347 = vmatpush.bf16.msrb.mxu2 %v12939_v36  ;;  %v9115_v36 = vpop.f32.mrf.mxu0  ;;  %v13947_v52 = vor.u32 %v18159_v32, %v13944_v34  ;;  %v13891_v34 = vor.u32 %v18145_v10, %v13888_v13  ;;  %v14700_v10 = vld [vmem:[%s28127_s1 + $0x16a4] sm:$0xf0]  ;;  %v18404_v13 = vld [vmem:[%s28127_s1 + $0x184c] sm:$0xf] }
 0x103   :  { %9360 = vmatpush.bf16.msrb.mxu3 %v13163_v43  ;;  %9322 = vmatmul.bf16.vlgmr.msrb.gmra.mxu0 %v19437_v20  ;;  %v9116_v43 = vadd.f32 %v9115_v36, %v20753_v48  ;;  %v14171_v48 = vor.u32 %v18215_v39, %v14168_v40  ;;  %v18026_v36 = vld [vmem:[%s28127_s1 + $0xc7c] sm:$0xf]  ;;  %v13412_v39 = vld [vmem:[%s28127_s1 + $0xc94] sm:$0xf0] }
 0x104   :  { %9366 = vmatpush.bf16.msra.mxu0 %v13583_v47  ;;  %9335 = vmatmul.bf16.vlgmr.msrb.gmra.mxu1 %v19597_v41  ;;  %v13499_v47 = vor.u32 %v18047_v17, %v13496_v21  ;;  %v14112_v17 = vld [vmem:[%s28127_s1 + $0x120c] sm:$0xf0]  ;;  %v18082_v40 = vld [vmem:[%s28127_s1 + $0xe3c] sm:$0xf] }
 0x105   :  { %9379 = vmatpush.bf16.msra.mxu1 %v13807_v50  ;;  %9348 = vmatmul.bf16.vlgmr.msrb.gmra.mxu2 %v19601_v44  ;;  %v9128_v50 = vpop.f32.mrf.mxu1 }
 0x106   :  { %9392 = vmatpush.bf16.msra.mxu2 %v14031_v51  ;;  %9361 = vmatmul.bf16.vlgmr.msrb.gmra.mxu3 %v19589_v38  ;;  %v13723_v51 = vor.u32 %v18103_v24, %v13720_v27  ;;  %v9129_v58 = vadd.f32 %v9128_v50, %v9116_v43  ;;  %v13443_v24 = vor.u32 %v18033_v3, %v13440_v4  ;;  %v18138_v50 = vld [vmem:[%s28127_s1 + $0xffc] sm:$0xf]  ;;  %v18292_v4 = vld [vmem:[%s28127_s1 + $0x14cc] sm:$0xf] }
 0x107   :  { %9405 = vmatpush.bf16.msra.mxu3 %v14255_v57  ;;  %v18096_v57 = vld [vmem:[%s28127_s1 + $0xeac] sm:$0xf] }
 0x108   :  { %9367 = vmatpush.bf16.msra.mxu0 %v13555_v63  ;;  %v14140_v63 = vld [vmem:[%s28127_s1 + $0x1244] sm:$0xf0]  ;;  %v9141_v8 = vpop.f32.mrf.mxu2 }
 0x109   :  { %9380 = vmatpush.bf16.msra.mxu1 %v13779_v0  ;;  %v13471_v0 = vor.u32 %v18040_v54, %v13468_v56  ;;  %v14143_v6 = vor.u32 %v18208_v62, %v14140_v63  ;;  %v14084_v54 = vld [vmem:[%s28127_s1 + $0x11d4] sm:$0xf0]  ;;  %v13415_v56 = vor.u32 %v18026_v36, %v13412_v39  ;;  %v18131_v62 = vld [vmem:[%s28127_s1 + $0xfc4] sm:$0xf]  ;;  %v18285_v36 = vld [vmem:[%s28127_s1 + $0x1494] sm:$0xf] }
 0x10a   :  { %9393 = vmatpush.bf16.msra.mxu2 %v14003_v55  ;;  %v13695_v55 = vor.u32 %v18096_v57, %v13692_v59  ;;  %v9117_v21 = vpop.f32.mrf.mxu0  ;;  %v18019_v57 = vld [vmem:[%s28127_s1 + $0xc44] sm:$0xf]  ;;  %v14448_v39 = vld [vmem:[%s28127_s1 + $0x14ac] sm:$0xf0] }
 0x10b   :  { %9406 = vmatpush.bf16.msra.mxu3 %v14227_v5  ;;  %v18089_v5 = vld [vmem:[%s28127_s1 + $0xe74] sm:$0xf]  ;;  %v15148_v21 = vld [vmem:[%s28127_s1 + $0x1a24] sm:$0xf0] }
 0x10c   :  { %9368 = vmatpush.bf16.msra.mxu0 %v13527_v14  ;;  %v9142_v14 = vadd.f32 %v9141_v8, %v9129_v58  ;;  %v13667_v32 = vor.u32 %v18089_v5, %v13664_v9  ;;  %v14476_v5 = vld [vmem:[%s28127_s1 + $0x14e4] sm:$0xf0] }
 0x10d   :  { %9381 = vmatpush.bf16.msra.mxu1 %v13751_v15  ;;  %v9154_v15 = vpop.f32.mrf.mxu3 }
 0x10e   :  { %9394 = vmatpush.bf16.msra.mxu2 %v13975_v53  ;;  %v18201_v53 = vld [vmem:[%s28127_s1 + $0x11f4] sm:$0xf]  ;;  %v20952_v27 = vadd.f32 %v9154_v15, %v9142_v14  ;;  %v14924_v14 = vld [vmem:[%s28127_s1 + $0x1864] sm:$0xf0]  ;;  %v13611_v15 = vor.u32 %v18075_v60, %v13608_v61  ;;  %v18334_v60 = vld [vmem:[%s28127_s1 + $0x161c] sm:$0xf] }
 0x10f   :  { %9407 = vmatpush.bf16.msra.mxu3 %v14199_v26  ;;  %v9130_v26 = vpop.f32.mrf.mxu1  ;;  %v14115_v43 = vor.u32 %v18201_v53, %v14112_v17  ;;  %v18460_v17 = vld [vmem:[%s28127_s1 + $0x1a0c] sm:$0xf] }
 0x110   :  { %9369 = vmatpush.bf16.msra.mxu0 %v13499_v47  ;;  %v13636_v47 = vld [vmem:[%s28127_s1 + $0xe54] sm:$0xf0]  ;;  %v9143_v3 = vpop.f32.mrf.mxu2  ;;  %v14479_v26 = vor.u32 %v18292_v4, %v14476_v5 }
 0x111   :  { %9382 = vmatpush.bf16.msra.mxu1 %v13723_v51  ;;  %v13860_v51 = vld [vmem:[%s28127_s1 + $0x1014] sm:$0xf0]  ;;  %v13639_v58 = vor.u32 %v18082_v40, %v13636_v47  ;;  %v18341_v40 = vld [vmem:[%s28127_s1 + $0x1654] sm:$0xf]  ;;  %v14672_v47 = vld [vmem:[%s28127_s1 + $0x166c] sm:$0xf0] }
 0x112   :  { %9395 = vmatpush.bf16.msra.mxu2 %v13947_v52  ;;  %v18194_v52 = vld [vmem:[%s28127_s1 + $0x11bc] sm:$0xf]  ;;  %v13863_v59 = vor.u32 %v18138_v50, %v13860_v51  ;;  %v18397_v50 = vld [vmem:[%s28127_s1 + $0x1814] sm:$0xf]  ;;  %v14896_v51 = vld [vmem:[%s28127_s1 + $0x182c] sm:$0xf0] }
 0x113   :  { %9408 = vmatpush.bf16.msra.mxu3 %v14171_v48  ;;  %v13384_v48 = vld [vmem:[%s28127_s1 + $0xc5c] sm:$0xf0]  ;;  %v14087_v63 = vor.u32 %v18194_v52, %v14084_v54  ;;  %v18453_v52 = vld [vmem:[%s28127_s1 + $0x19d4] sm:$0xf]  ;;  %v15120_v54 = vld [vmem:[%s28127_s1 + $0x19ec] sm:$0xf0] }
 0x114   :  { %9370 = vmatpush.bf16.msra.mxu0 %v13471_v0  ;;  %v13832_v0 = vld [vmem:[%s28127_s1 + $0xfdc] sm:$0xf0]  ;;  %v13387_v9 = vor.u32 %v18019_v57, %v13384_v48  ;;  %v14675_v57 = vor.u32 %v18341_v40, %v14672_v47  ;;  %v14899_v48 = vor.u32 %v18397_v50, %v14896_v51  ;;  %v15123_v61 = vor.u32 %v18453_v52, %v15120_v54  ;;  %v14364_v40 = vld [vmem:[%s28127_s1 + $0x1404] sm:$0xf0]  ;;  %v18376_v51 = vld [vmem:[%s28127_s1 + $0x176c] sm:$0xf] }
 0x115   :  { %9383 = vmatpush.bf16.msra.mxu1 %v13695_v55  ;;  %v18187_v55 = vld [vmem:[%s28127_s1 + $0x1184] sm:$0xf]  ;;  %v9156_v8 = vpop.f32.mrf.mxu3  ;;  %v13835_v53 = vor.u32 %v18131_v62, %v13832_v0  ;;  %v14644_v62 = vld [vmem:[%s28127_s1 + $0x1634] sm:$0xf0]  ;;  %v14588_v50 = vld [vmem:[%s28127_s1 + $0x15c4] sm:$0xf0] }
 0x116   :  { %9396 = vmatpush.bf16.msra.mxu2 %v13919_v2  ;;  %v14056_v2 = vld [vmem:[%s28127_s1 + $0x119c] sm:$0xf0]  ;;  %v14868_v0 = vld [vmem:[%s28127_s1 + $0x17f4] sm:$0xf0]  ;;  %v14647_v4 = vor.u32 %v18334_v60, %v14644_v62  ;;  %v14812_v52 = vld [vmem:[%s28127_s1 + $0x1784] sm:$0xf0] }
 0x117   :  { %9409 = vmatpush.bf16.msra.mxu3 %v14143_v6  ;;  %v18348_v6 = vld [vmem:[%s28127_s1 + $0x168c] sm:$0xf]  ;;  %v14392_v8 = vld [vmem:[%s28127_s1 + $0x143c] sm:$0xf0]  ;;  %v14336_v60 = vld [vmem:[%s28127_s1 + $0x13cc] sm:$0xf0] }
 0x118   :  { %9371 = vmatpush.bf16.msra.mxu0 %v13443_v24  ;;  %v14059_v24 = vor.u32 %v18187_v55, %v14056_v2  ;;  %v18446_v55 = vld [vmem:[%s28127_s1 + $0x199c] sm:$0xf]  ;;  %v15092_v2 = vld [vmem:[%s28127_s1 + $0x19b4] sm:$0xf0]  ;;  %v18432_v54 = vld [vmem:[%s28127_s1 + $0x192c] sm:$0xf] }
 0x119   :  { %9384 = vmatpush.bf16.msra.mxu1 %v13667_v32  ;;  %v14703_v32 = vor.u32 %v18348_v6, %v14700_v10  ;;  %v18271_v6 = vld [vmem:[%s28127_s1 + $0x1424] sm:$0xf]  ;;  %v15095_v10 = vor.u32 %v18446_v55, %v15092_v2  ;;  %v18369_v55 = vld [vmem:[%s28127_s1 + $0x1734] sm:$0xf]  ;;  %v14784_v2 = vld [vmem:[%s28127_s1 + $0x174c] sm:$0xf0] }
 0x11a   :  { %9397 = vmatpush.bf16.msra.mxu2 %v13891_v34  ;;  %v14927_v34 = vor.u32 %v18404_v13, %v14924_v14  ;;  %v14616_v13 = vld [vmem:[%s28127_s1 + $0x15fc] sm:$0xf0]  ;;  %v18383_v14 = vld [vmem:[%s28127_s1 + $0x17a4] sm:$0xf] }
 0x11b   :  { %9410 = vmatpush.bf16.msra.mxu3 %v14115_v43  ;;  %v15151_v43 = vor.u32 %v18460_v17, %v15148_v21  ;;  %v18439_v17 = vld [vmem:[%s28127_s1 + $0x1964] sm:$0xf]  ;;  %v15064_v21 = vld [vmem:[%s28127_s1 + $0x197c] sm:$0xf0] }
 0x11c   :  { %9372 = vmatpush.bf16.msra.mxu0 %v13415_v56  ;;  %v14451_v56 = vor.u32 %v18285_v36, %v14448_v39  ;;  %v18264_v39 = vld [vmem:[%s28127_s1 + $0x13ec] sm:$0xf] }
 0x11d   :  { %9385 = vmatpush.bf16.msra.mxu1 %v13639_v58  ;;  %v18278_v58 = vld [vmem:[%s28127_s1 + $0x145c] sm:$0xf] }
 0x11e   :  { %9398 = vmatpush.bf16.msra.mxu2 %v13863_v59  ;;  %v14420_v59 = vld [vmem:[%s28127_s1 + $0x1474] sm:$0xf0] }
 0x11f   :  { %9411 = vmatpush.bf16.msra.mxu3 %v14087_v63  ;;  %v18390_v63 = vld [vmem:[%s28127_s1 + $0x17dc] sm:$0xf]  ;;  %v14423_v3 = vor.u32 %v18278_v58, %v14420_v59  ;;  %v14815_v58 = vor.u32 %v18376_v51, %v14812_v52  ;;  %v18257_v59 = vld [vmem:[%s28127_s1 + $0x13b4] sm:$0xf]  ;;  %v18299_v51 = vld [vmem:[%s28127_s1 + $0x1504] sm:$0xf] }
 0x120   :  { %9373 = vmatpush.bf16.msra.mxu0 %v13387_v9  ;;  %v14871_v5 = vor.u32 %v18390_v63, %v14868_v0  ;;  %v18327_v9 = vld [vmem:[%s28127_s1 + $0x15e4] sm:$0xf]  ;;  %v14560_v0 = vld [vmem:[%s28127_s1 + $0x158c] sm:$0xf0]  ;;  %v14504_v52 = vld [vmem:[%s28127_s1 + $0x151c] sm:$0xf0] }
 0x121   :  { %9386 = vmatpush.bf16.msra.mxu1 %v13611_v15  ;;  %v14840_v15 = vld [vmem:[%s28127_s1 + $0x17bc] sm:$0xf0] }
 0x122   :  { %9399 = vmatpush.bf16.msra.mxu2 %v13835_v53  ;;  %v9167_v53 = vpop.f32.mrf.mxu0  ;;  %v14843_v36 = vor.u32 %v18383_v14, %v14840_v15  ;;  %v14787_v15 = vor.u32 %v18369_v55, %v14784_v2  ;;  %v15596_v55 = vld [vmem:[%s28127_s1 + $0x1da4] sm:$0xf0]  ;;  %v18628_v2 = vld [vmem:[%s28127_s1 + $0x1f4c] sm:$0xf] }
 0x123   :  { %9412 = vmatpush.bf16.msra.mxu3 %v14059_v24  ;;  %9374 = vmatmul.bf16.vlgmr.msra.gmra.mxu0 %v19599_v42  ;;  %v9168_v24 = vadd.f32 %v9167_v53, %v20952_v27  ;;  %v15067_v27 = vor.u32 %v18439_v17, %v15064_v21  ;;  %v18250_v53 = vld [vmem:[%s28127_s1 + $0x137c] sm:$0xf]  ;;  %v14308_v17 = vld [vmem:[%s28127_s1 + $0x1394] sm:$0xf0] }
 0x124   :  { %9418 = vmatpush.bf16.msrb.mxu0 %v14479_v26  ;;  %9387 = vmatmul.bf16.vlgmr.msra.gmra.mxu1 %v19790_v25  ;;  %v14395_v26 = vor.u32 %v18271_v6, %v14392_v8  ;;  %v15008_v6 = vld [vmem:[%s28127_s1 + $0x190c] sm:$0xf0]  ;;  %v18306_v21 = vld [vmem:[%s28127_s1 + $0x153c] sm:$0xf] }
 0x125   :  { %9431 = vmatpush.bf16.msrb.mxu1 %v14703_v32  ;;  %9400 = vmatmul.bf16.vlgmr.msra.gmra.mxu2 %v19803_v30  ;;  %v9180_v32 = vpop.f32.mrf.mxu1 }
 0x126   :  { %9444 = vmatpush.bf16.msrb.mxu2 %v14927_v34  ;;  %9413 = vmatmul.bf16.vlgmr.msra.gmra.mxu3 %v19801_v29  ;;  %v14619_v34 = vor.u32 %v18327_v9, %v14616_v13  ;;  %v9181_v47 = vadd.f32 %v9180_v32, %v9168_v24  ;;  %v14339_v9 = vor.u32 %v18257_v59, %v14336_v60  ;;  %v18362_v32 = vld [vmem:[%s28127_s1 + $0x16fc] sm:$0xf]  ;;  %v18516_v60 = vld [vmem:[%s28127_s1 + $0x1bcc] sm:$0xf] }
 0x127   :  { %9457 = vmatpush.bf16.msrb.mxu3 %v15151_v43  ;;  %v18320_v43 = vld [vmem:[%s28127_s1 + $0x15ac] sm:$0xf] }
 0x128   :  { %9419 = vmatpush.bf16.msrb.mxu0 %v14451_v56  ;;  %v15036_v56 = vld [vmem:[%s28127_s1 + $0x1944] sm:$0xf0]  ;;  %v9193_v63 = vpop.f32.mrf.mxu2 }
 0x129   :  { %9432 = vmatpush.bf16.msrb.mxu1 %v14675_v57  ;;  %v14367_v57 = vor.u32 %v18264_v39, %v14364_v40  ;;  %v15039_v62 = vor.u32 %v18432_v54, %v15036_v56  ;;  %v14980_v39 = vld [vmem:[%s28127_s1 + $0x18d4] sm:$0xf0]  ;;  %v14311_v40 = vor.u32 %v18250_v53, %v14308_v17  ;;  %v18355_v54 = vld [vmem:[%s28127_s1 + $0x16c4] sm:$0xf]  ;;  %v18509_v53 = vld [vmem:[%s28127_s1 + $0x1b94] sm:$0xf] }
 0x12a   :  { %9445 = vmatpush.bf16.msrb.mxu2 %v14899_v48  ;;  %v14591_v48 = vor.u32 %v18320_v43, %v14588_v50  ;;  %v9169_v8 = vpop.f32.mrf.mxu0  ;;  %v18243_v43 = vld [vmem:[%s28127_s1 + $0x1344] sm:$0xf]  ;;  %v15344_v17 = vld [vmem:[%s28127_s1 + $0x1bac] sm:$0xf0] }
 0x12b   :  { %9458 = vmatpush.bf16.msrb.mxu3 %v15123_v61  ;;  %v18313_v61 = vld [vmem:[%s28127_s1 + $0x1574] sm:$0xf]  ;;  %v16044_v8 = vld [vmem:[%s28127_s1 + $0x2124] sm:$0xf0] }
 0x12c   :  { %9420 = vmatpush.bf16.msrb.mxu0 %v14423_v3  ;;  %v9194_v3 = vadd.f32 %v9193_v63, %v9181_v47  ;;  %v14563_v14 = vor.u32 %v18313_v61, %v14560_v0  ;;  %v15372_v61 = vld [vmem:[%s28127_s1 + $0x1be4] sm:$0xf0] }
 0x12d   :  { %9433 = vmatpush.bf16.msrb.mxu1 %v14647_v4  ;;  %v9206_v4 = vpop.f32.mrf.mxu3 }
 0x12e   :  { %9446 = vmatpush.bf16.msrb.mxu2 %v14871_v5  ;;  %v18425_v5 = vld [vmem:[%s28127_s1 + $0x18f4] sm:$0xf]  ;;  %v21151_v13 = vadd.f32 %v9206_v4, %v9194_v3  ;;  %v15820_v3 = vld [vmem:[%s28127_s1 + $0x1f64] sm:$0xf0]  ;;  %v14507_v4 = vor.u32 %v18299_v51, %v14504_v52  ;;  %v18558_v51 = vld [vmem:[%s28127_s1 + $0x1d1c] sm:$0xf] }
 0x12f   :  { %9459 = vmatpush.bf16.msrb.mxu3 %v15095_v10  ;;  %v9182_v10 = vpop.f32.mrf.mxu1  ;;  %v15011_v24 = vor.u32 %v18425_v5, %v15008_v6  ;;  %v18684_v6 = vld [vmem:[%s28127_s1 + $0x210c] sm:$0xf] }
 0x130   :  { %9421 = vmatpush.bf16.msrb.mxu0 %v14395_v26  ;;  %v14532_v26 = vld [vmem:[%s28127_s1 + $0x1554] sm:$0xf0]  ;;  %v9195_v59 = vpop.f32.mrf.mxu2  ;;  %v15375_v10 = vor.u32 %v18516_v60, %v15372_v61 }
 0x131   :  { %9434 = vmatpush.bf16.msrb.mxu1 %v14619_v34  ;;  %v14756_v34 = vld [vmem:[%s28127_s1 + $0x1714] sm:$0xf0]  ;;  %v14535_v47 = vor.u32 %v18306_v21, %v14532_v26  ;;  %v18565_v21 = vld [vmem:[%s28127_s1 + $0x1d54] sm:$0xf]  ;;  %v15568_v26 = vld [vmem:[%s28127_s1 + $0x1d6c] sm:$0xf0] }
 0x132   :  { %9447 = vmatpush.bf16.msrb.mxu2 %v14843_v36  ;;  %v18418_v36 = vld [vmem:[%s28127_s1 + $0x18bc] sm:$0xf]  ;;  %v14759_v50 = vor.u32 %v18362_v32, %v14756_v34  ;;  %v18621_v32 = vld [vmem:[%s28127_s1 + $0x1f14] sm:$0xf]  ;;  %v15792_v34 = vld [vmem:[%s28127_s1 + $0x1f2c] sm:$0xf0] }
 0x133   :  { %9460 = vmatpush.bf16.msrb.mxu3 %v15067_v27  ;;  %v14280_v27 = vld [vmem:[%s28127_s1 + $0x135c] sm:$0xf0]  ;;  %v14983_v56 = vor.u32 %v18418_v36, %v14980_v39  ;;  %v18677_v36 = vld [vmem:[%s28127_s1 + $0x20d4] sm:$0xf]  ;;  %v16016_v39 = vld [vmem:[%s28127_s1 + $0x20ec] sm:$0xf0] }
 0x134   :  { %9422 = vmatpush.bf16.msrb.mxu0 %v14367_v57  ;;  %v14728_v57 = vld [vmem:[%s28127_s1 + $0x16dc] sm:$0xf0]  ;;  %v14283_v0 = vor.u32 %v18243_v43, %v14280_v27  ;;  %v15571_v43 = vor.u32 %v18565_v21, %v15568_v26  ;;  %v15795_v27 = vor.u32 %v18621_v32, %v15792_v34  ;;  %v16019_v52 = vor.u32 %v18677_v36, %v16016_v39  ;;  %v15260_v21 = vld [vmem:[%s28127_s1 + $0x1b04] sm:$0xf0]  ;;  %v18600_v34 = vld [vmem:[%s28127_s1 + $0x1e6c] sm:$0xf] }
 0x135   :  { %9435 = vmatpush.bf16.msrb.mxu1 %v14591_v48  ;;  %v18411_v48 = vld [vmem:[%s28127_s1 + $0x1884] sm:$0xf]  ;;  %v9208_v63 = vpop.f32.mrf.mxu3  ;;  %v14731_v5 = vor.u32 %v18355_v54, %v14728_v57  ;;  %v15540_v54 = vld [vmem:[%s28127_s1 + $0x1d34] sm:$0xf0]  ;;  %v15484_v32 = vld [vmem:[%s28127_s1 + $0x1cc4] sm:$0xf0] }
 0x136   :  { %9448 = vmatpush.bf16.msrb.mxu2 %v14815_v58  ;;  %v14952_v58 = vld [vmem:[%s28127_s1 + $0x189c] sm:$0xf0]  ;;  %v15764_v57 = vld [vmem:[%s28127_s1 + $0x1ef4] sm:$0xf0]  ;;  %v15543_v60 = vor.u32 %v18558_v51, %v15540_v54  ;;  %v15708_v36 = vld [vmem:[%s28127_s1 + $0x1e84] sm:$0xf0] }
 0x137   :  { %9461 = vmatpush.bf16.msrb.mxu3 %v15039_v62  ;;  %v18572_v62 = vld [vmem:[%s28127_s1 + $0x1d8c] sm:$0xf]  ;;  %v15288_v63 = vld [vmem:[%s28127_s1 + $0x1b3c] sm:$0xf0]  ;;  %v15232_v51 = vld [vmem:[%s28127_s1 + $0x1acc] sm:$0xf0] }
 0x138   :  { %9423 = vmatpush.bf16.msrb.mxu0 %v14339_v9  ;;  %v14955_v9 = vor.u32 %v18411_v48, %v14952_v58  ;;  %v18670_v48 = vld [vmem:[%s28127_s1 + $0x209c] sm:$0xf]  ;;  %v15988_v58 = vld [vmem:[%s28127_s1 + $0x20b4] sm:$0xf0]  ;;  %v18656_v39 = vld [vmem:[%s28127_s1 + $0x202c] sm:$0xf] }
 0x139   :  { %9436 = vmatpush.bf16.msrb.mxu1 %v14563_v14  ;;  %v15599_v14 = vor.u32 %v18572_v62, %v15596_v55  ;;  %v18495_v62 = vld [vmem:[%s28127_s1 + $0x1b24] sm:$0xf]  ;;  %v15991_v55 = vor.u32 %v18670_v48, %v15988_v58  ;;  %v18593_v48 = vld [vmem:[%s28127_s1 + $0x1e34] sm:$0xf]  ;;  %v15680_v58 = vld [vmem:[%s28127_s1 + $0x1e4c] sm:$0xf0] }
 0x13a   :  { %9449 = vmatpush.bf16.msrb.mxu2 %v14787_v15  ;;  %v15823_v15 = vor.u32 %v18628_v2, %v15820_v3  ;;  %v15512_v2 = vld [vmem:[%s28127_s1 + $0x1cfc] sm:$0xf0]  ;;  %v18607_v3 = vld [vmem:[%s28127_s1 + $0x1ea4] sm:$0xf] }
 0x13b   :  { %9462 = vmatpush.bf16.msrb.mxu3 %v15011_v24  ;;  %v16047_v24 = vor.u32 %v18684_v6, %v16044_v8  ;;  %v18663_v6 = vld [vmem:[%s28127_s1 + $0x2064] sm:$0xf]  ;;  %v15960_v8 = vld [vmem:[%s28127_s1 + $0x207c] sm:$0xf0] }
 0x13c   :  { %9424 = vmatpush.bf16.msrb.mxu0 %v14311_v40  ;;  %v15347_v40 = vor.u32 %v18509_v53, %v15344_v17  ;;  %v18488_v17 = vld [vmem:[%s28127_s1 + $0x1aec] sm:$0xf] }
 0x13d   :  { %9437 = vmatpush.bf16.msrb.mxu1 %v14535_v47  ;;  %v18502_v47 = vld [vmem:[%s28127_s1 + $0x1b5c] sm:$0xf] }
 0x13e   :  { %9450 = vmatpush.bf16.msrb.mxu2 %v14759_v50  ;;  %v15316_v50 = vld [vmem:[%s28127_s1 + $0x1b74] sm:$0xf0] }
 0x13f   :  { %9463 = vmatpush.bf16.msrb.mxu3 %v14983_v56  ;;  %v18614_v56 = vld [vmem:[%s28127_s1 + $0x1edc] sm:$0xf]  ;;  %v15319_v59 = vor.u32 %v18502_v47, %v15316_v50  ;;  %v15711_v47 = vor.u32 %v18600_v34, %v15708_v36  ;;  %v18481_v50 = vld [vmem:[%s28127_s1 + $0x1ab4] sm:$0xf]  ;;  %v18523_v34 = vld [vmem:[%s28127_s1 + $0x1c04] sm:$0xf] }
 0x140   :  { %9425 = vmatpush.bf16.msrb.mxu0 %v14283_v0  ;;  %v15767_v61 = vor.u32 %v18614_v56, %v15764_v57  ;;  %v18551_v0 = vld [vmem:[%s28127_s1 + $0x1ce4] sm:$0xf]  ;;  %v15456_v57 = vld [vmem:[%s28127_s1 + $0x1c8c] sm:$0xf0]  ;;  %v15400_v36 = vld [vmem:[%s28127_s1 + $0x1c1c] sm:$0xf0] }
 0x141   :  { %9438 = vmatpush.bf16.msrb.mxu1 %v14507_v4  ;;  %v15736_v4 = vld [vmem:[%s28127_s1 + $0x1ebc] sm:$0xf0] }
 0x142   :  { %9451 = vmatpush.bf16.msrb.mxu2 %v14731_v5  ;;  %v9219_v5 = vpop.f32.mrf.mxu0  ;;  %v15739_v53 = vor.u32 %v18607_v3, %v15736_v4  ;;  %v15683_v4 = vor.u32 %v18593_v48, %v15680_v58  ;;  %v16492_v48 = vld [vmem:[%s28127_s1 + $0x24a4] sm:$0xf0]  ;;  %v18852_v58 = vld [vmem:[%s28127_s1 + $0x264c] sm:$0xf] }
 0x143   :  { %9464 = vmatpush.bf16.msrb.mxu3 %v14955_v9  ;;  %9426 = vmatmul.bf16.vlgmr.msrb.gmra.mxu0 %v19811_v33  ;;  %v9220_v9 = vadd.f32 %v9219_v5, %v21151_v13  ;;  %v15963_v13 = vor.u32 %v18663_v6, %v15960_v8  ;;  %v18474_v5 = vld [vmem:[%s28127_s1 + $0x1a7c] sm:$0xf]  ;;  %v15204_v6 = vld [vmem:[%s28127_s1 + $0x1a94] sm:$0xf0] }
 0x144   :  { %9470 = vmatpush.bf16.msra.mxu0 %v15375_v10  ;;  %9439 = vmatmul.bf16.vlgmr.msrb.gmra.mxu1 %v20000_v23  ;;  %v15291_v10 = vor.u32 %v18495_v62, %v15288_v63  ;;  %v15904_v62 = vld [vmem:[%s28127_s1 + $0x200c] sm:$0xf0]  ;;  %v18530_v8 = vld [vmem:[%s28127_s1 + $0x1c3c] sm:$0xf] }
 0x145   :  { %9483 = vmatpush.bf16.msra.mxu1 %v15599_v14  ;;  %9452 = vmatmul.bf16.vlgmr.msrb.gmra.mxu2 %v20013_v31  ;;  %v9232_v14 = vpop.f32.mrf.mxu1 }
 0x146   :  { %9496 = vmatpush.bf16.msra.mxu2 %v15823_v15  ;;  %9465 = vmatmul.bf16.vlgmr.msrb.gmra.mxu3 %v20011_v28  ;;  %v15515_v15 = vor.u32 %v18551_v0, %v15512_v2  ;;  %v9233_v26 = vadd.f32 %v9232_v14, %v9220_v9  ;;  %v15235_v0 = vor.u32 %v18481_v50, %v15232_v51  ;;  %v18586_v14 = vld [vmem:[%s28127_s1 + $0x1dfc] sm:$0xf]  ;;  %v18740_v51 = vld [vmem:[%s28127_s1 + $0x22cc] sm:$0xf] }
 0x147   :  { %9509 = vmatpush.bf16.msra.mxu3 %v16047_v24  ;;  %v18544_v24 = vld [vmem:[%s28127_s1 + $0x1cac] sm:$0xf] }
 0x148   :  { %9471 = vmatpush.bf16.msra.mxu0 %v15347_v40  ;;  %v15932_v40 = vld [vmem:[%s28127_s1 + $0x2044] sm:$0xf0]  ;;  %v9245_v56 = vpop.f32.mrf.mxu2 }
 0x149   :  { %9484 = vmatpush.bf16.msra.mxu1 %v15571_v43  ;;  %v15263_v43 = vor.u32 %v18488_v17, %v15260_v21  ;;  %v15935_v54 = vor.u32 %v18656_v39, %v15932_v40  ;;  %v15876_v17 = vld [vmem:[%s28127_s1 + $0x1fd4] sm:$0xf0]  ;;  %v15207_v21 = vor.u32 %v18474_v5, %v15204_v6  ;;  %v18579_v39 = vld [vmem:[%s28127_s1 + $0x1dc4] sm:$0xf]  ;;  %v18733_v5 = vld [vmem:[%s28127_s1 + $0x2294] sm:$0xf] }
 0x14a   :  { %9497 = vmatpush.bf16.msra.mxu2 %v15795_v27  ;;  %v15487_v27 = vor.u32 %v18544_v24, %v15484_v32  ;;  %v9221_v63 = vpop.f32.mrf.mxu0  ;;  %v18467_v24 = vld [vmem:[%s28127_s1 + $0x1a44] sm:$0xf]  ;;  %v16240_v6 = vld [vmem:[%s28127_s1 + $0x22ac] sm:$0xf0] }
 0x14b   :  { %9510 = vmatpush.bf16.msra.mxu3 %v16019_v52  ;;  %v18537_v52 = vld [vmem:[%s28127_s1 + $0x1c74] sm:$0xf]  ;;  %v16940_v63 = vld [vmem:[%s28127_s1 + $0x2824] sm:$0xf0] }
 0x14c   :  { %9472 = vmatpush.bf16.msra.mxu0 %v15319_v59  ;;  %v9246_v59 = vadd.f32 %v9245_v56, %v9233_v26  ;;  %v15459_v3 = vor.u32 %v18537_v52, %v15456_v57  ;;  %v16268_v52 = vld [vmem:[%s28127_s1 + $0x22e4] sm:$0xf0] }
 0x14d   :  { %9485 = vmatpush.bf16.msra.mxu1 %v15543_v60  ;;  %v9258_v60 = vpop.f32.mrf.mxu3 }
 0x14e   :  { %9498 = vmatpush.bf16.msra.mxu2 %v15767_v61  ;;  %v18649_v61 = vld [vmem:[%s28127_s1 + $0x1ff4] sm:$0xf]  ;;  %v21350_v2 = vadd.f32 %v9258_v60, %v9246_v59  ;;  %v16716_v59 = vld [vmem:[%s28127_s1 + $0x2664] sm:$0xf0]  ;;  %v15403_v60 = vor.u32 %v18523_v34, %v15400_v36  ;;  %v18782_v34 = vld [vmem:[%s28127_s1 + $0x241c] sm:$0xf] }
 0x14f   :  { %9511 = vmatpush.bf16.msra.mxu3 %v15991_v55  ;;  %v9234_v55 = vpop.f32.mrf.mxu1  ;;  %v15907_v9 = vor.u32 %v18649_v61, %v15904_v62  ;;  %v18908_v62 = vld [vmem:[%s28127_s1 + $0x280c] sm:$0xf] }
 0x150   :  { %9473 = vmatpush.bf16.msra.mxu0 %v15291_v10  ;;  %v15428_v10 = vld [vmem:[%s28127_s1 + $0x1c54] sm:$0xf0]  ;;  %v9247_v50 = vpop.f32.mrf.mxu2  ;;  %v16271_v55 = vor.u32 %v18740_v51, %v16268_v52 }
 0x151   :  { %9486 = vmatpush.bf16.msra.mxu1 %v15515_v15  ;;  %v15652_v15 = vld [vmem:[%s28127_s1 + $0x1e14] sm:$0xf0]  ;;  %v15431_v26 = vor.u32 %v18530_v8, %v15428_v10  ;;  %v18789_v8 = vld [vmem:[%s28127_s1 + $0x2454] sm:$0xf]  ;;  %v16464_v10 = vld [vmem:[%s28127_s1 + $0x246c] sm:$0xf0] }
 0x152   :  { %9499 = vmatpush.bf16.msra.mxu2 %v15739_v53  ;;  %v18642_v53 = vld [vmem:[%s28127_s1 + $0x1fbc] sm:$0xf]  ;;  %v15655_v32 = vor.u32 %v18586_v14, %v15652_v15  ;;  %v18845_v14 = vld [vmem:[%s28127_s1 + $0x2614] sm:$0xf]  ;;  %v16688_v15 = vld [vmem:[%s28127_s1 + $0x262c] sm:$0xf0] }
 0x153   :  { %9512 = vmatpush.bf16.msra.mxu3 %v15963_v13  ;;  %v15176_v13 = vld [vmem:[%s28127_s1 + $0x1a5c] sm:$0xf0]  ;;  %v15879_v40 = vor.u32 %v18642_v53, %v15876_v17  ;;  %v18901_v53 = vld [vmem:[%s28127_s1 + $0x27d4] sm:$0xf]  ;;  %v16912_v17 = vld [vmem:[%s28127_s1 + $0x27ec] sm:$0xf0] }
 0x154   :  { %9474 = vmatpush.bf16.msra.mxu0 %v15263_v43  ;;  %v15624_v43 = vld [vmem:[%s28127_s1 + $0x1ddc] sm:$0xf0]  ;;  %v15179_v57 = vor.u32 %v18467_v24, %v15176_v13  ;;  %v16467_v24 = vor.u32 %v18789_v8, %v16464_v10  ;;  %v16691_v13 = vor.u32 %v18845_v14, %v16688_v15  ;;  %v16915_v36 = vor.u32 %v18901_v53, %v16912_v17  ;;  %v18712_v8 = vld [vmem:[%s28127_s1 + $0x21ec] sm:$0xf]  ;;  %v16380_v15 = vld [vmem:[%s28127_s1 + $0x23c4] sm:$0xf0] }
 0x155   :  { %9487 = vmatpush.bf16.msra.mxu1 %v15487_v27  ;;  %v18635_v27 = vld [vmem:[%s28127_s1 + $0x1f84] sm:$0xf]  ;;  %v9260_v56 = vpop.f32.mrf.mxu3  ;;  %v15627_v61 = vor.u32 %v18579_v39, %v15624_v43  ;;  %v16436_v39 = vld [vmem:[%s28127_s1 + $0x2434] sm:$0xf0]  ;;  %v18768_v10 = vld [vmem:[%s28127_s1 + $0x23ac] sm:$0xf] }
 0x156   :  { %9500 = vmatpush.bf16.msra.mxu2 %v15711_v47  ;;  %v15848_v47 = vld [vmem:[%s28127_s1 + $0x1f9c] sm:$0xf0]  ;;  %v16660_v43 = vld [vmem:[%s28127_s1 + $0x25f4] sm:$0xf0]  ;;  %v16439_v51 = vor.u32 %v18782_v34, %v16436_v39  ;;  %v18824_v53 = vld [vmem:[%s28127_s1 + $0x256c] sm:$0xf] }
 0x157   :  { %9513 = vmatpush.bf16.msra.mxu3 %v15935_v54  ;;  %v18796_v54 = vld [vmem:[%s28127_s1 + $0x248c] sm:$0xf]  ;;  %v16184_v56 = vld [vmem:[%s28127_s1 + $0x223c] sm:$0xf0]  ;;  %v16604_v17 = vld [vmem:[%s28127_s1 + $0x2584] sm:$0xf0] }
 0x158   :  { %9475 = vmatpush.bf16.msra.mxu0 %v15235_v0  ;;  %v15851_v0 = vor.u32 %v18635_v27, %v15848_v47  ;;  %v18894_v27 = vld [vmem:[%s28127_s1 + $0x279c] sm:$0xf]  ;;  %v16884_v47 = vld [vmem:[%s28127_s1 + $0x27b4] sm:$0xf0]  ;;  %v16607_v34 = vor.u32 %v18824_v53, %v16604_v17  ;;  %v16128_v39 = vld [vmem:[%s28127_s1 + $0x21cc] sm:$0xf0] }
 0x159   :  { %9488 = vmatpush.bf16.msra.mxu1 %v15459_v3  ;;  %v16495_v3 = vor.u32 %v18796_v54, %v16492_v48  ;;  %v18719_v54 = vld [vmem:[%s28127_s1 + $0x2224] sm:$0xf]  ;;  %v16887_v48 = vor.u32 %v18894_v27, %v16884_v47  ;;  %v16352_v27 = vld [vmem:[%s28127_s1 + $0x238c] sm:$0xf0]  ;;  %v18817_v47 = vld [vmem:[%s28127_s1 + $0x2534] sm:$0xf] }
 0x15a   :  { %9501 = vmatpush.bf16.msra.mxu2 %v15683_v4  ;;  %v16719_v4 = vor.u32 %v18852_v58, %v16716_v59  ;;  %v16408_v58 = vld [vmem:[%s28127_s1 + $0x23fc] sm:$0xf0]  ;;  %v18831_v59 = vld [vmem:[%s28127_s1 + $0x25a4] sm:$0xf] }
 0x15b   :  { %9514 = vmatpush.bf16.msra.mxu3 %v15907_v9  ;;  %v16943_v9 = vor.u32 %v18908_v62, %v16940_v63  ;;  %v18887_v62 = vld [vmem:[%s28127_s1 + $0x2764] sm:$0xf]  ;;  %v16856_v63 = vld [vmem:[%s28127_s1 + $0x277c] sm:$0xf0] }
 0x15c   :  { %9476 = vmatpush.bf16.msra.mxu0 %v15207_v21  ;;  %v16243_v21 = vor.u32 %v18733_v5, %v16240_v6 }
 0x15d   :  { %9489 = vmatpush.bf16.msra.mxu1 %v15431_v26  ;;  %v18726_v26 = vld [vmem:[%s28127_s1 + $0x225c] sm:$0xf] }
 0x15e   :  { %9502 = vmatpush.bf16.msra.mxu2 %v15655_v32  ;;  %v16212_v32 = vld [vmem:[%s28127_s1 + $0x2274] sm:$0xf0] }
 0x15f   :  { %9515 = vmatpush.bf16.msra.mxu3 %v15879_v40  ;;  %v18838_v40 = vld [vmem:[%s28127_s1 + $0x25dc] sm:$0xf]  ;;  %v16215_v50 = vor.u32 %v18726_v26, %v16212_v32  ;;  %v16383_v32 = vor.u32 %v18768_v10, %v16380_v15  ;;  %v16772_v10 = vld [vmem:[%s28127_s1 + $0x26d4] sm:$0xf0]  ;;  %v16072_v15 = vld [vmem:[%s28127_s1 + $0x215c] sm:$0xf0] }
 0x160   :  { %9477 = vmatpush.bf16.msra.mxu0 %v15179_v57  ;;  %v16663_v52 = vor.u32 %v18838_v40, %v16660_v43  ;;  %v18775_v57 = vld [vmem:[%s28127_s1 + $0x23e4] sm:$0xf]  ;;  %v18761_v40 = vld [vmem:[%s28127_s1 + $0x2374] sm:$0xf] }
 0x161   :  { %9490 = vmatpush.bf16.msra.mxu1 %v15403_v60  ;;  %v16632_v60 = vld [vmem:[%s28127_s1 + $0x25bc] sm:$0xf0]  ;;  %v16411_v5 = vor.u32 %v18775_v57, %v16408_v58  ;;  %v9284_v14 = vpop.f32.mrf.mxu1 }
 0x162   :  { %9503 = vmatpush.bf16.msra.mxu2 %v15627_v61  ;;  %v9271_v61 = vpop.f32.mrf.mxu0  ;;  %v16635_v6 = vor.u32 %v18831_v59, %v16632_v60  ;;  %v16355_v59 = vor.u32 %v18761_v40, %v16352_v27  ;;  %v17164_v27 = vld [vmem:[%s28127_s1 + $0x29e4] sm:$0xf0] }
 0x163   :  { %9516 = vmatpush.bf16.msra.mxu3 %v15851_v0  ;;  %9478 = vmatmul.bf16.vlgmr.msra.gmra.mxu0 %v20021_v35  ;;  %v19083_v0 = vld [vmem:[%s28129_s2] sm:$0x7f] }
 0x164   :  { %9522 = vmatpush.bf16.msrb.mxu0 %v16271_v55  ;;  %9491 = vmatmul.bf16.vlgmr.msra.gmra.mxu1 %v20210_v37  ;;  %v1649_v55 = vperm.slane %v19083_v0, 1 }
 0x165   :  { %9535 = vmatpush.bf16.msrb.mxu1 %v16495_v3  ;;  %9504 = vmatmul.bf16.vlgmr.msra.gmra.mxu2 %v20223_v46  ;;  %v21504_v3 = vadd.f32 %v9271_v61, %v21350_v2  ;;  %v16859_v2 = vor.u32 %v18887_v62, %v16856_v63  ;;  %v18698_v61 = vld [vmem:[%s28127_s1 + $0x217c] sm:$0xf]  ;;  %v16100_v62 = vld [vmem:[%s28127_s1 + $0x2194] sm:$0xf0] }
 0x166   :  { %9548 = vmatpush.bf16.msrb.mxu2 %v16719_v4  ;;  %9517 = vmatmul.bf16.vlgmr.msra.gmra.mxu3 %v20221_v45  ;;  %v16187_v4 = vor.u32 %v18719_v54, %v16184_v56  ;;  %v18873_v54 = vld [vmem:[%s28127_s1 + $0x26f4] sm:$0xf]  ;;  %v16800_v56 = vld [vmem:[%s28127_s1 + $0x270c] sm:$0xf0]  ;;  %v18754_v63 = vld [vmem:[%s28127_s1 + $0x233c] sm:$0xf] }
 0x167   :  { %9561 = vmatpush.bf16.msrb.mxu3 %v16943_v9  ;;  %v16156_v9 = vld [vmem:[%s28127_s1 + $0x2204] sm:$0xf0] }
 0x168   :  { %9523 = vmatpush.bf16.msrb.mxu0 %v16243_v21  ;;  %v18880_v21 = vld [vmem:[%s28127_s1 + $0x272c] sm:$0xf]  ;;  %v16159_v26 = vor.u32 %v18712_v8, %v16156_v9  ;;  %v16548_v8 = vld [vmem:[%s28127_s1 + $0x2514] sm:$0xf0]  ;;  %v18866_v9 = vld [vmem:[%s28127_s1 + $0x26bc] sm:$0xf] }
 0x169   :  { %9536 = vmatpush.bf16.msrb.mxu1 %v16467_v24  ;;  %v16828_v24 = vld [vmem:[%s28127_s1 + $0x2744] sm:$0xf0] }
 0x16a   :  { %9549 = vmatpush.bf16.msrb.mxu2 %v16691_v13  ;;  %v9285_v13 = vadd.f32 %v9284_v14, %v1649_v55  ;;  %v16831_v43 = vor.u32 %v18880_v21, %v16828_v24  ;;  %v9286_v55 = vpop.f32.mrf.mxu1  ;;  %v16103_v14 = vor.u32 %v18698_v61, %v16100_v62  ;;  %v18747_v21 = vld [vmem:[%s28127_s1 + $0x2304] sm:$0xf]  ;;  %v16296_v24 = vld [vmem:[%s28127_s1 + $0x231c] sm:$0xf0] }
 0x16b   :  { %9562 = vmatpush.bf16.msrb.mxu3 %v16915_v36  ;;  %v18705_v36 = vld [vmem:[%s28127_s1 + $0x21b4] sm:$0xf]  ;;  %v17136_v55 = vld [vmem:[%s28127_s1 + $0x29ac] sm:$0xf0] }
 0x16c   :  { %9524 = vmatpush.bf16.msrb.mxu0 %v16215_v50  ;;  %v16576_v50 = vld [vmem:[%s28127_s1 + $0x254c] sm:$0xf0]  ;;  %v16131_v58 = vor.u32 %v18705_v36, %v16128_v39  ;;  %v16744_v36 = vld [vmem:[%s28127_s1 + $0x269c] sm:$0xf0] }
 0x16d   :  { %9537 = vmatpush.bf16.msrb.mxu1 %v16439_v51  ;;  %v9297_v51 = vpop.f32.mrf.mxu2  ;;  %v16579_v60 = vor.u32 %v18817_v47, %v16576_v50  ;;  %v19020_v47 = vld [vmem:[%s28127_s1 + $0x2b8c] sm:$0xf] }
 0x16e   :  { %9550 = vmatpush.bf16.msrb.mxu2 %v16663_v52  ;;  %v9310_v52 = vpop.f32.mrf.mxu3  ;;  %v9298_v57 = vadd.f32 %v9297_v51, %v9285_v13  ;;  %v18803_v13 = vld [vmem:[%s28127_s1 + $0x24c4] sm:$0xf]  ;;  %v17388_v51 = vld [vmem:[%s28127_s1 + $0x2ba4] sm:$0xf0] }
 0x16f   :  { %9563 = vmatpush.bf16.msrb.mxu3 %v16887_v48  ;;  %v9273_v48 = vpop.f32.mrf.mxu0  ;;  %v17391_v61 = vor.u32 %v19020_v47, %v17388_v51  ;;  %v18943_v47 = vld [vmem:[%s28127_s1 + $0x2924] sm:$0xf] }
 0x170   :  { %9525 = vmatpush.bf16.msrb.mxu0 %v16187_v4  ;;  %v21563_v0 = vadd.f32 %v9310_v52, %v9298_v57  ;;  %v16803_v4 = vor.u32 %v18873_v54, %v16800_v56  ;;  %v12018_v52 = vld [vmem:[%s28127_s1 + $0x190] sm:$0xf]  ;;  %v17680_v54 = vld [vmem:[%s28127_s1 + $0x1a8] sm:$0xf0]  ;;  %v16299_v56 = vor.u32 %v18747_v21, %v16296_v24  ;;  %v17108_v21 = vld [vmem:[%s28127_s1 + $0x2974] sm:$0xf0] }
 0x171   :  { %9538 = vmatpush.bf16.msrb.mxu1 %v16411_v5  ;;  %v16324_v5 = vld [vmem:[%s28127_s1 + $0x2354] sm:$0xf0]  ;;  %v12242_v48 = vld [vmem:[%s28127_s1 + $0x350] sm:$0xf]  ;;  %v12019_v62 = vor.u32 %v17680_v54, %v12018_v52  ;;  %v19006_v24 = vld [vmem:[%s28127_s1 + $0x2b1c] sm:$0xf] }
 0x172   :  { %9551 = vmatpush.bf16.msrb.mxu2 %v16635_v6  ;;  %v18810_v6 = vld [vmem:[%s28127_s1 + $0x24fc] sm:$0xf]  ;;  %v16327_v53 = vor.u32 %v18754_v63, %v16324_v5  ;;  %v18957_v63 = vld [vmem:[%s28127_s1 + $0x2994] sm:$0xf]  ;;  %v18999_v51 = vld [vmem:[%s28127_s1 + $0x2ae4] sm:$0xf] }
 0x173   :  { %9564 = vmatpush.bf16.msrb.mxu3 %v16859_v2  ;;  %v18691_v2 = vld [vmem:[%s28127_s1 + $0x2144] sm:$0xf]  ;;  %v16551_v17 = vor.u32 %v18810_v6, %v16548_v8  ;;  %v17360_v6 = vld [vmem:[%s28127_s1 + $0x2b6c] sm:$0xf0]  ;;  %v11990_v8 = vld [vmem:[%s28127_s1 + $0x158] sm:$0xf] }
 0x174   :  { %9526 = vmatpush.bf16.msrb.mxu0 %v16159_v26  ;;  %v16775_v26 = vor.u32 %v18866_v9, %v16772_v10  ;;  %v16075_v50 = vor.u32 %v18691_v2, %v16072_v15  ;;  %v17673_v9 = vld [vmem:[%s28127_s1 + $0x170] sm:$0xf0]  ;;  %v12214_v10 = vld [vmem:[%s28127_s1 + $0x318] sm:$0xf]  ;;  %v17139_v2 = vor.u32 %v18957_v63, %v17136_v55  ;;  %v17304_v54 = vld [vmem:[%s28127_s1 + $0x2afc] sm:$0xf0] }
 0x175   :  { %9539 = vmatpush.bf16.msrb.mxu1 %v16383_v32  ;;  %v16520_v32 = vld [vmem:[%s28127_s1 + $0x24dc] sm:$0xf0]  ;;  %v9299_v39 = vpop.f32.mrf.mxu2  ;;  %v18936_v63 = vld [vmem:[%s28127_s1 + $0x28ec] sm:$0xf]  ;;  %v17052_v55 = vld [vmem:[%s28127_s1 + $0x2904] sm:$0xf0] }
 0x176   :  { %9552 = vmatpush.bf16.msrb.mxu2 %v16607_v34  ;;  %v18859_v34 = vld [vmem:[%s28127_s1 + $0x2684] sm:$0xf]  ;;  %v9312_v40 = vpop.f32.mrf.mxu3  ;;  %v16523_v57 = vor.u32 %v18803_v13, %v16520_v32  ;;  %v11962_v32 = vld [vmem:[%s28127_s1 + $0x120] sm:$0xf]  ;;  %v17722_v39 = vld [vmem:[%s28127_s1 + $0x2f8] sm:$0xf0] }
 0x177   :  { %9565 = vmatpush.bf16.msrb.mxu3 %v16831_v43  ;;  %v18964_v43 = vld [vmem:[%s28127_s1 + $0x29cc] sm:$0xf] }
 0x178   :  { %9527 = vmatpush.bf16.msrb.mxu0 %v16131_v58  ;;  %v17736_v58 = vld [vmem:[%s28127_s1 + $0x368] sm:$0xf0] }
 0x179   :  { %9540 = vmatpush.bf16.msrb.mxu1 %v16355_v59  ;;  %v16747_v59 = vor.u32 %v18859_v34, %v16744_v36  ;;  %v12243_v5 = vor.u32 %v17736_v58, %v12242_v48  ;;  %v17666_v34 = vld [vmem:[%s28127_s1 + $0x138] sm:$0xf0]  ;;  %v12186_v36 = vld [vmem:[%s28127_s1 + $0x2e0] sm:$0xf]  ;;  %v12158_v48 = vld [vmem:[%s28127_s1 + $0x2a8] sm:$0xf] }
 0x17a   :  { %9553 = vmatpush.bf16.msrb.mxu2 %v16579_v60  ;;  %v17167_v60 = vor.u32 %v18964_v43, %v17164_v27  ;;  %v11963_v27 = vor.u32 %v17666_v34, %v11962_v32  ;;  %v12187_v52 = vor.u32 %v17722_v39, %v12186_v36  ;;  %v17715_v58 = vld [vmem:[%s28127_s1 + $0x2c0] sm:$0xf0]  ;;  %v17248_v36 = vld [vmem:[%s28127_s1 + $0x2a8c] sm:$0xf0]  ;;  %v11878_v39 = vld [vmem:[%s28127_s1 + $0x78] sm:$0xf] }
 0x17b   :  { %9566 = vmatpush.bf16.msrb.mxu3 %v16803_v4  ;;  %v19013_v4 = vld [vmem:[%s28127_s1 + $0x2b54] sm:$0xf] }
 0x17c   :  { %9528 = vmatpush.bf16.msrb.mxu0 %v16103_v14  ;;  %v17729_v14 = vld [vmem:[%s28127_s1 + $0x330] sm:$0xf0]  ;;  %v17363_v15 = vor.u32 %v19013_v4, %v17360_v6  ;;  %v18992_v4 = vld [vmem:[%s28127_s1 + $0x2aac] sm:$0xf] }
 0x17d   :  { %9541 = vmatpush.bf16.msrb.mxu1 %v16327_v53  ;;  %v11991_v53 = vor.u32 %v17673_v9, %v11990_v8  ;;  %v12215_v13 = vor.u32 %v17729_v14, %v12214_v10  ;;  %v12159_v8 = vor.u32 %v17715_v58, %v12158_v48  ;;  %v17276_v9 = vld [vmem:[%s28127_s1 + $0x2ac4] sm:$0xf0]  ;;  %v11906_v10 = vld [vmem:[%s28127_s1 + $0xb0] sm:$0xf]  ;;  %v17652_v14 = vld [vmem:[%s28127_s1 + $0xc8] sm:$0xf0] }
 0x17e   :  { %9554 = vmatpush.bf16.msrb.mxu2 %v16551_v17  ;;  %v18950_v17 = vld [vmem:[%s28127_s1 + $0x295c] sm:$0xf]  ;;  %v16996_v58 = vld [vmem:[%s28127_s1 + $0x2894] sm:$0xf0] }
 0x17f   :  { %9567 = vmatpush.bf16.msrb.mxu3 %v16775_v26  ;;  %v17332_v26 = vld [vmem:[%s28127_s1 + $0x2b34] sm:$0xf0]  ;;  %v17111_v40 = vor.u32 %v18950_v17, %v17108_v21  ;;  %v17279_v17 = vor.u32 %v18992_v4, %v17276_v9  ;;  %v11907_v21 = vor.u32 %v17652_v14, %v11906_v10  ;;  %v18922_v48 = vld [vmem:[%s28127_s1 + $0x287c] sm:$0xf]  ;;  %v12074_v4 = vld [vmem:[%s28127_s1 + $0x200] sm:$0xf] }
 0x180   :  { %9529 = vmatpush.bf16.msrb.mxu0 %v16075_v50  ;;  %v17335_v43 = vor.u32 %v19006_v24, %v17332_v26  ;;  %v17080_v50 = vld [vmem:[%s28127_s1 + $0x293c] sm:$0xf0]  ;;  %v18929_v24 = vld [vmem:[%s28127_s1 + $0x28b4] sm:$0xf] }
 0x181   :  { %9542 = vmatpush.bf16.msrb.mxu1 %v16299_v56  ;;  %v11934_v56 = vld [vmem:[%s28127_s1 + $0xe8] sm:$0xf]  ;;  %v9336_v6 = vpop.f32.mrf.mxu1  ;;  %v18985_v26 = vld [vmem:[%s28127_s1 + $0x2a74] sm:$0xf]  ;;  %v16968_v9 = vld [vmem:[%s28127_s1 + $0x285c] sm:$0xf0] }
 0x182   :  { %9555 = vmatpush.bf16.msrb.mxu2 %v16523_v57  ;;  %v17659_v57 = vld [vmem:[%s28127_s1 + $0x100] sm:$0xf0] }
 0x183   :  { %9568 = vmatpush.bf16.msrb.mxu3 %v16747_v59  ;;  %9530 = vmatmul.bf16.vlgmr.msrb.gmra.mxu0 %v20231_v49  ;;  %v17083_v59 = vor.u32 %v18943_v47, %v17080_v50  ;;  %v12102_v47 = vld [vmem:[%s28127_s1 + $0x238] sm:$0xf]  ;;  %v17701_v50 = vld [vmem:[%s28127_s1 + $0x250] sm:$0xf0] }
 0x184   :  { %9574 = vmatpush.bf16.msra.mxu0 %v17167_v60  ;;  %9543 = vmatmul.bf16.vlgmr.msrb.gmra.mxu1 %v20425_v7  ;;  %v9323_v60 = vpop.f32.mrf.mxu0 }
 0x185   :  { %9587 = vmatpush.bf16.msra.mxu1 %v17391_v61  ;;  %9556 = vmatmul.bf16.vlgmr.msrb.gmra.mxu2 %v20438_v12  ;;  %v17307_v61 = vor.u32 %v18999_v51, %v17304_v54 }
 0x186   :  { %9600 = vmatpush.bf16.msra.mxu2 %v12019_v62  ;;  %9569 = vmatmul.bf16.vlgmr.msrb.gmra.mxu3 %v20436_v11  ;;  %v11935_v62 = vor.u32 %v17659_v57, %v11934_v56  ;;  %v17251_v56 = vor.u32 %v18985_v26, %v17248_v36  ;;  %v12690_v36 = vld [vmem:[%s28127_s1 + $0x6d0] sm:$0xf] }
 0x187   :  { %9613 = vmatpush.bf16.msra.mxu3 %v12243_v5  ;;  %v9324_v5 = vadd.f32 %v9323_v60, %v21563_v0  ;;  %v17708_v0 = vld [vmem:[%s28127_s1 + $0x288] sm:$0xf0] }
 0x188   :  { %9575 = vmatpush.bf16.msra.mxu0 %v17139_v2  ;;  %v12130_v2 = vld [vmem:[%s28127_s1 + $0x270] sm:$0xf]  ;;  %v9349_v32 = vpop.f32.mrf.mxu2 }
 0x189   :  { %9588 = vmatpush.bf16.msra.mxu1 %v17363_v15  ;;  %v9337_v15 = vadd.f32 %v9336_v6, %v9324_v5  ;;  %v12131_v34 = vor.u32 %v17708_v0, %v12130_v2  ;;  %v9338_v60 = vpop.f32.mrf.mxu1  ;;  %v17694_v5 = vld [vmem:[%s28127_s1 + $0x218] sm:$0xf0]  ;;  %v16999_v6 = vor.u32 %v18922_v48, %v16996_v58  ;;  %v18971_v2 = vld [vmem:[%s28127_s1 + $0x2a04] sm:$0xf]  ;;  %v17192_v0 = vld [vmem:[%s28127_s1 + $0x2a1c] sm:$0xf0] }
 0x18a   :  { %9601 = vmatpush.bf16.msra.mxu2 %v11991_v53  ;;  %v17055_v53 = vor.u32 %v18936_v63, %v17052_v55  ;;  %v11850_v63 = vld [vmem:[%s28127_s1 + $0x40] sm:$0xf]  ;;  %v17638_v55 = vld [vmem:[%s28127_s1 + $0x58] sm:$0xf0]  ;;  %v17785_v60 = vld [vmem:[%s28127_s1 + $0x4f0] sm:$0xf0] }
 0x18b   :  { %9614 = vmatpush.bf16.msra.mxu3 %v12215_v13  ;;  %v17024_v13 = vld [vmem:[%s28127_s1 + $0x28cc] sm:$0xf0]  ;;  %v11851_v14 = vor.u32 %v17638_v55, %v11850_v63  ;;  %v17841_v63 = vld [vmem:[%s28127_s1 + $0x6b0] sm:$0xf0]  ;;  %v12886_v55 = vld [vmem:[%s28127_s1 + $0x858] sm:$0xf] }
 0x18c   :  { %9576 = vmatpush.bf16.msra.mxu0 %v17111_v40  ;;  %v17645_v40 = vld [vmem:[%s28127_s1 + $0x90] sm:$0xf0]  ;;  %v17027_v51 = vor.u32 %v18929_v24, %v17024_v13  ;;  %v9325_v54 = vpop.f32.mrf.mxu0  ;;  %v12046_v24 = vld [vmem:[%s28127_s1 + $0x1c8] sm:$0xf]  ;;  %v17687_v13 = vld [vmem:[%s28127_s1 + $0x1e0] sm:$0xf0] }
 0x18d   :  { %9589 = vmatpush.bf16.msra.mxu1 %v17335_v43  ;;  %v9350_v43 = vadd.f32 %v9349_v32, %v9337_v15  ;;  %v11879_v57 = vor.u32 %v17645_v40, %v11878_v39  ;;  %v11822_v15 = vld [vmem:[%s28127_s1 + $0x8] sm:$0xf]  ;;  %v12466_v32 = vld [vmem:[%s28127_s1 + $0x510] sm:$0xf]  ;;  %v17848_v40 = vld [vmem:[%s28127_s1 + $0x6e8] sm:$0xf0] }
 0x18e   :  { %9602 = vmatpush.bf16.msra.mxu2 %v11963_v27  ;;  %v9362_v27 = vpop.f32.mrf.mxu3  ;;  %v17960_v54 = vld [vmem:[%s28127_s1 + $0xa68] sm:$0xf0]  ;;  %v12691_v48 = vor.u32 %v17848_v40, %v12690_v36  ;;  %v12382_v36 = vld [vmem:[%s28127_s1 + $0x468] sm:$0xf] }
 0x18f   :  { %9615 = vmatpush.bf16.msra.mxu3 %v12187_v52  ;;  %v21753_v52 = vadd.f32 %v9362_v27, %v9350_v43  ;;  %v12914_v43 = vld [vmem:[%s28127_s1 + $0x890] sm:$0xf]  ;;  %v17904_v27 = vld [vmem:[%s28127_s1 + $0x8a8] sm:$0xf0]  ;;  %v12606_v40 = vld [vmem:[%s28127_s1 + $0x628] sm:$0xf] }
 0x190   :  { %9577 = vmatpush.bf16.msra.mxu0 %v17083_v59  ;;  %v18978_v59 = vld [vmem:[%s28127_s1 + $0x2a3c] sm:$0xf]  ;;  %v12915_v58 = vor.u32 %v17904_v27, %v12914_v43  ;;  %v17827_v27 = vld [vmem:[%s28127_s1 + $0x640] sm:$0xf0] }
 0x191   :  { %9590 = vmatpush.bf16.msra.mxu1 %v17307_v61  ;;  %v12103_v61 = vor.u32 %v17701_v50, %v12102_v47  ;;  %v17195_v47 = vor.u32 %v18971_v2, %v17192_v0  ;;  %v17778_v2 = vld [vmem:[%s28127_s1 + $0x4b8] sm:$0xf0]  ;;  %v12634_v0 = vld [vmem:[%s28127_s1 + $0x660] sm:$0xf] }
 0x192   :  { %9603 = vmatpush.bf16.msra.mxu2 %v11935_v62  ;;  %v17220_v62 = vld [vmem:[%s28127_s1 + $0x2a54] sm:$0xf0] }
 0x193   :  { %9616 = vmatpush.bf16.msra.mxu3 %v12159_v8  ;;  %v18915_v8 = vld [vmem:[%s28127_s1 + $0x2844] sm:$0xf]  ;;  %v17223_v10 = vor.u32 %v18978_v59, %v17220_v62  ;;  %v12438_v59 = vld [vmem:[%s28127_s1 + $0x4d8] sm:$0xf] }
 0x194   :  { %9578 = vmatpush.bf16.msra.mxu0 %v17055_v53  ;;  %v9351_v53 = vpop.f32.mrf.mxu2  ;;  %v16971_v39 = vor.u32 %v18915_v8, %v16968_v9  ;;  %v12439_v8 = vor.u32 %v17785_v60, %v12438_v59  ;;  %v12607_v59 = vor.u32 %v17827_v27, %v12606_v40 }
 0x195   :  { %9591 = vmatpush.bf16.msra.mxu1 %v17279_v17  ;;  %v12075_v17 = vor.u32 %v17694_v5, %v12074_v4  ;;  %v17897_v4 = vld [vmem:[%s28127_s1 + $0x870] sm:$0xf0]  ;;  %v13110_v5 = vld [vmem:[%s28127_s1 + $0xa18] sm:$0xf]  ;;  %v17834_v53 = vld [vmem:[%s28127_s1 + $0x678] sm:$0xf0] }
 0x196   :  { %9604 = vmatpush.bf16.msra.mxu2 %v11907_v21  ;;  %v17631_v21 = vld [vmem:[%s28127_s1 + $0x20] sm:$0xf0]  ;;  %v9364_v26 = vpop.f32.mrf.mxu3 }
 0x197   :  { %9617 = vmatpush.bf16.msra.mxu3 %v12131_v34  ;;  %v17792_v34 = vld [vmem:[%s28127_s1 + $0x528] sm:$0xf0]  ;;  %v11823_v50 = vor.u32 %v17631_v21, %v11822_v15  ;;  %v17890_v21 = vld [vmem:[%s28127_s1 + $0x838] sm:$0xf0] }
 0x198   :  { %9579 = vmatpush.bf16.msra.mxu0 %v17027_v51  ;;  %v13138_v51 = vld [vmem:[%s28127_s1 + $0xa50] sm:$0xf] }
 0x199   :  { %9592 = vmatpush.bf16.msra.mxu1 %v17251_v56  ;;  %v12047_v56 = vor.u32 %v17687_v13, %v12046_v24  ;;  %v13139_v62 = vor.u32 %v17960_v54, %v13138_v51  ;;  %v13082_v24 = vld [vmem:[%s28127_s1 + $0x9e0] sm:$0xf]  ;;  %v17946_v13 = vld [vmem:[%s28127_s1 + $0x9f8] sm:$0xf0]  ;;  %v13054_v54 = vld [vmem:[%s28127_s1 + $0x9a8] sm:$0xf] }
 0x19a   :  { %9605 = vmatpush.bf16.msra.mxu2 %v11879_v57  ;;  %v12467_v57 = vor.u32 %v17792_v34, %v12466_v32  ;;  %v12635_v32 = vor.u32 %v17834_v53, %v12634_v0  ;;  %v13083_v43 = vor.u32 %v17946_v13, %v13082_v24  ;;  %v12326_v0 = vld [vmem:[%s28127_s1 + $0x3f8] sm:$0xf]  ;;  %v17813_v24 = vld [vmem:[%s28127_s1 + $0x5d0] sm:$0xf0] }
 0x19b   :  { %9618 = vmatpush.bf16.msra.mxu3 %v12103_v61  ;;  %v12662_v61 = vld [vmem:[%s28127_s1 + $0x698] sm:$0xf] }
 0x19c   :  { %9580 = vmatpush.bf16.msra.mxu0 %v16999_v6  ;;  %v17953_v6 = vld [vmem:[%s28127_s1 + $0xa30] sm:$0xf0]  ;;  %v12663_v9 = vor.u32 %v17841_v63, %v12662_v61  ;;  %v12354_v61 = vld [vmem:[%s28127_s1 + $0x430] sm:$0xf]  ;;  %v12550_v53 = vld [vmem:[%s28127_s1 + $0x5b8] sm:$0xf] }
 0x19d   :  { %9593 = vmatpush.bf16.msra.mxu1 %v17223_v10  ;;  %v12887_v10 = vor.u32 %v17897_v4, %v12886_v55  ;;  %v13111_v15 = vor.u32 %v17953_v6, %v13110_v5  ;;  %v12578_v63 = vld [vmem:[%s28127_s1 + $0x5f0] sm:$0xf]  ;;  %v17820_v4 = vld [vmem:[%s28127_s1 + $0x608] sm:$0xf0]  ;;  %v12774_v13 = vld [vmem:[%s28127_s1 + $0x778] sm:$0xf] }
 0x19e   :  { %9606 = vmatpush.bf16.msra.mxu2 %v11851_v14  ;;  %v12410_v14 = vld [vmem:[%s28127_s1 + $0x4a0] sm:$0xf]  ;;  %v12802_v5 = vld [vmem:[%s28127_s1 + $0x7b0] sm:$0xf]  ;;  %v17876_v6 = vld [vmem:[%s28127_s1 + $0x7c8] sm:$0xf0] }
 0x19f   :  { %9619 = vmatpush.bf16.msra.mxu3 %v12075_v17  ;;  %v12858_v17 = vld [vmem:[%s28127_s1 + $0x820] sm:$0xf]  ;;  %v12411_v26 = vor.u32 %v17778_v2, %v12410_v14  ;;  %v12579_v14 = vor.u32 %v17820_v4, %v12578_v63  ;;  %v12803_v2 = vor.u32 %v17876_v6, %v12802_v5  ;;  %v12494_v6 = vld [vmem:[%s28127_s1 + $0x548] sm:$0xf] }
 0x1a0   :  { %9581 = vmatpush.bf16.msra.mxu0 %v16971_v39  ;;  %v12859_v34 = vor.u32 %v17890_v21, %v12858_v17  ;;  %v17771_v39 = vld [vmem:[%s28127_s1 + $0x480] sm:$0xf0]  ;;  %v9375_v51 = vpop.f32.mrf.mxu0 }
 0x1a1   :  { %9594 = vmatpush.bf16.msra.mxu1 %v17195_v47  ;;  %v12830_v47 = vld [vmem:[%s28127_s1 + $0x7e8] sm:$0xf] }
 0x1a2   :  { %9607 = vmatpush.bf16.msra.mxu2 %v11823_v50  ;;  %v17883_v50 = vld [vmem:[%s28127_s1 + $0x800] sm:$0xf0] }
 0x1a3   :  { %9620 = vmatpush.bf16.msra.mxu3 %v12047_v56  ;;  %9582 = vmatmul.bf16.vlgmr.msra.gmra.mxu0 %v20446_v16  ;;  %v17939_v56 = vld [vmem:[%s28127_s1 + $0x9c0] sm:$0xf0]  ;;  %v12831_v60 = vor.u32 %v17883_v50, %v12830_v47  ;;  %v12551_v50 = vor.u32 %v17813_v24, %v12550_v53  ;;  %v13362_v53 = vld [vmem:[%s28127_s1 + $0xc10] sm:$0xf] }
 0x1a4   :  { %9626 = vmatpush.bf16.msrb.mxu0 %v12467_v57  ;;  %9595 = vmatmul.bf16.vlgmr.msra.gmra.mxu1 %v20635_v1  ;;  %v9376_v57 = vadd.f32 %v9375_v51, %v21753_v52  ;;  %v13055_v52 = vor.u32 %v17939_v56, %v13054_v54  ;;  %v12298_v54 = vld [vmem:[%s28127_s1 + $0x3c0] sm:$0xf]  ;;  %v17750_v56 = vld [vmem:[%s28127_s1 + $0x3d8] sm:$0xf0] }
 0x1a5   :  { %9639 = vmatpush.bf16.msrb.mxu1 %v12691_v48  ;;  %9608 = vmatmul.bf16.vlgmr.msra.gmra.mxu2 %v19435_v19  ;;  %v12383_v48 = vor.u32 %v17771_v39, %v12382_v36  ;;  %v12998_v36 = vld [vmem:[%s28127_s1 + $0x938] sm:$0xf]  ;;  %v17925_v39 = vld [vmem:[%s28127_s1 + $0x950] sm:$0xf0]  ;;  %v12299_v63 = vor.u32 %v17750_v56, %v12298_v54 }
 0x1a6   :  { %9652 = vmatpush.bf16.msrb.mxu2 %v12915_v58  ;;  %9621 = vmatmul.bf16.vlgmr.msra.gmra.mxu3 %v19439_v22  ;;  %v9388_v58 = vpop.f32.mrf.mxu1  ;;  %v13334_v56 = vld [vmem:[%s28127_s1 + $0xbd8] sm:$0xf] }
 0x1a7   :  { %9665 = vmatpush.bf16.msrb.mxu3 %v13139_v62  ;;  %v17764_v62 = vld [vmem:[%s28127_s1 + $0x448] sm:$0xf0]  ;;  %v9389_v55 = vadd.f32 %v9388_v58, %v9376_v57  ;;  %v12522_v57 = vld [vmem:[%s28127_s1 + $0x580] sm:$0xf]  ;;  %v17806_v58 = vld [vmem:[%s28127_s1 + $0x598] sm:$0xf0] }
 0x1a8   :  { %9627 = vmatpush.bf16.msrb.mxu0 %v12439_v8  ;;  %v13026_v8 = vld [vmem:[%s28127_s1 + $0x970] sm:$0xf]  ;;  %v9401_v21 = vpop.f32.mrf.mxu2  ;;  %v9377_v40 = vpop.f32.mrf.mxu0  ;;  %v12523_v4 = vor.u32 %v17806_v58, %v12522_v57  ;;  %v18009_v57 = vld [vmem:[%s28127_s1 + $0xbf0] sm:$0xf0] }
 0x1a9   :  { %9640 = vmatpush.bf16.msrb.mxu1 %v12663_v9  ;;  %v17932_v9 = vld [vmem:[%s28127_s1 + $0x988] sm:$0xf0]  ;;  %v14034_v40 = vld [vmem:[%s28127_s1 + $0x1150] sm:$0xf] }
 0x1aa   :  { %9653 = vmatpush.bf16.msrb.mxu2 %v12887_v10  ;;  %v12355_v10 = vor.u32 %v17764_v62, %v12354_v61  ;;  %v13027_v17 = vor.u32 %v17932_v9, %v13026_v8  ;;  %v12970_v61 = vld [vmem:[%s28127_s1 + $0x900] sm:$0xf]  ;;  %v17918_v62 = vld [vmem:[%s28127_s1 + $0x918] sm:$0xf0]  ;;  %v17799_v8 = vld [vmem:[%s28127_s1 + $0x560] sm:$0xf0] }
 0x1ab   :  { %9666 = vmatpush.bf16.msrb.mxu3 %v13111_v15  ;;  %v17757_v15 = vld [vmem:[%s28127_s1 + $0x410] sm:$0xf0]  ;;  %v12718_v9 = vld [vmem:[%s28127_s1 + $0x708] sm:$0xf] }
 0x1ac   :  { %9628 = vmatpush.bf16.msrb.mxu0 %v12411_v26  ;;  %v17869_v26 = vld [vmem:[%s28127_s1 + $0x790] sm:$0xf0] }
 0x1ad   :  { %9641 = vmatpush.bf16.msrb.mxu1 %v12635_v32  ;;  %v9402_v32 = vadd.f32 %v9401_v21, %v9389_v55  ;;  %v12775_v51 = vor.u32 %v17869_v26, %v12774_v13  ;;  %v17743_v55 = vld [vmem:[%s28127_s1 + $0x3a0] sm:$0xf0]  ;;  %v13586_v21 = vld [vmem:[%s28127_s1 + $0xdd0] sm:$0xf]  ;;  %v18072_v26 = vld [vmem:[%s28127_s1 + $0xde8] sm:$0xf0] }
 0x1ae   :  { %9654 = vmatpush.bf16.msrb.mxu2 %v12859_v34  ;;  %v9414_v34 = vpop.f32.mrf.mxu3  ;;  %v9390_v27 = vpop.f32.mrf.mxu1 }
 0x1af   :  { %9667 = vmatpush.bf16.msrb.mxu3 %v13083_v43  ;;  %v12327_v43 = vor.u32 %v17757_v15, %v12326_v0  ;;  %v21952_v47 = vadd.f32 %v9414_v34, %v9402_v32  ;;  %v17911_v0 = vld [vmem:[%s28127_s1 + $0x8e0] sm:$0xf0]  ;;  %v13810_v32 = vld [vmem:[%s28127_s1 + $0xf90] sm:$0xf]  ;;  %v18128_v34 = vld [vmem:[%s28127_s1 + $0xfa8] sm:$0xf0] }
 0x1b0   :  { %9629 = vmatpush.bf16.msrb.mxu0 %v12383_v48  ;;  %v12999_v48 = vor.u32 %v17925_v39, %v12998_v36  ;;  %v9403_v15 = vpop.f32.mrf.mxu2  ;;  %v12495_v36 = vor.u32 %v17799_v8, %v12494_v6  ;;  %v13811_v54 = vor.u32 %v18128_v34, %v13810_v32  ;;  %v18002_v6 = vld [vmem:[%s28127_s1 + $0xbb8] sm:$0xf0]  ;;  %v13530_v8 = vld [vmem:[%s28127_s1 + $0xd60] sm:$0xf]  ;;  %v18051_v34 = vld [vmem:[%s28127_s1 + $0xd40] sm:$0xf0] }
 0x1b1   :  { %9642 = vmatpush.bf16.msrb.mxu1 %v12607_v59  ;;  %v12746_v59 = vld [vmem:[%s28127_s1 + $0x740] sm:$0xf]  ;;  %v18170_v15 = vld [vmem:[%s28127_s1 + $0x10f8] sm:$0xf0] }
 0x1b2   :  { %9655 = vmatpush.bf16.msrb.mxu2 %v12831_v60  ;;  %v17862_v60 = vld [vmem:[%s28127_s1 + $0x758] sm:$0xf0] }
 0x1b3   :  { %9668 = vmatpush.bf16.msrb.mxu3 %v13055_v52  ;;  %v12270_v52 = vld [vmem:[%s28127_s1 + $0x388] sm:$0xf]  ;;  %v12747_v5 = vor.u32 %v17862_v60, %v12746_v59  ;;  %v18065_v59 = vld [vmem:[%s28127_s1 + $0xdb0] sm:$0xf0]  ;;  %v13782_v60 = vld [vmem:[%s28127_s1 + $0xf58] sm:$0xf] }
 0x1b4   :  { %9630 = vmatpush.bf16.msrb.mxu0 %v12355_v10  ;;  %v12971_v10 = vor.u32 %v17918_v62, %v12970_v61  ;;  %v12271_v13 = vor.u32 %v17743_v55, %v12270_v52  ;;  %v18121_v61 = vld [vmem:[%s28127_s1 + $0xf70] sm:$0xf0]  ;;  %v14006_v62 = vld [vmem:[%s28127_s1 + $0x1118] sm:$0xf]  ;;  %v13335_v52 = vor.u32 %v18009_v57, %v13334_v56 }
 0x1b5   :  { %9643 = vmatpush.bf16.msrb.mxu1 %v12579_v14  ;;  %v17855_v14 = vld [vmem:[%s28127_s1 + $0x720] sm:$0xf0] }
 0x1b6   :  { %9656 = vmatpush.bf16.msrb.mxu2 %v12803_v2  ;;  %v12942_v2 = vld [vmem:[%s28127_s1 + $0x8c8] sm:$0xf]  ;;  %v9416_v24 = vpop.f32.mrf.mxu3  ;;  %v12719_v39 = vor.u32 %v17855_v14, %v12718_v9  ;;  %v13754_v14 = vld [vmem:[%s28127_s1 + $0xf20] sm:$0xf] }
 0x1b7   :  { %9669 = vmatpush.bf16.msrb.mxu3 %v13027_v17  ;;  %v18016_v17 = vld [vmem:[%s28127_s1 + $0xc28] sm:$0xf0]  ;;  %v12943_v27 = vor.u32 %v17911_v0, %v12942_v2  ;;  %v18114_v2 = vld [vmem:[%s28127_s1 + $0xf38] sm:$0xf0]  ;;  %v13978_v0 = vld [vmem:[%s28127_s1 + $0x10e0] sm:$0xf] }
 0x1b8   :  { %9631 = vmatpush.bf16.msrb.mxu0 %v12327_v43  ;;  %v18184_v43 = vld [vmem:[%s28127_s1 + $0x1168] sm:$0xf0]  ;;  %v13278_v24 = vld [vmem:[%s28127_s1 + $0xb68] sm:$0xf]  ;;  %v13979_v32 = vor.u32 %v18170_v15, %v13978_v0  ;;  %v18037_v0 = vld [vmem:[%s28127_s1 + $0xcd0] sm:$0xf0] }
 0x1b9   :  { %9644 = vmatpush.bf16.msrb.mxu1 %v12551_v50  ;;  %v13363_v50 = vor.u32 %v18016_v17, %v13362_v53  ;;  %v14035_v58 = vor.u32 %v18184_v43, %v14034_v40  ;;  %v13950_v43 = vld [vmem:[%s28127_s1 + $0x10a8] sm:$0xf]  ;;  %v13670_v15 = vld [vmem:[%s28127_s1 + $0xe78] sm:$0xf] }
 0x1ba   :  { %9657 = vmatpush.bf16.msrb.mxu2 %v12775_v51  ;;  %v13587_v51 = vor.u32 %v18072_v26, %v13586_v21  ;;  %v13755_v21 = vor.u32 %v18114_v2, %v13754_v14  ;;  %v13502_v26 = vld [vmem:[%s28127_s1 + $0xd28] sm:$0xf] }
 0x1bb   :  { %9670 = vmatpush.bf16.msrb.mxu3 %v12999_v48  ;;  %v13558_v48 = vld [vmem:[%s28127_s1 + $0xd98] sm:$0xf]  ;;  %v13503_v56 = vor.u32 %v18051_v34, %v13502_v26 }
 0x1bc   :  { %9632 = vmatpush.bf16.msrb.mxu0 %v12299_v63  ;;  %v18177_v63 = vld [vmem:[%s28127_s1 + $0x1130] sm:$0xf0]  ;;  %v13559_v55 = vor.u32 %v18065_v59, %v13558_v48  ;;  %v13250_v48 = vld [vmem:[%s28127_s1 + $0xb30] sm:$0xf] }
 0x1bd   :  { %9645 = vmatpush.bf16.msrb.mxu1 %v12523_v4  ;;  %v13783_v4 = vor.u32 %v18121_v61, %v13782_v60  ;;  %v14007_v9 = vor.u32 %v18177_v63, %v14006_v62  ;;  %v13474_v59 = vld [vmem:[%s28127_s1 + $0xcf0] sm:$0xf]  ;;  %v18044_v61 = vld [vmem:[%s28127_s1 + $0xd08] sm:$0xf0] }
 0x1be   :  { %9658 = vmatpush.bf16.msrb.mxu2 %v12747_v5  ;;  %v13306_v5 = vld [vmem:[%s28127_s1 + $0xba0] sm:$0xf]  ;;  %v13698_v62 = vld [vmem:[%s28127_s1 + $0xeb0] sm:$0xf]  ;;  %v18100_v63 = vld [vmem:[%s28127_s1 + $0xec8] sm:$0xf0] }
 0x1bf   :  { %9671 = vmatpush.bf16.msrb.mxu3 %v12971_v10  ;;  %v18058_v10 = vld [vmem:[%s28127_s1 + $0xd78] sm:$0xf0]  ;;  %v13307_v53 = vor.u32 %v18002_v6, %v13306_v5  ;;  %v13475_v5 = vor.u32 %v18044_v61, %v13474_v59  ;;  %v13699_v6 = vor.u32 %v18100_v63, %v13698_v62  ;;  %v13390_v63 = vld [vmem:[%s28127_s1 + $0xc48] sm:$0xf] }
 0x1c0   :  { %9633 = vmatpush.bf16.msrb.mxu0 %v12271_v13  ;;  %v13531_v17 = vor.u32 %v18058_v10, %v13530_v8  ;;  %v17995_v13 = vld [vmem:[%s28127_s1 + $0xb80] sm:$0xf0]  ;;  %v9427_v40 = vpop.f32.mrf.mxu0  ;;  %v13222_v8 = vld [vmem:[%s28127_s1 + $0xaf8] sm:$0xf] }
 0x1c1   :  { %9646 = vmatpush.bf16.msrb.mxu1 %v12495_v36  ;;  %v13726_v36 = vld [vmem:[%s28127_s1 + $0xee8] sm:$0xf]  ;;  %v13446_v10 = vld [vmem:[%s28127_s1 + $0xcb8] sm:$0xf] }
 0x1c2   :  { %9659 = vmatpush.bf16.msrb.mxu2 %v12719_v39  ;;  %v18107_v39 = vld [vmem:[%s28127_s1 + $0xf00] sm:$0xf0] }
 0x1c3   :  { %9672 = vmatpush.bf16.msrb.mxu3 %v12943_v27  ;;  %9634 = vmatmul.bf16.vlgmr.msrb.gmra.mxu0 %v19433_v18  ;;  %v18163_v27 = vld [vmem:[%s28127_s1 + $0x10c0] sm:$0xf0]  ;;  %v13727_v57 = vor.u32 %v18107_v39, %v13726_v36  ;;  %v13447_v39 = vor.u32 %v18037_v0, %v13446_v10  ;;  %v14258_v10 = vld [vmem:[%s28127_s1 + $0x1310] sm:$0xf] }
 0x1c4   :  { %9678 = vmatpush.bf16.msra.mxu0 %v13363_v50  ;;  %9647 = vmatmul.bf16.vlgmr.msrb.gmra.mxu1 %v19437_v20  ;;  %v9428_v50 = vadd.f32 %v9427_v40, %v21952_v47  ;;  %v13951_v47 = vor.u32 %v18163_v27, %v13950_v43  ;;  %v13194_v43 = vld [vmem:[%s28127_s1 + $0xac0] sm:$0xf]  ;;  %v17974_v27 = vld [vmem:[%s28127_s1 + $0xad8] sm:$0xf0] }
 0x1c5   :  { %9691 = vmatpush.bf16.msra.mxu1 %v13587_v51  ;;  %9660 = vmatmul.bf16.vlgmr.msrb.gmra.mxu2 %v19597_v41  ;;  %v13279_v51 = vor.u32 %v17995_v13, %v13278_v24  ;;  %v13894_v24 = vld [vmem:[%s28127_s1 + $0x1038] sm:$0xf]  ;;  %v18149_v13 = vld [vmem:[%s28127_s1 + $0x1050] sm:$0xf0]  ;;  %v13195_v59 = vor.u32 %v17974_v27, %v13194_v43 }
 0x1c6   :  { %9704 = vmatpush.bf16.msra.mxu2 %v13811_v54  ;;  %9673 = vmatmul.bf16.vlgmr.msrb.gmra.mxu3 %v19601_v44  ;;  %v9440_v54 = vpop.f32.mrf.mxu1  ;;  %v14230_v27 = vld [vmem:[%s28127_s1 + $0x12d8] sm:$0xf] }
 0x1c7   :  { %9717 = vmatpush.bf16.msra.mxu3 %v14035_v58  ;;  %v17988_v58 = vld [vmem:[%s28127_s1 + $0xb48] sm:$0xf0]  ;;  %v9441_v60 = vadd.f32 %v9440_v54, %v9428_v50  ;;  %v13418_v50 = vld [vmem:[%s28127_s1 + $0xc80] sm:$0xf]  ;;  %v18030_v54 = vld [vmem:[%s28127_s1 + $0xc98] sm:$0xf0] }
 0x1c8   :  { %9679 = vmatpush.bf16.msra.mxu0 %v13335_v52  ;;  %v13922_v52 = vld [vmem:[%s28127_s1 + $0x1070] sm:$0xf]  ;;  %v9453_v2 = vpop.f32.mrf.mxu2  ;;  %v9429_v26 = vpop.f32.mrf.mxu0  ;;  %v13419_v61 = vor.u32 %v18030_v54, %v13418_v50  ;;  %v18233_v50 = vld [vmem:[%s28127_s1 + $0x12f0] sm:$0xf0] }
 0x1c9   :  { %9692 = vmatpush.bf16.msra.mxu1 %v13559_v55  ;;  %v18156_v55 = vld [vmem:[%s28127_s1 + $0x1088] sm:$0xf0]  ;;  %v14930_v26 = vld [vmem:[%s28127_s1 + $0x1850] sm:$0xf] }
 0x1ca   :  { %9705 = vmatpush.bf16.msra.mxu2 %v13783_v4  ;;  %v13251_v4 = vor.u32 %v17988_v58, %v13250_v48  ;;  %v13923_v14 = vor.u32 %v18156_v55, %v13922_v52  ;;  %v13866_v48 = vld [vmem:[%s28127_s1 + $0x1000] sm:$0xf]  ;;  %v18142_v58 = vld [vmem:[%s28127_s1 + $0x1018] sm:$0xf0]  ;;  %v18023_v52 = vld [vmem:[%s28127_s1 + $0xc60] sm:$0xf0] }
 0x1cb   :  { %9718 = vmatpush.bf16.msra.mxu3 %v14007_v9  ;;  %v17981_v9 = vld [vmem:[%s28127_s1 + $0xb10] sm:$0xf0]  ;;  %v13614_v55 = vld [vmem:[%s28127_s1 + $0xe08] sm:$0xf] }
 0x1cc   :  { %9680 = vmatpush.bf16.msra.mxu0 %v13307_v53  ;;  %v18093_v53 = vld [vmem:[%s28127_s1 + $0xe90] sm:$0xf0] }
 0x1cd   :  { %9693 = vmatpush.bf16.msra.mxu1 %v13531_v17  ;;  %v9454_v17 = vadd.f32 %v9453_v2, %v9441_v60  ;;  %v13671_v40 = vor.u32 %v18093_v53, %v13670_v15  ;;  %v17967_v60 = vld [vmem:[%s28127_s1 + $0xaa0] sm:$0xf0]  ;;  %v14482_v2 = vld [vmem:[%s28127_s1 + $0x14d0] sm:$0xf]  ;;  %v18296_v53 = vld [vmem:[%s28127_s1 + $0x14e8] sm:$0xf0] }
 0x1ce   :  { %9706 = vmatpush.bf16.msra.mxu2 %v13755_v21  ;;  %v9466_v21 = vpop.f32.mrf.mxu3  ;;  %v9442_v34 = vpop.f32.mrf.mxu1 }
 0x1cf   :  { %9719 = vmatpush.bf16.msra.mxu3 %v13979_v32  ;;  %v13223_v32 = vor.u32 %v17981_v9, %v13222_v8  ;;  %v22151_v36 = vadd.f32 %v9466_v21, %v9454_v17  ;;  %v18135_v8 = vld [vmem:[%s28127_s1 + $0xfe0] sm:$0xf0]  ;;  %v14706_v17 = vld [vmem:[%s28127_s1 + $0x1690] sm:$0xf]  ;;  %v18352_v21 = vld [vmem:[%s28127_s1 + $0x16a8] sm:$0xf0] }
 0x1d0   :  { %9681 = vmatpush.bf16.msra.mxu0 %v13279_v51  ;;  %v13895_v51 = vor.u32 %v18149_v13, %v13894_v24  ;;  %v9455_v9 = vpop.f32.mrf.mxu2  ;;  %v13391_v24 = vor.u32 %v18023_v52, %v13390_v63  ;;  %v14707_v43 = vor.u32 %v18352_v21, %v14706_v17  ;;  %v18226_v63 = vld [vmem:[%s28127_s1 + $0x12b8] sm:$0xf0]  ;;  %v14426_v52 = vld [vmem:[%s28127_s1 + $0x1460] sm:$0xf]  ;;  %v18275_v21 = vld [vmem:[%s28127_s1 + $0x1440] sm:$0xf0] }
 0x1d1   :  { %9694 = vmatpush.bf16.msra.mxu1 %v13503_v56  ;;  %v13642_v56 = vld [vmem:[%s28127_s1 + $0xe40] sm:$0xf]  ;;  %v18394_v9 = vld [vmem:[%s28127_s1 + $0x17f8] sm:$0xf0] }
 0x1d2   :  { %9707 = vmatpush.bf16.msra.mxu2 %v13727_v57  ;;  %v18086_v57 = vld [vmem:[%s28127_s1 + $0xe58] sm:$0xf0] }
 0x1d3   :  { %9720 = vmatpush.bf16.msra.mxu3 %v13951_v47  ;;  %v13166_v47 = vld [vmem:[%s28127_s1 + $0xa88] sm:$0xf]  ;;  %v13643_v62 = vor.u32 %v18086_v57, %v13642_v56  ;;  %v18289_v56 = vld [vmem:[%s28127_s1 + $0x14b0] sm:$0xf0]  ;;  %v14678_v57 = vld [vmem:[%s28127_s1 + $0x1658] sm:$0xf] }
 0x1d4   :  { %9682 = vmatpush.bf16.msra.mxu0 %v13251_v4  ;;  %v13867_v4 = vor.u32 %v18142_v58, %v13866_v48  ;;  %v13167_v15 = vor.u32 %v17967_v60, %v13166_v47  ;;  %v18345_v48 = vld [vmem:[%s28127_s1 + $0x1670] sm:$0xf0]  ;;  %v14902_v58 = vld [vmem:[%s28127_s1 + $0x1818] sm:$0xf]  ;;  %v14231_v47 = vor.u32 %v18233_v50, %v14230_v27 }
 0x1d5   :  { %9695 = vmatpush.bf16.msra.mxu1 %v13475_v5  ;;  %v18079_v5 = vld [vmem:[%s28127_s1 + $0xe20] sm:$0xf0] }
 0x1d6   :  { %9708 = vmatpush.bf16.msra.mxu2 %v13699_v6  ;;  %v13838_v6 = vld [vmem:[%s28127_s1 + $0xfc8] sm:$0xf]  ;;  %v9468_v0 = vpop.f32.mrf.mxu3  ;;  %v13615_v13 = vor.u32 %v18079_v5, %v13614_v55  ;;  %v14650_v5 = vld [vmem:[%s28127_s1 + $0x1620] sm:$0xf] }
 0x1d7   :  { %9721 = vmatpush.bf16.msra.mxu3 %v13923_v14  ;;  %v18240_v14 = vld [vmem:[%s28127_s1 + $0x1328] sm:$0xf0]  ;;  %v13839_v34 = vor.u32 %v18135_v8, %v13838_v6  ;;  %v18338_v6 = vld [vmem:[%s28127_s1 + $0x1638] sm:$0xf0]  ;;  %v14874_v8 = vld [vmem:[%s28127_s1 + $0x17e0] sm:$0xf] }
 0x1d8   :  { %9683 = vmatpush.bf16.msra.mxu0 %v13223_v32  ;;  %v18408_v32 = vld [vmem:[%s28127_s1 + $0x1868] sm:$0xf0]  ;;  %v14174_v0 = vld [vmem:[%s28127_s1 + $0x1268] sm:$0xf]  ;;  %v14875_v17 = vor.u32 %v18394_v9, %v14874_v8  ;;  %v18261_v8 = vld [vmem:[%s28127_s1 + $0x13d0] sm:$0xf0] }
 0x1d9   :  { %9696 = vmatpush.bf16.msra.mxu1 %v13447_v39  ;;  %v14259_v39 = vor.u32 %v18240_v14, %v14258_v10  ;;  %v14931_v54 = vor.u32 %v18408_v32, %v14930_v26  ;;  %v14846_v32 = vld [vmem:[%s28127_s1 + $0x17a8] sm:$0xf]  ;;  %v14566_v9 = vld [vmem:[%s28127_s1 + $0x1578] sm:$0xf] }
 0x1da   :  { %9709 = vmatpush.bf16.msra.mxu2 %v13671_v40  ;;  %v14483_v40 = vor.u32 %v18296_v53, %v14482_v2  ;;  %v14651_v2 = vor.u32 %v18338_v6, %v14650_v5  ;;  %v14398_v53 = vld [vmem:[%s28127_s1 + $0x1428] sm:$0xf] }
 0x1db   :  { %9722 = vmatpush.bf16.msra.mxu3 %v13895_v51  ;;  %v14454_v51 = vld [vmem:[%s28127_s1 + $0x1498] sm:$0xf]  ;;  %v14399_v27 = vor.u32 %v18275_v21, %v14398_v53 }
 0x1dc   :  { %9684 = vmatpush.bf16.msra.mxu0 %v13195_v59  ;;  %v18401_v59 = vld [vmem:[%s28127_s1 + $0x1830] sm:$0xf0]  ;;  %v14455_v60 = vor.u32 %v18289_v56, %v14454_v51  ;;  %v14146_v51 = vld [vmem:[%s28127_s1 + $0x1230] sm:$0xf] }
 0x1dd   :  { %9697 = vmatpush.bf16.msra.mxu1 %v13419_v61  ;;  %v14679_v61 = vor.u32 %v18345_v48, %v14678_v57  ;;  %v14903_v55 = vor.u32 %v18401_v59, %v14902_v58  ;;  %v14370_v56 = vld [vmem:[%s28127_s1 + $0x13f0] sm:$0xf]  ;;  %v18268_v48 = vld [vmem:[%s28127_s1 + $0x1408] sm:$0xf0] }
 0x1de   :  { %9710 = vmatpush.bf16.msra.mxu2 %v13643_v62  ;;  %v14202_v62 = vld [vmem:[%s28127_s1 + $0x12a0] sm:$0xf]  ;;  %v14594_v58 = vld [vmem:[%s28127_s1 + $0x15b0] sm:$0xf]  ;;  %v18324_v59 = vld [vmem:[%s28127_s1 + $0x15c8] sm:$0xf0] }
 0x1df   :  { %9723 = vmatpush.bf16.msra.mxu3 %v13867_v4  ;;  %v18282_v4 = vld [vmem:[%s28127_s1 + $0x1478] sm:$0xf0]  ;;  %v14203_v10 = vor.u32 %v18226_v63, %v14202_v62  ;;  %v14371_v62 = vor.u32 %v18268_v48, %v14370_v56  ;;  %v14595_v63 = vor.u32 %v18324_v59, %v14594_v58  ;;  %v14286_v59 = vld [vmem:[%s28127_s1 + $0x1348] sm:$0xf] }
 0x1e0   :  { %9685 = vmatpush.bf16.msra.mxu0 %v13167_v15  ;;  %v14427_v14 = vor.u32 %v18282_v4, %v14426_v52  ;;  %v18219_v15 = vld [vmem:[%s28127_s1 + $0x1280] sm:$0xf0]  ;;  %v9479_v26 = vpop.f32.mrf.mxu0  ;;  %v14118_v52 = vld [vmem:[%s28127_s1 + $0x11f8] sm:$0xf] }
 0x1e1   :  { %9698 = vmatpush.bf16.msra.mxu1 %v13391_v24  ;;  %v14622_v24 = vld [vmem:[%s28127_s1 + $0x15e8] sm:$0xf]  ;;  %v14342_v4 = vld [vmem:[%s28127_s1 + $0x13b8] sm:$0xf] }
 0x1e2   :  { %9711 = vmatpush.bf16.msra.mxu2 %v13615_v13  ;;  %v18331_v13 = vld [vmem:[%s28127_s1 + $0x1600] sm:$0xf0] }
 0x1e3   :  { %9724 = vmatpush.bf16.msra.mxu3 %v13839_v34  ;;  %9686 = vmatmul.bf16.vlgmr.msra.gmra.mxu0 %v19589_v38  ;;  %v18387_v34 = vld [vmem:[%s28127_s1 + $0x17c0] sm:$0xf0]  ;;  %v14623_v50 = vor.u32 %v18331_v13, %v14622_v24  ;;  %v14343_v13 = vor.u32 %v18261_v8, %v14342_v4  ;;  %v15154_v4 = vld [vmem:[%s28127_s1 + $0x1a10] sm:$0xf] }
 0x1e4   :  { %9730 = vmatpush.bf16.msrb.mxu0 %v14259_v39  ;;  %9699 = vmatmul.bf16.vlgmr.msra.gmra.mxu1 %v19599_v42  ;;  %v9480_v39 = vadd.f32 %v9479_v26, %v22151_v36  ;;  %v14847_v36 = vor.u32 %v18387_v34, %v14846_v32  ;;  %v14090_v32 = vld [vmem:[%s28127_s1 + $0x11c0] sm:$0xf]  ;;  %v18198_v34 = vld [vmem:[%s28127_s1 + $0x11d8] sm:$0xf0] }
 0x1e5   :  { %9743 = vmatpush.bf16.msrb.mxu1 %v14483_v40  ;;  %9712 = vmatmul.bf16.vlgmr.msra.gmra.mxu2 %v19790_v25  ;;  %v14175_v40 = vor.u32 %v18219_v15, %v14174_v0  ;;  %v14790_v0 = vld [vmem:[%s28127_s1 + $0x1738] sm:$0xf]  ;;  %v18373_v15 = vld [vmem:[%s28127_s1 + $0x1750] sm:$0xf0]  ;;  %v14091_v56 = vor.u32 %v18198_v34, %v14090_v32 }
 0x1e6   :  { %9756 = vmatpush.bf16.msrb.mxu2 %v14707_v43  ;;  %9725 = vmatmul.bf16.vlgmr.msra.gmra.mxu3 %v19803_v30  ;;  %v9492_v43 = vpop.f32.mrf.mxu1  ;;  %v15126_v34 = vld [vmem:[%s28127_s1 + $0x19d8] sm:$0xf] }
 0x1e7   :  { %9769 = vmatpush.bf16.msrb.mxu3 %v14931_v54  ;;  %v18212_v54 = vld [vmem:[%s28127_s1 + $0x1248] sm:$0xf0]  ;;  %v9493_v57 = vadd.f32 %v9492_v43, %v9480_v39  ;;  %v14314_v39 = vld [vmem:[%s28127_s1 + $0x1380] sm:$0xf]  ;;  %v18254_v43 = vld [vmem:[%s28127_s1 + $0x1398] sm:$0xf0] }
 0x1e8   :  { %9731 = vmatpush.bf16.msrb.mxu0 %v14231_v47  ;;  %v14818_v47 = vld [vmem:[%s28127_s1 + $0x1770] sm:$0xf]  ;;  %v9505_v6 = vpop.f32.mrf.mxu2  ;;  %v9481_v53 = vpop.f32.mrf.mxu0  ;;  %v14315_v48 = vor.u32 %v18254_v43, %v14314_v39  ;;  %v18457_v39 = vld [vmem:[%s28127_s1 + $0x19f0] sm:$0xf0] }
 0x1e9   :  { %9744 = vmatpush.bf16.msrb.mxu1 %v14455_v60  ;;  %v18380_v60 = vld [vmem:[%s28127_s1 + $0x1788] sm:$0xf0]  ;;  %v15826_v53 = vld [vmem:[%s28127_s1 + $0x1f50] sm:$0xf] }
 0x1ea   :  { %9757 = vmatpush.bf16.msrb.mxu2 %v14679_v61  ;;  %v14147_v61 = vor.u32 %v18212_v54, %v14146_v51  ;;  %v14819_v5 = vor.u32 %v18380_v60, %v14818_v47  ;;  %v14762_v51 = vld [vmem:[%s28127_s1 + $0x1700] sm:$0xf]  ;;  %v18366_v54 = vld [vmem:[%s28127_s1 + $0x1718] sm:$0xf0]  ;;  %v18247_v47 = vld [vmem:[%s28127_s1 + $0x1360] sm:$0xf0] }
 0x1eb   :  { %9770 = vmatpush.bf16.msrb.mxu3 %v14903_v55  ;;  %v18205_v55 = vld [vmem:[%s28127_s1 + $0x1210] sm:$0xf0]  ;;  %v14510_v60 = vld [vmem:[%s28127_s1 + $0x1508] sm:$0xf] }
 0x1ec   :  { %9732 = vmatpush.bf16.msrb.mxu0 %v14203_v10  ;;  %v18317_v10 = vld [vmem:[%s28127_s1 + $0x1590] sm:$0xf0] }
 0x1ed   :  { %9745 = vmatpush.bf16.msrb.mxu1 %v14427_v14  ;;  %v9506_v14 = vadd.f32 %v9505_v6, %v9493_v57  ;;  %v14567_v26 = vor.u32 %v18317_v10, %v14566_v9  ;;  %v18191_v57 = vld [vmem:[%s28127_s1 + $0x11a0] sm:$0xf0]  ;;  %v15378_v6 = vld [vmem:[%s28127_s1 + $0x1bd0] sm:$0xf]  ;;  %v18520_v10 = vld [vmem:[%s28127_s1 + $0x1be8] sm:$0xf0] }
 0x1ee   :  { %9758 = vmatpush.bf16.msrb.mxu2 %v14651_v2  ;;  %v9518_v2 = vpop.f32.mrf.mxu3  ;;  %v9494_v21 = vpop.f32.mrf.mxu1 }
 0x1ef   :  { %9771 = vmatpush.bf16.msrb.mxu3 %v14875_v17  ;;  %v14119_v17 = vor.u32 %v18205_v55, %v14118_v52  ;;  %v22350_v24 = vadd.f32 %v9518_v2, %v9506_v14  ;;  %v18359_v52 = vld [vmem:[%s28127_s1 + $0x16e0] sm:$0xf0]  ;;  %v15602_v14 = vld [vmem:[%s28127_s1 + $0x1d90] sm:$0xf]  ;;  %v18576_v2 = vld [vmem:[%s28127_s1 + $0x1da8] sm:$0xf0] }
 0x1f0   :  { %9733 = vmatpush.bf16.msrb.mxu0 %v14175_v40  ;;  %v14791_v40 = vor.u32 %v18373_v15, %v14790_v0  ;;  %v9507_v55 = vpop.f32.mrf.mxu2  ;;  %v14287_v0 = vor.u32 %v18247_v47, %v14286_v59  ;;  %v15603_v32 = vor.u32 %v18576_v2, %v15602_v14  ;;  %v18450_v59 = vld [vmem:[%s28127_s1 + $0x19b8] sm:$0xf0]  ;;  %v15322_v47 = vld [vmem:[%s28127_s1 + $0x1b60] sm:$0xf]  ;;  %v18499_v2 = vld [vmem:[%s28127_s1 + $0x1b40] sm:$0xf0] }
 0x1f1   :  { %9746 = vmatpush.bf16.msrb.mxu1 %v14399_v27  ;;  %v14538_v27 = vld [vmem:[%s28127_s1 + $0x1540] sm:$0xf]  ;;  %v18618_v55 = vld [vmem:[%s28127_s1 + $0x1ef8] sm:$0xf0] }
 0x1f2   :  { %9759 = vmatpush.bf16.msrb.mxu2 %v14623_v50  ;;  %v18310_v50 = vld [vmem:[%s28127_s1 + $0x1558] sm:$0xf0] }
 0x1f3   :  { %9772 = vmatpush.bf16.msrb.mxu3 %v14847_v36  ;;  %v14062_v36 = vld [vmem:[%s28127_s1 + $0x1188] sm:$0xf]  ;;  %v14539_v58 = vor.u32 %v18310_v50, %v14538_v27  ;;  %v18513_v27 = vld [vmem:[%s28127_s1 + $0x1bb0] sm:$0xf0]  ;;  %v15574_v50 = vld [vmem:[%s28127_s1 + $0x1d58] sm:$0xf] }
 0x1f4   :  { %9734 = vmatpush.bf16.msrb.mxu0 %v14147_v61  ;;  %v14763_v61 = vor.u32 %v18366_v54, %v14762_v51  ;;  %v14063_v9 = vor.u32 %v18191_v57, %v14062_v36  ;;  %v18569_v51 = vld [vmem:[%s28127_s1 + $0x1d70] sm:$0xf0]  ;;  %v15798_v54 = vld [vmem:[%s28127_s1 + $0x1f18] sm:$0xf]  ;;  %v15127_v36 = vor.u32 %v18457_v39, %v15126_v34 }
 0x1f5   :  { %9747 = vmatpush.bf16.msrb.mxu1 %v14371_v62  ;;  %v18303_v62 = vld [vmem:[%s28127_s1 + $0x1520] sm:$0xf0] }
 0x1f6   :  { %9760 = vmatpush.bf16.msrb.mxu2 %v14595_v63  ;;  %v14734_v63 = vld [vmem:[%s28127_s1 + $0x16c8] sm:$0xf]  ;;  %v9520_v8 = vpop.f32.mrf.mxu3  ;;  %v14511_v15 = vor.u32 %v18303_v62, %v14510_v60  ;;  %v15546_v62 = vld [vmem:[%s28127_s1 + $0x1d20] sm:$0xf] }
 0x1f7   :  { %9773 = vmatpush.bf16.msrb.mxu3 %v14819_v5  ;;  %v18464_v5 = vld [vmem:[%s28127_s1 + $0x1a28] sm:$0xf0]  ;;  %v14735_v21 = vor.u32 %v18359_v52, %v14734_v63  ;;  %v18562_v63 = vld [vmem:[%s28127_s1 + $0x1d38] sm:$0xf0]  ;;  %v15770_v52 = vld [vmem:[%s28127_s1 + $0x1ee0] sm:$0xf] }
 0x1f8   :  { %9735 = vmatpush.bf16.msrb.mxu0 %v14119_v17  ;;  %v18632_v17 = vld [vmem:[%s28127_s1 + $0x1f68] sm:$0xf0]  ;;  %v15070_v8 = vld [vmem:[%s28127_s1 + $0x1968] sm:$0xf]  ;;  %v15771_v14 = vor.u32 %v18618_v55, %v15770_v52  ;;  %v18485_v52 = vld [vmem:[%s28127_s1 + $0x1ad0] sm:$0xf0] }
 0x1f9   :  { %9748 = vmatpush.bf16.msrb.mxu1 %v14343_v13  ;;  %v15155_v13 = vor.u32 %v18464_v5, %v15154_v4  ;;  %v15827_v43 = vor.u32 %v18632_v17, %v15826_v53  ;;  %v15742_v17 = vld [vmem:[%s28127_s1 + $0x1ea8] sm:$0xf]  ;;  %v15462_v55 = vld [vmem:[%s28127_s1 + $0x1c78] sm:$0xf] }
 0x1fa   :  { %9761 = vmatpush.bf16.msrb.mxu2 %v14567_v26  ;;  %v15379_v26 = vor.u32 %v18520_v10, %v15378_v6  ;;  %v15547_v6 = vor.u32 %v18562_v63, %v15546_v62  ;;  %v15294_v10 = vld [vmem:[%s28127_s1 + $0x1b28] sm:$0xf] }
 0x1fb   :  { %9774 = vmatpush.bf16.msrb.mxu3 %v14791_v40  ;;  %v15350_v40 = vld [vmem:[%s28127_s1 + $0x1b98] sm:$0xf]  ;;  %v15295_v34 = vor.u32 %v18499_v2, %v15294_v10 }
 0x1fc   :  { %9736 = vmatpush.bf16.msrb.mxu0 %v14091_v56  ;;  %v18625_v56 = vld [vmem:[%s28127_s1 + $0x1f30] sm:$0xf0]  ;;  %v15351_v57 = vor.u32 %v18513_v27, %v15350_v40  ;;  %v15042_v40 = vld [vmem:[%s28127_s1 + $0x1930] sm:$0xf] }
 0x1fd   :  { %9749 = vmatpush.bf16.msrb.mxu1 %v14315_v48  ;;  %v15575_v48 = vor.u32 %v18569_v51, %v15574_v50  ;;  %v15799_v60 = vor.u32 %v18625_v56, %v15798_v54  ;;  %v15266_v27 = vld [vmem:[%s28127_s1 + $0x1af0] sm:$0xf]  ;;  %v18492_v51 = vld [vmem:[%s28127_s1 + $0x1b08] sm:$0xf0] }
 0x1fe   :  { %9762 = vmatpush.bf16.msrb.mxu2 %v14539_v58  ;;  %v15098_v58 = vld [vmem:[%s28127_s1 + $0x19a0] sm:$0xf]  ;;  %v15490_v54 = vld [vmem:[%s28127_s1 + $0x1cb0] sm:$0xf]  ;;  %v18548_v56 = vld [vmem:[%s28127_s1 + $0x1cc8] sm:$0xf0] }
 0x1ff   :  { %9775 = vmatpush.bf16.msrb.mxu3 %v14763_v61  ;;  %v18506_v61 = vld [vmem:[%s28127_s1 + $0x1b78] sm:$0xf0]  ;;  %v15099_v4 = vor.u32 %v18450_v59, %v15098_v58  ;;  %v15267_v58 = vor.u32 %v18492_v51, %v15266_v27  ;;  %v15491_v59 = vor.u32 %v18548_v56, %v15490_v54  ;;  %v15182_v56 = vld [vmem:[%s28127_s1 + $0x1a48] sm:$0xf] }
 0x200   :  { %9737 = vmatpush.bf16.msrb.mxu0 %v14063_v9  ;;  %v15323_v5 = vor.u32 %v18506_v61, %v15322_v47  ;;  %v18443_v9 = vld [vmem:[%s28127_s1 + $0x1980] sm:$0xf0]  ;;  %v9531_v53 = vpop.f32.mrf.mxu0  ;;  %v15014_v47 = vld [vmem:[%s28127_s1 + $0x18f8] sm:$0xf] }
 0x201   :  { %9750 = vmatpush.bf16.msrb.mxu1 %v14287_v0  ;;  %v15518_v0 = vld [vmem:[%s28127_s1 + $0x1ce8] sm:$0xf]  ;;  %v15238_v61 = vld [vmem:[%s28127_s1 + $0x1ab8] sm:$0xf] }
 0x202   :  { %9763 = vmatpush.bf16.msrb.mxu2 %v14511_v15  ;;  %v18555_v15 = vld [vmem:[%s28127_s1 + $0x1d00] sm:$0xf0] }
 0x203   :  { %9776 = vmatpush.bf16.msrb.mxu3 %v14735_v21  ;;  %9738 = vmatmul.bf16.vlgmr.msrb.gmra.mxu0 %v19801_v29  ;;  %v18611_v21 = vld [vmem:[%s28127_s1 + $0x1ec0] sm:$0xf0]  ;;  %v15519_v39 = vor.u32 %v18555_v15, %v15518_v0  ;;  %v15239_v15 = vor.u32 %v18485_v52, %v15238_v61  ;;  %v16050_v61 = vld [vmem:[%s28127_s1 + $0x2110] sm:$0xf] }
 0x204   :  { %9782 = vmatpush.bf16.msra.mxu0 %v15155_v13  ;;  %9751 = vmatmul.bf16.vlgmr.msrb.gmra.mxu1 %v19811_v33  ;;  %v9532_v13 = vadd.f32 %v9531_v53, %v22350_v24  ;;  %v15743_v24 = vor.u32 %v18611_v21, %v15742_v17  ;;  %v14986_v17 = vld [vmem:[%s28127_s1 + $0x18c0] sm:$0xf]  ;;  %v18422_v21 = vld [vmem:[%s28127_s1 + $0x18d8] sm:$0xf0] }
 0x205   :  { %9795 = vmatpush.bf16.msra.mxu1 %v15379_v26  ;;  %9764 = vmatmul.bf16.vlgmr.msrb.gmra.mxu2 %v20000_v23  ;;  %v15071_v26 = vor.u32 %v18443_v9, %v15070_v8  ;;  %v15686_v8 = vld [vmem:[%s28127_s1 + $0x1e38] sm:$0xf]  ;;  %v18597_v9 = vld [vmem:[%s28127_s1 + $0x1e50] sm:$0xf0]  ;;  %v14987_v27 = vor.u32 %v18422_v21, %v14986_v17 }
 0x206   :  { %9808 = vmatpush.bf16.msra.mxu2 %v15603_v32  ;;  %9777 = vmatmul.bf16.vlgmr.msrb.gmra.mxu3 %v20013_v31  ;;  %v9544_v32 = vpop.f32.mrf.mxu1  ;;  %v16022_v21 = vld [vmem:[%s28127_s1 + $0x20d8] sm:$0xf] }
 0x207   :  { %9821 = vmatpush.bf16.msra.mxu3 %v15827_v43  ;;  %v18436_v43 = vld [vmem:[%s28127_s1 + $0x1948] sm:$0xf0]  ;;  %v9545_v50 = vadd.f32 %v9544_v32, %v9532_v13  ;;  %v15210_v13 = vld [vmem:[%s28127_s1 + $0x1a80] sm:$0xf]  ;;  %v18478_v32 = vld [vmem:[%s28127_s1 + $0x1a98] sm:$0xf0] }
 0x208   :  { %9783 = vmatpush.bf16.msra.mxu0 %v15127_v36  ;;  %v15714_v36 = vld [vmem:[%s28127_s1 + $0x1e70] sm:$0xf]  ;;  %v9557_v63 = vpop.f32.mrf.mxu2  ;;  %v9533_v10 = vpop.f32.mrf.mxu0  ;;  %v15211_v51 = vor.u32 %v18478_v32, %v15210_v13  ;;  %v18681_v13 = vld [vmem:[%s28127_s1 + $0x20f0] sm:$0xf0] }
 0x209   :  { %9796 = vmatpush.bf16.msra.mxu1 %v15351_v57  ;;  %v18604_v57 = vld [vmem:[%s28127_s1 + $0x1e88] sm:$0xf0]  ;;  %v16722_v10 = vld [vmem:[%s28127_s1 + $0x2650] sm:$0xf] }
 0x20a   :  { %9809 = vmatpush.bf16.msra.mxu2 %v15575_v48  ;;  %v15043_v48 = vor.u32 %v18436_v43, %v15042_v40  ;;  %v15715_v62 = vor.u32 %v18604_v57, %v15714_v36  ;;  %v15658_v40 = vld [vmem:[%s28127_s1 + $0x1e00] sm:$0xf]  ;;  %v18590_v43 = vld [vmem:[%s28127_s1 + $0x1e18] sm:$0xf0]  ;;  %v18471_v36 = vld [vmem:[%s28127_s1 + $0x1a60] sm:$0xf0] }
 0x20b   :  { %9822 = vmatpush.bf16.msra.mxu3 %v15799_v60  ;;  %v18429_v60 = vld [vmem:[%s28127_s1 + $0x1910] sm:$0xf0]  ;;  %v15406_v57 = vld [vmem:[%s28127_s1 + $0x1c08] sm:$0xf] }
 0x20c   :  { %9784 = vmatpush.bf16.msra.mxu0 %v15099_v4  ;;  %v18541_v4 = vld [vmem:[%s28127_s1 + $0x1c90] sm:$0xf0] }
 0x20d   :  { %9797 = vmatpush.bf16.msra.mxu1 %v15323_v5  ;;  %v9558_v5 = vadd.f32 %v9557_v63, %v9545_v50  ;;  %v15463_v53 = vor.u32 %v18541_v4, %v15462_v55  ;;  %v18415_v50 = vld [vmem:[%s28127_s1 + $0x18a0] sm:$0xf0]  ;;  %v16274_v63 = vld [vmem:[%s28127_s1 + $0x22d0] sm:$0xf]  ;;  %v18744_v4 = vld [vmem:[%s28127_s1 + $0x22e8] sm:$0xf0] }
 0x20e   :  { %9810 = vmatpush.bf16.msra.mxu2 %v15547_v6  ;;  %v9570_v6 = vpop.f32.mrf.mxu3  ;;  %v9546_v2 = vpop.f32.mrf.mxu1 }
 0x20f   :  { %9823 = vmatpush.bf16.msra.mxu3 %v15771_v14  ;;  %v15015_v14 = vor.u32 %v18429_v60, %v15014_v47  ;;  %v22549_v0 = vadd.f32 %v9570_v6, %v9558_v5  ;;  %v18583_v47 = vld [vmem:[%s28127_s1 + $0x1de0] sm:$0xf0]  ;;  %v16498_v5 = vld [vmem:[%s28127_s1 + $0x2490] sm:$0xf]  ;;  %v18800_v6 = vld [vmem:[%s28127_s1 + $0x24a8] sm:$0xf0] }
 0x210   :  { %9785 = vmatpush.bf16.msra.mxu0 %v15071_v26  ;;  %v15687_v26 = vor.u32 %v18597_v9, %v15686_v8  ;;  %v9559_v60 = vpop.f32.mrf.mxu2  ;;  %v15183_v8 = vor.u32 %v18471_v36, %v15182_v56  ;;  %v16499_v17 = vor.u32 %v18800_v6, %v16498_v5  ;;  %v18674_v56 = vld [vmem:[%s28127_s1 + $0x20b8] sm:$0xf0]  ;;  %v16218_v36 = vld [vmem:[%s28127_s1 + $0x2260] sm:$0xf]  ;;  %v18723_v6 = vld [vmem:[%s28127_s1 + $0x2240] sm:$0xf0] }
 0x211   :  { %9798 = vmatpush.bf16.msra.mxu1 %v15295_v34  ;;  %v15434_v34 = vld [vmem:[%s28127_s1 + $0x1c40] sm:$0xf]  ;;  %v18842_v60 = vld [vmem:[%s28127_s1 + $0x25f8] sm:$0xf0] }
 0x212   :  { %9811 = vmatpush.bf16.msra.mxu2 %v15519_v39  ;;  %v18534_v39 = vld [vmem:[%s28127_s1 + $0x1c58] sm:$0xf0] }
 0x213   :  { %9824 = vmatpush.bf16.msra.mxu3 %v15743_v24  ;;  %v14958_v24 = vld [vmem:[%s28127_s1 + $0x1888] sm:$0xf]  ;;  %v15435_v54 = vor.u32 %v18534_v39, %v15434_v34  ;;  %v18737_v34 = vld [vmem:[%s28127_s1 + $0x22b0] sm:$0xf0]  ;;  %v16470_v39 = vld [vmem:[%s28127_s1 + $0x2458] sm:$0xf] }
 0x214   :  { %9786 = vmatpush.bf16.msra.mxu0 %v15043_v48  ;;  %v15659_v48 = vor.u32 %v18590_v43, %v15658_v40  ;;  %v14959_v55 = vor.u32 %v18415_v50, %v14958_v24  ;;  %v18793_v40 = vld [vmem:[%s28127_s1 + $0x2470] sm:$0xf0]  ;;  %v16694_v43 = vld [vmem:[%s28127_s1 + $0x2618] sm:$0xf]  ;;  %v16023_v24 = vor.u32 %v18681_v13, %v16022_v21 }
 0x215   :  { %9799 = vmatpush.bf16.msra.mxu1 %v15267_v58  ;;  %v18527_v58 = vld [vmem:[%s28127_s1 + $0x1c20] sm:$0xf0] }
 0x216   :  { %9812 = vmatpush.bf16.msra.mxu2 %v15491_v59  ;;  %v15630_v59 = vld [vmem:[%s28127_s1 + $0x1dc8] sm:$0xf]  ;;  %v9572_v52 = vpop.f32.mrf.mxu3  ;;  %v15407_v9 = vor.u32 %v18527_v58, %v15406_v57  ;;  %v16442_v58 = vld [vmem:[%s28127_s1 + $0x2420] sm:$0xf] }
 0x217   :  { %9825 = vmatpush.bf16.msra.mxu3 %v15715_v62  ;;  %v18688_v62 = vld [vmem:[%s28127_s1 + $0x2128] sm:$0xf0]  ;;  %v15631_v2 = vor.u32 %v18583_v47, %v15630_v59  ;;  %v18786_v59 = vld [vmem:[%s28127_s1 + $0x2438] sm:$0xf0]  ;;  %v16666_v47 = vld [vmem:[%s28127_s1 + $0x25e0] sm:$0xf] }
 0x218   :  { %9787 = vmatpush.bf16.msra.mxu0 %v15015_v14  ;;  %v18856_v14 = vld [vmem:[%s28127_s1 + $0x2668] sm:$0xf0]  ;;  %v15966_v52 = vld [vmem:[%s28127_s1 + $0x2068] sm:$0xf]  ;;  %v16667_v5 = vor.u32 %v18842_v60, %v16666_v47  ;;  %v18709_v60 = vld [vmem:[%s28127_s1 + $0x21d0] sm:$0xf0] }
 0x219   :  { %9800 = vmatpush.bf16.msra.mxu1 %v15239_v15  ;;  %v16051_v15 = vor.u32 %v18688_v62, %v16050_v61  ;;  %v16723_v32 = vor.u32 %v18856_v14, %v16722_v10  ;;  %v16638_v14 = vld [vmem:[%s28127_s1 + $0x25a8] sm:$0xf] }
 0x21a   :  { %9813 = vmatpush.bf16.msra.mxu2 %v15463_v53  ;;  %v16275_v53 = vor.u32 %v18744_v4, %v16274_v63  ;;  %v16443_v63 = vor.u32 %v18786_v59, %v16442_v58  ;;  %v16190_v4 = vld [vmem:[%s28127_s1 + $0x2228] sm:$0xf]  ;;  %v18653_v58 = vld [vmem:[%s28127_s1 + $0x2010] sm:$0xf0]  ;;  %v16134_v59 = vld [vmem:[%s28127_s1 + $0x21b8] sm:$0xf] }
 0x21b   :  { %9826 = vmatpush.bf16.msra.mxu3 %v15687_v26  ;;  %v16246_v26 = vld [vmem:[%s28127_s1 + $0x2298] sm:$0xf]  ;;  %v16191_v21 = vor.u32 %v18723_v6, %v16190_v4 }
 0x21c   :  { %9788 = vmatpush.bf16.msra.mxu0 %v14987_v27  ;;  %v18849_v27 = vld [vmem:[%s28127_s1 + $0x2630] sm:$0xf0]  ;;  %v16247_v50 = vor.u32 %v18737_v34, %v16246_v26  ;;  %v15938_v26 = vld [vmem:[%s28127_s1 + $0x2030] sm:$0xf] }
 0x21d   :  { %9801 = vmatpush.bf16.msra.mxu1 %v15211_v51  ;;  %v16471_v51 = vor.u32 %v18793_v40, %v16470_v39  ;;  %v16695_v57 = vor.u32 %v18849_v27, %v16694_v43  ;;  %v16162_v34 = vld [vmem:[%s28127_s1 + $0x21f0] sm:$0xf]  ;;  %v18716_v40 = vld [vmem:[%s28127_s1 + $0x2208] sm:$0xf0] }
 0x21e   :  { %9814 = vmatpush.bf16.msra.mxu2 %v15435_v54  ;;  %v15994_v54 = vld [vmem:[%s28127_s1 + $0x20a0] sm:$0xf]  ;;  %v16386_v43 = vld [vmem:[%s28127_s1 + $0x23b0] sm:$0xf]  ;;  %v18772_v27 = vld [vmem:[%s28127_s1 + $0x23c8] sm:$0xf0] }
 0x21f   :  { %9827 = vmatpush.bf16.msra.mxu3 %v15659_v48  ;;  %v18730_v48 = vld [vmem:[%s28127_s1 + $0x2278] sm:$0xf0]  ;;  %v15995_v61 = vor.u32 %v18674_v56, %v15994_v54 }
 0x220   :  { %9789 = vmatpush.bf16.msra.mxu0 %v14959_v55  ;;  %v16219_v62 = vor.u32 %v18730_v48, %v16218_v36  ;;  %v18667_v55 = vld [vmem:[%s28127_s1 + $0x2080] sm:$0xf0]  ;;  %v9583_v10 = vpop.f32.mrf.mxu0  ;;  %v16163_v36 = vor.u32 %v18716_v40, %v16162_v34  ;;  %v15910_v48 = vld [vmem:[%s28127_s1 + $0x1ff8] sm:$0xf]  ;;  %v16554_v34 = vld [vmem:[%s28127_s1 + $0x2500] sm:$0xf] }
 0x221   :  { %9802 = vmatpush.bf16.msra.mxu1 %v15183_v8  ;;  %v16414_v8 = vld [vmem:[%s28127_s1 + $0x23e8] sm:$0xf] }
 0x222   :  { %9815 = vmatpush.bf16.msra.mxu2 %v15407_v9  ;;  %v18779_v9 = vld [vmem:[%s28127_s1 + $0x2400] sm:$0xf0] }
 0x223   :  { %9828 = vmatpush.bf16.msra.mxu3 %v15631_v2  ;;  %9790 = vmatmul.bf16.vlgmr.msra.gmra.mxu0 %v20011_v28  ;;  %v18835_v2 = vld [vmem:[%s28127_s1 + $0x25c0] sm:$0xf0]  ;;  %v16415_v13 = vor.u32 %v18779_v9, %v16414_v8  ;;  %v15911_v8 = vor.u32 %v18653_v58, %v15910_v48  ;;  %v16526_v48 = vld [vmem:[%s28127_s1 + $0x24c8] sm:$0xf] }
 0x224   :  { %9834 = vmatpush.bf16.msrb.mxu0 %v16051_v15  ;;  %9803 = vmatmul.bf16.vlgmr.msra.gmra.mxu1 %v20021_v35  ;;  %v9584_v15 = vadd.f32 %v9583_v10, %v22549_v0  ;;  %v16639_v0 = vor.u32 %v18835_v2, %v16638_v14  ;;  %v16135_v10 = vor.u32 %v18709_v60, %v16134_v59  ;;  %v15882_v2 = vld [vmem:[%s28127_s1 + $0x1fc0] sm:$0xf]  ;;  %v18807_v58 = vld [vmem:[%s28127_s1 + $0x24e0] sm:$0xf0]  ;;  %v18912_v60 = vld [vmem:[%s28127_s1 + $0x2828] sm:$0xf0] }
 0x225   :  { %9847 = vmatpush.bf16.msrb.mxu1 %v16275_v53  ;;  %9816 = vmatmul.bf16.vlgmr.msra.gmra.mxu2 %v20210_v37  ;;  %v15967_v53 = vor.u32 %v18667_v55, %v15966_v52  ;;  %v16582_v52 = vld [vmem:[%s28127_s1 + $0x2538] sm:$0xf]  ;;  %v18821_v55 = vld [vmem:[%s28127_s1 + $0x2550] sm:$0xf0] }
 0x226   :  { %9860 = vmatpush.bf16.msrb.mxu2 %v16499_v17  ;;  %9829 = vmatmul.bf16.vlgmr.msra.gmra.mxu3 %v20223_v46  ;;  %v9596_v17 = vpop.f32.mrf.mxu1 }
 0x227   :  { %9873 = vmatpush.bf16.msrb.mxu3 %v16723_v32  ;;  %v18660_v32 = vld [vmem:[%s28127_s1 + $0x2048] sm:$0xf0]  ;;  %v22709_v39 = vadd.f32 %v9596_v17, %v9584_v15  ;;  %v18646_v15 = vld [vmem:[%s28127_s1 + $0x1fd8] sm:$0xf0] }
 0x228   :  { %9835 = vmatpush.bf16.msrb.mxu0 %v16023_v24  ;;  %v16610_v24 = vld [vmem:[%s28127_s1 + $0x2570] sm:$0xf]  ;;  %v15939_v56 = vor.u32 %v18660_v32, %v15938_v26  ;;  %v9585_v6 = vpop.f32.mrf.mxu0  ;;  %v16330_v26 = vld [vmem:[%s28127_s1 + $0x2340] sm:$0xf]  ;;  %v18758_v32 = vld [vmem:[%s28127_s1 + $0x2358] sm:$0xf0]  ;;  %v15883_v40 = vor.u32 %v18646_v15, %v15882_v2 }
 0x229   :  { %9848 = vmatpush.bf16.msrb.mxu1 %v16247_v50  ;;  %v18828_v50 = vld [vmem:[%s28127_s1 + $0x2588] sm:$0xf0] }
 0x22a   :  { %9861 = vmatpush.bf16.msrb.mxu2 %v16471_v51  ;;  %v19084_v51 = vld [vmem:[%s28129_s2] sm:$0x7f]  ;;  %v16611_v47 = vor.u32 %v18828_v50, %v16610_v24  ;;  %v16331_v50 = vor.u32 %v18758_v32, %v16330_v26  ;;  %v18961_v32 = vld [vmem:[%s28127_s1 + $0x29b0] sm:$0xf0] }
 0x22b   :  { %9874 = vmatpush.bf16.msrb.mxu3 %v16695_v57  ;;  %v1650_v54 = vperm.slane %v19084_v51, 2  ;;  %v16387_v57 = vor.u32 %v18772_v27, %v16386_v43  ;;  %v15854_v43 = vld [vmem:[%s28127_s1 + $0x1f88] sm:$0xf]  ;;  %v18639_v27 = vld [vmem:[%s28127_s1 + $0x1fa0] sm:$0xf0] }
 0x22c   :  { %9836 = vmatpush.bf16.msrb.mxu0 %v15995_v61  ;;  %v16358_v61 = vld [vmem:[%s28127_s1 + $0x2378] sm:$0xf]  ;;  %v16078_v51 = vld [vmem:[%s28127_s1 + $0x2148] sm:$0xf] }
 0x22d   :  { %9849 = vmatpush.bf16.msrb.mxu1 %v16219_v62  ;;  %v18765_v62 = vld [vmem:[%s28127_s1 + $0x2390] sm:$0xf0] }
 0x22e   :  { %9862 = vmatpush.bf16.msrb.mxu2 %v16443_v63  ;;  %v9609_v63 = vpop.f32.mrf.mxu2  ;;  %v9598_v9 = vpop.f32.mrf.mxu1  ;;  %v16359_v14 = vor.u32 %v18765_v62, %v16358_v61  ;;  %v17170_v61 = vld [vmem:[%s28127_s1 + $0x29d0] sm:$0xf] }
 0x22f   :  { %9875 = vmatpush.bf16.msrb.mxu3 %v16667_v5  ;;  %v9610_v4 = vadd.f32 %v9609_v63, %v1650_v54  ;;  %v9622_v5 = vpop.f32.mrf.mxu3  ;;  %v18695_v54 = vld [vmem:[%s28127_s1 + $0x2160] sm:$0xf0]  ;;  %v15855_v63 = vor.u32 %v18639_v27, %v15854_v43  ;;  %v12020_v9 = vld [vmem:[%s28127_s1 + $0x1ac] sm:$0xf0]  ;;  %v11992_v43 = vld [vmem:[%s28127_s1 + $0x174] sm:$0xf0] }
 0x230   :  { %9837 = vmatpush.bf16.msrb.mxu0 %v15967_v53  ;;  %v16106_v53 = vld [vmem:[%s28127_s1 + $0x2180] sm:$0xf] }
 0x231   :  { %9850 = vmatpush.bf16.msrb.mxu1 %v16191_v21  ;;  %v22762_v17 = vadd.f32 %v9622_v5, %v9610_v4  ;;  %v16583_v21 = vor.u32 %v18821_v55, %v16582_v52  ;;  %v18968_v52 = vld [vmem:[%s28127_s1 + $0x29e8] sm:$0xf0]  ;;  %v17394_v55 = vld [vmem:[%s28127_s1 + $0x2b90] sm:$0xf]  ;;  %v16079_v5 = vor.u32 %v18695_v54, %v16078_v51  ;;  %v16890_v51 = vld [vmem:[%s28127_s1 + $0x27a0] sm:$0xf] }
 0x232   :  { %9863 = vmatpush.bf16.msrb.mxu2 %v16415_v13  ;;  %v18702_v13 = vld [vmem:[%s28127_s1 + $0x2198] sm:$0xf0]  ;;  %v19024_v4 = vld [vmem:[%s28127_s1 + $0x2ba8] sm:$0xf0]  ;;  %v17171_v2 = vor.u32 %v18968_v52, %v17170_v61  ;;  %v18891_v52 = vld [vmem:[%s28127_s1 + $0x2780] sm:$0xf0] }
 0x233   :  { %9876 = vmatpush.bf16.msrb.mxu3 %v16639_v0  ;;  %v18814_v0 = vld [vmem:[%s28127_s1 + $0x2518] sm:$0xf0]  ;;  %v16107_v24 = vor.u32 %v18702_v13, %v16106_v53  ;;  %v17395_v15 = vor.u32 %v19024_v4, %v17394_v55  ;;  %v16918_v53 = vld [vmem:[%s28127_s1 + $0x27d8] sm:$0xf]  ;;  %v17086_v55 = vld [vmem:[%s28127_s1 + $0x2928] sm:$0xf] }
 0x234   :  { %9838 = vmatpush.bf16.msrb.mxu0 %v15939_v56  ;;  %v16302_v56 = vld [vmem:[%s28127_s1 + $0x2308] sm:$0xf]  ;;  %v17142_v13 = vld [vmem:[%s28127_s1 + $0x2998] sm:$0xf]  ;;  %v18898_v54 = vld [vmem:[%s28127_s1 + $0x27b8] sm:$0xf0] }
 0x235   :  { %9851 = vmatpush.bf16.msrb.mxu1 %v16163_v36  ;;  %v16555_v36 = vor.u32 %v18814_v0, %v16554_v34  ;;  %v17366_v34 = vld [vmem:[%s28127_s1 + $0x2b58] sm:$0xf]  ;;  %v19017_v0 = vld [vmem:[%s28127_s1 + $0x2b70] sm:$0xf0] }
 0x236   :  { %9864 = vmatpush.bf16.msrb.mxu2 %v16387_v57  ;;  %v18751_v57 = vld [vmem:[%s28127_s1 + $0x2320] sm:$0xf0]  ;;  %v9611_v59 = vpop.f32.mrf.mxu2 }
 0x237   :  { %9877 = vmatpush.bf16.msrb.mxu3 %v16611_v47  ;;  %v16946_v47 = vld [vmem:[%s28127_s1 + $0x2810] sm:$0xf]  ;;  %v9624_v62 = vpop.f32.mrf.mxu3  ;;  %v16303_v6 = vor.u32 %v18751_v57, %v16302_v56  ;;  %v17114_v56 = vld [vmem:[%s28127_s1 + $0x2960] sm:$0xf]  ;;  %v18954_v57 = vld [vmem:[%s28127_s1 + $0x2978] sm:$0xf0] }
 0x238   :  { %9839 = vmatpush.bf16.msrb.mxu0 %v15911_v8  ;;  %v17677_v8 = vld [vmem:[%s28127_s1 + $0x194] sm:$0xf]  ;;  %v17663_v59 = vld [vmem:[%s28127_s1 + $0x124] sm:$0xf]  ;;  %v17115_v61 = vor.u32 %v18954_v57, %v17114_v56 }
 0x239   :  { %9852 = vmatpush.bf16.msrb.mxu1 %v16135_v10  ;;  %v16527_v10 = vor.u32 %v18807_v58, %v16526_v48  ;;  %v12023_v26 = vor.u32 %v17677_v8, %v12020_v9  ;;  %v17338_v48 = vld [vmem:[%s28127_s1 + $0x2b20] sm:$0xf]  ;;  %v19010_v58 = vld [vmem:[%s28127_s1 + $0x2b38] sm:$0xf0]  ;;  %v19003_v8 = vld [vmem:[%s28127_s1 + $0x2b00] sm:$0xf0] }
 0x23a   :  { %9865 = vmatpush.bf16.msrb.mxu2 %v16359_v14  ;;  %v16947_v14 = vor.u32 %v18912_v60, %v16946_v47  ;;  %v11964_v47 = vld [vmem:[%s28127_s1 + $0x13c] sm:$0xf0]  ;;  %v16891_v60 = vor.u32 %v18898_v54, %v16890_v51  ;;  %v17339_v62 = vor.u32 %v19010_v58, %v17338_v48  ;;  %v17656_v9 = vld [vmem:[%s28127_s1 + $0xec] sm:$0xf]  ;;  %v18877_v57 = vld [vmem:[%s28127_s1 + $0x2710] sm:$0xf0] }
 0x23b   :  { %9878 = vmatpush.bf16.msrb.mxu3 %v16583_v21  ;;  %v18905_v21 = vld [vmem:[%s28127_s1 + $0x27f0] sm:$0xf0]  ;;  %v11967_v4 = vor.u32 %v17663_v59, %v11964_v47  ;;  %v17030_v48 = vld [vmem:[%s28127_s1 + $0x28b8] sm:$0xf] }
 0x23c   :  { %9840 = vmatpush.bf16.msrb.mxu0 %v15883_v40  ;;  %v17670_v40 = vld [vmem:[%s28127_s1 + $0x15c] sm:$0xf]  ;;  %v16919_v27 = vor.u32 %v18905_v21, %v16918_v53  ;;  %v16834_v21 = vld [vmem:[%s28127_s1 + $0x2730] sm:$0xf]  ;;  %v18933_v47 = vld [vmem:[%s28127_s1 + $0x28d0] sm:$0xf0] }
 0x23d   :  { %9853 = vmatpush.bf16.msrb.mxu1 %v16107_v24  ;;  %v17143_v24 = vor.u32 %v18961_v32, %v17142_v13  ;;  %v18884_v13 = vld [vmem:[%s28127_s1 + $0x2748] sm:$0xf0] }
 0x23e   :  { %9866 = vmatpush.bf16.msrb.mxu2 %v16331_v50  ;;  %v17367_v50 = vor.u32 %v19017_v0, %v17366_v34  ;;  %v16835_v51 = vor.u32 %v18884_v13, %v16834_v21  ;;  %v18926_v21 = vld [vmem:[%s28127_s1 + $0x2898] sm:$0xf0]  ;;  %v17226_v13 = vld [vmem:[%s28127_s1 + $0x2a40] sm:$0xf] }
 0x23f   :  { %9879 = vmatpush.bf16.msrb.mxu3 %v16555_v36  ;;  %v11995_v36 = vor.u32 %v17670_v40, %v11992_v43  ;;  %v18940_v40 = vld [vmem:[%s28127_s1 + $0x2908] sm:$0xf0]  ;;  %v17282_v43 = vld [vmem:[%s28127_s1 + $0x2ab0] sm:$0xf] }
 0x240   :  { %9841 = vmatpush.bf16.msrb.mxu0 %v15855_v63  ;;  %v16862_v63 = vld [vmem:[%s28127_s1 + $0x2768] sm:$0xf] }
 0x241   :  { %9854 = vmatpush.bf16.msrb.mxu1 %v16079_v5  ;;  %v18947_v5 = vld [vmem:[%s28127_s1 + $0x2940] sm:$0xf0]  ;;  %v9648_v34 = vpop.f32.mrf.mxu1 }
 0x242   :  { %9867 = vmatpush.bf16.msrb.mxu2 %v16303_v6  ;;  %v17310_v6 = vld [vmem:[%s28127_s1 + $0x2ae8] sm:$0xf] }
 0x243   :  { %9880 = vmatpush.bf16.msrb.mxu3 %v16527_v10  ;;  %9842 = vmatmul.bf16.vlgmr.msrb.gmra.mxu0 %v20221_v45  ;;  %v11936_v10 = vld [vmem:[%s28127_s1 + $0x104] sm:$0xf0]  ;;  %v17311_v53 = vor.u32 %v19003_v8, %v17310_v6  ;;  %v17031_v8 = vor.u32 %v18933_v47, %v17030_v48  ;;  %v12244_v47 = vld [vmem:[%s28127_s1 + $0x36c] sm:$0xf0] }
 0x244   :  { %9886 = vmatpush.bf16.msra.mxu0 %v16947_v14  ;;  %9855 = vmatmul.bf16.vlgmr.msrb.gmra.mxu1 %v20231_v49  ;;  %v16863_v14 = vor.u32 %v18891_v52, %v16862_v63  ;;  %v11939_v0 = vor.u32 %v17656_v9, %v11936_v10  ;;  %v17642_v52 = vld [vmem:[%s28127_s1 + $0x7c] sm:$0xf]  ;;  %v16778_v10 = vld [vmem:[%s28127_s1 + $0x26c0] sm:$0xf]  ;;  %v11824_v48 = vld [vmem:[%s28127_s1 + $0x24] sm:$0xf0] }
 0x245   :  { %9899 = vmatpush.bf16.msra.mxu1 %v17171_v2  ;;  %9868 = vmatmul.bf16.vlgmr.msrb.gmra.mxu2 %v20425_v7  ;;  %v9635_v2 = vpop.f32.mrf.mxu0 }
 0x246   :  { %9912 = vmatpush.bf16.msra.mxu2 %v17395_v15  ;;  %9881 = vmatmul.bf16.vlgmr.msrb.gmra.mxu3 %v20438_v12  ;;  %v17087_v15 = vor.u32 %v18947_v5, %v17086_v55  ;;  %v9636_v32 = vadd.f32 %v9635_v2, %v22762_v17  ;;  %v11908_v17 = vld [vmem:[%s28127_s1 + $0xcc] sm:$0xf0]  ;;  %v11880_v55 = vld [vmem:[%s28127_s1 + $0x94] sm:$0xf0]  ;;  %v17002_v2 = vld [vmem:[%s28127_s1 + $0x2880] sm:$0xf] }
 0x247   :  { %9925 = vmatpush.bf16.msra.mxu3 %v12023_v26  ;;  %v17058_v26 = vld [vmem:[%s28127_s1 + $0x28f0] sm:$0xf] }
 0x248   :  { %9887 = vmatpush.bf16.msra.mxu0 %v16919_v27  ;;  %v18996_v27 = vld [vmem:[%s28127_s1 + $0x2ac8] sm:$0xf0]  ;;  %v17059_v54 = vor.u32 %v18940_v40, %v17058_v26  ;;  %v9661_v58 = vpop.f32.mrf.mxu2  ;;  %v18982_v26 = vld [vmem:[%s28127_s1 + $0x2a58] sm:$0xf0]  ;;  %v16750_v40 = vld [vmem:[%s28127_s1 + $0x2688] sm:$0xf] }
 0x249   :  { %9900 = vmatpush.bf16.msra.mxu1 %v17143_v24  ;;  %v17649_v24 = vld [vmem:[%s28127_s1 + $0xb4] sm:$0xf]  ;;  %v17283_v56 = vor.u32 %v18996_v27, %v17282_v43  ;;  %v9674_v63 = vpop.f32.mrf.mxu3  ;;  %v18863_v43 = vld [vmem:[%s28127_s1 + $0x26a0] sm:$0xf0]  ;;  %v17003_v27 = vor.u32 %v18926_v21, %v17002_v2  ;;  %v17782_v21 = vld [vmem:[%s28127_s1 + $0x4dc] sm:$0xf] }
 0x24a   :  { %9913 = vmatpush.bf16.msra.mxu2 %v17367_v50  ;;  %v9649_v50 = vadd.f32 %v9648_v34, %v9636_v32  ;;  %v11911_v59 = vor.u32 %v17649_v24, %v11908_v17  ;;  %v17635_v32 = vld [vmem:[%s28127_s1 + $0x44] sm:$0xf]  ;;  %v11852_v34 = vld [vmem:[%s28127_s1 + $0x5c] sm:$0xf0]  ;;  %v17227_v24 = vor.u32 %v18982_v26, %v17226_v13  ;;  %v16974_v17 = vld [vmem:[%s28127_s1 + $0x2848] sm:$0xf] }
 0x24b   :  { %9926 = vmatpush.bf16.msra.mxu3 %v11995_v36  ;;  %v16806_v36 = vld [vmem:[%s28127_s1 + $0x26f8] sm:$0xf] }
 0x24c   :  { %9888 = vmatpush.bf16.msra.mxu0 %v16891_v60  ;;  %v17254_v60 = vld [vmem:[%s28127_s1 + $0x2a78] sm:$0xf] }
 0x24d   :  { %9901 = vmatpush.bf16.msra.mxu1 %v17115_v61  ;;  %v18989_v61 = vld [vmem:[%s28127_s1 + $0x2a90] sm:$0xf0]  ;;  %v9637_v6 = vpop.f32.mrf.mxu0  ;;  %v12440_v26 = vld [vmem:[%s28127_s1 + $0x4f4] sm:$0xf0] }
 0x24e   :  { %9914 = vmatpush.bf16.msra.mxu2 %v17339_v62  ;;  %v9662_v62 = vadd.f32 %v9661_v58, %v9649_v50  ;;  %v17255_v9 = vor.u32 %v18989_v61, %v17254_v60  ;;  %v18919_v50 = vld [vmem:[%s28127_s1 + $0x2860] sm:$0xf0]  ;;  %v17789_v60 = vld [vmem:[%s28127_s1 + $0x514] sm:$0xf]  ;;  %v16751_v61 = vor.u32 %v18863_v43, %v16750_v40  ;;  %v12888_v40 = vld [vmem:[%s28127_s1 + $0x874] sm:$0xf0] }
 0x24f   :  { %9927 = vmatpush.bf16.msra.mxu3 %v11967_v4  ;;  %v16807_v4 = vor.u32 %v18877_v57, %v16806_v36  ;;  %v18975_v36 = vld [vmem:[%s28127_s1 + $0x2a20] sm:$0xf0]  ;;  %v17628_v57 = vld [vmem:[%s28127_s1 + $0xc] sm:$0xf]  ;;  %v17901_v6 = vld [vmem:[%s28127_s1 + $0x894] sm:$0xf] }
 0x250   :  { %9889 = vmatpush.bf16.msra.mxu0 %v16863_v14  ;;  %v22952_v5 = vadd.f32 %v9674_v63, %v9662_v62  ;;  %v18870_v14 = vld [vmem:[%s28127_s1 + $0x26d8] sm:$0xf0]  ;;  %v12468_v62 = vld [vmem:[%s28127_s1 + $0x52c] sm:$0xf0]  ;;  %v17845_v63 = vld [vmem:[%s28127_s1 + $0x6d4] sm:$0xf] }
 0x251   :  { %9902 = vmatpush.bf16.msra.mxu1 %v17087_v15  ;;  %v9650_v15 = vpop.f32.mrf.mxu1  ;;  %v9676_v58 = vpop.f32.mrf.mxu3 }
 0x252   :  { %9915 = vmatpush.bf16.msra.mxu2 %v17311_v53  ;;  %v11883_v53 = vor.u32 %v17642_v52, %v11880_v55  ;;  %v12692_v52 = vld [vmem:[%s28127_s1 + $0x6ec] sm:$0xf0]  ;;  %v16975_v55 = vor.u32 %v18919_v50, %v16974_v17  ;;  %v17726_v15 = vld [vmem:[%s28127_s1 + $0x31c] sm:$0xf]  ;;  %v17719_v17 = vld [vmem:[%s28127_s1 + $0x2e4] sm:$0xf] }
 0x253   :  { %9928 = vmatpush.bf16.msra.mxu3 %v11939_v0  ;;  %v16779_v0 = vor.u32 %v18870_v14, %v16778_v10  ;;  %v12471_v14 = vor.u32 %v17789_v60, %v12468_v62  ;;  %v12695_v2 = vor.u32 %v17845_v63, %v12692_v52  ;;  %v12188_v50 = vld [vmem:[%s28127_s1 + $0x2fc] sm:$0xf0]  ;;  %v12160_v62 = vld [vmem:[%s28127_s1 + $0x2c4] sm:$0xf0]  ;;  %v17768_v63 = vld [vmem:[%s28127_s1 + $0x46c] sm:$0xf] }
 0x254   :  { %9890 = vmatpush.bf16.msra.mxu0 %v16835_v51  ;;  %v17198_v51 = vld [vmem:[%s28127_s1 + $0x2a08] sm:$0xf]  ;;  %v12860_v58 = vld [vmem:[%s28127_s1 + $0x83c] sm:$0xf0] }
 0x255   :  { %9903 = vmatpush.bf16.msra.mxu1 %v17059_v54  ;;  %v9663_v54 = vpop.f32.mrf.mxu2 }
 0x256   :  { %9916 = vmatpush.bf16.msra.mxu2 %v17283_v56  ;;  %v11855_v56 = vor.u32 %v17635_v32, %v11852_v34  ;;  %v17838_v32 = vld [vmem:[%s28127_s1 + $0x69c] sm:$0xf]  ;;  %v12664_v34 = vld [vmem:[%s28127_s1 + $0x6b4] sm:$0xf0] }
 0x257   :  { %9929 = vmatpush.bf16.msra.mxu3 %v11911_v59  ;;  %v17733_v59 = vld [vmem:[%s28127_s1 + $0x354] sm:$0xf] }
 0x258   :  { %9891 = vmatpush.bf16.msra.mxu0 %v16807_v4  ;;  %v17199_v4 = vor.u32 %v18975_v36, %v17198_v51  ;;  %v12247_v10 = vor.u32 %v17733_v59, %v12244_v47  ;;  %v17775_v51 = vld [vmem:[%s28127_s1 + $0x4a4] sm:$0xf]  ;;  %v12191_v59 = vor.u32 %v17719_v17, %v12188_v50 }
 0x259   :  { %9904 = vmatpush.bf16.msra.mxu1 %v17031_v8  ;;  %v12916_v8 = vld [vmem:[%s28127_s1 + $0x8ac] sm:$0xf0]  ;;  %v17831_v36 = vld [vmem:[%s28127_s1 + $0x664] sm:$0xf] }
 0x25a   :  { %9917 = vmatpush.bf16.msra.mxu2 %v17255_v9  ;;  %v11827_v9 = vor.u32 %v17628_v57, %v11824_v48  ;;  %v12919_v13 = vor.u32 %v17901_v6, %v12916_v8  ;;  %v12636_v57 = vld [vmem:[%s28127_s1 + $0x67c] sm:$0xf0]  ;;  %v17887_v48 = vld [vmem:[%s28127_s1 + $0x824] sm:$0xf]  ;;  %v12608_v6 = vld [vmem:[%s28127_s1 + $0x644] sm:$0xf0] }
 0x25b   :  { %9930 = vmatpush.bf16.msra.mxu3 %v11883_v53  ;;  %v12216_v53 = vld [vmem:[%s28127_s1 + $0x334] sm:$0xf0]  ;;  %v12639_v60 = vor.u32 %v17831_v36, %v12636_v57  ;;  %v12863_v52 = vor.u32 %v17887_v48, %v12860_v58  ;;  %v17754_v36 = vld [vmem:[%s28127_s1 + $0x3fc] sm:$0xf] }
 0x25c   :  { %9892 = vmatpush.bf16.msra.mxu0 %v16779_v0  ;;  %v17894_v0 = vld [vmem:[%s28127_s1 + $0x85c] sm:$0xf]  ;;  %v12219_v43 = vor.u32 %v17726_v15, %v12216_v53  ;;  %v12328_v58 = vld [vmem:[%s28127_s1 + $0x414] sm:$0xf0] }
 0x25d   :  { %9905 = vmatpush.bf16.msra.mxu1 %v17003_v27  ;;  %v12443_v27 = vor.u32 %v17782_v21, %v12440_v26  ;;  %v12891_v54 = vor.u32 %v17894_v0, %v12888_v40  ;;  %v12132_v26 = vld [vmem:[%s28127_s1 + $0x28c] sm:$0xf0]  ;;  %v17817_v40 = vld [vmem:[%s28127_s1 + $0x5f4] sm:$0xf] }
 0x25e   :  { %9918 = vmatpush.bf16.msra.mxu2 %v17227_v24  ;;  %v12667_v24 = vor.u32 %v17838_v32, %v12664_v34  ;;  %v17761_v32 = vld [vmem:[%s28127_s1 + $0x434] sm:$0xf]  ;;  %v12356_v0 = vld [vmem:[%s28127_s1 + $0x44c] sm:$0xf0] }
 0x25f   :  { %9931 = vmatpush.bf16.msra.mxu3 %v11855_v56  ;;  %v12412_v56 = vld [vmem:[%s28127_s1 + $0x4bc] sm:$0xf0]  ;;  %v12359_v50 = vor.u32 %v17761_v32, %v12356_v0  ;;  %v12048_v0 = vld [vmem:[%s28127_s1 + $0x1e4] sm:$0xf0] }
 0x260   :  { %9893 = vmatpush.bf16.msra.mxu0 %v16751_v61  ;;  %v12415_v47 = vor.u32 %v17775_v51, %v12412_v56  ;;  %v17712_v61 = vld [vmem:[%s28127_s1 + $0x2ac] sm:$0xf]  ;;  %v9687_v8 = vpop.f32.mrf.mxu0  ;;  %v12104_v56 = vld [vmem:[%s28127_s1 + $0x254] sm:$0xf0]  ;;  %v12748_v32 = vld [vmem:[%s28127_s1 + $0x75c] sm:$0xf0] }
 0x261   :  { %9906 = vmatpush.bf16.msra.mxu1 %v16975_v55  ;;  %v12384_v55 = vld [vmem:[%s28127_s1 + $0x484] sm:$0xf0]  ;;  %v9700_v15 = vpop.f32.mrf.mxu1 }
 0x262   :  { %9919 = vmatpush.bf16.msra.mxu2 %v17199_v4  ;;  %v17824_v4 = vld [vmem:[%s28127_s1 + $0x62c] sm:$0xf]  ;;  %v12387_v53 = vor.u32 %v17768_v63, %v12384_v55  ;;  %v12776_v63 = vld [vmem:[%s28127_s1 + $0x794] sm:$0xf0] }
 0x263   :  { %9932 = vmatpush.bf16.msra.mxu3 %v11827_v9  ;;  %9894 = vmatmul.bf16.vlgmr.msra.gmra.mxu0 %v20436_v11  ;;  %v17880_v9 = vld [vmem:[%s28127_s1 + $0x7ec] sm:$0xf]  ;;  %v12611_v21 = vor.u32 %v17824_v4, %v12608_v6 }
 0x264   :  { %9938 = vmatpush.bf16.msrb.mxu0 %v12247_v10  ;;  %9907 = vmatmul.bf16.vlgmr.msra.gmra.mxu1 %v20446_v16  ;;  %v12832_v10 = vld [vmem:[%s28127_s1 + $0x804] sm:$0xf0] }
 0x265   :  { %9951 = vmatpush.bf16.msrb.mxu1 %v12471_v14  ;;  %9920 = vmatmul.bf16.vlgmr.msra.gmra.mxu2 %v20635_v1  ;;  %v9688_v14 = vadd.f32 %v9687_v8, %v22952_v5  ;;  %v12835_v5 = vor.u32 %v17880_v9, %v12832_v10  ;;  %v12331_v8 = vor.u32 %v17754_v36, %v12328_v58  ;;  %v17691_v10 = vld [vmem:[%s28127_s1 + $0x204] sm:$0xf]  ;;  %v18013_v58 = vld [vmem:[%s28127_s1 + $0xc14] sm:$0xf] }
 0x266   :  { %9964 = vmatpush.bf16.msrb.mxu2 %v12695_v2  ;;  %9933 = vmatmul.bf16.vlgmr.msra.gmra.mxu3 %v19435_v19  ;;  %v12163_v2 = vor.u32 %v17712_v61, %v12160_v62  ;;  %v17866_v62 = vld [vmem:[%s28127_s1 + $0x77c] sm:$0xf] }
 0x267   :  { %9977 = vmatpush.bf16.msrb.mxu3 %v12919_v13  ;;  %v17705_v13 = vld [vmem:[%s28127_s1 + $0x274] sm:$0xf]  ;;  %v9701_v34 = vadd.f32 %v9700_v15, %v9688_v14  ;;  %v12076_v14 = vld [vmem:[%s28127_s1 + $0x21c] sm:$0xf0]  ;;  %v12779_v15 = vor.u32 %v17866_v62, %v12776_v63  ;;  %v13588_v62 = vld [vmem:[%s28127_s1 + $0xdec] sm:$0xf0] }
 0x268   :  { %9939 = vmatpush.bf16.msrb.mxu0 %v12219_v43  ;;  %v12580_v43 = vld [vmem:[%s28127_s1 + $0x60c] sm:$0xf0]  ;;  %v12135_v17 = vor.u32 %v17705_v13, %v12132_v26  ;;  %v9713_v48 = vpop.f32.mrf.mxu2  ;;  %v12524_v13 = vld [vmem:[%s28127_s1 + $0x59c] sm:$0xf0]  ;;  %v17859_v26 = vld [vmem:[%s28127_s1 + $0x744] sm:$0xf] }
 0x269   :  { %9952 = vmatpush.bf16.msrb.mxu1 %v12443_v27  ;;  %v17873_v27 = vld [vmem:[%s28127_s1 + $0x7b4] sm:$0xf]  ;;  %v12583_v51 = vor.u32 %v17817_v40, %v12580_v43  ;;  %v9726_v61 = vpop.f32.mrf.mxu3  ;;  %v9702_v4 = vpop.f32.mrf.mxu1 }
 0x26a   :  { %9965 = vmatpush.bf16.msrb.mxu2 %v12667_v24  ;;  %v12804_v24 = vld [vmem:[%s28127_s1 + $0x7cc] sm:$0xf0] }
 0x26b   :  { %9978 = vmatpush.bf16.msrb.mxu3 %v12891_v54  ;;  %v17698_v54 = vld [vmem:[%s28127_s1 + $0x23c] sm:$0xf]  ;;  %v12807_v57 = vor.u32 %v17873_v27, %v12804_v24  ;;  %v17740_v27 = vld [vmem:[%s28127_s1 + $0x38c] sm:$0xf]  ;;  %v12272_v24 = vld [vmem:[%s28127_s1 + $0x3a4] sm:$0xf0] }
 0x26c   :  { %9940 = vmatpush.bf16.msrb.mxu0 %v12191_v59  ;;  %v17810_v59 = vld [vmem:[%s28127_s1 + $0x5bc] sm:$0xf]  ;;  %v12107_v55 = vor.u32 %v17698_v54, %v12104_v56  ;;  %v17852_v54 = vld [vmem:[%s28127_s1 + $0x70c] sm:$0xf]  ;;  %v12720_v56 = vld [vmem:[%s28127_s1 + $0x724] sm:$0xf0]  ;;  %v12275_v63 = vor.u32 %v17740_v27, %v12272_v24 }
 0x26d   :  { %9953 = vmatpush.bf16.msrb.mxu1 %v12415_v47  ;;  %v12552_v47 = vld [vmem:[%s28127_s1 + $0x5d4] sm:$0xf0]  ;;  %v13812_v4 = vld [vmem:[%s28127_s1 + $0xfac] sm:$0xf0]  ;;  %v17943_v27 = vld [vmem:[%s28127_s1 + $0x9e4] sm:$0xf] }
 0x26e   :  { %9966 = vmatpush.bf16.msrb.mxu2 %v12639_v60  ;;  %v9714_v60 = vadd.f32 %v9713_v48, %v9701_v34  ;;  %v12555_v9 = vor.u32 %v17810_v59, %v12552_v47  ;;  %v17684_v34 = vld [vmem:[%s28127_s1 + $0x1cc] sm:$0xf]  ;;  %v13140_v48 = vld [vmem:[%s28127_s1 + $0xa6c] sm:$0xf0]  ;;  %v13084_v24 = vld [vmem:[%s28127_s1 + $0x9fc] sm:$0xf0] }
 0x26f   :  { %9979 = vmatpush.bf16.msrb.mxu3 %v12863_v52  ;;  %v9689_v52 = vpop.f32.mrf.mxu0  ;;  %v12051_v47 = vor.u32 %v17684_v34, %v12048_v0  ;;  %v13784_v34 = vld [vmem:[%s28127_s1 + $0xf74] sm:$0xf0] }
 0x270   :  { %9941 = vmatpush.bf16.msrb.mxu0 %v12163_v2  ;;  %v23151_v6 = vadd.f32 %v9726_v61, %v9714_v60  ;;  %v17747_v2 = vld [vmem:[%s28127_s1 + $0x3c4] sm:$0xf]  ;;  %v9715_v36 = vpop.f32.mrf.mxu2  ;;  %v13364_v60 = vld [vmem:[%s28127_s1 + $0xc2c] sm:$0xf0]  ;;  %v18069_v61 = vld [vmem:[%s28127_s1 + $0xdd4] sm:$0xf] }
 0x271   :  { %9954 = vmatpush.bf16.msrb.mxu1 %v12387_v53  ;;  %v12300_v53 = vld [vmem:[%s28127_s1 + $0x3dc] sm:$0xf0]  ;;  %v9728_v59 = vpop.f32.mrf.mxu3  ;;  %v18111_v36 = vld [vmem:[%s28127_s1 + $0xf24] sm:$0xf] }
 0x272   :  { %9967 = vmatpush.bf16.msrb.mxu2 %v12611_v21  ;;  %v17803_v21 = vld [vmem:[%s28127_s1 + $0x584] sm:$0xf]  ;;  %v12303_v40 = vor.u32 %v17747_v2, %v12300_v53  ;;  %v17950_v2 = vld [vmem:[%s28127_s1 + $0xa1c] sm:$0xf] }
 0x273   :  { %9980 = vmatpush.bf16.msrb.mxu3 %v12835_v5  ;;  %v12079_v5 = vor.u32 %v17691_v10, %v12076_v14  ;;  %v12527_v43 = vor.u32 %v17803_v21, %v12524_v13  ;;  %v13367_v10 = vor.u32 %v18013_v58, %v13364_v60  ;;  %v13591_v14 = vor.u32 %v18069_v61, %v13588_v62  ;;  %v18006_v53 = vld [vmem:[%s28127_s1 + $0xbdc] sm:$0xf]  ;;  %v13336_v13 = vld [vmem:[%s28127_s1 + $0xbf4] sm:$0xf0]  ;;  %v13056_v60 = vld [vmem:[%s28127_s1 + $0x9c4] sm:$0xf0] }
 0x274   :  { %9942 = vmatpush.bf16.msrb.mxu0 %v12135_v17  ;;  %v17796_v17 = vld [vmem:[%s28127_s1 + $0x54c] sm:$0xf] }
 0x275   :  { %9955 = vmatpush.bf16.msrb.mxu1 %v12359_v50  ;;  %v12751_v50 = vor.u32 %v17859_v26, %v12748_v32  ;;  %v18062_v26 = vld [vmem:[%s28127_s1 + $0xd9c] sm:$0xf]  ;;  %v13560_v32 = vld [vmem:[%s28127_s1 + $0xdb4] sm:$0xf0]  ;;  %v17992_v61 = vld [vmem:[%s28127_s1 + $0xb6c] sm:$0xf] }
 0x276   :  { %9968 = vmatpush.bf16.msrb.mxu2 %v12583_v51  ;;  %v12496_v51 = vld [vmem:[%s28127_s1 + $0x564] sm:$0xf0] }
 0x277   :  { %9981 = vmatpush.bf16.msrb.mxu3 %v12807_v57  ;;  %v17957_v57 = vld [vmem:[%s28127_s1 + $0xa54] sm:$0xf]  ;;  %v12499_v52 = vor.u32 %v17796_v17, %v12496_v51  ;;  %v17999_v17 = vld [vmem:[%s28127_s1 + $0xba4] sm:$0xf]  ;;  %v13308_v51 = vld [vmem:[%s28127_s1 + $0xbbc] sm:$0xf0] }
 0x278   :  { %9943 = vmatpush.bf16.msrb.mxu0 %v12107_v55  ;;  %v18125_v55 = vld [vmem:[%s28127_s1 + $0xf94] sm:$0xf]  ;;  %v13311_v58 = vor.u32 %v17999_v17, %v13308_v51  ;;  %v13000_v51 = vld [vmem:[%s28127_s1 + $0x954] sm:$0xf0] }
 0x279   :  { %9956 = vmatpush.bf16.msrb.mxu1 %v12331_v8  ;;  %v12723_v8 = vor.u32 %v17852_v54, %v12720_v56  ;;  %v13815_v21 = vor.u32 %v18125_v55, %v13812_v4  ;;  %v18055_v54 = vld [vmem:[%s28127_s1 + $0xd64] sm:$0xf]  ;;  %v13532_v56 = vld [vmem:[%s28127_s1 + $0xd7c] sm:$0xf0]  ;;  %v13504_v55 = vld [vmem:[%s28127_s1 + $0xd44] sm:$0xf0] }
 0x27a   :  { %9969 = vmatpush.bf16.msrb.mxu2 %v12555_v9  ;;  %v13143_v9 = vor.u32 %v17957_v57, %v13140_v48  ;;  %v13756_v57 = vld [vmem:[%s28127_s1 + $0xf3c] sm:$0xf0]  ;;  %v13087_v48 = vor.u32 %v17943_v27, %v13084_v24  ;;  %v13535_v59 = vor.u32 %v18055_v54, %v13532_v56  ;;  %v17978_v54 = vld [vmem:[%s28127_s1 + $0xafc] sm:$0xf] }
 0x27b   :  { %9982 = vmatpush.bf16.msrb.mxu3 %v12779_v15  ;;  %v13112_v15 = vld [vmem:[%s28127_s1 + $0xa34] sm:$0xf0]  ;;  %v13759_v62 = vor.u32 %v18111_v36, %v13756_v57 }
 0x27c   :  { %9944 = vmatpush.bf16.msrb.mxu0 %v12079_v5  ;;  %v18118_v5 = vld [vmem:[%s28127_s1 + $0xf5c] sm:$0xf]  ;;  %v13115_v0 = vor.u32 %v17950_v2, %v13112_v15  ;;  %v13224_v57 = vld [vmem:[%s28127_s1 + $0xb14] sm:$0xf0] }
 0x27d   :  { %9957 = vmatpush.bf16.msrb.mxu1 %v12303_v40  ;;  %v13339_v40 = vor.u32 %v18006_v53, %v13336_v13  ;;  %v13028_v13 = vld [vmem:[%s28127_s1 + $0x98c] sm:$0xf0] }
 0x27e   :  { %9970 = vmatpush.bf16.msrb.mxu2 %v12527_v43  ;;  %v13563_v43 = vor.u32 %v18062_v26, %v13560_v32  ;;  %v17985_v26 = vld [vmem:[%s28127_s1 + $0xb34] sm:$0xf] }
 0x27f   :  { %9983 = vmatpush.bf16.msrb.mxu3 %v12751_v50  ;;  %v13787_v50 = vor.u32 %v18118_v5, %v13784_v34  ;;  %v13252_v5 = vld [vmem:[%s28127_s1 + $0xb4c] sm:$0xf0]  ;;  %v18041_v34 = vld [vmem:[%s28127_s1 + $0xcf4] sm:$0xf] }
 0x280   :  { %9945 = vmatpush.bf16.msrb.mxu0 %v12051_v47  ;;  %v17936_v47 = vld [vmem:[%s28127_s1 + $0x9ac] sm:$0xf]  ;;  %v9739_v4 = vpop.f32.mrf.mxu0  ;;  %v13255_v24 = vor.u32 %v17985_v26, %v13252_v5  ;;  %v13644_v26 = vld [vmem:[%s28127_s1 + $0xe5c] sm:$0xf0]  ;;  %v12944_v5 = vld [vmem:[%s28127_s1 + $0x8e4] sm:$0xf0] }
 0x281   :  { %9958 = vmatpush.bf16.msrb.mxu1 %v12275_v63  ;;  %v13280_v63 = vld [vmem:[%s28127_s1 + $0xb84] sm:$0xf0]  ;;  %v9752_v2 = vpop.f32.mrf.mxu1 }
 0x282   :  { %9971 = vmatpush.bf16.msrb.mxu2 %v12499_v52  ;;  %v18048_v52 = vld [vmem:[%s28127_s1 + $0xd2c] sm:$0xf]  ;;  %v13283_v15 = vor.u32 %v17992_v61, %v13280_v63  ;;  %v13672_v61 = vld [vmem:[%s28127_s1 + $0xe94] sm:$0xf0] }
 0x283   :  { %9984 = vmatpush.bf16.msrb.mxu3 %v12723_v8  ;;  %9946 = vmatmul.bf16.vlgmr.msrb.gmra.mxu0 %v19439_v22  ;;  %v18104_v8 = vld [vmem:[%s28127_s1 + $0xeec] sm:$0xf]  ;;  %v13507_v53 = vor.u32 %v18048_v52, %v13504_v55 }
 0x284   :  { %9990 = vmatpush.bf16.msra.mxu0 %v13143_v9  ;;  %9959 = vmatmul.bf16.vlgmr.msrb.gmra.mxu1 %v19433_v18  ;;  %v13728_v9 = vld [vmem:[%s28127_s1 + $0xf04] sm:$0xf0] }
 0x285   :  { %10003 = vmatpush.bf16.msra.mxu1 %v13367_v10  ;;  %9972 = vmatmul.bf16.vlgmr.msrb.gmra.mxu2 %v19437_v20  ;;  %v9740_v10 = vadd.f32 %v9739_v4, %v23151_v6  ;;  %v13731_v6 = vor.u32 %v18104_v8, %v13728_v9  ;;  %v13227_v4 = vor.u32 %v17978_v54, %v13224_v57  ;;  %v17915_v9 = vld [vmem:[%s28127_s1 + $0x904] sm:$0xf]  ;;  %v18237_v57 = vld [vmem:[%s28127_s1 + $0x1314] sm:$0xf] }
 0x286   :  { %10016 = vmatpush.bf16.msra.mxu2 %v13591_v14  ;;  %9985 = vmatmul.bf16.vlgmr.msrb.gmra.mxu3 %v19597_v41  ;;  %v13059_v14 = vor.u32 %v17936_v47, %v13056_v60  ;;  %v18090_v60 = vld [vmem:[%s28127_s1 + $0xe7c] sm:$0xf] }
 0x287   :  { %10029 = vmatpush.bf16.msra.mxu3 %v13815_v21  ;;  %v17929_v21 = vld [vmem:[%s28127_s1 + $0x974] sm:$0xf]  ;;  %v9753_v32 = vadd.f32 %v9752_v2, %v9740_v10  ;;  %v12972_v10 = vld [vmem:[%s28127_s1 + $0x91c] sm:$0xf0]  ;;  %v13675_v2 = vor.u32 %v18090_v60, %v13672_v61  ;;  %v14484_v60 = vld [vmem:[%s28127_s1 + $0x14ec] sm:$0xf0] }
 0x288   :  { %9991 = vmatpush.bf16.msra.mxu0 %v13115_v0  ;;  %v13476_v0 = vld [vmem:[%s28127_s1 + $0xd0c] sm:$0xf0]  ;;  %v13031_v27 = vor.u32 %v17929_v21, %v13028_v13  ;;  %v9765_v36 = vpop.f32.mrf.mxu2  ;;  %v13420_v21 = vld [vmem:[%s28127_s1 + $0xc9c] sm:$0xf0]  ;;  %v18083_v13 = vld [vmem:[%s28127_s1 + $0xe44] sm:$0xf] }
 0x289   :  { %10004 = vmatpush.bf16.msra.mxu1 %v13339_v40  ;;  %v18097_v40 = vld [vmem:[%s28127_s1 + $0xeb4] sm:$0xf]  ;;  %v13479_v17 = vor.u32 %v18041_v34, %v13476_v0  ;;  %v9778_v47 = vpop.f32.mrf.mxu3  ;;  %v9754_v52 = vpop.f32.mrf.mxu1 }
 0x28a   :  { %10017 = vmatpush.bf16.msra.mxu2 %v13563_v43  ;;  %v13700_v43 = vld [vmem:[%s28127_s1 + $0xecc] sm:$0xf0] }
 0x28b   :  { %10030 = vmatpush.bf16.msra.mxu3 %v13787_v50  ;;  %v17922_v50 = vld [vmem:[%s28127_s1 + $0x93c] sm:$0xf]  ;;  %v13703_v56 = vor.u32 %v18097_v40, %v13700_v43  ;;  %v17964_v40 = vld [vmem:[%s28127_s1 + $0xa8c] sm:$0xf]  ;;  %v13168_v43 = vld [vmem:[%s28127_s1 + $0xaa4] sm:$0xf0] }
 0x28c   :  { %9992 = vmatpush.bf16.msra.mxu0 %v13087_v48  ;;  %v18034_v48 = vld [vmem:[%s28127_s1 + $0xcbc] sm:$0xf]  ;;  %v13003_v63 = vor.u32 %v17922_v50, %v13000_v51  ;;  %v18076_v50 = vld [vmem:[%s28127_s1 + $0xe0c] sm:$0xf]  ;;  %v13616_v51 = vld [vmem:[%s28127_s1 + $0xe24] sm:$0xf0]  ;;  %v13171_v61 = vor.u32 %v17964_v40, %v13168_v43 }
 0x28d   :  { %10005 = vmatpush.bf16.msra.mxu1 %v13311_v58  ;;  %v13448_v58 = vld [vmem:[%s28127_s1 + $0xcd4] sm:$0xf0]  ;;  %v14708_v52 = vld [vmem:[%s28127_s1 + $0x16ac] sm:$0xf0]  ;;  %v18167_v40 = vld [vmem:[%s28127_s1 + $0x10e4] sm:$0xf] }
 0x28e   :  { %10018 = vmatpush.bf16.msra.mxu2 %v13535_v59  ;;  %v9766_v59 = vadd.f32 %v9765_v36, %v9753_v32  ;;  %v13451_v8 = vor.u32 %v18034_v48, %v13448_v58  ;;  %v17908_v32 = vld [vmem:[%s28127_s1 + $0x8cc] sm:$0xf]  ;;  %v14036_v36 = vld [vmem:[%s28127_s1 + $0x116c] sm:$0xf0]  ;;  %v13980_v43 = vld [vmem:[%s28127_s1 + $0x10fc] sm:$0xf0] }
 0x28f   :  { %10031 = vmatpush.bf16.msra.mxu3 %v13759_v62  ;;  %v9741_v62 = vpop.f32.mrf.mxu0  ;;  %v12947_v58 = vor.u32 %v17908_v32, %v12944_v5  ;;  %v14680_v32 = vld [vmem:[%s28127_s1 + $0x1674] sm:$0xf0] }
 0x290   :  { %9993 = vmatpush.bf16.msra.mxu0 %v13059_v14  ;;  %v23350_v55 = vadd.f32 %v9778_v47, %v9766_v59  ;;  %v17971_v14 = vld [vmem:[%s28127_s1 + $0xac4] sm:$0xf]  ;;  %v9767_v54 = vpop.f32.mrf.mxu2  ;;  %v14260_v59 = vld [vmem:[%s28127_s1 + $0x132c] sm:$0xf0]  ;;  %v18293_v47 = vld [vmem:[%s28127_s1 + $0x14d4] sm:$0xf] }
 0x291   :  { %10006 = vmatpush.bf16.msra.mxu1 %v13283_v15  ;;  %v13196_v15 = vld [vmem:[%s28127_s1 + $0xadc] sm:$0xf0]  ;;  %v9780_v48 = vpop.f32.mrf.mxu3  ;;  %v18335_v54 = vld [vmem:[%s28127_s1 + $0x1624] sm:$0xf] }
 0x292   :  { %10019 = vmatpush.bf16.msra.mxu2 %v13507_v53  ;;  %v18027_v53 = vld [vmem:[%s28127_s1 + $0xc84] sm:$0xf]  ;;  %v13199_v34 = vor.u32 %v17971_v14, %v13196_v15  ;;  %v18174_v14 = vld [vmem:[%s28127_s1 + $0x111c] sm:$0xf] }
 0x293   :  { %10032 = vmatpush.bf16.msra.mxu3 %v13731_v6  ;;  %v12975_v6 = vor.u32 %v17915_v9, %v12972_v10  ;;  %v13423_v0 = vor.u32 %v18027_v53, %v13420_v21  ;;  %v14263_v9 = vor.u32 %v18237_v57, %v14260_v59  ;;  %v14487_v10 = vor.u32 %v18293_v47, %v14484_v60  ;;  %v18230_v15 = vld [vmem:[%s28127_s1 + $0x12dc] sm:$0xf]  ;;  %v14232_v21 = vld [vmem:[%s28127_s1 + $0x12f4] sm:$0xf0]  ;;  %v13952_v59 = vld [vmem:[%s28127_s1 + $0x10c4] sm:$0xf0] }
 0x294   :  { %9994 = vmatpush.bf16.msra.mxu0 %v13031_v27  ;;  %v18020_v27 = vld [vmem:[%s28127_s1 + $0xc4c] sm:$0xf] }
 0x295   :  { %10007 = vmatpush.bf16.msra.mxu1 %v13255_v24  ;;  %v13647_v24 = vor.u32 %v18083_v13, %v13644_v26  ;;  %v18286_v13 = vld [vmem:[%s28127_s1 + $0x149c] sm:$0xf]  ;;  %v14456_v26 = vld [vmem:[%s28127_s1 + $0x14b4] sm:$0xf0]  ;;  %v18216_v47 = vld [vmem:[%s28127_s1 + $0x126c] sm:$0xf] }
 0x296   :  { %10020 = vmatpush.bf16.msra.mxu2 %v13479_v17  ;;  %v13392_v17 = vld [vmem:[%s28127_s1 + $0xc64] sm:$0xf0] }
 0x297   :  { %10033 = vmatpush.bf16.msra.mxu3 %v13703_v56  ;;  %v18181_v56 = vld [vmem:[%s28127_s1 + $0x1154] sm:$0xf]  ;;  %v13395_v62 = vor.u32 %v18020_v27, %v13392_v17  ;;  %v18223_v27 = vld [vmem:[%s28127_s1 + $0x12a4] sm:$0xf]  ;;  %v14204_v17 = vld [vmem:[%s28127_s1 + $0x12bc] sm:$0xf0] }
 0x298   :  { %9995 = vmatpush.bf16.msra.mxu0 %v13003_v63  ;;  %v18349_v63 = vld [vmem:[%s28127_s1 + $0x1694] sm:$0xf]  ;;  %v14207_v57 = vor.u32 %v18223_v27, %v14204_v17  ;;  %v13896_v17 = vld [vmem:[%s28127_s1 + $0x1054] sm:$0xf0] }
 0x299   :  { %10008 = vmatpush.bf16.msra.mxu1 %v13227_v4  ;;  %v13619_v4 = vor.u32 %v18076_v50, %v13616_v51  ;;  %v14711_v53 = vor.u32 %v18349_v63, %v14708_v52  ;;  %v18279_v50 = vld [vmem:[%s28127_s1 + $0x1464] sm:$0xf]  ;;  %v14428_v51 = vld [vmem:[%s28127_s1 + $0x147c] sm:$0xf0]  ;;  %v14400_v63 = vld [vmem:[%s28127_s1 + $0x1444] sm:$0xf0] }
 0x29a   :  { %10021 = vmatpush.bf16.msra.mxu2 %v13451_v8  ;;  %v14039_v8 = vor.u32 %v18181_v56, %v14036_v36  ;;  %v14652_v56 = vld [vmem:[%s28127_s1 + $0x163c] sm:$0xf0]  ;;  %v13983_v36 = vor.u32 %v18167_v40, %v13980_v43  ;;  %v14431_v48 = vor.u32 %v18279_v50, %v14428_v51  ;;  %v18202_v50 = vld [vmem:[%s28127_s1 + $0x11fc] sm:$0xf] }
 0x29b   :  { %10034 = vmatpush.bf16.msra.mxu3 %v13675_v2  ;;  %v14008_v2 = vld [vmem:[%s28127_s1 + $0x1134] sm:$0xf0]  ;;  %v14655_v60 = vor.u32 %v18335_v54, %v14652_v56 }
 0x29c   :  { %9996 = vmatpush.bf16.msra.mxu0 %v12975_v6  ;;  %v18342_v6 = vld [vmem:[%s28127_s1 + $0x165c] sm:$0xf]  ;;  %v14011_v5 = vor.u32 %v18174_v14, %v14008_v2  ;;  %v14120_v56 = vld [vmem:[%s28127_s1 + $0x1214] sm:$0xf0] }
 0x29d   :  { %10009 = vmatpush.bf16.msra.mxu1 %v13199_v34  ;;  %v14235_v34 = vor.u32 %v18230_v15, %v14232_v21  ;;  %v13924_v21 = vld [vmem:[%s28127_s1 + $0x108c] sm:$0xf0] }
 0x29e   :  { %10022 = vmatpush.bf16.msra.mxu2 %v13423_v0  ;;  %v14459_v0 = vor.u32 %v18286_v13, %v14456_v26  ;;  %v18209_v13 = vld [vmem:[%s28127_s1 + $0x1234] sm:$0xf] }
 0x29f   :  { %10035 = vmatpush.bf16.msra.mxu3 %v13647_v24  ;;  %v14683_v24 = vor.u32 %v18342_v6, %v14680_v32  ;;  %v14148_v6 = vld [vmem:[%s28127_s1 + $0x124c] sm:$0xf0]  ;;  %v18265_v32 = vld [vmem:[%s28127_s1 + $0x13f4] sm:$0xf] }
 0x2a0   :  { %9997 = vmatpush.bf16.msra.mxu0 %v12947_v58  ;;  %v18160_v58 = vld [vmem:[%s28127_s1 + $0x10ac] sm:$0xf]  ;;  %v9791_v52 = vpop.f32.mrf.mxu0  ;;  %v14151_v43 = vor.u32 %v18209_v13, %v14148_v6  ;;  %v14540_v13 = vld [vmem:[%s28127_s1 + $0x155c] sm:$0xf0]  ;;  %v13840_v6 = vld [vmem:[%s28127_s1 + $0xfe4] sm:$0xf0] }
 0x2a1   :  { %10010 = vmatpush.bf16.msra.mxu1 %v13171_v61  ;;  %v14176_v61 = vld [vmem:[%s28127_s1 + $0x1284] sm:$0xf0]  ;;  %v9804_v14 = vpop.f32.mrf.mxu1 }
 0x2a2   :  { %10023 = vmatpush.bf16.msra.mxu2 %v13395_v62  ;;  %v18272_v62 = vld [vmem:[%s28127_s1 + $0x142c] sm:$0xf]  ;;  %v14179_v2 = vor.u32 %v18216_v47, %v14176_v61  ;;  %v14568_v47 = vld [vmem:[%s28127_s1 + $0x1594] sm:$0xf0] }
 0x2a3   :  { %10036 = vmatpush.bf16.msra.mxu3 %v13619_v4  ;;  %9998 = vmatmul.bf16.vlgmr.msra.gmra.mxu0 %v19601_v44  ;;  %v18328_v4 = vld [vmem:[%s28127_s1 + $0x15ec] sm:$0xf]  ;;  %v14403_v15 = vor.u32 %v18272_v62, %v14400_v63 }
 0x2a4   :  { %10042 = vmatpush.bf16.msrb.mxu0 %v14039_v8  ;;  %10011 = vmatmul.bf16.vlgmr.msra.gmra.mxu1 %v19589_v38  ;;  %v14624_v8 = vld [vmem:[%s28127_s1 + $0x1604] sm:$0xf0] }
 0x2a5   :  { %10055 = vmatpush.bf16.msrb.mxu1 %v14263_v9  ;;  %10024 = vmatmul.bf16.vlgmr.msra.gmra.mxu2 %v19599_v42  ;;  %v9792_v9 = vadd.f32 %v9791_v52, %v23350_v55  ;;  %v14627_v55 = vor.u32 %v18328_v4, %v14624_v8  ;;  %v14123_v52 = vor.u32 %v18202_v50, %v14120_v56  ;;  %v18139_v8 = vld [vmem:[%s28127_s1 + $0x1004] sm:$0xf]  ;;  %v18461_v56 = vld [vmem:[%s28127_s1 + $0x1a14] sm:$0xf] }
 0x2a6   :  { %10068 = vmatpush.bf16.msrb.mxu2 %v14487_v10  ;;  %10037 = vmatmul.bf16.vlgmr.msra.gmra.mxu3 %v19790_v25  ;;  %v13955_v10 = vor.u32 %v18160_v58, %v13952_v59  ;;  %v18314_v59 = vld [vmem:[%s28127_s1 + $0x157c] sm:$0xf] }
 0x2a7   :  { %10081 = vmatpush.bf16.msrb.mxu3 %v14711_v53  ;;  %v18153_v53 = vld [vmem:[%s28127_s1 + $0x1074] sm:$0xf]  ;;  %v9805_v26 = vadd.f32 %v9804_v14, %v9792_v9  ;;  %v13868_v9 = vld [vmem:[%s28127_s1 + $0x101c] sm:$0xf0]  ;;  %v14571_v14 = vor.u32 %v18314_v59, %v14568_v47  ;;  %v15380_v59 = vld [vmem:[%s28127_s1 + $0x1bec] sm:$0xf0] }
 0x2a8   :  { %10043 = vmatpush.bf16.msrb.mxu0 %v14011_v5  ;;  %v14372_v5 = vld [vmem:[%s28127_s1 + $0x140c] sm:$0xf0]  ;;  %v13927_v40 = vor.u32 %v18153_v53, %v13924_v21  ;;  %v9817_v54 = vpop.f32.mrf.mxu2  ;;  %v14316_v53 = vld [vmem:[%s28127_s1 + $0x139c] sm:$0xf0]  ;;  %v18307_v21 = vld [vmem:[%s28127_s1 + $0x1544] sm:$0xf] }
 0x2a9   :  { %10056 = vmatpush.bf16.msrb.mxu1 %v14235_v34  ;;  %v18321_v34 = vld [vmem:[%s28127_s1 + $0x15b4] sm:$0xf]  ;;  %v14375_v27 = vor.u32 %v18265_v32, %v14372_v5  ;;  %v9830_v58 = vpop.f32.mrf.mxu3  ;;  %v9806_v62 = vpop.f32.mrf.mxu1 }
 0x2aa   :  { %10069 = vmatpush.bf16.msrb.mxu2 %v14459_v0  ;;  %v14596_v0 = vld [vmem:[%s28127_s1 + $0x15cc] sm:$0xf0] }
 0x2ab   :  { %10082 = vmatpush.bf16.msrb.mxu3 %v14683_v24  ;;  %v18146_v24 = vld [vmem:[%s28127_s1 + $0x103c] sm:$0xf]  ;;  %v14599_v51 = vor.u32 %v18321_v34, %v14596_v0  ;;  %v18188_v34 = vld [vmem:[%s28127_s1 + $0x118c] sm:$0xf]  ;;  %v14064_v0 = vld [vmem:[%s28127_s1 + $0x11a4] sm:$0xf0] }
 0x2ac   :  { %10044 = vmatpush.bf16.msrb.mxu0 %v13983_v36  ;;  %v18258_v36 = vld [vmem:[%s28127_s1 + $0x13bc] sm:$0xf]  ;;  %v13899_v61 = vor.u32 %v18146_v24, %v13896_v17  ;;  %v18300_v24 = vld [vmem:[%s28127_s1 + $0x150c] sm:$0xf]  ;;  %v14512_v17 = vld [vmem:[%s28127_s1 + $0x1524] sm:$0xf0]  ;;  %v14067_v47 = vor.u32 %v18188_v34, %v14064_v0 }
 0x2ad   :  { %10057 = vmatpush.bf16.msrb.mxu1 %v14207_v57  ;;  %v14344_v57 = vld [vmem:[%s28127_s1 + $0x13d4] sm:$0xf0]  ;;  %v15604_v62 = vld [vmem:[%s28127_s1 + $0x1dac] sm:$0xf0]  ;;  %v18391_v34 = vld [vmem:[%s28127_s1 + $0x17e4] sm:$0xf] }
 0x2ae   :  { %10070 = vmatpush.bf16.msrb.mxu2 %v14431_v48  ;;  %v9818_v48 = vadd.f32 %v9817_v54, %v9805_v26  ;;  %v14347_v4 = vor.u32 %v18258_v36, %v14344_v57  ;;  %v18132_v26 = vld [vmem:[%s28127_s1 + $0xfcc] sm:$0xf]  ;;  %v14932_v54 = vld [vmem:[%s28127_s1 + $0x186c] sm:$0xf0]  ;;  %v14876_v0 = vld [vmem:[%s28127_s1 + $0x17fc] sm:$0xf0] }
 0x2af   :  { %10083 = vmatpush.bf16.msrb.mxu3 %v14655_v60  ;;  %v9793_v60 = vpop.f32.mrf.mxu0  ;;  %v13843_v57 = vor.u32 %v18132_v26, %v13840_v6  ;;  %v15576_v26 = vld [vmem:[%s28127_s1 + $0x1d74] sm:$0xf0] }
 0x2b0   :  { %10045 = vmatpush.bf16.msrb.mxu0 %v13955_v10  ;;  %v23549_v63 = vadd.f32 %v9830_v58, %v9818_v48  ;;  %v18195_v10 = vld [vmem:[%s28127_s1 + $0x11c4] sm:$0xf]  ;;  %v9819_v50 = vpop.f32.mrf.mxu2  ;;  %v15156_v48 = vld [vmem:[%s28127_s1 + $0x1a2c] sm:$0xf0]  ;;  %v18517_v58 = vld [vmem:[%s28127_s1 + $0x1bd4] sm:$0xf] }
 0x2b1   :  { %10058 = vmatpush.bf16.msrb.mxu1 %v14179_v2  ;;  %v14092_v2 = vld [vmem:[%s28127_s1 + $0x11dc] sm:$0xf0]  ;;  %v9832_v36 = vpop.f32.mrf.mxu3  ;;  %v18559_v50 = vld [vmem:[%s28127_s1 + $0x1d24] sm:$0xf] }
 0x2b2   :  { %10071 = vmatpush.bf16.msrb.mxu2 %v14403_v15  ;;  %v18251_v15 = vld [vmem:[%s28127_s1 + $0x1384] sm:$0xf]  ;;  %v14095_v32 = vor.u32 %v18195_v10, %v14092_v2  ;;  %v18398_v10 = vld [vmem:[%s28127_s1 + $0x181c] sm:$0xf] }
 0x2b3   :  { %10084 = vmatpush.bf16.msrb.mxu3 %v14627_v55  ;;  %v13871_v55 = vor.u32 %v18139_v8, %v13868_v9  ;;  %v14319_v5 = vor.u32 %v18251_v15, %v14316_v53  ;;  %v15159_v8 = vor.u32 %v18461_v56, %v15156_v48  ;;  %v15383_v9 = vor.u32 %v18517_v58, %v15380_v59  ;;  %v18454_v2 = vld [vmem:[%s28127_s1 + $0x19dc] sm:$0xf]  ;;  %v15128_v53 = vld [vmem:[%s28127_s1 + $0x19f4] sm:$0xf0]  ;;  %v14848_v48 = vld [vmem:[%s28127_s1 + $0x17c4] sm:$0xf0] }
 0x2b4   :  { %10046 = vmatpush.bf16.msrb.mxu0 %v13927_v40  ;;  %v18244_v40 = vld [vmem:[%s28127_s1 + $0x134c] sm:$0xf] }
 0x2b5   :  { %10059 = vmatpush.bf16.msrb.mxu1 %v14151_v43  ;;  %v14543_v43 = vor.u32 %v18307_v21, %v14540_v13  ;;  %v18510_v21 = vld [vmem:[%s28127_s1 + $0x1b9c] sm:$0xf]  ;;  %v15352_v13 = vld [vmem:[%s28127_s1 + $0x1bb4] sm:$0xf0]  ;;  %v18440_v58 = vld [vmem:[%s28127_s1 + $0x196c] sm:$0xf] }
 0x2b6   :  { %10072 = vmatpush.bf16.msrb.mxu2 %v14375_v27  ;;  %v14288_v27 = vld [vmem:[%s28127_s1 + $0x1364] sm:$0xf0] }
 0x2b7   :  { %10085 = vmatpush.bf16.msrb.mxu3 %v14599_v51  ;;  %v18405_v51 = vld [vmem:[%s28127_s1 + $0x1854] sm:$0xf]  ;;  %v14291_v60 = vor.u32 %v18244_v40, %v14288_v27  ;;  %v18447_v40 = vld [vmem:[%s28127_s1 + $0x19a4] sm:$0xf]  ;;  %v15100_v27 = vld [vmem:[%s28127_s1 + $0x19bc] sm:$0xf0] }
 0x2b8   :  { %10047 = vmatpush.bf16.msrb.mxu0 %v13899_v61  ;;  %v18573_v61 = vld [vmem:[%s28127_s1 + $0x1d94] sm:$0xf]  ;;  %v15103_v56 = vor.u32 %v18447_v40, %v15100_v27  ;;  %v14792_v27 = vld [vmem:[%s28127_s1 + $0x1754] sm:$0xf0] }
 0x2b9   :  { %10060 = vmatpush.bf16.msrb.mxu1 %v14123_v52  ;;  %v14515_v52 = vor.u32 %v18300_v24, %v14512_v17  ;;  %v15607_v15 = vor.u32 %v18573_v61, %v15604_v62  ;;  %v18503_v24 = vld [vmem:[%s28127_s1 + $0x1b64] sm:$0xf]  ;;  %v15324_v17 = vld [vmem:[%s28127_s1 + $0x1b7c] sm:$0xf0]  ;;  %v15296_v61 = vld [vmem:[%s28127_s1 + $0x1b44] sm:$0xf0] }
 0x2ba   :  { %10073 = vmatpush.bf16.msrb.mxu2 %v14347_v4  ;;  %v14935_v4 = vor.u32 %v18405_v51, %v14932_v54  ;;  %v15548_v51 = vld [vmem:[%s28127_s1 + $0x1d3c] sm:$0xf0]  ;;  %v14879_v54 = vor.u32 %v18391_v34, %v14876_v0  ;;  %v15327_v36 = vor.u32 %v18503_v24, %v15324_v17  ;;  %v18426_v24 = vld [vmem:[%s28127_s1 + $0x18fc] sm:$0xf] }
 0x2bb   :  { %10086 = vmatpush.bf16.msrb.mxu3 %v14571_v14  ;;  %v14904_v14 = vld [vmem:[%s28127_s1 + $0x1834] sm:$0xf0]  ;;  %v15551_v59 = vor.u32 %v18559_v50, %v15548_v51 }
 0x2bc   :  { %10048 = vmatpush.bf16.msrb.mxu0 %v13871_v55  ;;  %v18566_v55 = vld [vmem:[%s28127_s1 + $0x1d5c] sm:$0xf]  ;;  %v14907_v6 = vor.u32 %v18398_v10, %v14904_v14  ;;  %v15016_v51 = vld [vmem:[%s28127_s1 + $0x1914] sm:$0xf0] }
 0x2bd   :  { %10061 = vmatpush.bf16.msrb.mxu1 %v14095_v32  ;;  %v15131_v32 = vor.u32 %v18454_v2, %v15128_v53  ;;  %v14820_v53 = vld [vmem:[%s28127_s1 + $0x178c] sm:$0xf0] }
 0x2be   :  { %10074 = vmatpush.bf16.msrb.mxu2 %v14319_v5  ;;  %v15355_v5 = vor.u32 %v18510_v21, %v15352_v13  ;;  %v18433_v21 = vld [vmem:[%s28127_s1 + $0x1934] sm:$0xf] }
 0x2bf   :  { %10087 = vmatpush.bf16.msrb.mxu3 %v14543_v43  ;;  %v15579_v43 = vor.u32 %v18566_v55, %v15576_v26  ;;  %v15044_v55 = vld [vmem:[%s28127_s1 + $0x194c] sm:$0xf0]  ;;  %v18489_v26 = vld [vmem:[%s28127_s1 + $0x1af4] sm:$0xf] }
 0x2c0   :  { %10049 = vmatpush.bf16.msrb.mxu0 %v13843_v57  ;;  %v18384_v57 = vld [vmem:[%s28127_s1 + $0x17ac] sm:$0xf]  ;;  %v9843_v62 = vpop.f32.mrf.mxu0  ;;  %v15047_v0 = vor.u32 %v18433_v21, %v15044_v55  ;;  %v15436_v21 = vld [vmem:[%s28127_s1 + $0x1c5c] sm:$0xf0]  ;;  %v14736_v55 = vld [vmem:[%s28127_s1 + $0x16e4] sm:$0xf0] }
 0x2c1   :  { %10062 = vmatpush.bf16.msrb.mxu1 %v14067_v47  ;;  %v15072_v47 = vld [vmem:[%s28127_s1 + $0x1984] sm:$0xf0]  ;;  %v9856_v10 = vpop.f32.mrf.mxu1 }
 0x2c2   :  { %10075 = vmatpush.bf16.msrb.mxu2 %v14291_v60  ;;  %v18496_v60 = vld [vmem:[%s28127_s1 + $0x1b2c] sm:$0xf]  ;;  %v15075_v14 = vor.u32 %v18440_v58, %v15072_v47  ;;  %v15464_v58 = vld [vmem:[%s28127_s1 + $0x1c94] sm:$0xf0] }
 0x2c3   :  { %10088 = vmatpush.bf16.msrb.mxu3 %v14515_v52  ;;  %10050 = vmatmul.bf16.vlgmr.msrb.gmra.mxu0 %v19803_v30  ;;  %v18552_v52 = vld [vmem:[%s28127_s1 + $0x1cec] sm:$0xf]  ;;  %v15299_v2 = vor.u32 %v18496_v60, %v15296_v61 }
 0x2c4   :  { %10094 = vmatpush.bf16.msra.mxu0 %v14935_v4  ;;  %10063 = vmatmul.bf16.vlgmr.msrb.gmra.mxu1 %v19801_v29  ;;  %v15520_v4 = vld [vmem:[%s28127_s1 + $0x1d04] sm:$0xf0] }
 0x2c5   :  { %10107 = vmatpush.bf16.msra.mxu1 %v15159_v8  ;;  %10076 = vmatmul.bf16.vlgmr.msrb.gmra.mxu2 %v19811_v33  ;;  %v9844_v8 = vadd.f32 %v9843_v62, %v23549_v63  ;;  %v15523_v63 = vor.u32 %v18552_v52, %v15520_v4  ;;  %v15019_v62 = vor.u32 %v18426_v24, %v15016_v51  ;;  %v18363_v4 = vld [vmem:[%s28127_s1 + $0x1704] sm:$0xf]  ;;  %v18685_v51 = vld [vmem:[%s28127_s1 + $0x2114] sm:$0xf] }
 0x2c6   :  { %10120 = vmatpush.bf16.msra.mxu2 %v15383_v9  ;;  %10089 = vmatmul.bf16.vlgmr.msrb.gmra.mxu3 %v20000_v23  ;;  %v14851_v9 = vor.u32 %v18384_v57, %v14848_v48  ;;  %v18538_v48 = vld [vmem:[%s28127_s1 + $0x1c7c] sm:$0xf] }
 0x2c7   :  { %10133 = vmatpush.bf16.msra.mxu3 %v15607_v15  ;;  %v18377_v15 = vld [vmem:[%s28127_s1 + $0x1774] sm:$0xf]  ;;  %v9857_v13 = vadd.f32 %v9856_v10, %v9844_v8  ;;  %v14764_v8 = vld [vmem:[%s28127_s1 + $0x171c] sm:$0xf0]  ;;  %v15467_v10 = vor.u32 %v18538_v48, %v15464_v58  ;;  %v16276_v48 = vld [vmem:[%s28127_s1 + $0x22ec] sm:$0xf0] }
 0x2c8   :  { %10095 = vmatpush.bf16.msra.mxu0 %v14907_v6  ;;  %v15268_v6 = vld [vmem:[%s28127_s1 + $0x1b0c] sm:$0xf0]  ;;  %v14823_v34 = vor.u32 %v18377_v15, %v14820_v53  ;;  %v9869_v50 = vpop.f32.mrf.mxu2  ;;  %v15212_v15 = vld [vmem:[%s28127_s1 + $0x1a9c] sm:$0xf0]  ;;  %v18531_v53 = vld [vmem:[%s28127_s1 + $0x1c44] sm:$0xf] }
 0x2c9   :  { %10108 = vmatpush.bf16.msra.mxu1 %v15131_v32  ;;  %v18545_v32 = vld [vmem:[%s28127_s1 + $0x1cb4] sm:$0xf]  ;;  %v15271_v40 = vor.u32 %v18489_v26, %v15268_v6  ;;  %v9882_v57 = vpop.f32.mrf.mxu3  ;;  %v9858_v60 = vpop.f32.mrf.mxu1 }
 0x2ca   :  { %10121 = vmatpush.bf16.msra.mxu2 %v15355_v5  ;;  %v15492_v5 = vld [vmem:[%s28127_s1 + $0x1ccc] sm:$0xf0] }
 0x2cb   :  { %10134 = vmatpush.bf16.msra.mxu3 %v15579_v43  ;;  %v18370_v43 = vld [vmem:[%s28127_s1 + $0x173c] sm:$0xf]  ;;  %v15495_v17 = vor.u32 %v18545_v32, %v15492_v5  ;;  %v18412_v32 = vld [vmem:[%s28127_s1 + $0x188c] sm:$0xf]  ;;  %v14960_v5 = vld [vmem:[%s28127_s1 + $0x18a4] sm:$0xf0] }
 0x2cc   :  { %10096 = vmatpush.bf16.msra.mxu0 %v14879_v54  ;;  %v18482_v54 = vld [vmem:[%s28127_s1 + $0x1abc] sm:$0xf]  ;;  %v14795_v47 = vor.u32 %v18370_v43, %v14792_v27  ;;  %v18524_v43 = vld [vmem:[%s28127_s1 + $0x1c0c] sm:$0xf]  ;;  %v15408_v27 = vld [vmem:[%s28127_s1 + $0x1c24] sm:$0xf0]  ;;  %v14963_v58 = vor.u32 %v18412_v32, %v14960_v5 }
 0x2cd   :  { %10109 = vmatpush.bf16.msra.mxu1 %v15103_v56  ;;  %v15240_v56 = vld [vmem:[%s28127_s1 + $0x1ad4] sm:$0xf0]  ;;  %v16500_v60 = vld [vmem:[%s28127_s1 + $0x24ac] sm:$0xf0]  ;;  %v18615_v32 = vld [vmem:[%s28127_s1 + $0x1ee4] sm:$0xf] }
 0x2ce   :  { %10122 = vmatpush.bf16.msra.mxu2 %v15327_v36  ;;  %v9870_v36 = vadd.f32 %v9869_v50, %v9857_v13  ;;  %v15243_v52 = vor.u32 %v18482_v54, %v15240_v56  ;;  %v18356_v13 = vld [vmem:[%s28127_s1 + $0x16cc] sm:$0xf]  ;;  %v15828_v50 = vld [vmem:[%s28127_s1 + $0x1f6c] sm:$0xf0]  ;;  %v15772_v5 = vld [vmem:[%s28127_s1 + $0x1efc] sm:$0xf0] }
 0x2cf   :  { %10135 = vmatpush.bf16.msra.mxu3 %v15551_v59  ;;  %v9845_v59 = vpop.f32.mrf.mxu0  ;;  %v14739_v56 = vor.u32 %v18356_v13, %v14736_v55  ;;  %v16472_v13 = vld [vmem:[%s28127_s1 + $0x2474] sm:$0xf0] }
 0x2d0   :  { %10097 = vmatpush.bf16.msra.mxu0 %v14851_v9  ;;  %v23748_v61 = vadd.f32 %v9882_v57, %v9870_v36  ;;  %v18419_v9 = vld [vmem:[%s28127_s1 + $0x18c4] sm:$0xf]  ;;  %v9871_v24 = vpop.f32.mrf.mxu2  ;;  %v16052_v36 = vld [vmem:[%s28127_s1 + $0x212c] sm:$0xf0]  ;;  %v18741_v57 = vld [vmem:[%s28127_s1 + $0x22d4] sm:$0xf] }
 0x2d1   :  { %10110 = vmatpush.bf16.msra.mxu1 %v15075_v14  ;;  %v14988_v14 = vld [vmem:[%s28127_s1 + $0x18dc] sm:$0xf0]  ;;  %v9884_v54 = vpop.f32.mrf.mxu3  ;;  %v18783_v24 = vld [vmem:[%s28127_s1 + $0x2424] sm:$0xf] }
 0x2d2   :  { %10123 = vmatpush.bf16.msra.mxu2 %v15299_v2  ;;  %v18475_v2 = vld [vmem:[%s28127_s1 + $0x1a84] sm:$0xf]  ;;  %v14991_v26 = vor.u32 %v18419_v9, %v14988_v14  ;;  %v18622_v9 = vld [vmem:[%s28127_s1 + $0x1f1c] sm:$0xf] }
 0x2d3   :  { %10136 = vmatpush.bf16.msra.mxu3 %v15523_v63  ;;  %v14767_v63 = vor.u32 %v18363_v4, %v14764_v8  ;;  %v15215_v6 = vor.u32 %v18475_v2, %v15212_v15  ;;  %v16055_v4 = vor.u32 %v18685_v51, %v16052_v36  ;;  %v16279_v8 = vor.u32 %v18741_v57, %v16276_v48  ;;  %v18678_v14 = vld [vmem:[%s28127_s1 + $0x20dc] sm:$0xf]  ;;  %v16024_v15 = vld [vmem:[%s28127_s1 + $0x20f4] sm:$0xf0]  ;;  %v15744_v36 = vld [vmem:[%s28127_s1 + $0x1ec4] sm:$0xf0] }
 0x2d4   :  { %10098 = vmatpush.bf16.msra.mxu0 %v14823_v34  ;;  %v18468_v34 = vld [vmem:[%s28127_s1 + $0x1a4c] sm:$0xf] }
 0x2d5   :  { %10111 = vmatpush.bf16.msra.mxu1 %v15047_v0  ;;  %v15439_v0 = vor.u32 %v18531_v53, %v15436_v21  ;;  %v18734_v53 = vld [vmem:[%s28127_s1 + $0x229c] sm:$0xf]  ;;  %v16248_v21 = vld [vmem:[%s28127_s1 + $0x22b4] sm:$0xf0]  ;;  %v18664_v57 = vld [vmem:[%s28127_s1 + $0x206c] sm:$0xf] }
 0x2d6   :  { %10124 = vmatpush.bf16.msra.mxu2 %v15271_v40  ;;  %v15184_v40 = vld [vmem:[%s28127_s1 + $0x1a64] sm:$0xf0] }
 0x2d7   :  { %10137 = vmatpush.bf16.msra.mxu3 %v15495_v17  ;;  %v18629_v17 = vld [vmem:[%s28127_s1 + $0x1f54] sm:$0xf]  ;;  %v15187_v59 = vor.u32 %v18468_v34, %v15184_v40  ;;  %v18671_v34 = vld [vmem:[%s28127_s1 + $0x20a4] sm:$0xf]  ;;  %v15996_v40 = vld [vmem:[%s28127_s1 + $0x20bc] sm:$0xf0] }
 0x2d8   :  { %10099 = vmatpush.bf16.msra.mxu0 %v14795_v47  ;;  %v18797_v47 = vld [vmem:[%s28127_s1 + $0x2494] sm:$0xf]  ;;  %v15999_v51 = vor.u32 %v18671_v34, %v15996_v40  ;;  %v15688_v40 = vld [vmem:[%s28127_s1 + $0x1e54] sm:$0xf0] }
 0x2d9   :  { %10112 = vmatpush.bf16.msra.mxu1 %v15019_v62  ;;  %v15411_v62 = vor.u32 %v18524_v43, %v15408_v27  ;;  %v16503_v2 = vor.u32 %v18797_v47, %v16500_v60  ;;  %v18727_v43 = vld [vmem:[%s28127_s1 + $0x2264] sm:$0xf]  ;;  %v16220_v27 = vld [vmem:[%s28127_s1 + $0x227c] sm:$0xf0]  ;;  %v16192_v47 = vld [vmem:[%s28127_s1 + $0x2244] sm:$0xf0] }
 0x2da   :  { %10125 = vmatpush.bf16.msra.mxu2 %v15243_v52  ;;  %v15831_v52 = vor.u32 %v18629_v17, %v15828_v50  ;;  %v16444_v17 = vld [vmem:[%s28127_s1 + $0x243c] sm:$0xf0]  ;;  %v15775_v50 = vor.u32 %v18615_v32, %v15772_v5  ;;  %v16223_v54 = vor.u32 %v18727_v43, %v16220_v27  ;;  %v18650_v43 = vld [vmem:[%s28127_s1 + $0x1ffc] sm:$0xf] }
 0x2db   :  { %10138 = vmatpush.bf16.msra.mxu3 %v15467_v10  ;;  %v15800_v10 = vld [vmem:[%s28127_s1 + $0x1f34] sm:$0xf0]  ;;  %v16447_v48 = vor.u32 %v18783_v24, %v16444_v17 }
 0x2dc   :  { %10100 = vmatpush.bf16.msra.mxu0 %v14767_v63  ;;  %v18790_v63 = vld [vmem:[%s28127_s1 + $0x245c] sm:$0xf]  ;;  %v15803_v55 = vor.u32 %v18622_v9, %v15800_v10  ;;  %v15912_v17 = vld [vmem:[%s28127_s1 + $0x2014] sm:$0xf0] }
 0x2dd   :  { %10113 = vmatpush.bf16.msra.mxu1 %v14991_v26  ;;  %v16027_v26 = vor.u32 %v18678_v14, %v16024_v15  ;;  %v15716_v15 = vld [vmem:[%s28127_s1 + $0x1e8c] sm:$0xf0] }
 0x2de   :  { %10126 = vmatpush.bf16.msra.mxu2 %v15215_v6  ;;  %v16251_v6 = vor.u32 %v18734_v53, %v16248_v21  ;;  %v18657_v53 = vld [vmem:[%s28127_s1 + $0x2034] sm:$0xf] }
 0x2df   :  { %10139 = vmatpush.bf16.msra.mxu3 %v15439_v0  ;;  %v16475_v0 = vor.u32 %v18790_v63, %v16472_v13  ;;  %v15940_v63 = vld [vmem:[%s28127_s1 + $0x204c] sm:$0xf0]  ;;  %v18713_v13 = vld [vmem:[%s28127_s1 + $0x21f4] sm:$0xf] }
 0x2e0   :  { %10101 = vmatpush.bf16.msra.mxu0 %v14739_v56  ;;  %v18608_v56 = vld [vmem:[%s28127_s1 + $0x1eac] sm:$0xf]  ;;  %v9895_v60 = vpop.f32.mrf.mxu0  ;;  %v15943_v5 = vor.u32 %v18657_v53, %v15940_v63 }
 0x2e1   :  { %10114 = vmatpush.bf16.msra.mxu1 %v14963_v58  ;;  %v15968_v58 = vld [vmem:[%s28127_s1 + $0x2084] sm:$0xf0]  ;;  %v9908_v9 = vpop.f32.mrf.mxu1  ;;  %v18580_v53 = vld [vmem:[%s28127_s1 + $0x1dcc] sm:$0xf] }
 0x2e2   :  { %10127 = vmatpush.bf16.msra.mxu2 %v15187_v59  ;;  %v18720_v59 = vld [vmem:[%s28127_s1 + $0x222c] sm:$0xf]  ;;  %v15971_v10 = vor.u32 %v18664_v57, %v15968_v58 }
 0x2e3   :  { %10140 = vmatpush.bf16.msra.mxu3 %v15411_v62  ;;  %10102 = vmatmul.bf16.vlgmr.msra.gmra.mxu0 %v20013_v31  ;;  %v18776_v62 = vld [vmem:[%s28127_s1 + $0x23ec] sm:$0xf]  ;;  %v16195_v14 = vor.u32 %v18720_v59, %v16192_v47  ;;  %v15915_v59 = vor.u32 %v18650_v43, %v15912_v17  ;;  %v18853_v43 = vld [vmem:[%s28127_s1 + $0x2654] sm:$0xf] }
 0x2e4   :  { %10146 = vmatpush.bf16.msrb.mxu0 %v15831_v52  ;;  %10115 = vmatmul.bf16.vlgmr.msra.gmra.mxu1 %v20011_v28  ;;  %v16416_v52 = vld [vmem:[%s28127_s1 + $0x2404] sm:$0xf0] }
 0x2e5   :  { %10159 = vmatpush.bf16.msrb.mxu1 %v16055_v4  ;;  %10128 = vmatmul.bf16.vlgmr.msra.gmra.mxu2 %v20021_v35  ;;  %v9896_v4 = vadd.f32 %v9895_v60, %v23748_v61  ;;  %v16419_v61 = vor.u32 %v18776_v62, %v16416_v52  ;;  %v18587_v60 = vld [vmem:[%s28127_s1 + $0x1e04] sm:$0xf]  ;;  %v15660_v62 = vld [vmem:[%s28127_s1 + $0x1e1c] sm:$0xf0] }
 0x2e6   :  { %10172 = vmatpush.bf16.msrb.mxu2 %v16279_v8  ;;  %10141 = vmatmul.bf16.vlgmr.msra.gmra.mxu3 %v20210_v37  ;;  %v15747_v8 = vor.u32 %v18608_v56, %v15744_v36  ;;  %v18762_v56 = vld [vmem:[%s28127_s1 + $0x237c] sm:$0xf]  ;;  %v16360_v36 = vld [vmem:[%s28127_s1 + $0x2394] sm:$0xf0]  ;;  %v18643_v52 = vld [vmem:[%s28127_s1 + $0x1fc4] sm:$0xf] }
 0x2e7   :  { %10185 = vmatpush.bf16.msrb.mxu3 %v16503_v2  ;;  %v18601_v2 = vld [vmem:[%s28127_s1 + $0x1e74] sm:$0xf]  ;;  %v9909_v21 = vadd.f32 %v9908_v9, %v9896_v4  ;;  %v16363_v4 = vor.u32 %v18762_v56, %v16360_v36  ;;  %v18699_v9 = vld [vmem:[%s28127_s1 + $0x2184] sm:$0xf]  ;;  %v17172_v56 = vld [vmem:[%s28127_s1 + $0x29ec] sm:$0xf0] }
 0x2e8   :  { %10147 = vmatpush.bf16.msrb.mxu0 %v15803_v55  ;;  %v16164_v55 = vld [vmem:[%s28127_s1 + $0x220c] sm:$0xf0]  ;;  %v15719_v32 = vor.u32 %v18601_v2, %v15716_v15  ;;  %v9921_v24 = vpop.f32.mrf.mxu2  ;;  %v9897_v57 = vpop.f32.mrf.mxu0  ;;  %v16332_v2 = vld [vmem:[%s28127_s1 + $0x235c] sm:$0xf0]  ;;  %v15663_v15 = vor.u32 %v18587_v60, %v15660_v62 }
 0x2e9   :  { %10160 = vmatpush.bf16.msrb.mxu1 %v16027_v26  ;;  %v18769_v26 = vld [vmem:[%s28127_s1 + $0x23b4] sm:$0xf]  ;;  %v16167_v34 = vor.u32 %v18713_v13, %v16164_v55  ;;  %v9910_v58 = vpop.f32.mrf.mxu1  ;;  %v18636_v55 = vld [vmem:[%s28127_s1 + $0x1f8c] sm:$0xf] }
 0x2ea   :  { %10173 = vmatpush.bf16.msrb.mxu2 %v16251_v6  ;;  %v16388_v6 = vld [vmem:[%s28127_s1 + $0x23cc] sm:$0xf0] }
 0x2eb   :  { %10186 = vmatpush.bf16.msrb.mxu3 %v16475_v0  ;;  %v18594_v0 = vld [vmem:[%s28127_s1 + $0x1e3c] sm:$0xf]  ;;  %v16391_v27 = vor.u32 %v18769_v26, %v16388_v6  ;;  %v15856_v26 = vld [vmem:[%s28127_s1 + $0x1fa4] sm:$0xf0]  ;;  %v18692_v6 = vld [vmem:[%s28127_s1 + $0x214c] sm:$0xf] }
 0x2ec   :  { %10148 = vmatpush.bf16.msrb.mxu0 %v15775_v50  ;;  %v18706_v50 = vld [vmem:[%s28127_s1 + $0x21bc] sm:$0xf]  ;;  %v15859_v36 = vor.u32 %v18636_v55, %v15856_v26  ;;  %v17396_v58 = vld [vmem:[%s28127_s1 + $0x2bac] sm:$0xf0] }
 0x2ed   :  { %10161 = vmatpush.bf16.msrb.mxu1 %v15999_v51  ;;  %v16136_v51 = vld [vmem:[%s28127_s1 + $0x21d4] sm:$0xf0] }
 0x2ee   :  { %10174 = vmatpush.bf16.msrb.mxu2 %v16223_v54  ;;  %v23941_v54 = vadd.f32 %v9921_v24, %v9909_v21  ;;  %v16139_v47 = vor.u32 %v18706_v50, %v16136_v51  ;;  %v23979_v21 = vpop.f32.mrf.mxu3  ;;  %v18909_v24 = vld [vmem:[%s28127_s1 + $0x2814] sm:$0xf]  ;;  %v16948_v50 = vld [vmem:[%s28127_s1 + $0x282c] sm:$0xf0] }
 0x2ef   :  { %10187 = vmatpush.bf16.msrb.mxu3 %v16447_v48  ;;  %v15691_v48 = vor.u32 %v18594_v0, %v15688_v40  ;;  %v16304_v0 = vld [vmem:[%s28127_s1 + $0x2324] sm:$0xf0]  ;;  %v18965_v51 = vld [vmem:[%s28127_s1 + $0x29d4] sm:$0xf]  ;;  %v16951_v60 = vor.u32 %v18909_v24, %v16948_v50  ;;  %v19007_v24 = vld [vmem:[%s28127_s1 + $0x2b24] sm:$0xf] }
 0x2f0   :  { %10149 = vmatpush.bf16.msrb.mxu0 %v15747_v8  ;;  %v15884_v8 = vld [vmem:[%s28127_s1 + $0x1fdc] sm:$0xf0]  ;;  %v9923_v40 = vpop.f32.mrf.mxu2  ;;  %v17175_v62 = vor.u32 %v18965_v51, %v17172_v56 }
 0x2f1   :  { %10162 = vmatpush.bf16.msrb.mxu1 %v15971_v10  ;;  %v16108_v10 = vld [vmem:[%s28127_s1 + $0x219c] sm:$0xf0]  ;;  %v15887_v63 = vor.u32 %v18643_v52, %v15884_v8  ;;  %v18846_v52 = vld [vmem:[%s28127_s1 + $0x261c] sm:$0xf] }
 0x2f2   :  { %10175 = vmatpush.bf16.msrb.mxu2 %v16195_v14  ;;  %v18755_v14 = vld [vmem:[%s28127_s1 + $0x2344] sm:$0xf]  ;;  %v16111_v13 = vor.u32 %v18699_v9, %v16108_v10  ;;  %v18902_v8 = vld [vmem:[%s28127_s1 + $0x27dc] sm:$0xf]  ;;  %v16920_v10 = vld [vmem:[%s28127_s1 + $0x27f4] sm:$0xf0] }
 0x2f3   :  { %10188 = vmatpush.bf16.msrb.mxu3 %v16419_v61  ;;  %v15632_v61 = vld [vmem:[%s28127_s1 + $0x1de4] sm:$0xf0]  ;;  %v16923_v55 = vor.u32 %v18902_v8, %v16920_v10  ;;  %v16892_v40 = vld [vmem:[%s28127_s1 + $0x27bc] sm:$0xf0] }
 0x2f4   :  { %10150 = vmatpush.bf16.msrb.mxu0 %v15719_v32  ;;  %v16335_v32 = vor.u32 %v18755_v14, %v16332_v2  ;;  %v15635_v17 = vor.u32 %v18580_v53, %v15632_v61  ;;  %v18958_v14 = vld [vmem:[%s28127_s1 + $0x299c] sm:$0xf]  ;;  %v17144_v2 = vld [vmem:[%s28127_s1 + $0x29b4] sm:$0xf0] }
 0x2f5   :  { %10163 = vmatpush.bf16.msrb.mxu1 %v15943_v5  ;;  %v16080_v5 = vld [vmem:[%s28127_s1 + $0x2164] sm:$0xf0]  ;;  %v19014_v53 = vld [vmem:[%s28127_s1 + $0x2b5c] sm:$0xf]  ;;  %v17368_v61 = vld [vmem:[%s28127_s1 + $0x2b74] sm:$0xf0]  ;;  %v17147_v26 = vor.u32 %v18958_v14, %v17144_v2 }
 0x2f6   :  { %10176 = vmatpush.bf16.msrb.mxu2 %v16167_v34  ;;  %v18748_v34 = vld [vmem:[%s28127_s1 + $0x230c] sm:$0xf]  ;;  %v16083_v57 = vor.u32 %v18692_v6, %v16080_v5  ;;  %v16668_v6 = vld [vmem:[%s28127_s1 + $0x25fc] sm:$0xf0]  ;;  %v18825_v14 = vld [vmem:[%s28127_s1 + $0x2574] sm:$0xf] }
 0x2f7   :  { %10189 = vmatpush.bf16.msrb.mxu3 %v16391_v27  ;;  %v16724_v27 = vld [vmem:[%s28127_s1 + $0x266c] sm:$0xf0]  ;;  %v19085_v5 = vld [vmem:[%s28129_s2] sm:$0x7f] }
 0x2f8   :  { %10151 = vmatpush.bf16.msrb.mxu0 %v15691_v48  ;;  %v19021_v48 = vld [vmem:[%s28127_s1 + $0x2b94] sm:$0xf]  ;;  %v16612_v2 = vld [vmem:[%s28127_s1 + $0x258c] sm:$0xf0] }
 0x2f9   :  { %10164 = vmatpush.bf16.msrb.mxu1 %v15915_v59  ;;  %v16307_v59 = vor.u32 %v18748_v34, %v16304_v0  ;;  %v17399_v9 = vor.u32 %v19021_v48, %v17396_v58  ;;  %v1651_v34 = vperm.slane %v19085_v5, 3  ;;  %v17371_v0 = vor.u32 %v19014_v53, %v17368_v61  ;;  %v18888_v48 = vld [vmem:[%s28127_s1 + $0x276c] sm:$0xf] }
 0x2fa   :  { %10177 = vmatpush.bf16.msrb.mxu2 %v16139_v47  ;;  %v16727_v47 = vor.u32 %v18853_v43, %v16724_v27  ;;  %v18951_v43 = vld [vmem:[%s28127_s1 + $0x2964] sm:$0xf]  ;;  %v17116_v27 = vld [vmem:[%s28127_s1 + $0x297c] sm:$0xf0] }
 0x2fb   :  { %10190 = vmatpush.bf16.msrb.mxu3 %v16363_v4  ;;  %v16696_v4 = vld [vmem:[%s28127_s1 + $0x2634] sm:$0xf0]  ;;  %v17119_v56 = vor.u32 %v18951_v43, %v17116_v27  ;;  %v9935_v58 = vadd.f32 %v23979_v21, %v1651_v34  ;;  %v17312_v21 = vld [vmem:[%s28127_s1 + $0x2b04] sm:$0xf0]  ;;  %v16615_v34 = vor.u32 %v18825_v14, %v16612_v2  ;;  %v18818_v43 = vld [vmem:[%s28127_s1 + $0x253c] sm:$0xf] }
 0x2fc   :  { %10152 = vmatpush.bf16.msrb.mxu0 %v15663_v15  ;;  %v9936_v15 = vpop.f32.mrf.mxu3  ;;  %v16584_v27 = vld [vmem:[%s28127_s1 + $0x2554] sm:$0xf0]  ;;  %v16780_v2 = vld [vmem:[%s28127_s1 + $0x26dc] sm:$0xf0] }
 0x2fd   :  { %10165 = vmatpush.bf16.msrb.mxu1 %v15887_v63  ;;  %v16699_v63 = vor.u32 %v18846_v52, %v16696_v4  ;;  %v19000_v52 = vld [vmem:[%s28127_s1 + $0x2aec] sm:$0xf]  ;;  %v18881_v15 = vld [vmem:[%s28127_s1 + $0x2734] sm:$0xf] }
 0x2fe   :  { %10178 = vmatpush.bf16.msrb.mxu2 %v16111_v13  ;;  %v18839_v13 = vld [vmem:[%s28127_s1 + $0x25e4] sm:$0xf] }
 0x2ff   :  { %10191 = vmatpush.bf16.msrb.mxu3 %v16335_v32  ;;  %v18895_v32 = vld [vmem:[%s28127_s1 + $0x27a4] sm:$0xf]  ;;  %v16671_v50 = vor.u32 %v18839_v13, %v16668_v6  ;;  %v16836_v13 = vld [vmem:[%s28127_s1 + $0x274c] sm:$0xf0]  ;;  %v18993_v6 = vld [vmem:[%s28127_s1 + $0x2ab4] sm:$0xf] }
 0x300   :  { %10153 = vmatpush.bf16.msrb.mxu0 %v15635_v17  ;;  %v17340_v17 = vld [vmem:[%s28127_s1 + $0x2b3c] sm:$0xf0]  ;;  %v16895_v51 = vor.u32 %v18895_v32, %v16892_v40  ;;  %v9947_v8 = vpop.f32.mrf.mxu0  ;;  %v17284_v32 = vld [vmem:[%s28127_s1 + $0x2acc] sm:$0xf0] }
 0x301   :  { %10166 = vmatpush.bf16.msrb.mxu1 %v15859_v36  ;;  %v18832_v36 = vld [vmem:[%s28127_s1 + $0x25ac] sm:$0xf]  ;;  %v9948_v53 = vadd.f32 %v9947_v8, %v9935_v58  ;;  %v9960_v61 = vpop.f32.mrf.mxu1  ;;  %v18986_v58 = vld [vmem:[%s28127_s1 + $0x2a7c] sm:$0xf]  ;;  %v16556_v8 = vld [vmem:[%s28127_s1 + $0x251c] sm:$0xf0] }
 0x302   :  { %10179 = vmatpush.bf16.msrb.mxu2 %v16083_v57  ;;  %v16640_v57 = vld [vmem:[%s28127_s1 + $0x25c4] sm:$0xf0] }
 0x303   :  { %10192 = vmatpush.bf16.msrb.mxu3 %v16307_v59  ;;  %10154 = vmatmul.bf16.vlgmr.msrb.gmra.mxu0 %v20223_v46  ;;  %v17343_v59 = vor.u32 %v19007_v24, %v17340_v17  ;;  %v16643_v4 = vor.u32 %v18832_v36, %v16640_v57  ;;  %v9961_v5 = vadd.f32 %v9960_v61, %v9948_v53  ;;  %v18874_v24 = vld [vmem:[%s28127_s1 + $0x26fc] sm:$0xf]  ;;  %v17032_v36 = vld [vmem:[%s28127_s1 + $0x28d4] sm:$0xf0]  ;;  %v17004_v53 = vld [vmem:[%s28127_s1 + $0x289c] sm:$0xf0] }
 0x304   :  { %10198 = vmatpush.bf16.msra.mxu0 %v16727_v47  ;;  %10167 = vmatmul.bf16.vlgmr.msrb.gmra.mxu1 %v20221_v45  ;;  %v16864_v47 = vld [vmem:[%s28127_s1 + $0x2784] sm:$0xf0]  ;;  %v18979_v61 = vld [vmem:[%s28127_s1 + $0x2a44] sm:$0xf] }
 0x305   :  { %10211 = vmatpush.bf16.msra.mxu1 %v16951_v60  ;;  %10180 = vmatmul.bf16.vlgmr.msrb.gmra.mxu2 %v20231_v49  ;;  %v18944_v60 = vld [vmem:[%s28127_s1 + $0x292c] sm:$0xf] }
 0x306   :  { %10224 = vmatpush.bf16.msra.mxu2 %v17175_v62  ;;  %10193 = vmatmul.bf16.vlgmr.msrb.gmra.mxu3 %v20425_v7  ;;  %v17088_v62 = vld [vmem:[%s28127_s1 + $0x2944] sm:$0xf0] }
 0x307   :  { %10237 = vmatpush.bf16.msra.mxu3 %v17399_v9  ;;  %v16867_v9 = vor.u32 %v18888_v48, %v16864_v47  ;;  %v17091_v10 = vor.u32 %v18944_v60, %v17088_v62  ;;  %v16587_v47 = vor.u32 %v18818_v43, %v16584_v27  ;;  %v16976_v27 = vld [vmem:[%s28127_s1 + $0x2864] sm:$0xf0] }
 0x308   :  { %10199 = vmatpush.bf16.msra.mxu0 %v16699_v63  ;;  %v17315_v63 = vor.u32 %v19000_v52, %v17312_v21  ;;  %v9973_v17 = vpop.f32.mrf.mxu2  ;;  %v9949_v62 = vpop.f32.mrf.mxu0 }
 0x309   :  { %10212 = vmatpush.bf16.msra.mxu1 %v16923_v55  ;;  %v18937_v55 = vld [vmem:[%s28127_s1 + $0x28f4] sm:$0xf]  ;;  %v9974_v57 = vadd.f32 %v9973_v17, %v9961_v5  ;;  %v9986_v48 = vpop.f32.mrf.mxu3  ;;  %v18860_v5 = vld [vmem:[%s28127_s1 + $0x268c] sm:$0xf]  ;;  %v17200_v17 = vld [vmem:[%s28127_s1 + $0x2a24] sm:$0xf0] }
 0x30a   :  { %10225 = vmatpush.bf16.msra.mxu2 %v17147_v26  ;;  %v17060_v26 = vld [vmem:[%s28127_s1 + $0x290c] sm:$0xf0] }
 0x30b   :  { %10238 = vmatpush.bf16.msra.mxu3 %v17371_v0  ;;  %v16839_v0 = vor.u32 %v18881_v15, %v16836_v13  ;;  %v17063_v40 = vor.u32 %v18937_v55, %v17060_v26  ;;  %v24151_v60 = vadd.f32 %v9986_v48, %v9974_v57  ;;  %v18923_v15 = vld [vmem:[%s28127_s1 + $0x2884] sm:$0xf]  ;;  %v18804_v55 = vld [vmem:[%s28127_s1 + $0x24cc] sm:$0xf]  ;;  %v16528_v26 = vld [vmem:[%s28127_s1 + $0x24e4] sm:$0xf0] }
 0x30c   :  { %10200 = vmatpush.bf16.msra.mxu0 %v16671_v50  ;;  %v17287_v50 = vor.u32 %v18993_v6, %v17284_v32  ;;  %v17007_v32 = vor.u32 %v18923_v15, %v17004_v53  ;;  %v16531_v57 = vor.u32 %v18804_v55, %v16528_v26  ;;  %v17737_v48 = vld [vmem:[%s28127_s1 + $0x370] sm:$0xf0]  ;;  %v12222_v15 = vld [vmem:[%s28127_s1 + $0x320] sm:$0xf]  ;;  %v17842_v26 = vld [vmem:[%s28127_s1 + $0x6b8] sm:$0xf0] }
 0x30d   :  { %10213 = vmatpush.bf16.msra.mxu1 %v16895_v51  ;;  %v16808_v51 = vld [vmem:[%s28127_s1 + $0x2714] sm:$0xf0]  ;;  %v12670_v55 = vld [vmem:[%s28127_s1 + $0x6a0] sm:$0xf] }
 0x30e   :  { %10226 = vmatpush.bf16.msra.mxu2 %v17119_v56  ;;  %v18930_v56 = vld [vmem:[%s28127_s1 + $0x28bc] sm:$0xf]  ;;  %v16811_v52 = vor.u32 %v18874_v24, %v16808_v51  ;;  %v18972_v24 = vld [vmem:[%s28127_s1 + $0x2a0c] sm:$0xf]  ;;  %v12026_v51 = vld [vmem:[%s28127_s1 + $0x198] sm:$0xf] }
 0x30f   :  { %10239 = vmatpush.bf16.msra.mxu3 %v17343_v59  ;;  %v17256_v59 = vld [vmem:[%s28127_s1 + $0x2a94] sm:$0xf0]  ;;  %v17035_v21 = vor.u32 %v18930_v56, %v17032_v36  ;;  %v17681_v56 = vld [vmem:[%s28127_s1 + $0x1b0] sm:$0xf0] }
 0x310   :  { %10201 = vmatpush.bf16.msra.mxu0 %v16643_v4  ;;  %v18811_v4 = vld [vmem:[%s28127_s1 + $0x2504] sm:$0xf]  ;;  %v17259_v14 = vor.u32 %v18986_v58, %v17256_v59  ;;  %v12250_v36 = vld [vmem:[%s28127_s1 + $0x358] sm:$0xf]  ;;  %v17793_v59 = vld [vmem:[%s28127_s1 + $0x530] sm:$0xf0] }
 0x311   :  { %10214 = vmatpush.bf16.msra.mxu1 %v16867_v9  ;;  %v18867_v9 = vld [vmem:[%s28127_s1 + $0x26c4] sm:$0xf]  ;;  %v16559_v13 = vor.u32 %v18811_v4, %v16556_v8  ;;  %v12474_v58 = vld [vmem:[%s28127_s1 + $0x518] sm:$0xf]  ;;  %v17203_v4 = vor.u32 %v18972_v24, %v17200_v17  ;;  %v12027_v8 = vor.u32 %v17681_v56, %v12026_v51  ;;  %v12418_v24 = vld [vmem:[%s28127_s1 + $0x4a8] sm:$0xf] }
 0x312   :  { %10227 = vmatpush.bf16.msra.mxu2 %v17091_v10  ;;  %v9962_v10 = vpop.f32.mrf.mxu1  ;;  %v16783_v6 = vor.u32 %v18867_v9, %v16780_v2  ;;  %v12251_v9 = vor.u32 %v17737_v48, %v12250_v36  ;;  %v17674_v2 = vld [vmem:[%s28127_s1 + $0x178] sm:$0xf0]  ;;  %v17779_v17 = vld [vmem:[%s28127_s1 + $0x4c0] sm:$0xf0]  ;;  %v11942_v48 = vld [vmem:[%s28127_s1 + $0xf0] sm:$0xf] }
 0x313   :  { %10240 = vmatpush.bf16.msra.mxu3 %v17315_v63  ;;  %v17228_v63 = vld [vmem:[%s28127_s1 + $0x2a5c] sm:$0xf0]  ;;  %v12475_v10 = vor.u32 %v17793_v59, %v12474_v58  ;;  %v17835_v51 = vld [vmem:[%s28127_s1 + $0x680] sm:$0xf0]  ;;  %v17660_v58 = vld [vmem:[%s28127_s1 + $0x108] sm:$0xf0] }
 0x314   :  { %10202 = vmatpush.bf16.msra.mxu0 %v16615_v34  ;;  %v16752_v34 = vld [vmem:[%s28127_s1 + $0x26a4] sm:$0xf0]  ;;  %v17231_v43 = vor.u32 %v18979_v61, %v17228_v63  ;;  %v17730_v61 = vld [vmem:[%s28127_s1 + $0x338] sm:$0xf0]  ;;  %v12446_v63 = vld [vmem:[%s28127_s1 + $0x4e0] sm:$0xf] }
 0x315   :  { %10215 = vmatpush.bf16.msra.mxu1 %v16839_v0  ;;  %v18916_v0 = vld [vmem:[%s28127_s1 + $0x284c] sm:$0xf]  ;;  %v12166_v59 = vld [vmem:[%s28127_s1 + $0x2b0] sm:$0xf] }
 0x316   :  { %10228 = vmatpush.bf16.msra.mxu2 %v17063_v40  ;;  %v9975_v40 = vpop.f32.mrf.mxu2  ;;  %v16979_v62 = vor.u32 %v18916_v0, %v16976_v27  ;;  %v17667_v0 = vld [vmem:[%s28127_s1 + $0x140] sm:$0xf0] }
 0x317   :  { %10241 = vmatpush.bf16.msra.mxu3 %v17287_v50  ;;  %v9988_v50 = vpop.f32.mrf.mxu3  ;;  %v12194_v40 = vld [vmem:[%s28127_s1 + $0x2e8] sm:$0xf]  ;;  %v17723_v27 = vld [vmem:[%s28127_s1 + $0x300] sm:$0xf0] }
 0x318   :  { %10203 = vmatpush.bf16.msra.mxu0 %v16587_v47  ;;  %v16755_v47 = vor.u32 %v18860_v5, %v16752_v34  ;;  %v11970_v34 = vld [vmem:[%s28127_s1 + $0x128] sm:$0xf]  ;;  %v12195_v36 = vor.u32 %v17723_v27, %v12194_v40  ;;  %v11886_v27 = vld [vmem:[%s28127_s1 + $0x80] sm:$0xf] }
 0x319   :  { %10216 = vmatpush.bf16.msra.mxu1 %v16811_v52  ;;  %v12698_v52 = vld [vmem:[%s28127_s1 + $0x6d8] sm:$0xf]  ;;  %v12642_v50 = vld [vmem:[%s28127_s1 + $0x668] sm:$0xf]  ;;  %v11971_v56 = vor.u32 %v17667_v0, %v11970_v34 }
 0x31a   :  { %10229 = vmatpush.bf16.msra.mxu2 %v17035_v21  ;;  %v17849_v21 = vld [vmem:[%s28127_s1 + $0x6f0] sm:$0xf0] }
 0x31b   :  { %10242 = vmatpush.bf16.msra.mxu3 %v17259_v14  ;;  %v11998_v14 = vld [vmem:[%s28127_s1 + $0x160] sm:$0xf]  ;;  %v12699_v53 = vor.u32 %v17849_v21, %v12698_v52  ;;  %v12390_v52 = vld [vmem:[%s28127_s1 + $0x470] sm:$0xf]  ;;  %v17772_v21 = vld [vmem:[%s28127_s1 + $0x488] sm:$0xf0] }
 0x31c   :  { %10204 = vmatpush.bf16.msra.mxu0 %v16559_v13  ;;  %v17786_v13 = vld [vmem:[%s28127_s1 + $0x4f8] sm:$0xf0] }
 0x31d   :  { %10217 = vmatpush.bf16.msra.mxu1 %v16783_v6  ;;  %v11999_v6 = vor.u32 %v17674_v2, %v11998_v14  ;;  %v12447_v5 = vor.u32 %v17786_v13, %v12446_v63  ;;  %v12391_v2 = vor.u32 %v17772_v21, %v12390_v52 }
 0x31e   :  { %10230 = vmatpush.bf16.msra.mxu2 %v17007_v32  ;;  %v12223_v32 = vor.u32 %v17730_v61, %v12222_v15  ;;  %v11914_v15 = vld [vmem:[%s28127_s1 + $0xb8] sm:$0xf] }
 0x31f   :  { %10243 = vmatpush.bf16.msra.mxu3 %v17231_v43  ;;  %v12671_v43 = vor.u32 %v17842_v26, %v12670_v55  ;;  %v12138_v61 = vld [vmem:[%s28127_s1 + $0x278] sm:$0xf]  ;;  %v17709_v26 = vld [vmem:[%s28127_s1 + $0x290] sm:$0xf0] }
 0x320   :  { %10205 = vmatpush.bf16.msra.mxu0 %v16531_v57  ;;  %v12419_v57 = vor.u32 %v17779_v17, %v12418_v24  ;;  %v12139_v40 = vor.u32 %v17709_v26, %v12138_v61  ;;  %v17646_v24 = vld [vmem:[%s28127_s1 + $0x98] sm:$0xf0]  ;;  %v12110_v17 = vld [vmem:[%s28127_s1 + $0x240] sm:$0xf]  ;;  %v12306_v61 = vld [vmem:[%s28127_s1 + $0x3c8] sm:$0xf] }
 0x321   :  { %10218 = vmatpush.bf16.msra.mxu1 %v16755_v47  ;;  %v12643_v47 = vor.u32 %v17835_v51, %v12642_v50  ;;  %v10012_v13 = vpop.f32.mrf.mxu1 }
 0x322   :  { %10231 = vmatpush.bf16.msra.mxu2 %v16979_v62  ;;  %v17716_v62 = vld [vmem:[%s28127_s1 + $0x2c8] sm:$0xf0] }
 0x323   :  { %10244 = vmatpush.bf16.msra.mxu3 %v17203_v4  ;;  %10206 = vmatmul.bf16.vlgmr.msra.gmra.mxu0 %v20438_v12  ;;  %v12614_v4 = vld [vmem:[%s28127_s1 + $0x630] sm:$0xf]  ;;  %v12167_v14 = vor.u32 %v17716_v62, %v12166_v59  ;;  %v12558_v59 = vld [vmem:[%s28127_s1 + $0x5c0] sm:$0xf]  ;;  %v11887_v62 = vor.u32 %v17646_v24, %v11886_v27  ;;  %v17744_v24 = vld [vmem:[%s28127_s1 + $0x3a8] sm:$0xf0] }
 0x324   :  { %10250 = vmatpush.bf16.msrb.mxu0 %v12027_v8  ;;  %10219 = vmatmul.bf16.vlgmr.msra.gmra.mxu1 %v20436_v11  ;;  %v17828_v8 = vld [vmem:[%s28127_s1 + $0x648] sm:$0xf0] }
 0x325   :  { %10263 = vmatpush.bf16.msrb.mxu1 %v12251_v9  ;;  %10232 = vmatmul.bf16.vlgmr.msra.gmra.mxu2 %v20446_v16  ;;  %v11943_v9 = vor.u32 %v17660_v58, %v11942_v48  ;;  %v12615_v55 = vor.u32 %v17828_v8, %v12614_v4 }
 0x326   :  { %10276 = vmatpush.bf16.msrb.mxu2 %v12475_v10  ;;  %10245 = vmatmul.bf16.vlgmr.msra.gmra.mxu3 %v20635_v1  ;;  %v9999_v10 = vpop.f32.mrf.mxu0 }
 0x327   :  { %10289 = vmatpush.bf16.msrb.mxu3 %v12699_v53  ;;  %v17653_v53 = vld [vmem:[%s28127_s1 + $0xd0] sm:$0xf0]  ;;  %v10000_v63 = vadd.f32 %v9999_v10, %v24151_v60  ;;  %v17639_v10 = vld [vmem:[%s28127_s1 + $0x60] sm:$0xf0] }
 0x328   :  { %10251 = vmatpush.bf16.msrb.mxu0 %v11999_v6  ;;  %v12362_v6 = vld [vmem:[%s28127_s1 + $0x438] sm:$0xf]  ;;  %v17821_v60 = vld [vmem:[%s28127_s1 + $0x610] sm:$0xf0]  ;;  %v11915_v0 = vor.u32 %v17653_v53, %v11914_v15  ;;  %v10025_v50 = vpop.f32.mrf.mxu2  ;;  %v17695_v53 = vld [vmem:[%s28127_s1 + $0x220] sm:$0xf0] }
 0x329   :  { %10264 = vmatpush.bf16.msrb.mxu1 %v12223_v32  ;;  %v17765_v32 = vld [vmem:[%s28127_s1 + $0x450] sm:$0xf0]  ;;  %v10013_v34 = vadd.f32 %v10012_v13, %v10000_v63  ;;  %v10038_v58 = vpop.f32.mrf.mxu3  ;;  %v17751_v63 = vld [vmem:[%s28127_s1 + $0x3e0] sm:$0xf0]  ;;  %v12530_v13 = vld [vmem:[%s28127_s1 + $0x588] sm:$0xf] }
 0x32a   :  { %10277 = vmatpush.bf16.msrb.mxu2 %v12447_v5  ;;  %v12586_v5 = vld [vmem:[%s28127_s1 + $0x5f8] sm:$0xf] }
 0x32b   :  { %10290 = vmatpush.bf16.msrb.mxu3 %v12671_v43  ;;  %v12363_v43 = vor.u32 %v17765_v32, %v12362_v6  ;;  %v12587_v51 = vor.u32 %v17821_v60, %v12586_v5  ;;  %v10026_v48 = vadd.f32 %v10025_v50, %v10013_v34  ;;  %v11830_v6 = vld [vmem:[%s28127_s1 + $0x10] sm:$0xf]  ;;  %v17632_v32 = vld [vmem:[%s28127_s1 + $0x28] sm:$0xf0]  ;;  %v12307_v60 = vor.u32 %v17751_v63, %v12306_v61  ;;  %v13118_v61 = vld [vmem:[%s28127_s1 + $0xa20] sm:$0xf] }
 0x32c   :  { %10252 = vmatpush.bf16.msrb.mxu0 %v11971_v56  ;;  %v17702_v56 = vld [vmem:[%s28127_s1 + $0x258] sm:$0xf0]  ;;  %v12054_v34 = vld [vmem:[%s28127_s1 + $0x1d0] sm:$0xf]  ;;  %v17800_v50 = vld [vmem:[%s28127_s1 + $0x568] sm:$0xf0] }
 0x32d   :  { %10265 = vmatpush.bf16.msrb.mxu1 %v12195_v36  ;;  %v12334_v36 = vld [vmem:[%s28127_s1 + $0x400] sm:$0xf]  ;;  %v24350_v52 = vadd.f32 %v10038_v58, %v10026_v48  ;;  %v12111_v4 = vor.u32 %v17702_v56, %v12110_v17  ;;  %v12502_v17 = vld [vmem:[%s28127_s1 + $0x550] sm:$0xf]  ;;  %v12922_v56 = vld [vmem:[%s28127_s1 + $0x898] sm:$0xf]  ;;  %v11831_v48 = vor.u32 %v17632_v32, %v11830_v6 }
 0x32e   :  { %10278 = vmatpush.bf16.msrb.mxu2 %v12419_v57  ;;  %v17758_v57 = vld [vmem:[%s28127_s1 + $0x418] sm:$0xf0]  ;;  %v10001_v21 = vpop.f32.mrf.mxu0  ;;  %v17961_v58 = vld [vmem:[%s28127_s1 + $0xa70] sm:$0xf0]  ;;  %v13566_v6 = vld [vmem:[%s28127_s1 + $0xda0] sm:$0xf] }
 0x32f   :  { %10291 = vmatpush.bf16.msrb.mxu3 %v12643_v47  ;;  %v17814_v47 = vld [vmem:[%s28127_s1 + $0x5d8] sm:$0xf0]  ;;  %v12335_v8 = vor.u32 %v17758_v57, %v12334_v36  ;;  %v17905_v36 = vld [vmem:[%s28127_s1 + $0x8b0] sm:$0xf0]  ;;  %v13146_v57 = vld [vmem:[%s28127_s1 + $0xa58] sm:$0xf] }
 0x330   :  { %10253 = vmatpush.bf16.msrb.mxu0 %v11943_v9  ;;  %v11858_v9 = vld [vmem:[%s28127_s1 + $0x48] sm:$0xf]  ;;  %v12559_v15 = vor.u32 %v17814_v47, %v12558_v59  ;;  %v13370_v59 = vld [vmem:[%s28127_s1 + $0xc18] sm:$0xf]  ;;  %v18017_v47 = vld [vmem:[%s28127_s1 + $0xc30] sm:$0xf0] }
 0x331   :  { %10266 = vmatpush.bf16.msrb.mxu1 %v12167_v14  ;;  %v12082_v14 = vld [vmem:[%s28127_s1 + $0x208] sm:$0xf]  ;;  %v11859_v26 = vor.u32 %v17639_v10, %v11858_v9  ;;  %v12503_v9 = vor.u32 %v17800_v50, %v12502_v17  ;;  %v12923_v10 = vor.u32 %v17905_v36, %v12922_v56  ;;  %v18066_v32 = vld [vmem:[%s28127_s1 + $0xdb8] sm:$0xf0]  ;;  %v18003_v50 = vld [vmem:[%s28127_s1 + $0xbc0] sm:$0xf0] }
 0x332   :  { %10279 = vmatpush.bf16.msrb.mxu2 %v12391_v2  ;;  %v10014_v2 = vpop.f32.mrf.mxu1  ;;  %v12083_v5 = vor.u32 %v17695_v53, %v12082_v14  ;;  %v13147_v14 = vor.u32 %v17961_v58, %v13146_v57  ;;  %v17898_v53 = vld [vmem:[%s28127_s1 + $0x878] sm:$0xf0]  ;;  %v13314_v17 = vld [vmem:[%s28127_s1 + $0xba8] sm:$0xf]  ;;  %v18059_v56 = vld [vmem:[%s28127_s1 + $0xd80] sm:$0xf0] }
 0x333   :  { %10292 = vmatpush.bf16.msrb.mxu3 %v12615_v55  ;;  %v17807_v55 = vld [vmem:[%s28127_s1 + $0x5a0] sm:$0xf0]  ;;  %v13371_v2 = vor.u32 %v18017_v47, %v13370_v59  ;;  %v12838_v58 = vld [vmem:[%s28127_s1 + $0x7f0] sm:$0xf]  ;;  %v17884_v59 = vld [vmem:[%s28127_s1 + $0x808] sm:$0xf0] }
 0x334   :  { %10254 = vmatpush.bf16.msrb.mxu0 %v11915_v0  ;;  %v17688_v0 = vld [vmem:[%s28127_s1 + $0x1e8] sm:$0xf0]  ;;  %v12531_v27 = vor.u32 %v17807_v55, %v12530_v13  ;;  %v17954_v13 = vld [vmem:[%s28127_s1 + $0xa38] sm:$0xf0]  ;;  %v13342_v55 = vld [vmem:[%s28127_s1 + $0xbe0] sm:$0xf] }
 0x335   :  { %10267 = vmatpush.bf16.msrb.mxu1 %v12139_v40  ;;  %v12278_v40 = vld [vmem:[%s28127_s1 + $0x390] sm:$0xf] }
 0x336   :  { %10280 = vmatpush.bf16.msrb.mxu2 %v12363_v43  ;;  %v10027_v43 = vpop.f32.mrf.mxu2  ;;  %v12279_v21 = vor.u32 %v17744_v24, %v12278_v40  ;;  %v17891_v40 = vld [vmem:[%s28127_s1 + $0x840] sm:$0xf0]  ;;  %v13062_v47 = vld [vmem:[%s28127_s1 + $0x9b0] sm:$0xf] }
 0x337   :  { %10293 = vmatpush.bf16.msrb.mxu3 %v12587_v51  ;;  %v10040_v51 = vpop.f32.mrf.mxu3  ;;  %v13090_v43 = vld [vmem:[%s28127_s1 + $0x9e8] sm:$0xf]  ;;  %v17947_v24 = vld [vmem:[%s28127_s1 + $0xa00] sm:$0xf0] }
 0x338   :  { %10255 = vmatpush.bf16.msrb.mxu0 %v11887_v62  ;;  %v12055_v62 = vor.u32 %v17688_v0, %v12054_v34  ;;  %v12866_v0 = vld [vmem:[%s28127_s1 + $0x828] sm:$0xf]  ;;  %v13091_v57 = vor.u32 %v17947_v24, %v13090_v43  ;;  %v12782_v24 = vld [vmem:[%s28127_s1 + $0x780] sm:$0xf] }
 0x339   :  { %10268 = vmatpush.bf16.msrb.mxu1 %v12111_v4  ;;  %v13594_v4 = vld [vmem:[%s28127_s1 + $0xdd8] sm:$0xf]  ;;  %v13538_v51 = vld [vmem:[%s28127_s1 + $0xd68] sm:$0xf]  ;;  %v12867_v36 = vor.u32 %v17891_v40, %v12866_v0  ;;  %v18045_v0 = vld [vmem:[%s28127_s1 + $0xd10] sm:$0xf0] }
 0x33a   :  { %10281 = vmatpush.bf16.msrb.mxu2 %v12335_v8  ;;  %v18073_v8 = vld [vmem:[%s28127_s1 + $0xdf0] sm:$0xf0] }
 0x33b   :  { %10294 = vmatpush.bf16.msrb.mxu3 %v12559_v15  ;;  %v12894_v15 = vld [vmem:[%s28127_s1 + $0x860] sm:$0xf]  ;;  %v13595_v63 = vor.u32 %v18073_v8, %v13594_v4  ;;  %v13286_v4 = vld [vmem:[%s28127_s1 + $0xb70] sm:$0xf]  ;;  %v17996_v8 = vld [vmem:[%s28127_s1 + $0xb88] sm:$0xf0] }
 0x33c   :  { %10256 = vmatpush.bf16.msrb.mxu0 %v11859_v26  ;;  %v18010_v26 = vld [vmem:[%s28127_s1 + $0xbf8] sm:$0xf0] }
 0x33d   :  { %10269 = vmatpush.bf16.msrb.mxu1 %v12083_v5  ;;  %v12895_v5 = vor.u32 %v17898_v53, %v12894_v15  ;;  %v13343_v34 = vor.u32 %v18010_v26, %v13342_v55  ;;  %v12839_v15 = vor.u32 %v17884_v59, %v12838_v58  ;;  %v17877_v55 = vld [vmem:[%s28127_s1 + $0x7d0] sm:$0xf0]  ;;  %v13034_v26 = vld [vmem:[%s28127_s1 + $0x978] sm:$0xf] }
 0x33e   :  { %10282 = vmatpush.bf16.msrb.mxu2 %v12307_v60  ;;  %v13119_v60 = vor.u32 %v17954_v13, %v13118_v61  ;;  %v12810_v13 = vld [vmem:[%s28127_s1 + $0x7b8] sm:$0xf] }
 0x33f   :  { %10295 = vmatpush.bf16.msrb.mxu3 %v12531_v27  ;;  %v13567_v27 = vor.u32 %v18066_v32, %v13566_v6  ;;  %v17933_v32 = vld [vmem:[%s28127_s1 + $0x990] sm:$0xf0]  ;;  %v12811_v40 = vor.u32 %v17877_v55, %v12810_v13  ;;  %v13202_v13 = vld [vmem:[%s28127_s1 + $0xac8] sm:$0xf]  ;;  %v17975_v55 = vld [vmem:[%s28127_s1 + $0xae0] sm:$0xf0] }
 0x340   :  { %10257 = vmatpush.bf16.msrb.mxu0 %v11831_v48  ;;  %v13315_v48 = vor.u32 %v18003_v50, %v13314_v17  ;;  %v13035_v43 = vor.u32 %v17933_v32, %v13034_v26  ;;  %v17870_v17 = vld [vmem:[%s28127_s1 + $0x798] sm:$0xf0]  ;;  %v13006_v50 = vld [vmem:[%s28127_s1 + $0x940] sm:$0xf]  ;;  %v13426_v26 = vld [vmem:[%s28127_s1 + $0xc88] sm:$0xf] }
 0x341   :  { %10270 = vmatpush.bf16.msrb.mxu1 %v12055_v62  ;;  %v13539_v62 = vor.u32 %v18059_v56, %v13538_v51  ;;  %v10064_v53 = vpop.f32.mrf.mxu1  ;;  %v12726_v32 = vld [vmem:[%s28127_s1 + $0x710] sm:$0xf] }
 0x342   :  { %10283 = vmatpush.bf16.msrb.mxu2 %v12279_v21  ;;  %v17940_v21 = vld [vmem:[%s28127_s1 + $0x9c8] sm:$0xf0] }
 0x343   :  { %10296 = vmatpush.bf16.msrb.mxu3 %v12503_v9  ;;  %10258 = vmatmul.bf16.vlgmr.msrb.gmra.mxu0 %v19435_v19  ;;  %v10051_v9 = vpop.f32.mrf.mxu0  ;;  %v13063_v61 = vor.u32 %v17940_v21, %v13062_v47  ;;  %v13454_v47 = vld [vmem:[%s28127_s1 + $0xcc0] sm:$0xf] }
 0x344   :  { %10302 = vmatpush.bf16.msra.mxu0 %v12923_v10  ;;  %10271 = vmatmul.bf16.vlgmr.msrb.gmra.mxu1 %v19439_v22  ;;  %v13510_v10 = vld [vmem:[%s28127_s1 + $0xd30] sm:$0xf] }
 0x345   :  { %10315 = vmatpush.bf16.msra.mxu1 %v13147_v14  ;;  %10284 = vmatmul.bf16.vlgmr.msrb.gmra.mxu2 %v19433_v18  ;;  %v18052_v14 = vld [vmem:[%s28127_s1 + $0xd48] sm:$0xf0] }
 0x346   :  { %10328 = vmatpush.bf16.msra.mxu2 %v13371_v2  ;;  %10297 = vmatmul.bf16.vlgmr.msrb.gmra.mxu3 %v19437_v20  ;;  %v10052_v2 = vadd.f32 %v10051_v9, %v24350_v52  ;;  %v13511_v52 = vor.u32 %v18052_v14, %v13510_v10 }
 0x347   :  { %10341 = vmatpush.bf16.msra.mxu3 %v13595_v63  ;;  %v13287_v63 = vor.u32 %v17996_v8, %v13286_v4  ;;  %v12783_v4 = vor.u32 %v17870_v17, %v12782_v24  ;;  %v17968_v24 = vld [vmem:[%s28127_s1 + $0xaa8] sm:$0xf0]  ;;  %v13398_v17 = vld [vmem:[%s28127_s1 + $0xc50] sm:$0xf] }
 0x348   :  { %10303 = vmatpush.bf16.msra.mxu0 %v12895_v5  ;;  %v10065_v6 = vadd.f32 %v10064_v53, %v10052_v2  ;;  %v13258_v5 = vld [vmem:[%s28127_s1 + $0xb38] sm:$0xf]  ;;  %v10077_v56 = vpop.f32.mrf.mxu2  ;;  %v12754_v2 = vld [vmem:[%s28127_s1 + $0x748] sm:$0xf] }
 0x349   :  { %10316 = vmatpush.bf16.msra.mxu1 %v13119_v60  ;;  %v17989_v60 = vld [vmem:[%s28127_s1 + $0xb50] sm:$0xf0]  ;;  %v10090_v59 = vpop.f32.mrf.mxu3  ;;  %v10066_v8 = vpop.f32.mrf.mxu1  ;;  %v12978_v53 = vld [vmem:[%s28127_s1 + $0x908] sm:$0xf] }
 0x34a   :  { %10329 = vmatpush.bf16.msra.mxu2 %v13343_v34  ;;  %v13482_v34 = vld [vmem:[%s28127_s1 + $0xcf8] sm:$0xf]  ;;  %v10078_v58 = vadd.f32 %v10077_v56, %v10065_v6 }
 0x34b   :  { %10342 = vmatpush.bf16.msra.mxu3 %v13567_v27  ;;  %v13259_v27 = vor.u32 %v17989_v60, %v13258_v5  ;;  %v13483_v51 = vor.u32 %v18045_v0, %v13482_v34  ;;  %v10053_v21 = vpop.f32.mrf.mxu0  ;;  %v17856_v5 = vld [vmem:[%s28127_s1 + $0x728] sm:$0xf0]  ;;  %v13203_v34 = vor.u32 %v17975_v55, %v13202_v13  ;;  %v12950_v0 = vld [vmem:[%s28127_s1 + $0x8d0] sm:$0xf]  ;;  %v13818_v56 = vld [vmem:[%s28127_s1 + $0xf98] sm:$0xf] }
 0x34c   :  { %10304 = vmatpush.bf16.msra.mxu0 %v12867_v36  ;;  %v17926_v36 = vld [vmem:[%s28127_s1 + $0x958] sm:$0xf0]  ;;  %v24549_v9 = vadd.f32 %v10090_v59, %v10078_v58  ;;  %v12727_v58 = vor.u32 %v17856_v5, %v12726_v32  ;;  %v18185_v59 = vld [vmem:[%s28127_s1 + $0x1170] sm:$0xf0]  ;;  %v14490_v8 = vld [vmem:[%s28127_s1 + $0x14d8] sm:$0xf] }
 0x34d   :  { %10317 = vmatpush.bf16.msra.mxu1 %v13091_v57  ;;  %v13230_v57 = vld [vmem:[%s28127_s1 + $0xb00] sm:$0xf]  ;;  %v13007_v10 = vor.u32 %v17926_v36, %v13006_v50  ;;  %v18024_v50 = vld [vmem:[%s28127_s1 + $0xc68] sm:$0xf0]  ;;  %v18129_v36 = vld [vmem:[%s28127_s1 + $0xfb0] sm:$0xf0] }
 0x34e   :  { %10330 = vmatpush.bf16.msra.mxu2 %v13315_v48  ;;  %v17982_v48 = vld [vmem:[%s28127_s1 + $0xb18] sm:$0xf0]  ;;  %v14014_v13 = vld [vmem:[%s28127_s1 + $0x1120] sm:$0xf] }
 0x34f   :  { %10343 = vmatpush.bf16.msra.mxu3 %v13539_v62  ;;  %v18038_v62 = vld [vmem:[%s28127_s1 + $0xcd8] sm:$0xf0]  ;;  %v13231_v14 = vor.u32 %v17982_v48, %v13230_v57  ;;  %v14042_v57 = vld [vmem:[%s28127_s1 + $0x1158] sm:$0xf]  ;;  %v14462_v32 = vld [vmem:[%s28127_s1 + $0x14a0] sm:$0xf] }
 0x350   :  { %10305 = vmatpush.bf16.msra.mxu0 %v12839_v15  ;;  %v17863_v15 = vld [vmem:[%s28127_s1 + $0x760] sm:$0xf0]  ;;  %v18290_v5 = vld [vmem:[%s28127_s1 + $0x14b8] sm:$0xf0] }
 0x351   :  { %10318 = vmatpush.bf16.msra.mxu1 %v13063_v61  ;;  %v13455_v61 = vor.u32 %v18038_v62, %v13454_v47  ;;  %v12755_v6 = vor.u32 %v17863_v15, %v12754_v2  ;;  %v10092_v48 = vpop.f32.mrf.mxu3  ;;  %v14266_v47 = vld [vmem:[%s28127_s1 + $0x1318] sm:$0xf]  ;;  %v18241_v62 = vld [vmem:[%s28127_s1 + $0x1330] sm:$0xf0]  ;;  %v13819_v2 = vor.u32 %v18129_v36, %v13818_v56  ;;  %v14043_v15 = vor.u32 %v18185_v59, %v14042_v57  ;;  %v14434_v56 = vld [vmem:[%s28127_s1 + $0x1468] sm:$0xf] }
 0x352   :  { %10331 = vmatpush.bf16.msra.mxu2 %v13287_v63  ;;  %v17919_v63 = vld [vmem:[%s28127_s1 + $0x920] sm:$0xf0]  ;;  %v13734_v59 = vld [vmem:[%s28127_s1 + $0xef0] sm:$0xf] }
 0x353   :  { %10344 = vmatpush.bf16.msra.mxu3 %v13511_v52  ;;  %v18031_v52 = vld [vmem:[%s28127_s1 + $0xca0] sm:$0xf0]  ;;  %v12979_v60 = vor.u32 %v17919_v63, %v12978_v53  ;;  %v14267_v53 = vor.u32 %v18241_v62, %v14266_v47  ;;  %v18122_v63 = vld [vmem:[%s28127_s1 + $0xf78] sm:$0xf0]  ;;  %v18108_v47 = vld [vmem:[%s28127_s1 + $0xf08] sm:$0xf0] }
 0x354   :  { %10306 = vmatpush.bf16.msra.mxu0 %v12811_v40  ;;  %v17912_v40 = vld [vmem:[%s28127_s1 + $0x8e8] sm:$0xf0]  ;;  %v18283_v36 = vld [vmem:[%s28127_s1 + $0x1480] sm:$0xf0]  ;;  %v13958_v62 = vld [vmem:[%s28127_s1 + $0x10b0] sm:$0xf] }
 0x355   :  { %10319 = vmatpush.bf16.msra.mxu1 %v13035_v43  ;;  %v13174_v43 = vld [vmem:[%s28127_s1 + $0xa90] sm:$0xf]  ;;  %v12951_v21 = vor.u32 %v17912_v40, %v12950_v0  ;;  %v13762_v40 = vld [vmem:[%s28127_s1 + $0xf28] sm:$0xf] }
 0x356   :  { %10332 = vmatpush.bf16.msra.mxu2 %v13259_v27  ;;  %v13427_v27 = vor.u32 %v18031_v52, %v13426_v26  ;;  %v18178_v26 = vld [vmem:[%s28127_s1 + $0x1138] sm:$0xf0]  ;;  %v14238_v52 = vld [vmem:[%s28127_s1 + $0x12e0] sm:$0xf] }
 0x357   :  { %10345 = vmatpush.bf16.msra.mxu3 %v13483_v51  ;;  %v10079_v51 = vpop.f32.mrf.mxu2 }
 0x358   :  { %10307 = vmatpush.bf16.msra.mxu0 %v12783_v4  ;;  %v13175_v4 = vor.u32 %v17968_v24, %v13174_v43  ;;  %v18115_v43 = vld [vmem:[%s28127_s1 + $0xf40] sm:$0xf0]  ;;  %v14463_v24 = vor.u32 %v18290_v5, %v14462_v32  ;;  %v18157_v5 = vld [vmem:[%s28127_s1 + $0x1090] sm:$0xf0] }
 0x359   :  { %10320 = vmatpush.bf16.msra.mxu1 %v13007_v10  ;;  %v18297_v10 = vld [vmem:[%s28127_s1 + $0x14f0] sm:$0xf0]  ;;  %v18227_v51 = vld [vmem:[%s28127_s1 + $0x12c0] sm:$0xf0]  ;;  %v13763_v57 = vor.u32 %v18115_v43, %v13762_v40 }
 0x35a   :  { %10333 = vmatpush.bf16.msra.mxu2 %v13231_v14  ;;  %v13399_v14 = vor.u32 %v18024_v50, %v13398_v17  ;;  %v14491_v55 = vor.u32 %v18297_v10, %v14490_v8  ;;  %v18171_v17 = vld [vmem:[%s28127_s1 + $0x1100] sm:$0xf0]  ;;  %v14210_v50 = vld [vmem:[%s28127_s1 + $0x12a8] sm:$0xf]  ;;  %v14182_v8 = vld [vmem:[%s28127_s1 + $0x1270] sm:$0xf] }
 0x35b   :  { %10346 = vmatpush.bf16.msra.mxu3 %v13455_v61  ;;  %v13790_v61 = vld [vmem:[%s28127_s1 + $0xf60] sm:$0xf]  ;;  %v18220_v10 = vld [vmem:[%s28127_s1 + $0x1288] sm:$0xf0]  ;;  %v18269_v40 = vld [vmem:[%s28127_s1 + $0x1410] sm:$0xf0] }
 0x35c   :  { %10308 = vmatpush.bf16.msra.mxu0 %v12755_v6  ;;  %v18234_v6 = vld [vmem:[%s28127_s1 + $0x12f8] sm:$0xf0] }
 0x35d   :  { %10321 = vmatpush.bf16.msra.mxu1 %v12979_v60  ;;  %v13791_v60 = vor.u32 %v18122_v63, %v13790_v61  ;;  %v14239_v0 = vor.u32 %v18234_v6, %v14238_v52  ;;  %v13735_v61 = vor.u32 %v18108_v47, %v13734_v59  ;;  %v18101_v52 = vld [vmem:[%s28127_s1 + $0xed0] sm:$0xf0]  ;;  %v13930_v6 = vld [vmem:[%s28127_s1 + $0x1078] sm:$0xf] }
 0x35e   :  { %10334 = vmatpush.bf16.msra.mxu2 %v13203_v34  ;;  %v14015_v34 = vor.u32 %v18178_v26, %v14014_v13  ;;  %v13706_v26 = vld [vmem:[%s28127_s1 + $0xeb8] sm:$0xf] }
 0x35f   :  { %10347 = vmatpush.bf16.msra.mxu3 %v13427_v27  ;;  %v13986_v27 = vld [vmem:[%s28127_s1 + $0x10e8] sm:$0xf]  ;;  %v13707_v43 = vor.u32 %v18101_v52, %v13706_v26  ;;  %v18199_v52 = vld [vmem:[%s28127_s1 + $0x11e0] sm:$0xf0] }
 0x360   :  { %10309 = vmatpush.bf16.msra.mxu0 %v12727_v58  ;;  %v13987_v48 = vor.u32 %v18171_v17, %v13986_v27  ;;  %v14211_v58 = vor.u32 %v18227_v51, %v14210_v50  ;;  %v13931_v27 = vor.u32 %v18157_v5, %v13930_v6  ;;  %v13678_v17 = vld [vmem:[%s28127_s1 + $0xe80] sm:$0xf]  ;;  %v18094_v50 = vld [vmem:[%s28127_s1 + $0xe98] sm:$0xf0]  ;;  %v14098_v26 = vld [vmem:[%s28127_s1 + $0x11c8] sm:$0xf] }
 0x361   :  { %10322 = vmatpush.bf16.msra.mxu1 %v12951_v21  ;;  %v14435_v21 = vor.u32 %v18283_v36, %v14434_v56  ;;  %v10116_v63 = vpop.f32.mrf.mxu1  ;;  %v13902_v51 = vld [vmem:[%s28127_s1 + $0x1040] sm:$0xf]  ;;  %v14322_v6 = vld [vmem:[%s28127_s1 + $0x1388] sm:$0xf]  ;;  %v13622_v5 = vld [vmem:[%s28127_s1 + $0xe10] sm:$0xf] }
 0x362   :  { %10335 = vmatpush.bf16.msra.mxu2 %v13175_v4  ;;  %v18164_v4 = vld [vmem:[%s28127_s1 + $0x10c8] sm:$0xf0] }
 0x363   :  { %10348 = vmatpush.bf16.msra.mxu3 %v13399_v14  ;;  %10310 = vmatmul.bf16.vlgmr.msra.gmra.mxu0 %v19597_v41  ;;  %v10103_v14 = vpop.f32.mrf.mxu0  ;;  %v13959_v13 = vor.u32 %v18164_v4, %v13958_v62  ;;  %v14350_v62 = vld [vmem:[%s28127_s1 + $0x13c0] sm:$0xf] }
 0x364   :  { %10354 = vmatpush.bf16.msrb.mxu0 %v13819_v2  ;;  %10323 = vmatmul.bf16.vlgmr.msra.gmra.mxu1 %v19601_v44  ;;  %v14406_v2 = vld [vmem:[%s28127_s1 + $0x1430] sm:$0xf] }
 0x365   :  { %10367 = vmatpush.bf16.msrb.mxu1 %v14043_v15  ;;  %10336 = vmatmul.bf16.vlgmr.msra.gmra.mxu2 %v19589_v38  ;;  %v18276_v15 = vld [vmem:[%s28127_s1 + $0x1448] sm:$0xf0] }
 0x366   :  { %10380 = vmatpush.bf16.msrb.mxu2 %v14267_v53  ;;  %10349 = vmatmul.bf16.vlgmr.msra.gmra.mxu3 %v19599_v42  ;;  %v10104_v53 = vadd.f32 %v10103_v14, %v24549_v9  ;;  %v14407_v9 = vor.u32 %v18276_v15, %v14406_v2 }
 0x367   :  { %10393 = vmatpush.bf16.msrb.mxu3 %v14491_v55  ;;  %v14183_v55 = vor.u32 %v18220_v10, %v14182_v8  ;;  %v13679_v8 = vor.u32 %v18094_v50, %v13678_v17  ;;  %v18192_v17 = vld [vmem:[%s28127_s1 + $0x11a8] sm:$0xf0]  ;;  %v14294_v50 = vld [vmem:[%s28127_s1 + $0x1350] sm:$0xf] }
 0x368   :  { %10355 = vmatpush.bf16.msrb.mxu0 %v13791_v60  ;;  %v10117_v32 = vadd.f32 %v10116_v63, %v10104_v53  ;;  %v14154_v60 = vld [vmem:[%s28127_s1 + $0x1238] sm:$0xf]  ;;  %v10129_v36 = vpop.f32.mrf.mxu2  ;;  %v13650_v53 = vld [vmem:[%s28127_s1 + $0xe48] sm:$0xf] }
 0x369   :  { %10368 = vmatpush.bf16.msrb.mxu1 %v14015_v34  ;;  %v18213_v34 = vld [vmem:[%s28127_s1 + $0x1250] sm:$0xf0]  ;;  %v10142_v47 = vpop.f32.mrf.mxu3  ;;  %v10118_v10 = vpop.f32.mrf.mxu1  ;;  %v13874_v63 = vld [vmem:[%s28127_s1 + $0x1008] sm:$0xf] }
 0x36a   :  { %10381 = vmatpush.bf16.msrb.mxu2 %v14239_v0  ;;  %v14378_v0 = vld [vmem:[%s28127_s1 + $0x13f8] sm:$0xf]  ;;  %v10130_v59 = vadd.f32 %v10129_v36, %v10117_v32 }
 0x36b   :  { %10394 = vmatpush.bf16.msrb.mxu3 %v14463_v24  ;;  %v14155_v24 = vor.u32 %v18213_v34, %v14154_v60  ;;  %v14379_v56 = vor.u32 %v18269_v40, %v14378_v0  ;;  %v10105_v4 = vpop.f32.mrf.mxu0  ;;  %v18080_v60 = vld [vmem:[%s28127_s1 + $0xe28] sm:$0xf0]  ;;  %v14099_v0 = vor.u32 %v18199_v52, %v14098_v26  ;;  %v13846_v40 = vld [vmem:[%s28127_s1 + $0xfd0] sm:$0xf]  ;;  %v14714_v36 = vld [vmem:[%s28127_s1 + $0x1698] sm:$0xf] }
 0x36c   :  { %10356 = vmatpush.bf16.msrb.mxu0 %v13763_v57  ;;  %v18150_v57 = vld [vmem:[%s28127_s1 + $0x1058] sm:$0xf0]  ;;  %v24748_v14 = vadd.f32 %v10142_v47, %v10130_v59  ;;  %v13623_v59 = vor.u32 %v18080_v60, %v13622_v5  ;;  %v18409_v47 = vld [vmem:[%s28127_s1 + $0x1870] sm:$0xf0]  ;;  %v15386_v10 = vld [vmem:[%s28127_s1 + $0x1bd8] sm:$0xf] }
 0x36d   :  { %10369 = vmatpush.bf16.msrb.mxu1 %v13987_v48  ;;  %v14126_v48 = vld [vmem:[%s28127_s1 + $0x1200] sm:$0xf]  ;;  %v13903_v2 = vor.u32 %v18150_v57, %v13902_v51  ;;  %v18248_v51 = vld [vmem:[%s28127_s1 + $0x1368] sm:$0xf0]  ;;  %v18353_v57 = vld [vmem:[%s28127_s1 + $0x16b0] sm:$0xf0] }
 0x36e   :  { %10382 = vmatpush.bf16.msrb.mxu2 %v14211_v58  ;;  %v18206_v58 = vld [vmem:[%s28127_s1 + $0x1218] sm:$0xf0]  ;;  %v14910_v26 = vld [vmem:[%s28127_s1 + $0x1820] sm:$0xf] }
 0x36f   :  { %10395 = vmatpush.bf16.msrb.mxu3 %v14435_v21  ;;  %v18262_v21 = vld [vmem:[%s28127_s1 + $0x13d8] sm:$0xf0]  ;;  %v14127_v15 = vor.u32 %v18206_v58, %v14126_v48  ;;  %v14938_v48 = vld [vmem:[%s28127_s1 + $0x1858] sm:$0xf]  ;;  %v15358_v5 = vld [vmem:[%s28127_s1 + $0x1ba0] sm:$0xf] }
 0x370   :  { %10357 = vmatpush.bf16.msrb.mxu0 %v13735_v61  ;;  %v18087_v61 = vld [vmem:[%s28127_s1 + $0xe60] sm:$0xf0]  ;;  %v18514_v60 = vld [vmem:[%s28127_s1 + $0x1bb8] sm:$0xf0] }
 0x371   :  { %10370 = vmatpush.bf16.msrb.mxu1 %v13959_v13  ;;  %v14351_v13 = vor.u32 %v18262_v21, %v14350_v62  ;;  %v13651_v32 = vor.u32 %v18087_v61, %v13650_v53  ;;  %v10144_v58 = vpop.f32.mrf.mxu3  ;;  %v15162_v62 = vld [vmem:[%s28127_s1 + $0x1a18] sm:$0xf]  ;;  %v18465_v21 = vld [vmem:[%s28127_s1 + $0x1a30] sm:$0xf0]  ;;  %v14715_v53 = vor.u32 %v18353_v57, %v14714_v36  ;;  %v14939_v61 = vor.u32 %v18409_v47, %v14938_v48  ;;  %v15330_v36 = vld [vmem:[%s28127_s1 + $0x1b68] sm:$0xf] }
 0x372   :  { %10383 = vmatpush.bf16.msrb.mxu2 %v14183_v55  ;;  %v18143_v55 = vld [vmem:[%s28127_s1 + $0x1020] sm:$0xf0]  ;;  %v14630_v47 = vld [vmem:[%s28127_s1 + $0x15f0] sm:$0xf] }
 0x373   :  { %10396 = vmatpush.bf16.msrb.mxu3 %v14407_v9  ;;  %v18255_v9 = vld [vmem:[%s28127_s1 + $0x13a0] sm:$0xf0]  ;;  %v13875_v34 = vor.u32 %v18143_v55, %v13874_v63  ;;  %v15163_v63 = vor.u32 %v18465_v21, %v15162_v62  ;;  %v18346_v55 = vld [vmem:[%s28127_s1 + $0x1678] sm:$0xf0]  ;;  %v18332_v62 = vld [vmem:[%s28127_s1 + $0x1608] sm:$0xf0] }
 0x374   :  { %10358 = vmatpush.bf16.msrb.mxu0 %v13707_v43  ;;  %v18136_v43 = vld [vmem:[%s28127_s1 + $0xfe8] sm:$0xf0]  ;;  %v18507_v57 = vld [vmem:[%s28127_s1 + $0x1b80] sm:$0xf0]  ;;  %v14854_v21 = vld [vmem:[%s28127_s1 + $0x17b0] sm:$0xf] }
 0x375   :  { %10371 = vmatpush.bf16.msrb.mxu1 %v13931_v27  ;;  %v14070_v27 = vld [vmem:[%s28127_s1 + $0x1190] sm:$0xf]  ;;  %v13847_v4 = vor.u32 %v18136_v43, %v13846_v40  ;;  %v14658_v43 = vld [vmem:[%s28127_s1 + $0x1628] sm:$0xf] }
 0x376   :  { %10384 = vmatpush.bf16.msrb.mxu2 %v14155_v24  ;;  %v14323_v24 = vor.u32 %v18255_v9, %v14322_v6  ;;  %v18402_v6 = vld [vmem:[%s28127_s1 + $0x1838] sm:$0xf0]  ;;  %v15134_v9 = vld [vmem:[%s28127_s1 + $0x19e0] sm:$0xf] }
 0x377   :  { %10397 = vmatpush.bf16.msrb.mxu3 %v14379_v56  ;;  %v10131_v56 = vpop.f32.mrf.mxu2 }
 0x378   :  { %10359 = vmatpush.bf16.msrb.mxu0 %v13679_v8  ;;  %v14071_v8 = vor.u32 %v18192_v17, %v14070_v27  ;;  %v18339_v27 = vld [vmem:[%s28127_s1 + $0x1640] sm:$0xf0]  ;;  %v15359_v17 = vor.u32 %v18514_v60, %v15358_v5  ;;  %v18381_v60 = vld [vmem:[%s28127_s1 + $0x1790] sm:$0xf0] }
 0x379   :  { %10372 = vmatpush.bf16.msrb.mxu1 %v13903_v2  ;;  %v18521_v2 = vld [vmem:[%s28127_s1 + $0x1bf0] sm:$0xf0]  ;;  %v18451_v56 = vld [vmem:[%s28127_s1 + $0x19c0] sm:$0xf0]  ;;  %v14659_v48 = vor.u32 %v18339_v27, %v14658_v43 }
 0x37a   :  { %10385 = vmatpush.bf16.msrb.mxu2 %v14127_v15  ;;  %v14295_v15 = vor.u32 %v18248_v51, %v14294_v50  ;;  %v15387_v52 = vor.u32 %v18521_v2, %v15386_v10  ;;  %v18395_v50 = vld [vmem:[%s28127_s1 + $0x1800] sm:$0xf0]  ;;  %v15106_v51 = vld [vmem:[%s28127_s1 + $0x19a8] sm:$0xf]  ;;  %v15078_v10 = vld [vmem:[%s28127_s1 + $0x1970] sm:$0xf] }
 0x37b   :  { %10398 = vmatpush.bf16.msrb.mxu3 %v14351_v13  ;;  %v14686_v13 = vld [vmem:[%s28127_s1 + $0x1660] sm:$0xf]  ;;  %v18444_v2 = vld [vmem:[%s28127_s1 + $0x1988] sm:$0xf0]  ;;  %v18493_v43 = vld [vmem:[%s28127_s1 + $0x1b10] sm:$0xf0] }
 0x37c   :  { %10360 = vmatpush.bf16.msrb.mxu0 %v13651_v32  ;;  %v18458_v32 = vld [vmem:[%s28127_s1 + $0x19f8] sm:$0xf0] }
 0x37d   :  { %10373 = vmatpush.bf16.msrb.mxu1 %v13875_v34  ;;  %v14687_v34 = vor.u32 %v18346_v55, %v14686_v13  ;;  %v15135_v40 = vor.u32 %v18458_v32, %v15134_v9  ;;  %v14631_v13 = vor.u32 %v18332_v62, %v14630_v47  ;;  %v18325_v9 = vld [vmem:[%s28127_s1 + $0x15d0] sm:$0xf0]  ;;  %v14826_v32 = vld [vmem:[%s28127_s1 + $0x1778] sm:$0xf] }
 0x37e   :  { %10386 = vmatpush.bf16.msrb.mxu2 %v14099_v0  ;;  %v14911_v0 = vor.u32 %v18402_v6, %v14910_v26  ;;  %v14602_v6 = vld [vmem:[%s28127_s1 + $0x15b8] sm:$0xf] }
 0x37f   :  { %10399 = vmatpush.bf16.msrb.mxu3 %v14323_v24  ;;  %v14882_v24 = vld [vmem:[%s28127_s1 + $0x17e8] sm:$0xf]  ;;  %v14603_v27 = vor.u32 %v18325_v9, %v14602_v6  ;;  %v18423_v9 = vld [vmem:[%s28127_s1 + $0x18e0] sm:$0xf0] }
 0x380   :  { %10361 = vmatpush.bf16.msrb.mxu0 %v13623_v59  ;;  %v14883_v58 = vor.u32 %v18395_v50, %v14882_v24  ;;  %v15107_v59 = vor.u32 %v18451_v56, %v15106_v51  ;;  %v14827_v24 = vor.u32 %v18381_v60, %v14826_v32  ;;  %v14574_v50 = vld [vmem:[%s28127_s1 + $0x1580] sm:$0xf]  ;;  %v18318_v51 = vld [vmem:[%s28127_s1 + $0x1598] sm:$0xf0]  ;;  %v14994_v6 = vld [vmem:[%s28127_s1 + $0x18c8] sm:$0xf] }
 0x381   :  { %10374 = vmatpush.bf16.msrb.mxu1 %v13847_v4  ;;  %v15331_v4 = vor.u32 %v18507_v57, %v15330_v36  ;;  %v10168_v55 = vpop.f32.mrf.mxu1  ;;  %v14798_v56 = vld [vmem:[%s28127_s1 + $0x1740] sm:$0xf]  ;;  %v15218_v32 = vld [vmem:[%s28127_s1 + $0x1a88] sm:$0xf]  ;;  %v14518_v60 = vld [vmem:[%s28127_s1 + $0x1510] sm:$0xf] }
 0x382   :  { %10387 = vmatpush.bf16.msrb.mxu2 %v14071_v8  ;;  %v18388_v8 = vld [vmem:[%s28127_s1 + $0x17c8] sm:$0xf0] }
 0x383   :  { %10400 = vmatpush.bf16.msrb.mxu3 %v14295_v15  ;;  %10362 = vmatmul.bf16.vlgmr.msrb.gmra.mxu0 %v19790_v25  ;;  %v10155_v15 = vpop.f32.mrf.mxu0  ;;  %v14855_v26 = vor.u32 %v18388_v8, %v14854_v21  ;;  %v15246_v21 = vld [vmem:[%s28127_s1 + $0x1ac0] sm:$0xf] }
 0x384   :  { %10406 = vmatpush.bf16.msra.mxu0 %v14715_v53  ;;  %10375 = vmatmul.bf16.vlgmr.msrb.gmra.mxu1 %v19803_v30  ;;  %v15302_v53 = vld [vmem:[%s28127_s1 + $0x1b30] sm:$0xf] }
 0x385   :  { %10419 = vmatpush.bf16.msra.mxu1 %v14939_v61  ;;  %10388 = vmatmul.bf16.vlgmr.msrb.gmra.mxu2 %v19801_v29  ;;  %v18500_v61 = vld [vmem:[%s28127_s1 + $0x1b48] sm:$0xf0] }
 0x386   :  { %10432 = vmatpush.bf16.msra.mxu2 %v15163_v63  ;;  %10401 = vmatmul.bf16.vlgmr.msrb.gmra.mxu3 %v19811_v33  ;;  %v10156_v63 = vadd.f32 %v10155_v15, %v24748_v14  ;;  %v15303_v14 = vor.u32 %v18500_v61, %v15302_v53 }
 0x387   :  { %10445 = vmatpush.bf16.msra.mxu3 %v15387_v52  ;;  %v15079_v52 = vor.u32 %v18444_v2, %v15078_v10  ;;  %v14575_v10 = vor.u32 %v18318_v51, %v14574_v50  ;;  %v18416_v50 = vld [vmem:[%s28127_s1 + $0x18a8] sm:$0xf0]  ;;  %v15190_v51 = vld [vmem:[%s28127_s1 + $0x1a50] sm:$0xf] }
 0x388   :  { %10407 = vmatpush.bf16.msra.mxu0 %v14687_v34  ;;  %v10169_v5 = vadd.f32 %v10168_v55, %v10156_v63  ;;  %v15050_v34 = vld [vmem:[%s28127_s1 + $0x1938] sm:$0xf]  ;;  %v10181_v57 = vpop.f32.mrf.mxu2  ;;  %v14546_v63 = vld [vmem:[%s28127_s1 + $0x1548] sm:$0xf] }
 0x389   :  { %10420 = vmatpush.bf16.msra.mxu1 %v14911_v0  ;;  %v18437_v0 = vld [vmem:[%s28127_s1 + $0x1950] sm:$0xf0]  ;;  %v10194_v62 = vpop.f32.mrf.mxu3  ;;  %v10170_v2 = vpop.f32.mrf.mxu1  ;;  %v14770_v55 = vld [vmem:[%s28127_s1 + $0x1708] sm:$0xf] }
 0x38a   :  { %10433 = vmatpush.bf16.msra.mxu2 %v15135_v40  ;;  %v15274_v40 = vld [vmem:[%s28127_s1 + $0x1af8] sm:$0xf]  ;;  %v10182_v47 = vadd.f32 %v10181_v57, %v10169_v5 }
 0x38b   :  { %10446 = vmatpush.bf16.msra.mxu3 %v15359_v17  ;;  %v15051_v17 = vor.u32 %v18437_v0, %v15050_v34  ;;  %v15275_v36 = vor.u32 %v18493_v43, %v15274_v40  ;;  %v10157_v8 = vpop.f32.mrf.mxu0  ;;  %v18304_v34 = vld [vmem:[%s28127_s1 + $0x1528] sm:$0xf0]  ;;  %v14995_v40 = vor.u32 %v18423_v9, %v14994_v6  ;;  %v14742_v43 = vld [vmem:[%s28127_s1 + $0x16d0] sm:$0xf]  ;;  %v15610_v57 = vld [vmem:[%s28127_s1 + $0x1d98] sm:$0xf] }
 0x38c   :  { %10408 = vmatpush.bf16.msra.mxu0 %v14659_v48  ;;  %v18374_v48 = vld [vmem:[%s28127_s1 + $0x1758] sm:$0xf0]  ;;  %v24947_v15 = vadd.f32 %v10194_v62, %v10182_v47  ;;  %v14519_v47 = vor.u32 %v18304_v34, %v14518_v60  ;;  %v18633_v62 = vld [vmem:[%s28127_s1 + $0x1f70] sm:$0xf0]  ;;  %v16282_v2 = vld [vmem:[%s28127_s1 + $0x22d8] sm:$0xf] }
 0x38d   :  { %10421 = vmatpush.bf16.msra.mxu1 %v14883_v58  ;;  %v15022_v58 = vld [vmem:[%s28127_s1 + $0x1900] sm:$0xf]  ;;  %v14799_v53 = vor.u32 %v18374_v48, %v14798_v56  ;;  %v18472_v56 = vld [vmem:[%s28127_s1 + $0x1a68] sm:$0xf0]  ;;  %v18577_v48 = vld [vmem:[%s28127_s1 + $0x1db0] sm:$0xf0] }
 0x38e   :  { %10434 = vmatpush.bf16.msra.mxu2 %v15107_v59  ;;  %v18430_v59 = vld [vmem:[%s28127_s1 + $0x1918] sm:$0xf0]  ;;  %v15806_v6 = vld [vmem:[%s28127_s1 + $0x1f20] sm:$0xf] }
 0x38f   :  { %10447 = vmatpush.bf16.msra.mxu3 %v15331_v4  ;;  %v18486_v4 = vld [vmem:[%s28127_s1 + $0x1ad8] sm:$0xf0]  ;;  %v15023_v61 = vor.u32 %v18430_v59, %v15022_v58  ;;  %v15834_v58 = vld [vmem:[%s28127_s1 + $0x1f58] sm:$0xf]  ;;  %v16254_v60 = vld [vmem:[%s28127_s1 + $0x22a0] sm:$0xf] }
 0x390   :  { %10409 = vmatpush.bf16.msra.mxu0 %v14631_v13  ;;  %v18311_v13 = vld [vmem:[%s28127_s1 + $0x1560] sm:$0xf0]  ;;  %v18738_v34 = vld [vmem:[%s28127_s1 + $0x22b8] sm:$0xf0] }
 0x391   :  { %10422 = vmatpush.bf16.msra.mxu1 %v14855_v26  ;;  %v15247_v26 = vor.u32 %v18486_v4, %v15246_v21  ;;  %v14547_v5 = vor.u32 %v18311_v13, %v14546_v63  ;;  %v10196_v59 = vpop.f32.mrf.mxu3  ;;  %v16058_v21 = vld [vmem:[%s28127_s1 + $0x2118] sm:$0xf]  ;;  %v18689_v4 = vld [vmem:[%s28127_s1 + $0x2130] sm:$0xf0]  ;;  %v15611_v63 = vor.u32 %v18577_v48, %v15610_v57  ;;  %v15835_v13 = vor.u32 %v18633_v62, %v15834_v58  ;;  %v16226_v57 = vld [vmem:[%s28127_s1 + $0x2268] sm:$0xf] }
 0x392   :  { %10435 = vmatpush.bf16.msra.mxu2 %v15079_v52  ;;  %v18367_v52 = vld [vmem:[%s28127_s1 + $0x1720] sm:$0xf0]  ;;  %v15526_v62 = vld [vmem:[%s28127_s1 + $0x1cf0] sm:$0xf] }
 0x393   :  { %10448 = vmatpush.bf16.msra.mxu3 %v15303_v14  ;;  %v18479_v14 = vld [vmem:[%s28127_s1 + $0x1aa0] sm:$0xf0]  ;;  %v14771_v0 = vor.u32 %v18367_v52, %v14770_v55  ;;  %v16059_v55 = vor.u32 %v18689_v4, %v16058_v21  ;;  %v18570_v52 = vld [vmem:[%s28127_s1 + $0x1d78] sm:$0xf0]  ;;  %v18556_v21 = vld [vmem:[%s28127_s1 + $0x1d08] sm:$0xf0] }
 0x394   :  { %10410 = vmatpush.bf16.msra.mxu0 %v14603_v27  ;;  %v18360_v27 = vld [vmem:[%s28127_s1 + $0x16e8] sm:$0xf0]  ;;  %v18731_v48 = vld [vmem:[%s28127_s1 + $0x2280] sm:$0xf0]  ;;  %v15750_v4 = vld [vmem:[%s28127_s1 + $0x1eb0] sm:$0xf] }
 0x395   :  { %10423 = vmatpush.bf16.msra.mxu1 %v14827_v24  ;;  %v14966_v24 = vld [vmem:[%s28127_s1 + $0x1890] sm:$0xf]  ;;  %v14743_v8 = vor.u32 %v18360_v27, %v14742_v43  ;;  %v15554_v27 = vld [vmem:[%s28127_s1 + $0x1d28] sm:$0xf] }
 0x396   :  { %10436 = vmatpush.bf16.msra.mxu2 %v15051_v17  ;;  %v15219_v17 = vor.u32 %v18479_v14, %v15218_v32  ;;  %v18626_v32 = vld [vmem:[%s28127_s1 + $0x1f38] sm:$0xf0]  ;;  %v16030_v14 = vld [vmem:[%s28127_s1 + $0x20e0] sm:$0xf] }
 0x397   :  { %10449 = vmatpush.bf16.msra.mxu3 %v15275_v36  ;;  %v10183_v36 = vpop.f32.mrf.mxu2 }
 0x398   :  { %10411 = vmatpush.bf16.msra.mxu0 %v14575_v10  ;;  %v14967_v10 = vor.u32 %v18416_v50, %v14966_v24  ;;  %v18563_v24 = vld [vmem:[%s28127_s1 + $0x1d40] sm:$0xf0]  ;;  %v16255_v50 = vor.u32 %v18738_v34, %v16254_v60  ;;  %v18605_v34 = vld [vmem:[%s28127_s1 + $0x1e90] sm:$0xf0] }
 0x399   :  { %10424 = vmatpush.bf16.msra.mxu1 %v14799_v53  ;;  %v18745_v53 = vld [vmem:[%s28127_s1 + $0x22f0] sm:$0xf0]  ;;  %v18675_v36 = vld [vmem:[%s28127_s1 + $0x20c0] sm:$0xf0]  ;;  %v15555_v58 = vor.u32 %v18563_v24, %v15554_v27 }
 0x39a   :  { %10437 = vmatpush.bf16.msra.mxu2 %v15023_v61  ;;  %v15191_v61 = vor.u32 %v18472_v56, %v15190_v51  ;;  %v16283_v9 = vor.u32 %v18745_v53, %v16282_v2  ;;  %v18619_v51 = vld [vmem:[%s28127_s1 + $0x1f00] sm:$0xf0]  ;;  %v16002_v56 = vld [vmem:[%s28127_s1 + $0x20a8] sm:$0xf]  ;;  %v15974_v2 = vld [vmem:[%s28127_s1 + $0x2070] sm:$0xf] }
 0x39b   :  { %10450 = vmatpush.bf16.msra.mxu3 %v15247_v26  ;;  %v15582_v26 = vld [vmem:[%s28127_s1 + $0x1d60] sm:$0xf]  ;;  %v18668_v53 = vld [vmem:[%s28127_s1 + $0x2088] sm:$0xf0]  ;;  %v18717_v27 = vld [vmem:[%s28127_s1 + $0x2210] sm:$0xf0] }
 0x39c   :  { %10412 = vmatpush.bf16.msra.mxu0 %v14547_v5  ;;  %v18682_v5 = vld [vmem:[%s28127_s1 + $0x20f8] sm:$0xf0] }
 0x39d   :  { %10425 = vmatpush.bf16.msra.mxu1 %v14771_v0  ;;  %v15583_v0 = vor.u32 %v18570_v52, %v15582_v26  ;;  %v16031_v43 = vor.u32 %v18682_v5, %v16030_v14  ;;  %v15527_v26 = vor.u32 %v18556_v21, %v15526_v62  ;;  %v18549_v14 = vld [vmem:[%s28127_s1 + $0x1cd0] sm:$0xf0]  ;;  %v15722_v5 = vld [vmem:[%s28127_s1 + $0x1e78] sm:$0xf] }
 0x39e   :  { %10438 = vmatpush.bf16.msra.mxu2 %v14995_v40  ;;  %v15807_v40 = vor.u32 %v18626_v32, %v15806_v6  ;;  %v15498_v32 = vld [vmem:[%s28127_s1 + $0x1cb8] sm:$0xf] }
 0x39f   :  { %10451 = vmatpush.bf16.msra.mxu3 %v15219_v17  ;;  %v15778_v17 = vld [vmem:[%s28127_s1 + $0x1ee8] sm:$0xf]  ;;  %v15499_v24 = vor.u32 %v18549_v14, %v15498_v32  ;;  %v18647_v14 = vld [vmem:[%s28127_s1 + $0x1fe0] sm:$0xf0] }
 0x3a0   :  { %10413 = vmatpush.bf16.msra.mxu0 %v14519_v47  ;;  %v15779_v59 = vor.u32 %v18619_v51, %v15778_v17  ;;  %v16003_v47 = vor.u32 %v18675_v36, %v16002_v56  ;;  %v15723_v17 = vor.u32 %v18605_v34, %v15722_v5  ;;  %v15470_v51 = vld [vmem:[%s28127_s1 + $0x1c80] sm:$0xf]  ;;  %v18542_v56 = vld [vmem:[%s28127_s1 + $0x1c98] sm:$0xf0]  ;;  %v15890_v32 = vld [vmem:[%s28127_s1 + $0x1fc8] sm:$0xf] }
 0x3a1   :  { %10426 = vmatpush.bf16.msra.mxu1 %v14743_v8  ;;  %v16227_v8 = vor.u32 %v18731_v48, %v16226_v57  ;;  %v10220_v52 = vpop.f32.mrf.mxu1  ;;  %v15694_v36 = vld [vmem:[%s28127_s1 + $0x1e40] sm:$0xf]  ;;  %v16114_v5 = vld [vmem:[%s28127_s1 + $0x2188] sm:$0xf]  ;;  %v15414_v34 = vld [vmem:[%s28127_s1 + $0x1c10] sm:$0xf] }
 0x3a2   :  { %10439 = vmatpush.bf16.msra.mxu2 %v14967_v10  ;;  %v18612_v10 = vld [vmem:[%s28127_s1 + $0x1ec8] sm:$0xf0] }
 0x3a3   :  { %10452 = vmatpush.bf16.msra.mxu3 %v15191_v61  ;;  %10414 = vmatmul.bf16.vlgmr.msra.gmra.mxu0 %v20000_v23  ;;  %v10207_v61 = vpop.f32.mrf.mxu0  ;;  %v15751_v6 = vor.u32 %v18612_v10, %v15750_v4  ;;  %v16142_v4 = vld [vmem:[%s28127_s1 + $0x21c0] sm:$0xf] }
 0x3a4   :  { %10458 = vmatpush.bf16.msrb.mxu0 %v15611_v63  ;;  %10427 = vmatmul.bf16.vlgmr.msra.gmra.mxu1 %v20013_v31  ;;  %v16198_v63 = vld [vmem:[%s28127_s1 + $0x2230] sm:$0xf] }
 0x3a5   :  { %10471 = vmatpush.bf16.msrb.mxu1 %v15835_v13  ;;  %10440 = vmatmul.bf16.vlgmr.msra.gmra.mxu2 %v20011_v28  ;;  %v18724_v13 = vld [vmem:[%s28127_s1 + $0x2248] sm:$0xf0] }
 0x3a6   :  { %10484 = vmatpush.bf16.msrb.mxu2 %v16059_v55  ;;  %10453 = vmatmul.bf16.vlgmr.msra.gmra.mxu3 %v20021_v35  ;;  %v10208_v55 = vadd.f32 %v10207_v61, %v24947_v15  ;;  %v16199_v15 = vor.u32 %v18724_v13, %v16198_v63 }
 0x3a7   :  { %10497 = vmatpush.bf16.msrb.mxu3 %v16283_v9  ;;  %v15975_v9 = vor.u32 %v18668_v53, %v15974_v2  ;;  %v15471_v2 = vor.u32 %v18542_v56, %v15470_v51  ;;  %v18640_v51 = vld [vmem:[%s28127_s1 + $0x1fa8] sm:$0xf0]  ;;  %v16086_v56 = vld [vmem:[%s28127_s1 + $0x2150] sm:$0xf] }
 0x3a8   :  { %10459 = vmatpush.bf16.msrb.mxu0 %v15583_v0  ;;  %v10221_v60 = vadd.f32 %v10220_v52, %v10208_v55  ;;  %v15946_v0 = vld [vmem:[%s28127_s1 + $0x2038] sm:$0xf]  ;;  %v10233_v48 = vpop.f32.mrf.mxu2  ;;  %v15442_v55 = vld [vmem:[%s28127_s1 + $0x1c48] sm:$0xf] }
 0x3a9   :  { %10472 = vmatpush.bf16.msrb.mxu1 %v15807_v40  ;;  %v18661_v40 = vld [vmem:[%s28127_s1 + $0x2050] sm:$0xf0]  ;;  %v10246_v21 = vpop.f32.mrf.mxu3  ;;  %v10222_v53 = vpop.f32.mrf.mxu1  ;;  %v15666_v52 = vld [vmem:[%s28127_s1 + $0x1e08] sm:$0xf] }
 0x3aa   :  { %10485 = vmatpush.bf16.msrb.mxu2 %v16031_v43  ;;  %v16170_v43 = vld [vmem:[%s28127_s1 + $0x21f8] sm:$0xf]  ;;  %v10234_v62 = vadd.f32 %v10233_v48, %v10221_v60 }
 0x3ab   :  { %10498 = vmatpush.bf16.msrb.mxu3 %v16255_v50  ;;  %v15947_v50 = vor.u32 %v18661_v40, %v15946_v0  ;;  %v16171_v57 = vor.u32 %v18717_v27, %v16170_v43  ;;  %v10209_v10 = vpop.f32.mrf.mxu0  ;;  %v18528_v0 = vld [vmem:[%s28127_s1 + $0x1c28] sm:$0xf0]  ;;  %v15891_v43 = vor.u32 %v18647_v14, %v15890_v32  ;;  %v15638_v27 = vld [vmem:[%s28127_s1 + $0x1dd0] sm:$0xf]  ;;  %v16506_v48 = vld [vmem:[%s28127_s1 + $0x2498] sm:$0xf] }
 0x3ac   :  { %10460 = vmatpush.bf16.msrb.mxu0 %v15555_v58  ;;  %v18598_v58 = vld [vmem:[%s28127_s1 + $0x1e58] sm:$0xf0]  ;;  %v25146_v61 = vadd.f32 %v10246_v21, %v10234_v62  ;;  %v15415_v62 = vor.u32 %v18528_v0, %v15414_v34  ;;  %v18857_v21 = vld [vmem:[%s28127_s1 + $0x2670] sm:$0xf0]  ;;  %v17178_v53 = vld [vmem:[%s28127_s1 + $0x29d8] sm:$0xf] }
 0x3ad   :  { %10473 = vmatpush.bf16.msrb.mxu1 %v15779_v59  ;;  %v15918_v59 = vld [vmem:[%s28127_s1 + $0x2000] sm:$0xf]  ;;  %v15695_v63 = vor.u32 %v18598_v58, %v15694_v36  ;;  %v18696_v36 = vld [vmem:[%s28127_s1 + $0x2168] sm:$0xf0]  ;;  %v18801_v58 = vld [vmem:[%s28127_s1 + $0x24b0] sm:$0xf0] }
 0x3ae   :  { %10486 = vmatpush.bf16.msrb.mxu2 %v16003_v47  ;;  %v18654_v47 = vld [vmem:[%s28127_s1 + $0x2018] sm:$0xf0]  ;;  %v16702_v32 = vld [vmem:[%s28127_s1 + $0x2620] sm:$0xf] }
 0x3af   :  { %10499 = vmatpush.bf16.msrb.mxu3 %v16227_v8  ;;  %v18710_v8 = vld [vmem:[%s28127_s1 + $0x21d8] sm:$0xf0]  ;;  %v15919_v13 = vor.u32 %v18654_v47, %v15918_v59  ;;  %v16730_v59 = vld [vmem:[%s28127_s1 + $0x2658] sm:$0xf]  ;;  %v17150_v34 = vld [vmem:[%s28127_s1 + $0x29a0] sm:$0xf] }
 0x3b0   :  { %10461 = vmatpush.bf16.msrb.mxu0 %v15527_v26  ;;  %v18535_v26 = vld [vmem:[%s28127_s1 + $0x1c60] sm:$0xf0]  ;;  %v18962_v0 = vld [vmem:[%s28127_s1 + $0x29b8] sm:$0xf0] }
 0x3b1   :  { %10474 = vmatpush.bf16.msrb.mxu1 %v15751_v6  ;;  %v16143_v6 = vor.u32 %v18710_v8, %v16142_v4  ;;  %v15443_v60 = vor.u32 %v18535_v26, %v15442_v55  ;;  %v10248_v47 = vpop.f32.mrf.mxu3  ;;  %v16954_v4 = vld [vmem:[%s28127_s1 + $0x2818] sm:$0xf]  ;;  %v18913_v8 = vld [vmem:[%s28127_s1 + $0x2830] sm:$0xf0]  ;;  %v16507_v55 = vor.u32 %v18801_v58, %v16506_v48  ;;  %v16731_v26 = vor.u32 %v18857_v21, %v16730_v59  ;;  %v17122_v48 = vld [vmem:[%s28127_s1 + $0x2968] sm:$0xf] }
 0x3b2   :  { %10487 = vmatpush.bf16.msrb.mxu2 %v15975_v9  ;;  %v18591_v9 = vld [vmem:[%s28127_s1 + $0x1e20] sm:$0xf0]  ;;  %v16422_v47 = vld [vmem:[%s28127_s1 + $0x23f0] sm:$0xf] }
 0x3b3   :  { %10500 = vmatpush.bf16.msrb.mxu3 %v16199_v15  ;;  %v18703_v15 = vld [vmem:[%s28127_s1 + $0x21a0] sm:$0xf0]  ;;  %v15667_v40 = vor.u32 %v18591_v9, %v15666_v52  ;;  %v16955_v52 = vor.u32 %v18913_v8, %v16954_v4  ;;  %v18794_v9 = vld [vmem:[%s28127_s1 + $0x2478] sm:$0xf0]  ;;  %v18780_v4 = vld [vmem:[%s28127_s1 + $0x2408] sm:$0xf0] }
 0x3b4   :  { %10462 = vmatpush.bf16.msrb.mxu0 %v15499_v24  ;;  %v18584_v24 = vld [vmem:[%s28127_s1 + $0x1de8] sm:$0xf0]  ;;  %v18955_v58 = vld [vmem:[%s28127_s1 + $0x2980] sm:$0xf0]  ;;  %v16646_v8 = vld [vmem:[%s28127_s1 + $0x25b0] sm:$0xf] }
 0x3b5   :  { %10475 = vmatpush.bf16.msrb.mxu1 %v15723_v17  ;;  %v15862_v17 = vld [vmem:[%s28127_s1 + $0x1f90] sm:$0xf]  ;;  %v15639_v10 = vor.u32 %v18584_v24, %v15638_v27  ;;  %v16450_v24 = vld [vmem:[%s28127_s1 + $0x2428] sm:$0xf] }
 0x3b6   :  { %10488 = vmatpush.bf16.msrb.mxu2 %v15947_v50  ;;  %v16115_v50 = vor.u32 %v18703_v15, %v16114_v5  ;;  %v18850_v5 = vld [vmem:[%s28127_s1 + $0x2638] sm:$0xf0]  ;;  %v16926_v15 = vld [vmem:[%s28127_s1 + $0x27e0] sm:$0xf] }
 0x3b7   :  { %10501 = vmatpush.bf16.msrb.mxu3 %v16171_v57  ;;  %v10235_v57 = vpop.f32.mrf.mxu2 }
 0x3b8   :  { %10463 = vmatpush.bf16.msrb.mxu0 %v15471_v2  ;;  %v15863_v2 = vor.u32 %v18640_v51, %v15862_v17  ;;  %v18787_v17 = vld [vmem:[%s28127_s1 + $0x2440] sm:$0xf0]  ;;  %v17151_v51 = vor.u32 %v18962_v0, %v17150_v34 }
 0x3b9   :  { %10476 = vmatpush.bf16.msrb.mxu1 %v15695_v63  ;;  %v18969_v63 = vld [vmem:[%s28127_s1 + $0x29f0] sm:$0xf0]  ;;  %v18899_v57 = vld [vmem:[%s28127_s1 + $0x27c0] sm:$0xf0]  ;;  %v16451_v59 = vor.u32 %v18787_v17, %v16450_v24  ;;  %v17066_v17 = vld [vmem:[%s28127_s1 + $0x28f8] sm:$0xf] }
 0x3ba   :  { %10489 = vmatpush.bf16.msrb.mxu2 %v15919_v13  ;;  %v16087_v13 = vor.u32 %v18696_v36, %v16086_v56  ;;  %v17179_v14 = vor.u32 %v18969_v63, %v17178_v53  ;;  %v18843_v56 = vld [vmem:[%s28127_s1 + $0x2600] sm:$0xf0]  ;;  %v16898_v36 = vld [vmem:[%s28127_s1 + $0x27a8] sm:$0xf]  ;;  %v17123_v53 = vor.u32 %v18955_v58, %v17122_v48  ;;  %v18836_v63 = vld [vmem:[%s28127_s1 + $0x25c8] sm:$0xf0] }
 0x3bb   :  { %10502 = vmatpush.bf16.msrb.mxu3 %v16143_v6  ;;  %v16478_v6 = vld [vmem:[%s28127_s1 + $0x2460] sm:$0xf]  ;;  %v16899_v21 = vor.u32 %v18899_v57, %v16898_v36  ;;  %v18885_v24 = vld [vmem:[%s28127_s1 + $0x2750] sm:$0xf0]  ;;  %v18766_v58 = vld [vmem:[%s28127_s1 + $0x2398] sm:$0xf0] }
 0x3bc   :  { %10464 = vmatpush.bf16.msrb.mxu0 %v15443_v60  ;;  %v18906_v60 = vld [vmem:[%s28127_s1 + $0x27f8] sm:$0xf0]  ;;  %v16366_v48 = vld [vmem:[%s28127_s1 + $0x2380] sm:$0xf] }
 0x3bd   :  { %10477 = vmatpush.bf16.msrb.mxu1 %v15667_v40  ;;  %v16479_v40 = vor.u32 %v18794_v9, %v16478_v6  ;;  %v16927_v27 = vor.u32 %v18906_v60, %v16926_v15  ;;  %v16423_v6 = vor.u32 %v18780_v4, %v16422_v47  ;;  %v18773_v15 = vld [vmem:[%s28127_s1 + $0x23d0] sm:$0xf0]  ;;  %v16618_v60 = vld [vmem:[%s28127_s1 + $0x2578] sm:$0xf]  ;;  %v16814_v4 = vld [vmem:[%s28127_s1 + $0x2700] sm:$0xf] }
 0x3be   :  { %10490 = vmatpush.bf16.msrb.mxu2 %v15891_v43  ;;  %v16703_v43 = vor.u32 %v18850_v5, %v16702_v32  ;;  %v16647_v32 = vor.u32 %v18836_v63, %v16646_v8  ;;  %v16394_v5 = vld [vmem:[%s28127_s1 + $0x23b8] sm:$0xf]  ;;  %v18878_v8 = vld [vmem:[%s28127_s1 + $0x2718] sm:$0xf0] }
 0x3bf   :  { %10503 = vmatpush.bf16.msrb.mxu3 %v16115_v50  ;;  %v16674_v50 = vld [vmem:[%s28127_s1 + $0x25e8] sm:$0xf]  ;;  %v18934_v63 = vld [vmem:[%s28127_s1 + $0x28d8] sm:$0xf0] }
 0x3c0   :  { %10465 = vmatpush.bf16.msrb.mxu0 %v15415_v62  ;;  %v16675_v62 = vor.u32 %v18843_v56, %v16674_v50  ;;  %v10259_v9 = vpop.f32.mrf.mxu0  ;;  %v18941_v50 = vld [vmem:[%s28127_s1 + $0x2910] sm:$0xf0]  ;;  %v16395_v56 = vor.u32 %v18773_v15, %v16394_v5 }
 0x3c1   :  { %10478 = vmatpush.bf16.msrb.mxu1 %v15639_v10  ;;  %v19086_v10 = vld [vmem:[%s28129_s2] sm:$0x7f]  ;;  %v10272_v0 = vpop.f32.mrf.mxu1 }
 0x3c2   :  { %10491 = vmatpush.bf16.msrb.mxu2 %v15863_v2  ;;  %v1652_v2 = vperm.slane %v19086_v10, 4 }
 0x3c3   :  { %10504 = vmatpush.bf16.msrb.mxu3 %v16087_v13  ;;  %10466 = vmatmul.bf16.vlgmr.msrb.gmra.mxu0 %v20210_v37  ;;  %v16870_v13 = vld [vmem:[%s28127_s1 + $0x2770] sm:$0xf] }
 0x3c4   :  { %10510 = vmatpush.bf16.msra.mxu0 %v16507_v55  ;;  %10479 = vmatmul.bf16.vlgmr.msrb.gmra.mxu1 %v20223_v46  ;;  %v18892_v55 = vld [vmem:[%s28127_s1 + $0x2788] sm:$0xf0]  ;;  %v10260_v34 = vadd.f32 %v10259_v9, %v1652_v2  ;;  %v16338_v9 = vld [vmem:[%s28127_s1 + $0x2348] sm:$0xf] }
 0x3c5   :  { %10523 = vmatpush.bf16.msra.mxu1 %v16731_v26  ;;  %10492 = vmatmul.bf16.vlgmr.msrb.gmra.mxu2 %v20221_v45  ;;  %v17094_v26 = vld [vmem:[%s28127_s1 + $0x2930] sm:$0xf] }
 0x3c6   :  { %10536 = vmatpush.bf16.msra.mxu2 %v16955_v52  ;;  %10505 = vmatmul.bf16.vlgmr.msrb.gmra.mxu3 %v20231_v49  ;;  %v18948_v52 = vld [vmem:[%s28127_s1 + $0x2948] sm:$0xf0] }
 0x3c7   :  { %10549 = vmatpush.bf16.msra.mxu3 %v17179_v14  ;;  %v16871_v14 = vor.u32 %v18892_v55, %v16870_v13  ;;  %v16367_v13 = vor.u32 %v18766_v58, %v16366_v48 }
 0x3c8   :  { %10511 = vmatpush.bf16.msra.mxu0 %v16479_v40  ;;  %v17095_v40 = vor.u32 %v18948_v52, %v17094_v26  ;;  %v10285_v47 = vpop.f32.mrf.mxu2  ;;  %v10261_v26 = vpop.f32.mrf.mxu0 }
 0x3c9   :  { %10524 = vmatpush.bf16.msra.mxu1 %v16703_v43  ;;  %v18829_v43 = vld [vmem:[%s28127_s1 + $0x2590] sm:$0xf0]  ;;  %v10298_v2 = vpop.f32.mrf.mxu3  ;;  %v10274_v5 = vpop.f32.mrf.mxu1 }
 0x3ca   :  { %10537 = vmatpush.bf16.msra.mxu2 %v16927_v27  ;;  %v16842_v27 = vld [vmem:[%s28127_s1 + $0x2738] sm:$0xf]  ;;  %v16619_v36 = vor.u32 %v18829_v43, %v16618_v60  ;;  %v18815_v60 = vld [vmem:[%s28127_s1 + $0x2520] sm:$0xf0] }
 0x3cb   :  { %10550 = vmatpush.bf16.msra.mxu3 %v17151_v51  ;;  %v10273_v51 = vadd.f32 %v10272_v0, %v10260_v34  ;;  %v16843_v57 = vor.u32 %v18885_v24, %v16842_v27  ;;  %v16786_v34 = vld [vmem:[%s28127_s1 + $0x26c8] sm:$0xf]  ;;  %v18871_v0 = vld [vmem:[%s28127_s1 + $0x26e0] sm:$0xf0]  ;;  %v16310_v24 = vld [vmem:[%s28127_s1 + $0x2310] sm:$0xf] }
 0x3cc   :  { %10512 = vmatpush.bf16.msra.mxu0 %v16451_v59  ;;  %v16590_v59 = vld [vmem:[%s28127_s1 + $0x2540] sm:$0xf]  ;;  %v18927_v43 = vld [vmem:[%s28127_s1 + $0x28a0] sm:$0xf0] }
 0x3cd   :  { %10525 = vmatpush.bf16.msra.mxu1 %v16675_v62  ;;  %v17067_v62 = vor.u32 %v18941_v50, %v17066_v17  ;;  %v10286_v10 = vadd.f32 %v10285_v47, %v10273_v51  ;;  %v18752_v17 = vld [vmem:[%s28127_s1 + $0x2328] sm:$0xf0]  ;;  %v16787_v51 = vor.u32 %v18871_v0, %v16786_v34  ;;  %v16982_v47 = vld [vmem:[%s28127_s1 + $0x2850] sm:$0xf]  ;;  %v19018_v34 = vld [vmem:[%s28127_s1 + $0x2b78] sm:$0xf0] }
 0x3ce   :  { %10538 = vmatpush.bf16.msra.mxu2 %v16899_v21  ;;  %v18822_v21 = vld [vmem:[%s28127_s1 + $0x2558] sm:$0xf0]  ;;  %v17671_v0 = vld [vmem:[%s28127_s1 + $0x164] sm:$0xf] }
 0x3cf   :  { %10551 = vmatpush.bf16.msra.mxu3 %v17123_v53  ;;  %v17038_v53 = vld [vmem:[%s28127_s1 + $0x28c0] sm:$0xf]  ;;  %v25347_v55 = vadd.f32 %v10298_v2, %v10286_v10  ;;  %v16591_v52 = vor.u32 %v18822_v21, %v16590_v59  ;;  %v18864_v59 = vld [vmem:[%s28127_s1 + $0x26a8] sm:$0xf0]  ;;  %v17678_v10 = vld [vmem:[%s28127_s1 + $0x19c] sm:$0xf]  ;;  %v16311_v2 = vor.u32 %v18752_v17, %v16310_v24 }
 0x3d0   :  { %10513 = vmatpush.bf16.msra.mxu0 %v16423_v6  ;;  %v16815_v6 = vor.u32 %v18878_v8, %v16814_v4  ;;  %v17039_v15 = vor.u32 %v18934_v63, %v17038_v53  ;;  %v10287_v48 = vpop.f32.mrf.mxu2  ;;  %v17402_v4 = vld [vmem:[%s28127_s1 + $0x2b98] sm:$0xf]  ;;  %v19025_v8 = vld [vmem:[%s28127_s1 + $0x2bb0] sm:$0xf0]  ;;  %v17734_v63 = vld [vmem:[%s28127_s1 + $0x35c] sm:$0xf] }
 0x3d1   :  { %10526 = vmatpush.bf16.msra.mxu1 %v16647_v32  ;;  %v18759_v32 = vld [vmem:[%s28127_s1 + $0x2360] sm:$0xf0]  ;;  %v10300_v21 = vpop.f32.mrf.mxu3  ;;  %v12028_v53 = vld [vmem:[%s28127_s1 + $0x1b4] sm:$0xf0]  ;;  %v12224_v24 = vld [vmem:[%s28127_s1 + $0x33c] sm:$0xf0] }
 0x3d2   :  { %10539 = vmatpush.bf16.msra.mxu2 %v16871_v14  ;;  %v16562_v14 = vld [vmem:[%s28127_s1 + $0x2508] sm:$0xf]  ;;  %v16339_v27 = vor.u32 %v18759_v32, %v16338_v9  ;;  %v12476_v9 = vld [vmem:[%s28127_s1 + $0x534] sm:$0xf0]  ;;  %v12031_v5 = vor.u32 %v17678_v10, %v12028_v53  ;;  %v17783_v17 = vld [vmem:[%s28127_s1 + $0x4e4] sm:$0xf] }
 0x3d3   :  { %10552 = vmatpush.bf16.msra.mxu3 %v17095_v40  ;;  %v17010_v40 = vld [vmem:[%s28127_s1 + $0x2888] sm:$0xf]  ;;  %v16563_v50 = vor.u32 %v18815_v60, %v16562_v14  ;;  %v17403_v14 = vor.u32 %v19025_v8, %v17402_v4  ;;  %v17374_v60 = vld [vmem:[%s28127_s1 + $0x2b60] sm:$0xf]  ;;  %v19011_v48 = vld [vmem:[%s28127_s1 + $0x2b40] sm:$0xf0] }
 0x3d4   :  { %10514 = vmatpush.bf16.msra.mxu0 %v16395_v56  ;;  %v16534_v56 = vld [vmem:[%s28127_s1 + $0x24d0] sm:$0xf]  ;;  %v17011_v58 = vor.u32 %v18927_v43, %v17010_v40  ;;  %v12000_v43 = vld [vmem:[%s28127_s1 + $0x17c] sm:$0xf0]  ;;  %v12196_v21 = vld [vmem:[%s28127_s1 + $0x304] sm:$0xf0] }
 0x3d5   :  { %10527 = vmatpush.bf16.msra.mxu1 %v16619_v36  ;;  %v18808_v36 = vld [vmem:[%s28127_s1 + $0x24e8] sm:$0xf0]  ;;  %v12420_v8 = vld [vmem:[%s28127_s1 + $0x4c4] sm:$0xf0] }
 0x3d6   :  { %10540 = vmatpush.bf16.msra.mxu2 %v16843_v57  ;;  %v16758_v57 = vld [vmem:[%s28127_s1 + $0x2690] sm:$0xf]  ;;  %v16535_v26 = vor.u32 %v18808_v36, %v16534_v56  ;;  %v12003_v56 = vor.u32 %v17671_v0, %v12000_v43  ;;  %v17776_v4 = vld [vmem:[%s28127_s1 + $0x4ac] sm:$0xf]  ;;  %v18997_v43 = vld [vmem:[%s28127_s1 + $0x2ad0] sm:$0xf0] }
 0x3d7   :  { %10553 = vmatpush.bf16.msra.mxu3 %v17067_v62  ;;  %v18920_v62 = vld [vmem:[%s28127_s1 + $0x2868] sm:$0xf0] }
 0x3d8   :  { %10515 = vmatpush.bf16.msra.mxu0 %v16367_v13  ;;  %v12252_v13 = vld [vmem:[%s28127_s1 + $0x374] sm:$0xf0]  ;;  %v16983_v32 = vor.u32 %v18920_v62, %v16982_v47  ;;  %v11972_v47 = vld [vmem:[%s28127_s1 + $0x144] sm:$0xf0]  ;;  %v17720_v62 = vld [vmem:[%s28127_s1 + $0x2ec] sm:$0xf] }
 0x3d9   :  { %10528 = vmatpush.bf16.msra.mxu1 %v16591_v52  ;;  %v16759_v52 = vor.u32 %v18864_v59, %v16758_v57  ;;  %v17346_v57 = vld [vmem:[%s28127_s1 + $0x2b28] sm:$0xf]  ;;  %v12199_v53 = vor.u32 %v17720_v62, %v12196_v21  ;;  %v17262_v62 = vld [vmem:[%s28127_s1 + $0x2a80] sm:$0xf]  ;;  %v18990_v21 = vld [vmem:[%s28127_s1 + $0x2a98] sm:$0xf0] }
 0x3da   :  { %10541 = vmatpush.bf16.msra.mxu2 %v16815_v6  ;;  %v17790_v6 = vld [vmem:[%s28127_s1 + $0x51c] sm:$0xf]  ;;  %v17347_v10 = vor.u32 %v19011_v48, %v17346_v57 }
 0x3db   :  { %10554 = vmatpush.bf16.msra.mxu3 %v17039_v15  ;;  %v12255_v15 = vor.u32 %v17734_v63, %v12252_v13  ;;  %v12479_v40 = vor.u32 %v17790_v6, %v12476_v9  ;;  %v17318_v63 = vld [vmem:[%s28127_s1 + $0x2af0] sm:$0xf]  ;;  %v19004_v13 = vld [vmem:[%s28127_s1 + $0x2b08] sm:$0xf0]  ;;  %v17713_v9 = vld [vmem:[%s28127_s1 + $0x2b4] sm:$0xf] }
 0x3dc   :  { %10516 = vmatpush.bf16.msra.mxu0 %v16339_v27  ;;  %v17727_v27 = vld [vmem:[%s28127_s1 + $0x324] sm:$0xf]  ;;  %v11944_v6 = vld [vmem:[%s28127_s1 + $0x10c] sm:$0xf0]  ;;  %v17762_v57 = vld [vmem:[%s28127_s1 + $0x43c] sm:$0xf] }
 0x3dd   :  { %10529 = vmatpush.bf16.msra.mxu1 %v16563_v50  ;;  %v12448_v50 = vld [vmem:[%s28127_s1 + $0x4fc] sm:$0xf0]  ;;  %v12227_v36 = vor.u32 %v17727_v27, %v12224_v24  ;;  %v17650_v27 = vld [vmem:[%s28127_s1 + $0xbc] sm:$0xf] }
 0x3de   :  { %10542 = vmatpush.bf16.msra.mxu2 %v16787_v51  ;;  %v17375_v51 = vor.u32 %v19018_v34, %v17374_v60  ;;  %v12451_v59 = vor.u32 %v17783_v17, %v12448_v50 }
 0x3df   :  { %10555 = vmatpush.bf16.msra.mxu3 %v17011_v58  ;;  %v17664_v58 = vld [vmem:[%s28127_s1 + $0x12c] sm:$0xf] }
 0x3e0   :  { %10517 = vmatpush.bf16.msra.mxu0 %v16311_v2  ;;  %v11975_v2 = vor.u32 %v17664_v58, %v11972_v47  ;;  %v10311_v60 = vpop.f32.mrf.mxu0 }
 0x3e1   :  { %10530 = vmatpush.bf16.msra.mxu1 %v16535_v26  ;;  %v17657_v26 = vld [vmem:[%s28127_s1 + $0xf4] sm:$0xf]  ;;  %v10312_v24 = vadd.f32 %v10311_v60, %v25347_v55  ;;  %v10324_v17 = vpop.f32.mrf.mxu1  ;;  %v12364_v55 = vld [vmem:[%s28127_s1 + $0x454] sm:$0xf0]  ;;  %v17234_v60 = vld [vmem:[%s28127_s1 + $0x2a48] sm:$0xf] }
 0x3e2   :  { %10543 = vmatpush.bf16.msra.mxu2 %v16759_v52  ;;  %v12423_v52 = vor.u32 %v17776_v4, %v12420_v8  ;;  %v11947_v34 = vor.u32 %v17657_v26, %v11944_v6  ;;  %v17643_v4 = vld [vmem:[%s28127_s1 + $0x84] sm:$0xf]  ;;  %v12336_v6 = vld [vmem:[%s28127_s1 + $0x41c] sm:$0xf0] }
 0x3e3   :  { %10556 = vmatpush.bf16.msra.mxu3 %v16983_v32  ;;  %10518 = vmatmul.bf16.vlgmr.msra.gmra.mxu0 %v20425_v7  ;;  %v12168_v32 = vld [vmem:[%s28127_s1 + $0x2cc] sm:$0xf0]  ;;  %v10325_v48 = vadd.f32 %v10324_v17, %v10312_v24  ;;  %v17692_v24 = vld [vmem:[%s28127_s1 + $0x20c] sm:$0xf]  ;;  %v12084_v17 = vld [vmem:[%s28127_s1 + $0x224] sm:$0xf0] }
 0x3e4   :  { %10562 = vmatpush.bf16.msrb.mxu0 %v17403_v14  ;;  %10531 = vmatmul.bf16.vlgmr.msra.gmra.mxu1 %v20438_v12  ;;  %v17769_v14 = vld [vmem:[%s28127_s1 + $0x474] sm:$0xf]  ;;  %v12171_v0 = vor.u32 %v17713_v9, %v12168_v32  ;;  %v17263_v9 = vor.u32 %v18990_v21, %v17262_v62 }
 0x3e5   :  { %10575 = vmatpush.bf16.msrb.mxu1 %v12031_v5  ;;  %10544 = vmatmul.bf16.vlgmr.msra.gmra.mxu2 %v20436_v11  ;;  %v12392_v5 = vld [vmem:[%s28127_s1 + $0x48c] sm:$0xf0] }
 0x3e6   :  { %10588 = vmatpush.bf16.msrb.mxu2 %v12255_v15  ;;  %10557 = vmatmul.bf16.vlgmr.msra.gmra.mxu3 %v20446_v16  ;;  %v17319_v15 = vor.u32 %v19004_v13, %v17318_v63  ;;  %v12395_v50 = vor.u32 %v17769_v14, %v12392_v5  ;;  %v12112_v63 = vld [vmem:[%s28127_s1 + $0x25c] sm:$0xf0] }
 0x3e7   :  { %10601 = vmatpush.bf16.msrb.mxu3 %v12479_v40  ;;  %v17290_v40 = vld [vmem:[%s28127_s1 + $0x2ab8] sm:$0xf] }
 0x3e8   :  { %10563 = vmatpush.bf16.msrb.mxu0 %v17375_v51  ;;  %v11916_v51 = vld [vmem:[%s28127_s1 + $0xd4] sm:$0xf0]  ;;  %v17291_v58 = vor.u32 %v18997_v43, %v17290_v40  ;;  %v10337_v8 = vpop.f32.mrf.mxu2  ;;  %v10313_v14 = vpop.f32.mrf.mxu0 }
 0x3e9   :  { %10576 = vmatpush.bf16.msrb.mxu1 %v12003_v56  ;;  %v17706_v56 = vld [vmem:[%s28127_s1 + $0x27c] sm:$0xf]  ;;  %v10338_v13 = vadd.f32 %v10337_v8, %v10325_v48  ;;  %v10350_v26 = vpop.f32.mrf.mxu3  ;;  %v10326_v40 = vpop.f32.mrf.mxu1  ;;  %v12087_v48 = vor.u32 %v17692_v24, %v12084_v17  ;;  %v17741_v8 = vld [vmem:[%s28127_s1 + $0x394] sm:$0xf]  ;;  %v12672_v24 = vld [vmem:[%s28127_s1 + $0x6bc] sm:$0xf0] }
 0x3ea   :  { %10589 = vmatpush.bf16.msrb.mxu2 %v12227_v36  ;;  %v12140_v36 = vld [vmem:[%s28127_s1 + $0x294] sm:$0xf0]  ;;  %v17895_v17 = vld [vmem:[%s28127_s1 + $0x864] sm:$0xf] }
 0x3eb   :  { %10602 = vmatpush.bf16.msrb.mxu3 %v12451_v59  ;;  %v11919_v59 = vor.u32 %v17650_v27, %v11916_v51  ;;  %v12143_v47 = vor.u32 %v17706_v56, %v12140_v36  ;;  %v25546_v32 = vadd.f32 %v10350_v26, %v10338_v13  ;;  %v11860_v27 = vld [vmem:[%s28127_s1 + $0x64] sm:$0xf0]  ;;  %v17206_v36 = vld [vmem:[%s28127_s1 + $0x2a10] sm:$0xf]  ;;  %v17902_v13 = vld [vmem:[%s28127_s1 + $0x89c] sm:$0xf] }
 0x3ec   :  { %10564 = vmatpush.bf16.msrb.mxu0 %v17347_v10  ;;  %v12367_v10 = vor.u32 %v17762_v57, %v12364_v55  ;;  %v12308_v51 = vld [vmem:[%s28127_s1 + $0x3e4] sm:$0xf0]  ;;  %v18976_v57 = vld [vmem:[%s28127_s1 + $0x2a28] sm:$0xf0] }
 0x3ed   :  { %10577 = vmatpush.bf16.msrb.mxu1 %v11975_v2  ;;  %v11888_v2 = vld [vmem:[%s28127_s1 + $0x9c] sm:$0xf0]  ;;  %v17207_v26 = vor.u32 %v18976_v57, %v17206_v36  ;;  %v18007_v57 = vld [vmem:[%s28127_s1 + $0xbe4] sm:$0xf] }
 0x3ee   :  { %10590 = vmatpush.bf16.msrb.mxu2 %v12199_v53  ;;  %v17699_v53 = vld [vmem:[%s28127_s1 + $0x244] sm:$0xf]  ;;  %v11891_v5 = vor.u32 %v17643_v4, %v11888_v2  ;;  %v12056_v4 = vld [vmem:[%s28127_s1 + $0x1ec] sm:$0xf0]  ;;  %v13120_v36 = vld [vmem:[%s28127_s1 + $0xa3c] sm:$0xf0] }
 0x3ef   :  { %10603 = vmatpush.bf16.msrb.mxu3 %v12423_v52  ;;  %v17755_v52 = vld [vmem:[%s28127_s1 + $0x404] sm:$0xf] }
 0x3f0   :  { %10565 = vmatpush.bf16.msrb.mxu0 %v17319_v15  ;;  %v12115_v15 = vor.u32 %v17699_v53, %v12112_v63  ;;  %v12339_v43 = vor.u32 %v17755_v52, %v12336_v6  ;;  %v10339_v62 = vpop.f32.mrf.mxu2  ;;  %v17846_v53 = vld [vmem:[%s28127_s1 + $0x6dc] sm:$0xf]  ;;  %v12700_v63 = vld [vmem:[%s28127_s1 + $0x6f4] sm:$0xf0] }
 0x3f1   :  { %10578 = vmatpush.bf16.msrb.mxu1 %v11947_v34  ;;  %v18983_v34 = vld [vmem:[%s28127_s1 + $0x2a60] sm:$0xf0]  ;;  %v10352_v2 = vpop.f32.mrf.mxu3  ;;  %v12924_v52 = vld [vmem:[%s28127_s1 + $0x8b4] sm:$0xf0]  ;;  %v17958_v6 = vld [vmem:[%s28127_s1 + $0xa5c] sm:$0xf] }
 0x3f2   :  { %10591 = vmatpush.bf16.msrb.mxu2 %v12171_v0  ;;  %v17636_v0 = vld [vmem:[%s28127_s1 + $0x4c] sm:$0xf]  ;;  %v17235_v56 = vor.u32 %v18983_v34, %v17234_v60  ;;  %v13372_v60 = vld [vmem:[%s28127_s1 + $0xc34] sm:$0xf0]  ;;  %v12927_v40 = vor.u32 %v17902_v13, %v12924_v52  ;;  %v12644_v62 = vld [vmem:[%s28127_s1 + $0x684] sm:$0xf0] }
 0x3f3   :  { %10604 = vmatpush.bf16.msrb.mxu3 %v12395_v50  ;;  %v17748_v50 = vld [vmem:[%s28127_s1 + $0x3cc] sm:$0xf]  ;;  %v11863_v55 = vor.u32 %v17636_v0, %v11860_v27  ;;  %v12703_v0 = vor.u32 %v17846_v53, %v12700_v63  ;;  %v17839_v27 = vld [vmem:[%s28127_s1 + $0x6a4] sm:$0xf]  ;;  %v13092_v2 = vld [vmem:[%s28127_s1 + $0xa04] sm:$0xf0] }
 0x3f4   :  { %10566 = vmatpush.bf16.msrb.mxu0 %v17291_v58  ;;  %v17629_v58 = vld [vmem:[%s28127_s1 + $0x14] sm:$0xf]  ;;  %v12311_v21 = vor.u32 %v17748_v50, %v12308_v51  ;;  %v12896_v51 = vld [vmem:[%s28127_s1 + $0x87c] sm:$0xf0]  ;;  %v18000_v53 = vld [vmem:[%s28127_s1 + $0xbac] sm:$0xf] }
 0x3f5   :  { %10579 = vmatpush.bf16.msrb.mxu1 %v11919_v59  ;;  %v11832_v59 = vld [vmem:[%s28127_s1 + $0x2c] sm:$0xf0]  ;;  %v13316_v63 = vld [vmem:[%s28127_s1 + $0xbc4] sm:$0xf0] }
 0x3f6   :  { %10592 = vmatpush.bf16.msrb.mxu2 %v12143_v47  ;;  %v17685_v47 = vld [vmem:[%s28127_s1 + $0x1d4] sm:$0xf]  ;;  %v11835_v14 = vor.u32 %v17629_v58, %v11832_v59  ;;  %v12899_v58 = vor.u32 %v17895_v17, %v12896_v51 }
 0x3f7   :  { %10605 = vmatpush.bf16.msrb.mxu3 %v12367_v10  ;;  %v12280_v10 = vld [vmem:[%s28127_s1 + $0x3ac] sm:$0xf0] }
 0x3f8   :  { %10567 = vmatpush.bf16.msrb.mxu0 %v17263_v9  ;;  %v13148_v9 = vld [vmem:[%s28127_s1 + $0xa74] sm:$0xf0]  ;;  %v12283_v34 = vor.u32 %v17741_v8, %v12280_v10  ;;  %v12868_v8 = vld [vmem:[%s28127_s1 + $0x844] sm:$0xf0]  ;;  %v17944_v10 = vld [vmem:[%s28127_s1 + $0x9ec] sm:$0xf] }
 0x3f9   :  { %10580 = vmatpush.bf16.msrb.mxu1 %v11891_v5  ;;  %v12059_v5 = vor.u32 %v17685_v47, %v12056_v4  ;;  %v17832_v47 = vld [vmem:[%s28127_s1 + $0x66c] sm:$0xf]  ;;  %v13095_v52 = vor.u32 %v17944_v10, %v13092_v2  ;;  %v17811_v10 = vld [vmem:[%s28127_s1 + $0x5c4] sm:$0xf]  ;;  %v12560_v2 = vld [vmem:[%s28127_s1 + $0x5dc] sm:$0xf0] }
 0x3fa   :  { %10593 = vmatpush.bf16.msrb.mxu2 %v12115_v15  ;;  %v18014_v15 = vld [vmem:[%s28127_s1 + $0xc1c] sm:$0xf]  ;;  %v12647_v13 = vor.u32 %v17832_v47, %v12644_v62  ;;  %v13260_v62 = vld [vmem:[%s28127_s1 + $0xb54] sm:$0xf0] }
 0x3fb   :  { %10606 = vmatpush.bf16.msrb.mxu3 %v12339_v43  ;;  %v13151_v43 = vor.u32 %v17958_v6, %v13148_v9  ;;  %v13375_v50 = vor.u32 %v18014_v15, %v13372_v60  ;;  %v17825_v6 = vld [vmem:[%s28127_s1 + $0x634] sm:$0xf]  ;;  %v12616_v9 = vld [vmem:[%s28127_s1 + $0x64c] sm:$0xf0]  ;;  %v17986_v47 = vld [vmem:[%s28127_s1 + $0xb3c] sm:$0xf] }
 0x3fc   :  { %10568 = vmatpush.bf16.msrb.mxu0 %v17235_v56  ;;  %v17951_v56 = vld [vmem:[%s28127_s1 + $0xa24] sm:$0xf]  ;;  %v12840_v15 = vld [vmem:[%s28127_s1 + $0x80c] sm:$0xf0]  ;;  %v17937_v60 = vld [vmem:[%s28127_s1 + $0x9b4] sm:$0xf] }
 0x3fd   :  { %10581 = vmatpush.bf16.msrb.mxu1 %v11863_v55  ;;  %v13344_v55 = vld [vmem:[%s28127_s1 + $0xbfc] sm:$0xf0]  ;;  %v13123_v59 = vor.u32 %v17951_v56, %v13120_v36  ;;  %v17818_v56 = vld [vmem:[%s28127_s1 + $0x5fc] sm:$0xf]  ;;  %v12588_v36 = vld [vmem:[%s28127_s1 + $0x614] sm:$0xf0] }
 0x3fe   :  { %10594 = vmatpush.bf16.msrb.mxu2 %v12087_v48  ;;  %v12675_v48 = vor.u32 %v17839_v27, %v12672_v24  ;;  %v13347_v4 = vor.u32 %v18007_v57, %v13344_v55  ;;  %v12619_v24 = vor.u32 %v17825_v6, %v12616_v9  ;;  %v17874_v57 = vld [vmem:[%s28127_s1 + $0x7bc] sm:$0xf]  ;;  %v13008_v6 = vld [vmem:[%s28127_s1 + $0x95c] sm:$0xf0] }
 0x3ff   :  { %10607 = vmatpush.bf16.msrb.mxu3 %v12311_v21  ;;  %v17888_v21 = vld [vmem:[%s28127_s1 + $0x82c] sm:$0xf] }
 0x400   :  { %10569 = vmatpush.bf16.msrb.mxu0 %v17207_v26  ;;  %v12871_v26 = vor.u32 %v17888_v21, %v12868_v8  ;;  %v12591_v21 = vor.u32 %v17818_v56, %v12588_v36  ;;  %v12756_v56 = vld [vmem:[%s28127_s1 + $0x764] sm:$0xf0]  ;;  %v17916_v36 = vld [vmem:[%s28127_s1 + $0x90c] sm:$0xf] }
 0x401   :  { %10582 = vmatpush.bf16.msrb.mxu1 %v11835_v14  ;;  %v17881_v14 = vld [vmem:[%s28127_s1 + $0x7f4] sm:$0xf]  ;;  %v10376_v17 = vpop.f32.mrf.mxu1 }
 0x402   :  { %10595 = vmatpush.bf16.msrb.mxu2 %v12059_v5  ;;  %v13319_v5 = vor.u32 %v18000_v53, %v13316_v63  ;;  %v17867_v53 = vld [vmem:[%s28127_s1 + $0x784] sm:$0xf]  ;;  %v13263_v63 = vor.u32 %v17986_v47, %v13260_v62 }
 0x403   :  { %10608 = vmatpush.bf16.msrb.mxu3 %v12283_v34  ;;  %10570 = vmatmul.bf16.vlgmr.msrb.gmra.mxu0 %v20635_v1  ;;  %v13064_v34 = vld [vmem:[%s28127_s1 + $0x9cc] sm:$0xf0] }
 0x404   :  { %10614 = vmatpush.bf16.msra.mxu0 %v12703_v0  ;;  %10583 = vmatmul.bf16.vlgmr.msrb.gmra.mxu1 %v19435_v19  ;;  %v10363_v0 = vpop.f32.mrf.mxu0  ;;  %v13067_v51 = vor.u32 %v17937_v60, %v13064_v34  ;;  %v12563_v34 = vor.u32 %v17811_v10, %v12560_v2  ;;  %v12952_v2 = vld [vmem:[%s28127_s1 + $0x8ec] sm:$0xf0] }
 0x405   :  { %10627 = vmatpush.bf16.msra.mxu1 %v12927_v40  ;;  %10596 = vmatmul.bf16.vlgmr.msrb.gmra.mxu2 %v19439_v22  ;;  %v17993_v40 = vld [vmem:[%s28127_s1 + $0xb74] sm:$0xf]  ;;  %v10364_v27 = vadd.f32 %v10363_v0, %v25546_v32 }
 0x406   :  { %10640 = vmatpush.bf16.msra.mxu2 %v13151_v43  ;;  %10609 = vmatmul.bf16.vlgmr.msrb.gmra.mxu3 %v19433_v18  ;;  %v13288_v43 = vld [vmem:[%s28127_s1 + $0xb8c] sm:$0xf0] }
 0x407   :  { %10653 = vmatpush.bf16.msra.mxu3 %v13375_v50  ;;  %v12843_v50 = vor.u32 %v17881_v14, %v12840_v15  ;;  %v13291_v32 = vor.u32 %v17993_v40, %v13288_v43  ;;  %v10377_v55 = vadd.f32 %v10376_v17, %v10364_v27  ;;  %v13232_v15 = vld [vmem:[%s28127_s1 + $0xb1c] sm:$0xf0]  ;;  %v12532_v17 = vld [vmem:[%s28127_s1 + $0x5a4] sm:$0xf0] }
 0x408   :  { %10615 = vmatpush.bf16.msra.mxu0 %v12675_v48  ;;  %v12812_v48 = vld [vmem:[%s28127_s1 + $0x7d4] sm:$0xf0] }
 0x409   :  { %10628 = vmatpush.bf16.msra.mxu1 %v12899_v58  ;;  %v17930_v58 = vld [vmem:[%s28127_s1 + $0x97c] sm:$0xf]  ;;  %v10402_v14 = vpop.f32.mrf.mxu3  ;;  %v10378_v0 = vpop.f32.mrf.mxu1 }
 0x40a   :  { %10641 = vmatpush.bf16.msra.mxu2 %v13123_v59  ;;  %v13036_v59 = vld [vmem:[%s28127_s1 + $0x994] sm:$0xf0] }
 0x40b   :  { %10654 = vmatpush.bf16.msra.mxu3 %v13347_v4  ;;  %v12815_v4 = vor.u32 %v17874_v57, %v12812_v48  ;;  %v13039_v8 = vor.u32 %v17930_v58, %v13036_v59  ;;  %v12980_v57 = vld [vmem:[%s28127_s1 + $0x924] sm:$0xf0]  ;;  %v17797_v58 = vld [vmem:[%s28127_s1 + $0x554] sm:$0xf]  ;;  %v12504_v59 = vld [vmem:[%s28127_s1 + $0x56c] sm:$0xf0] }
 0x40c   :  { %10616 = vmatpush.bf16.msra.mxu0 %v12647_v13  ;;  %v10389_v13 = vpop.f32.mrf.mxu2  ;;  %v10365_v60 = vpop.f32.mrf.mxu0  ;;  %v12983_v62 = vor.u32 %v17916_v36, %v12980_v57  ;;  %v13568_v36 = vld [vmem:[%s28127_s1 + $0xdbc] sm:$0xf0]  ;;  %v18119_v57 = vld [vmem:[%s28127_s1 + $0xf64] sm:$0xf] }
 0x40d   :  { %10629 = vmatpush.bf16.msra.mxu1 %v12871_v26  ;;  %v12784_v26 = vld [vmem:[%s28127_s1 + $0x79c] sm:$0xf0]  ;;  %v10390_v9 = vadd.f32 %v10389_v13, %v10377_v55  ;;  %v13204_v55 = vld [vmem:[%s28127_s1 + $0xae4] sm:$0xf0]  ;;  %v14044_v60 = vld [vmem:[%s28127_s1 + $0x1174] sm:$0xf0] }
 0x40e   :  { %10642 = vmatpush.bf16.msra.mxu2 %v13095_v52  ;;  %v17923_v52 = vld [vmem:[%s28127_s1 + $0x944] sm:$0xf]  ;;  %v12787_v43 = vor.u32 %v17867_v53, %v12784_v26  ;;  %v17965_v53 = vld [vmem:[%s28127_s1 + $0xa94] sm:$0xf]  ;;  %v18070_v26 = vld [vmem:[%s28127_s1 + $0xddc] sm:$0xf] }
 0x40f   :  { %10655 = vmatpush.bf16.msra.mxu3 %v13319_v5  ;;  %v17979_v5 = vld [vmem:[%s28127_s1 + $0xb04] sm:$0xf]  ;;  %v25745_v40 = vadd.f32 %v10402_v14, %v10390_v9  ;;  %v13011_v27 = vor.u32 %v17923_v52, %v13008_v6  ;;  %v13596_v52 = vld [vmem:[%s28127_s1 + $0xdf4] sm:$0xf0]  ;;  %v18126_v6 = vld [vmem:[%s28127_s1 + $0xf9c] sm:$0xf]  ;;  %v12507_v14 = vor.u32 %v17797_v58, %v12504_v59 }
 0x410   :  { %10617 = vmatpush.bf16.msra.mxu0 %v12619_v24  ;;  %v17804_v24 = vld [vmem:[%s28127_s1 + $0x58c] sm:$0xf]  ;;  %v14016_v58 = vld [vmem:[%s28127_s1 + $0x113c] sm:$0xf0]  ;;  %v18231_v59 = vld [vmem:[%s28127_s1 + $0x12e4] sm:$0xf] }
 0x411   :  { %10630 = vmatpush.bf16.msra.mxu1 %v12843_v50  ;;  %v17860_v50 = vld [vmem:[%s28127_s1 + $0x74c] sm:$0xf]  ;;  %v12535_v48 = vor.u32 %v17804_v24, %v12532_v17  ;;  %v10404_v9 = vpop.f32.mrf.mxu3  ;;  %v13599_v17 = vor.u32 %v18070_v26, %v13596_v52  ;;  %v13988_v26 = vld [vmem:[%s28127_s1 + $0x1104] sm:$0xf0] }
 0x412   :  { %10643 = vmatpush.bf16.msra.mxu2 %v13067_v51  ;;  %v13235_v51 = vor.u32 %v17979_v5, %v13232_v15  ;;  %v12759_v47 = vor.u32 %v17860_v50, %v12756_v56  ;;  %v13820_v5 = vld [vmem:[%s28127_s1 + $0xfb4] sm:$0xf0]  ;;  %v18182_v15 = vld [vmem:[%s28127_s1 + $0x115c] sm:$0xf]  ;;  %v18063_v56 = vld [vmem:[%s28127_s1 + $0xda4] sm:$0xf] }
 0x413   :  { %10656 = vmatpush.bf16.msra.mxu3 %v13291_v32  ;;  %v17972_v32 = vld [vmem:[%s28127_s1 + $0xacc] sm:$0xf]  ;;  %v13823_v50 = vor.u32 %v18126_v6, %v13820_v5  ;;  %v14212_v6 = vld [vmem:[%s28127_s1 + $0x12c4] sm:$0xf0] }
 0x414   :  { %10618 = vmatpush.bf16.msra.mxu0 %v12591_v21  ;;  %v17853_v21 = vld [vmem:[%s28127_s1 + $0x714] sm:$0xf]  ;;  %v13207_v10 = vor.u32 %v17972_v32, %v13204_v55  ;;  %v10391_v13 = vpop.f32.mrf.mxu2  ;;  %v13792_v55 = vld [vmem:[%s28127_s1 + $0xf7c] sm:$0xf0]  ;;  %v18224_v52 = vld [vmem:[%s28127_s1 + $0x12ac] sm:$0xf] }
 0x415   :  { %10631 = vmatpush.bf16.msra.mxu1 %v12815_v4  ;;  %v12728_v4 = vld [vmem:[%s28127_s1 + $0x72c] sm:$0xf0]  ;;  %v18168_v13 = vld [vmem:[%s28127_s1 + $0x10ec] sm:$0xf] }
 0x416   :  { %10644 = vmatpush.bf16.msra.mxu2 %v13039_v8  ;;  %v17909_v8 = vld [vmem:[%s28127_s1 + $0x8d4] sm:$0xf]  ;;  %v13991_v5 = vor.u32 %v18168_v13, %v13988_v26  ;;  %v18035_v13 = vld [vmem:[%s28127_s1 + $0xcc4] sm:$0xf]  ;;  %v13456_v26 = vld [vmem:[%s28127_s1 + $0xcdc] sm:$0xf0] }
 0x417   :  { %10657 = vmatpush.bf16.msra.mxu3 %v13263_v63  ;;  %v13176_v63 = vld [vmem:[%s28127_s1 + $0xaac] sm:$0xf0]  ;;  %v12955_v0 = vor.u32 %v17909_v8, %v12952_v2  ;;  %v18056_v8 = vld [vmem:[%s28127_s1 + $0xd6c] sm:$0xf] }
 0x418   :  { %10619 = vmatpush.bf16.msra.mxu0 %v12563_v34  ;;  %v12731_v34 = vor.u32 %v17853_v21, %v12728_v4  ;;  %v13179_v24 = vor.u32 %v17965_v53, %v13176_v63  ;;  %v13795_v21 = vor.u32 %v18119_v57, %v13792_v55  ;;  %v18112_v2 = vld [vmem:[%s28127_s1 + $0xf2c] sm:$0xf]  ;;  %v13764_v63 = vld [vmem:[%s28127_s1 + $0xf44] sm:$0xf0] }
 0x419   :  { %10632 = vmatpush.bf16.msra.mxu1 %v12787_v43  ;;  %v18238_v43 = vld [vmem:[%s28127_s1 + $0x131c] sm:$0xf] }
 0x41a   :  { %10645 = vmatpush.bf16.msra.mxu2 %v13011_v27  ;;  %v14268_v27 = vld [vmem:[%s28127_s1 + $0x1334] sm:$0xf0] }
 0x41b   :  { %10658 = vmatpush.bf16.msra.mxu3 %v13235_v51  ;;  %v14047_v51 = vor.u32 %v18182_v15, %v14044_v60  ;;  %v14271_v32 = vor.u32 %v18238_v43, %v14268_v27  ;;  %v18049_v15 = vld [vmem:[%s28127_s1 + $0xd34] sm:$0xf]  ;;  %v13512_v60 = vld [vmem:[%s28127_s1 + $0xd4c] sm:$0xf0] }
 0x41c   :  { %10620 = vmatpush.bf16.msra.mxu0 %v12535_v48  ;;  %v18175_v48 = vld [vmem:[%s28127_s1 + $0x1124] sm:$0xf]  ;;  %v13736_v43 = vld [vmem:[%s28127_s1 + $0xf0c] sm:$0xf0]  ;;  %v18161_v27 = vld [vmem:[%s28127_s1 + $0x10b4] sm:$0xf] }
 0x41d   :  { %10633 = vmatpush.bf16.msra.mxu1 %v12759_v47  ;;  %v14240_v47 = vld [vmem:[%s28127_s1 + $0x12fc] sm:$0xf0]  ;;  %v14019_v4 = vor.u32 %v18175_v48, %v14016_v58  ;;  %v18042_v48 = vld [vmem:[%s28127_s1 + $0xcfc] sm:$0xf]  ;;  %v13484_v58 = vld [vmem:[%s28127_s1 + $0xd14] sm:$0xf0] }
 0x41e   :  { %10646 = vmatpush.bf16.msra.mxu2 %v12983_v62  ;;  %v13571_v62 = vor.u32 %v18063_v56, %v13568_v36  ;;  %v14243_v53 = vor.u32 %v18231_v59, %v14240_v47  ;;  %v13515_v36 = vor.u32 %v18049_v15, %v13512_v60  ;;  %v18098_v59 = vld [vmem:[%s28127_s1 + $0xebc] sm:$0xf]  ;;  %v13904_v15 = vld [vmem:[%s28127_s1 + $0x105c] sm:$0xf0] }
 0x41f   :  { %10659 = vmatpush.bf16.msra.mxu3 %v13207_v10  ;;  %v13540_v10 = vld [vmem:[%s28127_s1 + $0xd84] sm:$0xf0] }
 0x420   :  { %10621 = vmatpush.bf16.msra.mxu0 %v12507_v14  ;;  %v13543_v9 = vor.u32 %v18056_v8, %v13540_v10  ;;  %v13767_v14 = vor.u32 %v18112_v2, %v13764_v63  ;;  %v18210_v8 = vld [vmem:[%s28127_s1 + $0x123c] sm:$0xf]  ;;  %v14156_v10 = vld [vmem:[%s28127_s1 + $0x1254] sm:$0xf0]  ;;  %v13487_v2 = vor.u32 %v18042_v48, %v13484_v58  ;;  %v13652_v48 = vld [vmem:[%s28127_s1 + $0xe64] sm:$0xf0] }
 0x421   :  { %10634 = vmatpush.bf16.msra.mxu1 %v12731_v34  ;;  %v18105_v34 = vld [vmem:[%s28127_s1 + $0xef4] sm:$0xf]  ;;  %v10428_v57 = vpop.f32.mrf.mxu1  ;;  %v18140_v58 = vld [vmem:[%s28127_s1 + $0x100c] sm:$0xf] }
 0x422   :  { %10647 = vmatpush.bf16.msra.mxu2 %v12955_v0  ;;  %v14215_v0 = vor.u32 %v18224_v52, %v14212_v6  ;;  %v18091_v52 = vld [vmem:[%s28127_s1 + $0xe84] sm:$0xf]  ;;  %v14159_v6 = vor.u32 %v18210_v8, %v14156_v10 }
 0x423   :  { %10660 = vmatpush.bf16.msra.mxu3 %v13179_v24  ;;  %10622 = vmatmul.bf16.vlgmr.msra.gmra.mxu0 %v19437_v20  ;;  %v13960_v24 = vld [vmem:[%s28127_s1 + $0x10cc] sm:$0xf0] }
 0x424   :  { %10666 = vmatpush.bf16.msrb.mxu0 %v13599_v17  ;;  %10635 = vmatmul.bf16.vlgmr.msra.gmra.mxu1 %v19597_v41  ;;  %v10415_v17 = vpop.f32.mrf.mxu0  ;;  %v13963_v55 = vor.u32 %v18161_v27, %v13960_v24  ;;  %v13459_v24 = vor.u32 %v18035_v13, %v13456_v26  ;;  %v13848_v26 = vld [vmem:[%s28127_s1 + $0xfec] sm:$0xf0] }
 0x425   :  { %10679 = vmatpush.bf16.msrb.mxu1 %v13823_v50  ;;  %10648 = vmatmul.bf16.vlgmr.msra.gmra.mxu2 %v19601_v44  ;;  %v18217_v50 = vld [vmem:[%s28127_s1 + $0x1274] sm:$0xf]  ;;  %v10416_v56 = vadd.f32 %v10415_v17, %v25745_v40 }
 0x426   :  { %10692 = vmatpush.bf16.msrb.mxu2 %v14047_v51  ;;  %10661 = vmatmul.bf16.vlgmr.msra.gmra.mxu3 %v19589_v38  ;;  %v14184_v51 = vld [vmem:[%s28127_s1 + $0x128c] sm:$0xf0] }
 0x427   :  { %10705 = vmatpush.bf16.msrb.mxu3 %v14271_v32  ;;  %v13739_v32 = vor.u32 %v18105_v34, %v13736_v43  ;;  %v14187_v40 = vor.u32 %v18217_v50, %v14184_v51  ;;  %v10429_v47 = vadd.f32 %v10428_v57, %v10416_v56  ;;  %v14128_v43 = vld [vmem:[%s28127_s1 + $0x121c] sm:$0xf0]  ;;  %v13428_v57 = vld [vmem:[%s28127_s1 + $0xca4] sm:$0xf0] }
 0x428   :  { %10667 = vmatpush.bf16.msrb.mxu0 %v13571_v62  ;;  %v13708_v62 = vld [vmem:[%s28127_s1 + $0xed4] sm:$0xf0] }
 0x429   :  { %10680 = vmatpush.bf16.msrb.mxu1 %v13795_v21  ;;  %v18154_v21 = vld [vmem:[%s28127_s1 + $0x107c] sm:$0xf]  ;;  %v10454_v34 = vpop.f32.mrf.mxu3  ;;  %v10430_v17 = vpop.f32.mrf.mxu1 }
 0x42a   :  { %10693 = vmatpush.bf16.msrb.mxu2 %v14019_v4  ;;  %v13932_v4 = vld [vmem:[%s28127_s1 + $0x1094] sm:$0xf0] }
 0x42b   :  { %10706 = vmatpush.bf16.msrb.mxu3 %v14243_v53  ;;  %v13711_v53 = vor.u32 %v18098_v59, %v13708_v62  ;;  %v13935_v63 = vor.u32 %v18154_v21, %v13932_v4  ;;  %v13876_v59 = vld [vmem:[%s28127_s1 + $0x1024] sm:$0xf0]  ;;  %v18021_v21 = vld [vmem:[%s28127_s1 + $0xc54] sm:$0xf]  ;;  %v13400_v4 = vld [vmem:[%s28127_s1 + $0xc6c] sm:$0xf0] }
 0x42c   :  { %10668 = vmatpush.bf16.msrb.mxu0 %v13543_v9  ;;  %v10441_v9 = vpop.f32.mrf.mxu2  ;;  %v10417_v27 = vpop.f32.mrf.mxu0  ;;  %v13879_v10 = vor.u32 %v18140_v58, %v13876_v59  ;;  %v14464_v58 = vld [vmem:[%s28127_s1 + $0x14bc] sm:$0xf0]  ;;  %v18343_v59 = vld [vmem:[%s28127_s1 + $0x1664] sm:$0xf] }
 0x42d   :  { %10681 = vmatpush.bf16.msrb.mxu1 %v13767_v14  ;;  %v13680_v14 = vld [vmem:[%s28127_s1 + $0xe9c] sm:$0xf0]  ;;  %v10442_v60 = vadd.f32 %v10441_v9, %v10429_v47  ;;  %v14100_v47 = vld [vmem:[%s28127_s1 + $0x11e4] sm:$0xf0]  ;;  %v14940_v27 = vld [vmem:[%s28127_s1 + $0x1874] sm:$0xf0] }
 0x42e   :  { %10694 = vmatpush.bf16.msrb.mxu2 %v13991_v5  ;;  %v18147_v5 = vld [vmem:[%s28127_s1 + $0x1044] sm:$0xf]  ;;  %v13683_v51 = vor.u32 %v18091_v52, %v13680_v14  ;;  %v18189_v52 = vld [vmem:[%s28127_s1 + $0x1194] sm:$0xf]  ;;  %v18294_v14 = vld [vmem:[%s28127_s1 + $0x14dc] sm:$0xf] }
 0x42f   :  { %10707 = vmatpush.bf16.msrb.mxu3 %v14215_v0  ;;  %v18203_v0 = vld [vmem:[%s28127_s1 + $0x1204] sm:$0xf]  ;;  %v25944_v50 = vadd.f32 %v10454_v34, %v10442_v60  ;;  %v13907_v56 = vor.u32 %v18147_v5, %v13904_v15  ;;  %v14492_v5 = vld [vmem:[%s28127_s1 + $0x14f4] sm:$0xf0]  ;;  %v18350_v15 = vld [vmem:[%s28127_s1 + $0x169c] sm:$0xf]  ;;  %v13403_v34 = vor.u32 %v18021_v21, %v13400_v4 }
 0x430   :  { %10669 = vmatpush.bf16.msrb.mxu0 %v13515_v36  ;;  %v18028_v36 = vld [vmem:[%s28127_s1 + $0xc8c] sm:$0xf]  ;;  %v14912_v21 = vld [vmem:[%s28127_s1 + $0x183c] sm:$0xf0]  ;;  %v18455_v4 = vld [vmem:[%s28127_s1 + $0x19e4] sm:$0xf] }
 0x431   :  { %10682 = vmatpush.bf16.msrb.mxu1 %v13739_v32  ;;  %v18084_v32 = vld [vmem:[%s28127_s1 + $0xe4c] sm:$0xf]  ;;  %v13431_v62 = vor.u32 %v18028_v36, %v13428_v57  ;;  %v10456_v60 = vpop.f32.mrf.mxu3  ;;  %v14495_v57 = vor.u32 %v18294_v14, %v14492_v5  ;;  %v14884_v14 = vld [vmem:[%s28127_s1 + $0x1804] sm:$0xf0] }
 0x432   :  { %10695 = vmatpush.bf16.msrb.mxu2 %v13963_v55  ;;  %v14131_v55 = vor.u32 %v18203_v0, %v14128_v43  ;;  %v13655_v8 = vor.u32 %v18084_v32, %v13652_v48  ;;  %v14716_v0 = vld [vmem:[%s28127_s1 + $0x16b4] sm:$0xf0]  ;;  %v18406_v43 = vld [vmem:[%s28127_s1 + $0x185c] sm:$0xf]  ;;  %v18287_v48 = vld [vmem:[%s28127_s1 + $0x14a4] sm:$0xf] }
 0x433   :  { %10708 = vmatpush.bf16.msrb.mxu3 %v14187_v40  ;;  %v18196_v40 = vld [vmem:[%s28127_s1 + $0x11cc] sm:$0xf]  ;;  %v14719_v32 = vor.u32 %v18350_v15, %v14716_v0  ;;  %v15108_v15 = vld [vmem:[%s28127_s1 + $0x19c4] sm:$0xf0] }
 0x434   :  { %10670 = vmatpush.bf16.msrb.mxu0 %v13487_v2  ;;  %v18077_v2 = vld [vmem:[%s28127_s1 + $0xe14] sm:$0xf]  ;;  %v14103_v13 = vor.u32 %v18196_v40, %v14100_v47  ;;  %v10443_v9 = vpop.f32.mrf.mxu2  ;;  %v14688_v47 = vld [vmem:[%s28127_s1 + $0x167c] sm:$0xf0]  ;;  %v18448_v5 = vld [vmem:[%s28127_s1 + $0x19ac] sm:$0xf] }
 0x435   :  { %10683 = vmatpush.bf16.msrb.mxu1 %v13711_v53  ;;  %v13624_v53 = vld [vmem:[%s28127_s1 + $0xe2c] sm:$0xf0]  ;;  %v18392_v9 = vld [vmem:[%s28127_s1 + $0x17ec] sm:$0xf] }
 0x436   :  { %10696 = vmatpush.bf16.msrb.mxu2 %v13935_v63  ;;  %v18133_v63 = vld [vmem:[%s28127_s1 + $0xfd4] sm:$0xf]  ;;  %v14887_v0 = vor.u32 %v18392_v9, %v14884_v14  ;;  %v18259_v9 = vld [vmem:[%s28127_s1 + $0x13c4] sm:$0xf]  ;;  %v14352_v14 = vld [vmem:[%s28127_s1 + $0x13dc] sm:$0xf0] }
 0x437   :  { %10709 = vmatpush.bf16.msrb.mxu3 %v14159_v6  ;;  %v14072_v6 = vld [vmem:[%s28127_s1 + $0x11ac] sm:$0xf0]  ;;  %v13851_v17 = vor.u32 %v18133_v63, %v13848_v26  ;;  %v18280_v63 = vld [vmem:[%s28127_s1 + $0x146c] sm:$0xf] }
 0x438   :  { %10671 = vmatpush.bf16.msrb.mxu0 %v13459_v24  ;;  %v13627_v24 = vor.u32 %v18077_v2, %v13624_v53  ;;  %v14075_v36 = vor.u32 %v18189_v52, %v14072_v6  ;;  %v14691_v2 = vor.u32 %v18343_v59, %v14688_v47  ;;  %v18336_v26 = vld [vmem:[%s28127_s1 + $0x162c] sm:$0xf]  ;;  %v14660_v6 = vld [vmem:[%s28127_s1 + $0x1644] sm:$0xf0] }
 0x439   :  { %10684 = vmatpush.bf16.msrb.mxu1 %v13683_v51  ;;  %v18462_v51 = vld [vmem:[%s28127_s1 + $0x1a1c] sm:$0xf] }
 0x43a   :  { %10697 = vmatpush.bf16.msrb.mxu2 %v13907_v56  ;;  %v15164_v56 = vld [vmem:[%s28127_s1 + $0x1a34] sm:$0xf0] }
 0x43b   :  { %10710 = vmatpush.bf16.msrb.mxu3 %v14131_v55  ;;  %v14943_v55 = vor.u32 %v18406_v43, %v14940_v27  ;;  %v15167_v40 = vor.u32 %v18462_v51, %v15164_v56  ;;  %v18273_v43 = vld [vmem:[%s28127_s1 + $0x1434] sm:$0xf]  ;;  %v14408_v27 = vld [vmem:[%s28127_s1 + $0x144c] sm:$0xf0] }
 0x43c   :  { %10672 = vmatpush.bf16.msrb.mxu0 %v13431_v62  ;;  %v18399_v62 = vld [vmem:[%s28127_s1 + $0x1824] sm:$0xf]  ;;  %v14632_v51 = vld [vmem:[%s28127_s1 + $0x160c] sm:$0xf0]  ;;  %v18385_v56 = vld [vmem:[%s28127_s1 + $0x17b4] sm:$0xf] }
 0x43d   :  { %10685 = vmatpush.bf16.msrb.mxu1 %v13655_v8  ;;  %v15136_v8 = vld [vmem:[%s28127_s1 + $0x19fc] sm:$0xf0]  ;;  %v14915_v53 = vor.u32 %v18399_v62, %v14912_v21  ;;  %v18266_v62 = vld [vmem:[%s28127_s1 + $0x13fc] sm:$0xf]  ;;  %v14380_v21 = vld [vmem:[%s28127_s1 + $0x1414] sm:$0xf0] }
 0x43e   :  { %10698 = vmatpush.bf16.msrb.mxu2 %v13879_v10  ;;  %v14467_v10 = vor.u32 %v18287_v48, %v14464_v58  ;;  %v15139_v52 = vor.u32 %v18455_v4, %v15136_v8  ;;  %v14411_v58 = vor.u32 %v18273_v43, %v14408_v27  ;;  %v18322_v4 = vld [vmem:[%s28127_s1 + $0x15bc] sm:$0xf]  ;;  %v14800_v43 = vld [vmem:[%s28127_s1 + $0x175c] sm:$0xf0] }
 0x43f   :  { %10711 = vmatpush.bf16.msrb.mxu3 %v14103_v13  ;;  %v14436_v13 = vld [vmem:[%s28127_s1 + $0x1484] sm:$0xf0] }
 0x440   :  { %10673 = vmatpush.bf16.msrb.mxu0 %v13403_v34  ;;  %v14439_v60 = vor.u32 %v18280_v63, %v14436_v13  ;;  %v14663_v34 = vor.u32 %v18336_v26, %v14660_v6  ;;  %v18434_v63 = vld [vmem:[%s28127_s1 + $0x193c] sm:$0xf]  ;;  %v15052_v13 = vld [vmem:[%s28127_s1 + $0x1954] sm:$0xf0]  ;;  %v14383_v26 = vor.u32 %v18266_v62, %v14380_v21  ;;  %v14548_v62 = vld [vmem:[%s28127_s1 + $0x1564] sm:$0xf0] }
 0x441   :  { %10686 = vmatpush.bf16.msrb.mxu1 %v13627_v24  ;;  %v18329_v24 = vld [vmem:[%s28127_s1 + $0x15f4] sm:$0xf]  ;;  %v10480_v59 = vpop.f32.mrf.mxu1  ;;  %v18364_v21 = vld [vmem:[%s28127_s1 + $0x170c] sm:$0xf] }
 0x442   :  { %10699 = vmatpush.bf16.msrb.mxu2 %v13851_v17  ;;  %v15111_v17 = vor.u32 %v18448_v5, %v15108_v15  ;;  %v18315_v5 = vld [vmem:[%s28127_s1 + $0x1584] sm:$0xf]  ;;  %v15055_v15 = vor.u32 %v18434_v63, %v15052_v13 }
 0x443   :  { %10712 = vmatpush.bf16.msrb.mxu3 %v14075_v36  ;;  %10674 = vmatmul.bf16.vlgmr.msrb.gmra.mxu0 %v19599_v42  ;;  %v14856_v36 = vld [vmem:[%s28127_s1 + $0x17cc] sm:$0xf0] }
 0x444   :  { %10718 = vmatpush.bf16.msra.mxu0 %v14495_v57  ;;  %10687 = vmatmul.bf16.vlgmr.msrb.gmra.mxu1 %v19790_v25  ;;  %v10467_v57 = vpop.f32.mrf.mxu0  ;;  %v14859_v47 = vor.u32 %v18385_v56, %v14856_v36  ;;  %v14355_v36 = vor.u32 %v18259_v9, %v14352_v14  ;;  %v14744_v14 = vld [vmem:[%s28127_s1 + $0x16ec] sm:$0xf0] }
 0x445   :  { %10731 = vmatpush.bf16.msra.mxu1 %v14719_v32  ;;  %10700 = vmatmul.bf16.vlgmr.msrb.gmra.mxu2 %v19803_v30  ;;  %v18441_v32 = vld [vmem:[%s28127_s1 + $0x1974] sm:$0xf]  ;;  %v10468_v48 = vadd.f32 %v10467_v57, %v25944_v50 }
 0x446   :  { %10744 = vmatpush.bf16.msra.mxu2 %v14943_v55  ;;  %10713 = vmatmul.bf16.vlgmr.msrb.gmra.mxu3 %v19801_v29  ;;  %v15080_v55 = vld [vmem:[%s28127_s1 + $0x198c] sm:$0xf0] }
 0x447   :  { %10757 = vmatpush.bf16.msra.mxu3 %v15167_v40  ;;  %v14635_v40 = vor.u32 %v18329_v24, %v14632_v51  ;;  %v15083_v50 = vor.u32 %v18441_v32, %v15080_v55  ;;  %v10481_v8 = vadd.f32 %v10480_v59, %v10468_v48  ;;  %v15024_v51 = vld [vmem:[%s28127_s1 + $0x191c] sm:$0xf0]  ;;  %v14324_v59 = vld [vmem:[%s28127_s1 + $0x13a4] sm:$0xf0] }
 0x448   :  { %10719 = vmatpush.bf16.msra.mxu0 %v14467_v10  ;;  %v14604_v10 = vld [vmem:[%s28127_s1 + $0x15d4] sm:$0xf0] }
 0x449   :  { %10732 = vmatpush.bf16.msra.mxu1 %v14691_v2  ;;  %v18378_v2 = vld [vmem:[%s28127_s1 + $0x177c] sm:$0xf]  ;;  %v10506_v24 = vpop.f32.mrf.mxu3  ;;  %v10482_v57 = vpop.f32.mrf.mxu1 }
 0x44a   :  { %10745 = vmatpush.bf16.msra.mxu2 %v14915_v53  ;;  %v14828_v53 = vld [vmem:[%s28127_s1 + $0x1794] sm:$0xf0] }
 0x44b   :  { %10758 = vmatpush.bf16.msra.mxu3 %v15139_v52  ;;  %v14607_v52 = vor.u32 %v18322_v4, %v14604_v10  ;;  %v14831_v6 = vor.u32 %v18378_v2, %v14828_v53  ;;  %v14772_v4 = vld [vmem:[%s28127_s1 + $0x1724] sm:$0xf0]  ;;  %v18245_v2 = vld [vmem:[%s28127_s1 + $0x1354] sm:$0xf]  ;;  %v14296_v53 = vld [vmem:[%s28127_s1 + $0x136c] sm:$0xf0] }
 0x44c   :  { %10720 = vmatpush.bf16.msra.mxu0 %v14439_v60  ;;  %v10493_v60 = vpop.f32.mrf.mxu2  ;;  %v10469_v56 = vpop.f32.mrf.mxu0  ;;  %v14775_v13 = vor.u32 %v18364_v21, %v14772_v4  ;;  %v15360_v21 = vld [vmem:[%s28127_s1 + $0x1bbc] sm:$0xf0]  ;;  %v18567_v4 = vld [vmem:[%s28127_s1 + $0x1d64] sm:$0xf] }
 0x44d   :  { %10733 = vmatpush.bf16.msra.mxu1 %v14663_v34  ;;  %v14576_v34 = vld [vmem:[%s28127_s1 + $0x159c] sm:$0xf0]  ;;  %v10494_v27 = vadd.f32 %v10493_v60, %v10481_v8  ;;  %v14996_v8 = vld [vmem:[%s28127_s1 + $0x18e4] sm:$0xf0]  ;;  %v15836_v56 = vld [vmem:[%s28127_s1 + $0x1f74] sm:$0xf0] }
 0x44e   :  { %10746 = vmatpush.bf16.msra.mxu2 %v14887_v0  ;;  %v18371_v0 = vld [vmem:[%s28127_s1 + $0x1744] sm:$0xf]  ;;  %v14579_v55 = vor.u32 %v18315_v5, %v14576_v34  ;;  %v18413_v5 = vld [vmem:[%s28127_s1 + $0x1894] sm:$0xf]  ;;  %v18518_v34 = vld [vmem:[%s28127_s1 + $0x1bdc] sm:$0xf] }
 0x44f   :  { %10759 = vmatpush.bf16.msra.mxu3 %v15111_v17  ;;  %v18427_v17 = vld [vmem:[%s28127_s1 + $0x1904] sm:$0xf]  ;;  %v26143_v32 = vadd.f32 %v10506_v24, %v10494_v27  ;;  %v14803_v48 = vor.u32 %v18371_v0, %v14800_v43  ;;  %v15388_v0 = vld [vmem:[%s28127_s1 + $0x1bf4] sm:$0xf0]  ;;  %v18574_v43 = vld [vmem:[%s28127_s1 + $0x1d9c] sm:$0xf]  ;;  %v14299_v24 = vor.u32 %v18245_v2, %v14296_v53 }
 0x450   :  { %10721 = vmatpush.bf16.msra.mxu0 %v14411_v58  ;;  %v18252_v58 = vld [vmem:[%s28127_s1 + $0x138c] sm:$0xf]  ;;  %v15808_v2 = vld [vmem:[%s28127_s1 + $0x1f3c] sm:$0xf0]  ;;  %v18679_v53 = vld [vmem:[%s28127_s1 + $0x20e4] sm:$0xf] }
 0x451   :  { %10734 = vmatpush.bf16.msra.mxu1 %v14635_v40  ;;  %v18308_v40 = vld [vmem:[%s28127_s1 + $0x154c] sm:$0xf]  ;;  %v14327_v10 = vor.u32 %v18252_v58, %v14324_v59  ;;  %v10508_v27 = vpop.f32.mrf.mxu3  ;;  %v15391_v59 = vor.u32 %v18518_v34, %v15388_v0  ;;  %v15780_v34 = vld [vmem:[%s28127_s1 + $0x1f04] sm:$0xf0] }
 0x452   :  { %10747 = vmatpush.bf16.msra.mxu2 %v14859_v47  ;;  %v15027_v47 = vor.u32 %v18427_v17, %v15024_v51  ;;  %v14551_v63 = vor.u32 %v18308_v40, %v14548_v62  ;;  %v15612_v17 = vld [vmem:[%s28127_s1 + $0x1db4] sm:$0xf0]  ;;  %v18630_v51 = vld [vmem:[%s28127_s1 + $0x1f5c] sm:$0xf]  ;;  %v18511_v62 = vld [vmem:[%s28127_s1 + $0x1ba4] sm:$0xf] }
 0x453   :  { %10760 = vmatpush.bf16.msra.mxu3 %v15083_v50  ;;  %v18420_v50 = vld [vmem:[%s28127_s1 + $0x18cc] sm:$0xf]  ;;  %v15615_v40 = vor.u32 %v18574_v43, %v15612_v17  ;;  %v16004_v43 = vld [vmem:[%s28127_s1 + $0x20c4] sm:$0xf0] }
 0x454   :  { %10722 = vmatpush.bf16.msra.mxu0 %v14383_v26  ;;  %v18301_v26 = vld [vmem:[%s28127_s1 + $0x1514] sm:$0xf]  ;;  %v14999_v9 = vor.u32 %v18420_v50, %v14996_v8  ;;  %v10495_v60 = vpop.f32.mrf.mxu2  ;;  %v15584_v8 = vld [vmem:[%s28127_s1 + $0x1d7c] sm:$0xf0]  ;;  %v18672_v0 = vld [vmem:[%s28127_s1 + $0x20ac] sm:$0xf] }
 0x455   :  { %10735 = vmatpush.bf16.msra.mxu1 %v14607_v52  ;;  %v14520_v52 = vld [vmem:[%s28127_s1 + $0x152c] sm:$0xf0]  ;;  %v18616_v60 = vld [vmem:[%s28127_s1 + $0x1eec] sm:$0xf] }
 0x456   :  { %10748 = vmatpush.bf16.msra.mxu2 %v14831_v6  ;;  %v18357_v6 = vld [vmem:[%s28127_s1 + $0x16d4] sm:$0xf]  ;;  %v15783_v17 = vor.u32 %v18616_v60, %v15780_v34  ;;  %v18483_v60 = vld [vmem:[%s28127_s1 + $0x1ac4] sm:$0xf]  ;;  %v15248_v34 = vld [vmem:[%s28127_s1 + $0x1adc] sm:$0xf0] }
 0x457   :  { %10761 = vmatpush.bf16.msra.mxu3 %v15055_v15  ;;  %v14968_v15 = vld [vmem:[%s28127_s1 + $0x18ac] sm:$0xf0]  ;;  %v14747_v57 = vor.u32 %v18357_v6, %v14744_v14  ;;  %v18504_v6 = vld [vmem:[%s28127_s1 + $0x1b6c] sm:$0xf] }
 0x458   :  { %10723 = vmatpush.bf16.msra.mxu0 %v14355_v36  ;;  %v14523_v36 = vor.u32 %v18301_v26, %v14520_v52  ;;  %v14971_v58 = vor.u32 %v18413_v5, %v14968_v15  ;;  %v15587_v26 = vor.u32 %v18567_v4, %v15584_v8  ;;  %v18560_v14 = vld [vmem:[%s28127_s1 + $0x1d2c] sm:$0xf]  ;;  %v15556_v15 = vld [vmem:[%s28127_s1 + $0x1d44] sm:$0xf0] }
 0x459   :  { %10736 = vmatpush.bf16.msra.mxu1 %v14579_v55  ;;  %v18686_v55 = vld [vmem:[%s28127_s1 + $0x211c] sm:$0xf] }
 0x45a   :  { %10749 = vmatpush.bf16.msra.mxu2 %v14803_v48  ;;  %v16060_v48 = vld [vmem:[%s28127_s1 + $0x2134] sm:$0xf0] }
 0x45b   :  { %10762 = vmatpush.bf16.msra.mxu3 %v15027_v47  ;;  %v15839_v47 = vor.u32 %v18630_v51, %v15836_v56  ;;  %v16063_v50 = vor.u32 %v18686_v55, %v16060_v48  ;;  %v18497_v51 = vld [vmem:[%s28127_s1 + $0x1b34] sm:$0xf]  ;;  %v15304_v56 = vld [vmem:[%s28127_s1 + $0x1b4c] sm:$0xf0] }
 0x45c   :  { %10724 = vmatpush.bf16.msra.mxu0 %v14327_v10  ;;  %v18623_v10 = vld [vmem:[%s28127_s1 + $0x1f24] sm:$0xf]  ;;  %v15528_v55 = vld [vmem:[%s28127_s1 + $0x1d0c] sm:$0xf0]  ;;  %v18609_v48 = vld [vmem:[%s28127_s1 + $0x1eb4] sm:$0xf] }
 0x45d   :  { %10737 = vmatpush.bf16.msra.mxu1 %v14551_v63  ;;  %v16032_v63 = vld [vmem:[%s28127_s1 + $0x20fc] sm:$0xf0]  ;;  %v15811_v52 = vor.u32 %v18623_v10, %v15808_v2  ;;  %v18490_v10 = vld [vmem:[%s28127_s1 + $0x1afc] sm:$0xf]  ;;  %v15276_v2 = vld [vmem:[%s28127_s1 + $0x1b14] sm:$0xf0] }
 0x45e   :  { %10750 = vmatpush.bf16.msra.mxu2 %v14775_v13  ;;  %v15363_v13 = vor.u32 %v18511_v62, %v15360_v21  ;;  %v16035_v5 = vor.u32 %v18679_v53, %v16032_v63  ;;  %v15307_v21 = vor.u32 %v18497_v51, %v15304_v56  ;;  %v18546_v53 = vld [vmem:[%s28127_s1 + $0x1cbc] sm:$0xf]  ;;  %v15696_v51 = vld [vmem:[%s28127_s1 + $0x1e5c] sm:$0xf0] }
 0x45f   :  { %10763 = vmatpush.bf16.msra.mxu3 %v14999_v9  ;;  %v15332_v9 = vld [vmem:[%s28127_s1 + $0x1b84] sm:$0xf0] }
 0x460   :  { %10725 = vmatpush.bf16.msra.mxu0 %v14299_v24  ;;  %v15335_v27 = vor.u32 %v18504_v6, %v15332_v9  ;;  %v15559_v24 = vor.u32 %v18560_v14, %v15556_v15  ;;  %v18658_v6 = vld [vmem:[%s28127_s1 + $0x203c] sm:$0xf]  ;;  %v15948_v9 = vld [vmem:[%s28127_s1 + $0x2054] sm:$0xf0]  ;;  %v15279_v14 = vor.u32 %v18490_v10, %v15276_v2  ;;  %v15444_v10 = vld [vmem:[%s28127_s1 + $0x1c64] sm:$0xf0] }
 0x461   :  { %10738 = vmatpush.bf16.msra.mxu1 %v14523_v36  ;;  %v18553_v36 = vld [vmem:[%s28127_s1 + $0x1cf4] sm:$0xf]  ;;  %v10532_v4 = vpop.f32.mrf.mxu1  ;;  %v18588_v2 = vld [vmem:[%s28127_s1 + $0x1e0c] sm:$0xf] }
 0x462   :  { %10751 = vmatpush.bf16.msra.mxu2 %v14747_v57  ;;  %v16007_v57 = vor.u32 %v18672_v0, %v16004_v43  ;;  %v18539_v0 = vld [vmem:[%s28127_s1 + $0x1c84] sm:$0xf]  ;;  %v15951_v43 = vor.u32 %v18658_v6, %v15948_v9 }
 0x463   :  { %10764 = vmatpush.bf16.msra.mxu3 %v14971_v58  ;;  %10726 = vmatmul.bf16.vlgmr.msra.gmra.mxu0 %v19811_v33  ;;  %v15752_v58 = vld [vmem:[%s28127_s1 + $0x1ecc] sm:$0xf0] }
 0x464   :  { %10770 = vmatpush.bf16.msrb.mxu0 %v15391_v59  ;;  %10739 = vmatmul.bf16.vlgmr.msra.gmra.mxu1 %v20000_v23  ;;  %v10519_v59 = vpop.f32.mrf.mxu0  ;;  %v15755_v8 = vor.u32 %v18609_v48, %v15752_v58  ;;  %v15251_v58 = vor.u32 %v18483_v60, %v15248_v34  ;;  %v15640_v34 = vld [vmem:[%s28127_s1 + $0x1dec] sm:$0xf0] }
 0x465   :  { %10783 = vmatpush.bf16.msrb.mxu1 %v15615_v40  ;;  %10752 = vmatmul.bf16.vlgmr.msra.gmra.mxu2 %v20013_v31  ;;  %v18665_v40 = vld [vmem:[%s28127_s1 + $0x2074] sm:$0xf]  ;;  %v10520_v62 = vadd.f32 %v10519_v59, %v26143_v32 }
 0x466   :  { %10796 = vmatpush.bf16.msrb.mxu2 %v15839_v47  ;;  %10765 = vmatmul.bf16.vlgmr.msra.gmra.mxu3 %v20011_v28  ;;  %v15976_v47 = vld [vmem:[%s28127_s1 + $0x208c] sm:$0xf0] }
 0x467   :  { %10809 = vmatpush.bf16.msrb.mxu3 %v16063_v50  ;;  %v15531_v50 = vor.u32 %v18553_v36, %v15528_v55  ;;  %v15979_v32 = vor.u32 %v18665_v40, %v15976_v47  ;;  %v10533_v63 = vadd.f32 %v10532_v4, %v10520_v62  ;;  %v15920_v55 = vld [vmem:[%s28127_s1 + $0x201c] sm:$0xf0]  ;;  %v15220_v4 = vld [vmem:[%s28127_s1 + $0x1aa4] sm:$0xf0] }
 0x468   :  { %10771 = vmatpush.bf16.msrb.mxu0 %v15363_v13  ;;  %v15500_v13 = vld [vmem:[%s28127_s1 + $0x1cd4] sm:$0xf0] }
 0x469   :  { %10784 = vmatpush.bf16.msrb.mxu1 %v15587_v26  ;;  %v18602_v26 = vld [vmem:[%s28127_s1 + $0x1e7c] sm:$0xf]  ;;  %v10558_v36 = vpop.f32.mrf.mxu3  ;;  %v10534_v59 = vpop.f32.mrf.mxu1 }
 0x46a   :  { %10797 = vmatpush.bf16.msrb.mxu2 %v15811_v52  ;;  %v15724_v52 = vld [vmem:[%s28127_s1 + $0x1e94] sm:$0xf0] }
 0x46b   :  { %10810 = vmatpush.bf16.msrb.mxu3 %v16035_v5  ;;  %v15503_v5 = vor.u32 %v18546_v53, %v15500_v13  ;;  %v15727_v15 = vor.u32 %v18602_v26, %v15724_v52  ;;  %v15668_v53 = vld [vmem:[%s28127_s1 + $0x1e24] sm:$0xf0]  ;;  %v18469_v26 = vld [vmem:[%s28127_s1 + $0x1a54] sm:$0xf]  ;;  %v15192_v52 = vld [vmem:[%s28127_s1 + $0x1a6c] sm:$0xf0] }
 0x46c   :  { %10772 = vmatpush.bf16.msrb.mxu0 %v15335_v27  ;;  %v10545_v27 = vpop.f32.mrf.mxu2  ;;  %v10521_v48 = vpop.f32.mrf.mxu0  ;;  %v15671_v9 = vor.u32 %v18588_v2, %v15668_v53  ;;  %v16256_v2 = vld [vmem:[%s28127_s1 + $0x22bc] sm:$0xf0]  ;;  %v18791_v53 = vld [vmem:[%s28127_s1 + $0x2464] sm:$0xf] }
 0x46d   :  { %10785 = vmatpush.bf16.msrb.mxu1 %v15559_v24  ;;  %v15472_v24 = vld [vmem:[%s28127_s1 + $0x1c9c] sm:$0xf0]  ;;  %v10546_v56 = vadd.f32 %v10545_v27, %v10533_v63  ;;  %v15892_v63 = vld [vmem:[%s28127_s1 + $0x1fe4] sm:$0xf0]  ;;  %v16732_v48 = vld [vmem:[%s28127_s1 + $0x2674] sm:$0xf0] }
 0x46e   :  { %10798 = vmatpush.bf16.msrb.mxu2 %v15783_v17  ;;  %v18595_v17 = vld [vmem:[%s28127_s1 + $0x1e44] sm:$0xf]  ;;  %v15475_v47 = vor.u32 %v18539_v0, %v15472_v24  ;;  %v18637_v0 = vld [vmem:[%s28127_s1 + $0x1f94] sm:$0xf]  ;;  %v18742_v24 = vld [vmem:[%s28127_s1 + $0x22dc] sm:$0xf] }
 0x46f   :  { %10811 = vmatpush.bf16.msrb.mxu3 %v16007_v57  ;;  %v18651_v57 = vld [vmem:[%s28127_s1 + $0x2004] sm:$0xf]  ;;  %v26342_v40 = vadd.f32 %v10558_v36, %v10546_v56  ;;  %v15699_v62 = vor.u32 %v18595_v17, %v15696_v51  ;;  %v16284_v17 = vld [vmem:[%s28127_s1 + $0x22f4] sm:$0xf0]  ;;  %v18798_v51 = vld [vmem:[%s28127_s1 + $0x249c] sm:$0xf]  ;;  %v15195_v36 = vor.u32 %v18469_v26, %v15192_v52 }
 0x470   :  { %10773 = vmatpush.bf16.msrb.mxu0 %v15307_v21  ;;  %v18476_v21 = vld [vmem:[%s28127_s1 + $0x1a8c] sm:$0xf]  ;;  %v16704_v26 = vld [vmem:[%s28127_s1 + $0x263c] sm:$0xf0]  ;;  %v18903_v52 = vld [vmem:[%s28127_s1 + $0x27e4] sm:$0xf] }
 0x471   :  { %10786 = vmatpush.bf16.msrb.mxu1 %v15531_v50  ;;  %v18532_v50 = vld [vmem:[%s28127_s1 + $0x1c4c] sm:$0xf]  ;;  %v15223_v13 = vor.u32 %v18476_v21, %v15220_v4  ;;  %v10560_v56 = vpop.f32.mrf.mxu3  ;;  %v16287_v4 = vor.u32 %v18742_v24, %v16284_v17  ;;  %v16676_v24 = vld [vmem:[%s28127_s1 + $0x2604] sm:$0xf0] }
 0x472   :  { %10799 = vmatpush.bf16.msrb.mxu2 %v15755_v8  ;;  %v15923_v8 = vor.u32 %v18651_v57, %v15920_v55  ;;  %v15447_v6 = vor.u32 %v18532_v50, %v15444_v10  ;;  %v16508_v57 = vld [vmem:[%s28127_s1 + $0x24b4] sm:$0xf0]  ;;  %v18854_v55 = vld [vmem:[%s28127_s1 + $0x265c] sm:$0xf]  ;;  %v18735_v10 = vld [vmem:[%s28127_s1 + $0x22a4] sm:$0xf] }
 0x473   :  { %10812 = vmatpush.bf16.msrb.mxu3 %v15979_v32  ;;  %v18644_v32 = vld [vmem:[%s28127_s1 + $0x1fcc] sm:$0xf]  ;;  %v16511_v50 = vor.u32 %v18798_v51, %v16508_v57  ;;  %v16900_v51 = vld [vmem:[%s28127_s1 + $0x27c4] sm:$0xf0] }
 0x474   :  { %10774 = vmatpush.bf16.msrb.mxu0 %v15279_v14  ;;  %v18525_v14 = vld [vmem:[%s28127_s1 + $0x1c14] sm:$0xf]  ;;  %v15895_v60 = vor.u32 %v18644_v32, %v15892_v63  ;;  %v10547_v27 = vpop.f32.mrf.mxu2  ;;  %v16480_v63 = vld [vmem:[%s28127_s1 + $0x247c] sm:$0xf0]  ;;  %v18896_v17 = vld [vmem:[%s28127_s1 + $0x27ac] sm:$0xf] }
 0x475   :  { %10787 = vmatpush.bf16.msrb.mxu1 %v15503_v5  ;;  %v15416_v5 = vld [vmem:[%s28127_s1 + $0x1c2c] sm:$0xf0]  ;;  %v18840_v27 = vld [vmem:[%s28127_s1 + $0x25ec] sm:$0xf] }
 0x476   :  { %10800 = vmatpush.bf16.msrb.mxu2 %v15727_v15  ;;  %v18581_v15 = vld [vmem:[%s28127_s1 + $0x1dd4] sm:$0xf]  ;;  %v16679_v57 = vor.u32 %v18840_v27, %v16676_v24 }
 0x477   :  { %10813 = vmatpush.bf16.msrb.mxu3 %v15951_v43  ;;  %v15864_v43 = vld [vmem:[%s28127_s1 + $0x1fac] sm:$0xf0]  ;;  %v15643_v59 = vor.u32 %v18581_v15, %v15640_v34  ;;  %v18728_v15 = vld [vmem:[%s28127_s1 + $0x226c] sm:$0xf] }
 0x478   :  { %10775 = vmatpush.bf16.msrb.mxu0 %v15251_v58  ;;  %v15419_v58 = vor.u32 %v18525_v14, %v15416_v5  ;;  %v15867_v21 = vor.u32 %v18637_v0, %v15864_v43  ;;  %v16483_v14 = vor.u32 %v18791_v53, %v16480_v63  ;;  %v18784_v34 = vld [vmem:[%s28127_s1 + $0x242c] sm:$0xf]  ;;  %v16452_v43 = vld [vmem:[%s28127_s1 + $0x2444] sm:$0xf0] }
 0x479   :  { %10788 = vmatpush.bf16.msrb.mxu1 %v15475_v47  ;;  %v18910_v47 = vld [vmem:[%s28127_s1 + $0x281c] sm:$0xf] }
 0x47a   :  { %10801 = vmatpush.bf16.msrb.mxu2 %v15699_v62  ;;  %v16956_v62 = vld [vmem:[%s28127_s1 + $0x2834] sm:$0xf0] }
 0x47b   :  { %10814 = vmatpush.bf16.msrb.mxu3 %v15923_v8  ;;  %v16735_v8 = vor.u32 %v18854_v55, %v16732_v48  ;;  %v16959_v32 = vor.u32 %v18910_v47, %v16956_v62  ;;  %v18721_v55 = vld [vmem:[%s28127_s1 + $0x2234] sm:$0xf]  ;;  %v16200_v48 = vld [vmem:[%s28127_s1 + $0x224c] sm:$0xf0] }
 0x47c   :  { %10776 = vmatpush.bf16.msrb.mxu0 %v15223_v13  ;;  %v18847_v13 = vld [vmem:[%s28127_s1 + $0x2624] sm:$0xf]  ;;  %v16424_v47 = vld [vmem:[%s28127_s1 + $0x240c] sm:$0xf0]  ;;  %v18833_v62 = vld [vmem:[%s28127_s1 + $0x25b4] sm:$0xf] }
 0x47d   :  { %10789 = vmatpush.bf16.msrb.mxu1 %v15447_v6  ;;  %v16928_v6 = vld [vmem:[%s28127_s1 + $0x27fc] sm:$0xf0]  ;;  %v16707_v5 = vor.u32 %v18847_v13, %v16704_v26  ;;  %v18714_v26 = vld [vmem:[%s28127_s1 + $0x21fc] sm:$0xf] }
 0x47e   :  { %10802 = vmatpush.bf16.msrb.mxu2 %v15671_v9  ;;  %v16259_v9 = vor.u32 %v18735_v10, %v16256_v2  ;;  %v16931_v0 = vor.u32 %v18903_v52, %v16928_v6  ;;  %v19087_v10 = vld [vmem:[%s28129_s2] sm:$0x7f]  ;;  %v16172_v52 = vld [vmem:[%s28127_s1 + $0x2214] sm:$0xf0]  ;;  %v18770_v6 = vld [vmem:[%s28127_s1 + $0x23bc] sm:$0xf] }
 0x47f   :  { %10815 = vmatpush.bf16.msrb.mxu3 %v15895_v60  ;;  %v16228_v60 = vld [vmem:[%s28127_s1 + $0x2284] sm:$0xf0]  ;;  %v1653_v2 = vperm.slane %v19087_v10, 5 }
 0x480   :  { %10777 = vmatpush.bf16.msrb.mxu0 %v15195_v36  ;;  %v16231_v56 = vor.u32 %v18728_v15, %v16228_v60  ;;  %v16455_v36 = vor.u32 %v18784_v34, %v16452_v43  ;;  %v16620_v15 = vld [vmem:[%s28127_s1 + $0x2594] sm:$0xf0]  ;;  %v18882_v60 = vld [vmem:[%s28127_s1 + $0x273c] sm:$0xf]  ;;  %v16175_v43 = vor.u32 %v18714_v26, %v16172_v52 }
 0x481   :  { %10790 = vmatpush.bf16.msrb.mxu1 %v15419_v58  ;;  %v18777_v58 = vld [vmem:[%s28127_s1 + $0x23f4] sm:$0xf]  ;;  %v16844_v34 = vld [vmem:[%s28127_s1 + $0x2754] sm:$0xf0] }
 0x482   :  { %10803 = vmatpush.bf16.msrb.mxu2 %v15643_v59  ;;  %v16903_v59 = vor.u32 %v18896_v17, %v16900_v51  ;;  %v16427_v63 = vor.u32 %v18777_v58, %v16424_v47  ;;  %v18707_v17 = vld [vmem:[%s28127_s1 + $0x21c4] sm:$0xf]  ;;  %v16144_v51 = vld [vmem:[%s28127_s1 + $0x21dc] sm:$0xf0] }
 0x483   :  { %10816 = vmatpush.bf16.msrb.mxu3 %v15867_v21  ;;  %10778 = vmatmul.bf16.vlgmr.msrb.gmra.mxu0 %v20021_v35  ;;  %v16648_v21 = vld [vmem:[%s28127_s1 + $0x25cc] sm:$0xf0]  ;;  %v18875_v47 = vld [vmem:[%s28127_s1 + $0x2704] sm:$0xf] }
 0x484   :  { %10822 = vmatpush.bf16.msra.mxu0 %v16287_v4  ;;  %10791 = vmatmul.bf16.vlgmr.msrb.gmra.mxu1 %v20210_v37  ;;  %v10571_v4 = vpop.f32.mrf.mxu0  ;;  %v16651_v13 = vor.u32 %v18833_v62, %v16648_v21  ;;  %v16816_v62 = vld [vmem:[%s28127_s1 + $0x271c] sm:$0xf0] }
 0x485   :  { %10835 = vmatpush.bf16.msra.mxu1 %v16511_v50  ;;  %10804 = vmatmul.bf16.vlgmr.msrb.gmra.mxu2 %v20223_v46  ;;  %v18889_v50 = vld [vmem:[%s28127_s1 + $0x2774] sm:$0xf]  ;;  %v26496_v53 = vadd.f32 %v10571_v4, %v26342_v40  ;;  %v16819_v52 = vor.u32 %v18875_v47, %v16816_v62  ;;  %v19022_v47 = vld [vmem:[%s28127_s1 + $0x2b9c] sm:$0xf] }
 0x486   :  { %10848 = vmatpush.bf16.msra.mxu2 %v16735_v8  ;;  %10817 = vmatmul.bf16.vlgmr.msrb.gmra.mxu3 %v20221_v45  ;;  %v16872_v8 = vld [vmem:[%s28127_s1 + $0x278c] sm:$0xf0] }
 0x487   :  { %10861 = vmatpush.bf16.msra.mxu3 %v16959_v32  ;;  %v16203_v32 = vor.u32 %v18721_v55, %v16200_v48  ;;  %v16875_v40 = vor.u32 %v18889_v50, %v16872_v8  ;;  %v18819_v55 = vld [vmem:[%s28127_s1 + $0x2544] sm:$0xf]  ;;  %v16592_v48 = vld [vmem:[%s28127_s1 + $0x255c] sm:$0xf0]  ;;  %v16147_v50 = vor.u32 %v18707_v17, %v16144_v51  ;;  %v18805_v17 = vld [vmem:[%s28127_s1 + $0x24d4] sm:$0xf] }
 0x488   :  { %10823 = vmatpush.bf16.msra.mxu0 %v16259_v9  ;;  %v10584_v9 = vpop.f32.mrf.mxu1  ;;  %v10597_v58 = vpop.f32.mrf.mxu2  ;;  %v16595_v10 = vor.u32 %v18819_v55, %v16592_v48 }
 0x489   :  { %10836 = vmatpush.bf16.msra.mxu1 %v16483_v14  ;;  %v16396_v14 = vld [vmem:[%s28127_s1 + $0x23d4] sm:$0xf0] }
 0x48a   :  { %10849 = vmatpush.bf16.msra.mxu2 %v16707_v5  ;;  %v18826_v5 = vld [vmem:[%s28127_s1 + $0x257c] sm:$0xf]  ;;  %v16399_v27 = vor.u32 %v18770_v6, %v16396_v14  ;;  %v16340_v6 = vld [vmem:[%s28127_s1 + $0x2364] sm:$0xf0]  ;;  %v18868_v14 = vld [vmem:[%s28127_s1 + $0x26cc] sm:$0xf] }
 0x48b   :  { %10862 = vmatpush.bf16.msra.mxu3 %v16931_v0  ;;  %v10585_v0 = vadd.f32 %v10584_v9, %v1653_v2  ;;  %v16623_v24 = vor.u32 %v18826_v5, %v16620_v15  ;;  %v18700_v2 = vld [vmem:[%s28127_s1 + $0x218c] sm:$0xf]  ;;  %v16788_v5 = vld [vmem:[%s28127_s1 + $0x26e4] sm:$0xf0] }
 0x48c   :  { %10824 = vmatpush.bf16.msra.mxu0 %v16231_v56  ;;  %v18763_v56 = vld [vmem:[%s28127_s1 + $0x2384] sm:$0xf]  ;;  %v10573_v4 = vpop.f32.mrf.mxu0  ;;  %v18812_v9 = vld [vmem:[%s28127_s1 + $0x250c] sm:$0xf]  ;;  %v16791_v51 = vor.u32 %v18868_v14, %v16788_v5 }
 0x48d   :  { %10837 = vmatpush.bf16.msra.mxu1 %v16455_v36  ;;  %v16847_v36 = vor.u32 %v18882_v60, %v16844_v34  ;;  %v10598_v21 = vadd.f32 %v10597_v58, %v10585_v0  ;;  %v18693_v60 = vld [vmem:[%s28127_s1 + $0x2154] sm:$0xf]  ;;  %v16088_v34 = vld [vmem:[%s28127_s1 + $0x216c] sm:$0xf0]  ;;  %v18966_v58 = vld [vmem:[%s28127_s1 + $0x29dc] sm:$0xf] }
 0x48e   :  { %10850 = vmatpush.bf16.msra.mxu2 %v16679_v57  ;;  %v16368_v57 = vld [vmem:[%s28127_s1 + $0x239c] sm:$0xf0]  ;;  %v16091_v62 = vor.u32 %v18693_v60, %v16088_v34  ;;  %v19015_v14 = vld [vmem:[%s28127_s1 + $0x2b64] sm:$0xf]  ;;  %v12006_v60 = vld [vmem:[%s28127_s1 + $0x168] sm:$0xf] }
 0x48f   :  { %10863 = vmatpush.bf16.msra.mxu3 %v16903_v59  ;;  %v10610_v59 = vpop.f32.mrf.mxu3  ;;  %v16371_v8 = vor.u32 %v18763_v56, %v16368_v57  ;;  %v16536_v56 = vld [vmem:[%s28127_s1 + $0x24ec] sm:$0xf0]  ;;  %v12034_v4 = vld [vmem:[%s28127_s1 + $0x1a0] sm:$0xf]  ;;  %v17675_v34 = vld [vmem:[%s28127_s1 + $0x180] sm:$0xf0] }
 0x490   :  { %10825 = vmatpush.bf16.msra.mxu0 %v16203_v32  ;;  %v16116_v32 = vld [vmem:[%s28127_s1 + $0x21a4] sm:$0xf0]  ;;  %v10586_v26 = vpop.f32.mrf.mxu1  ;;  %v16760_v57 = vld [vmem:[%s28127_s1 + $0x26ac] sm:$0xf0]  ;;  %v10599_v55 = vpop.f32.mrf.mxu2 }
 0x491   :  { %10838 = vmatpush.bf16.msra.mxu1 %v16427_v63  ;;  %v18756_v63 = vld [vmem:[%s28127_s1 + $0x234c] sm:$0xf]  ;;  %v16119_v15 = vor.u32 %v18700_v2, %v16116_v32  ;;  %v12258_v2 = vld [vmem:[%s28127_s1 + $0x360] sm:$0xf]  ;;  %v17738_v32 = vld [vmem:[%s28127_s1 + $0x378] sm:$0xf0] }
 0x492   :  { %10851 = vmatpush.bf16.msra.mxu2 %v16651_v13  ;;  %v26555_v13 = vadd.f32 %v10610_v59, %v10598_v21  ;;  %v16343_v0 = vor.u32 %v18756_v63, %v16340_v6  ;;  %v17180_v59 = vld [vmem:[%s28127_s1 + $0x29f4] sm:$0xf0]  ;;  %v12259_v5 = vor.u32 %v17738_v32, %v12258_v2  ;;  %v17348_v55 = vld [vmem:[%s28127_s1 + $0x2b44] sm:$0xf0]  ;;  %v17320_v32 = vld [vmem:[%s28127_s1 + $0x2b0c] sm:$0xf0] }
 0x493   :  { %10864 = vmatpush.bf16.msra.mxu3 %v16875_v40  ;;  %v16564_v40 = vld [vmem:[%s28127_s1 + $0x2524] sm:$0xf0]  ;;  %v17404_v21 = vld [vmem:[%s28127_s1 + $0x2bb4] sm:$0xf0]  ;;  %v17183_v26 = vor.u32 %v18966_v58, %v17180_v59  ;;  %v17668_v58 = vld [vmem:[%s28127_s1 + $0x148] sm:$0xf0] }
 0x494   :  { %10826 = vmatpush.bf16.msra.mxu0 %v16175_v43  ;;  %v16567_v43 = vor.u32 %v18812_v9, %v16564_v40  ;;  %v18959_v9 = vld [vmem:[%s28127_s1 + $0x29a4] sm:$0xf]  ;;  %v17152_v40 = vld [vmem:[%s28127_s1 + $0x29bc] sm:$0xf0]  ;;  %v12202_v59 = vld [vmem:[%s28127_s1 + $0x2f0] sm:$0xf] }
 0x495   :  { %10839 = vmatpush.bf16.msra.mxu1 %v16399_v27  ;;  %v18749_v27 = vld [vmem:[%s28127_s1 + $0x2314] sm:$0xf] }
 0x496   :  { %10852 = vmatpush.bf16.msra.mxu2 %v16623_v24  ;;  %v16312_v24 = vld [vmem:[%s28127_s1 + $0x232c] sm:$0xf0] }
 0x497   :  { %10865 = vmatpush.bf16.msra.mxu3 %v16847_v36  ;;  %v18861_v36 = vld [vmem:[%s28127_s1 + $0x2694] sm:$0xf]  ;;  %v10612_v48 = vpop.f32.mrf.mxu3 }
 0x498   :  { %10827 = vmatpush.bf16.msra.mxu0 %v16147_v50  ;;  %v17682_v50 = vld [vmem:[%s28127_s1 + $0x1b8] sm:$0xf0]  ;;  %v16763_v63 = vor.u32 %v18861_v36, %v16760_v57  ;;  %v19008_v36 = vld [vmem:[%s28127_s1 + $0x2b2c] sm:$0xf]  ;;  %v11978_v48 = vld [vmem:[%s28127_s1 + $0x130] sm:$0xf] }
 0x499   :  { %10840 = vmatpush.bf16.msra.mxu1 %v16371_v8  ;;  %v16315_v8 = vor.u32 %v18749_v27, %v16312_v24  ;;  %v12035_v6 = vor.u32 %v17682_v50, %v12034_v4  ;;  %v17155_v27 = vor.u32 %v18959_v9, %v17152_v40  ;;  %v11979_v4 = vor.u32 %v17668_v58, %v11978_v48  ;;  %v18945_v50 = vld [vmem:[%s28127_s1 + $0x2934] sm:$0xf]  ;;  %v18931_v58 = vld [vmem:[%s28127_s1 + $0x28c4] sm:$0xf] }
 0x49a   :  { %10853 = vmatpush.bf16.msra.mxu2 %v16595_v10  ;;  %v16539_v10 = vor.u32 %v18805_v17, %v16536_v56  ;;  %v12007_v17 = vor.u32 %v17675_v34, %v12006_v60  ;;  %v17124_v56 = vld [vmem:[%s28127_s1 + $0x2984] sm:$0xf0]  ;;  %v17068_v60 = vld [vmem:[%s28127_s1 + $0x2914] sm:$0xf0]  ;;  %v18994_v34 = vld [vmem:[%s28127_s1 + $0x2abc] sm:$0xf] }
 0x49b   :  { %10866 = vmatpush.bf16.msra.mxu3 %v16819_v52  ;;  %v17407_v52 = vor.u32 %v19022_v47, %v17404_v21  ;;  %v17724_v47 = vld [vmem:[%s28127_s1 + $0x308] sm:$0xf0]  ;;  %v17351_v21 = vor.u32 %v19008_v36, %v17348_v55 }
 0x49c   :  { %10828 = vmatpush.bf16.msra.mxu0 %v16119_v15  ;;  %v17376_v15 = vld [vmem:[%s28127_s1 + $0x2b7c] sm:$0xf0]  ;;  %v12203_v2 = vor.u32 %v17724_v47, %v12202_v59  ;;  %v18987_v47 = vld [vmem:[%s28127_s1 + $0x2a84] sm:$0xf] }
 0x49d   :  { %10841 = vmatpush.bf16.msra.mxu1 %v16343_v0  ;;  %v12230_v0 = vld [vmem:[%s28127_s1 + $0x328] sm:$0xf]  ;;  %v17379_v24 = vor.u32 %v19015_v14, %v17376_v15  ;;  %v18938_v15 = vld [vmem:[%s28127_s1 + $0x28fc] sm:$0xf]  ;;  %v17040_v59 = vld [vmem:[%s28127_s1 + $0x28dc] sm:$0xf0] }
 0x49e   :  { %10854 = vmatpush.bf16.msra.mxu2 %v16567_v43  ;;  %v17731_v43 = vld [vmem:[%s28127_s1 + $0x340] sm:$0xf0] }
 0x49f   :  { %10867 = vmatpush.bf16.msra.mxu3 %v16791_v51  ;;  %v18952_v51 = vld [vmem:[%s28127_s1 + $0x296c] sm:$0xf]  ;;  %v12231_v57 = vor.u32 %v17731_v43, %v12230_v0 }
 0x4a0   :  { %10829 = vmatpush.bf16.msra.mxu0 %v16091_v62  ;;  %v17127_v62 = vor.u32 %v18952_v51, %v17124_v56  ;;  %v10623_v40 = vpop.f32.mrf.mxu0  ;;  %v17654_v51 = vld [vmem:[%s28127_s1 + $0xd8] sm:$0xf0]  ;;  %v12146_v56 = vld [vmem:[%s28127_s1 + $0x280] sm:$0xf] }
 0x4a1   :  { %10842 = vmatpush.bf16.msra.mxu1 %v16315_v8  ;;  %v17096_v8 = vld [vmem:[%s28127_s1 + $0x294c] sm:$0xf0]  ;;  %v10624_v0 = vadd.f32 %v10623_v40, %v26555_v13  ;;  %v10636_v43 = vpop.f32.mrf.mxu1  ;;  %v17710_v13 = vld [vmem:[%s28127_s1 + $0x298] sm:$0xf0] }
 0x4a2   :  { %10855 = vmatpush.bf16.msra.mxu2 %v16539_v10  ;;  %v19001_v10 = vld [vmem:[%s28127_s1 + $0x2af4] sm:$0xf]  ;;  %v17099_v9 = vor.u32 %v18945_v50, %v17096_v8  ;;  %v11894_v50 = vld [vmem:[%s28127_s1 + $0x88] sm:$0xf]  ;;  %v17647_v8 = vld [vmem:[%s28127_s1 + $0xa0] sm:$0xf0] }
 0x4a3   :  { %10868 = vmatpush.bf16.msra.mxu3 %v16763_v63  ;;  %10830 = vmatmul.bf16.vlgmr.msra.gmra.mxu0 %v20231_v49  ;;  %v11950_v63 = vld [vmem:[%s28127_s1 + $0xf8] sm:$0xf]  ;;  %v17323_v14 = vor.u32 %v19001_v10, %v17320_v32  ;;  %v10637_v36 = vadd.f32 %v10636_v43, %v10624_v0  ;;  %v12118_v32 = vld [vmem:[%s28127_s1 + $0x248] sm:$0xf]  ;;  %v11895_v40 = vor.u32 %v17647_v8, %v11894_v50  ;;  %v11866_v43 = vld [vmem:[%s28127_s1 + $0x50] sm:$0xf] }
 0x4a4   :  { %10874 = vmatpush.bf16.msrb.mxu0 %v17183_v26  ;;  %10843 = vmatmul.bf16.vlgmr.msra.gmra.mxu1 %v20425_v7  ;;  %v17661_v26 = vld [vmem:[%s28127_s1 + $0x110] sm:$0xf0]  ;;  %v17236_v0 = vld [vmem:[%s28127_s1 + $0x2a64] sm:$0xf0]  ;;  %v12482_v8 = vld [vmem:[%s28127_s1 + $0x520] sm:$0xf] }
 0x4a5   :  { %10887 = vmatpush.bf16.msrb.mxu1 %v17407_v52  ;;  %10856 = vmatmul.bf16.vlgmr.msra.gmra.mxu2 %v20438_v12  ;;  %v12174_v52 = vld [vmem:[%s28127_s1 + $0x2b8] sm:$0xf] }
 0x4a6   :  { %10900 = vmatpush.bf16.msrb.mxu2 %v12035_v6  ;;  %10869 = vmatmul.bf16.vlgmr.msra.gmra.mxu3 %v20436_v11  ;;  %v17717_v6 = vld [vmem:[%s28127_s1 + $0x2d0] sm:$0xf0] }
 0x4a7   :  { %10913 = vmatpush.bf16.msrb.mxu3 %v12259_v5  ;;  %v11951_v5 = vor.u32 %v17661_v26, %v11950_v63  ;;  %v17703_v63 = vld [vmem:[%s28127_s1 + $0x260] sm:$0xf0]  ;;  %v17043_v26 = vor.u32 %v18931_v58, %v17040_v59  ;;  %v11838_v58 = vld [vmem:[%s28127_s1 + $0x18] sm:$0xf] }
 0x4a8   :  { %10875 = vmatpush.bf16.msrb.mxu0 %v17155_v27  ;;  %v12175_v27 = vor.u32 %v17717_v6, %v12174_v52  ;;  %v10625_v6 = vpop.f32.mrf.mxu0 }
 0x4a9   :  { %10888 = vmatpush.bf16.msrb.mxu1 %v17379_v24  ;;  %v17292_v24 = vld [vmem:[%s28127_s1 + $0x2ad4] sm:$0xf0]  ;;  %v17906_v6 = vld [vmem:[%s28127_s1 + $0x8b8] sm:$0xf0] }
 0x4aa   :  { %10901 = vmatpush.bf16.msrb.mxu2 %v12007_v17  ;;  %v11922_v17 = vld [vmem:[%s28127_s1 + $0xc0] sm:$0xf]  ;;  %v17295_v55 = vor.u32 %v18994_v34, %v17292_v24  ;;  %v12119_v34 = vor.u32 %v17703_v63, %v12118_v32  ;;  %v12090_v24 = vld [vmem:[%s28127_s1 + $0x210] sm:$0xf]  ;;  %v17850_v63 = vld [vmem:[%s28127_s1 + $0x6f8] sm:$0xf0] }
 0x4ab   :  { %10914 = vmatpush.bf16.msrb.mxu3 %v12231_v57  ;;  %v17071_v57 = vor.u32 %v18938_v15, %v17068_v60  ;;  %v11923_v48 = vor.u32 %v17654_v51, %v11922_v17  ;;  %v18980_v15 = vld [vmem:[%s28127_s1 + $0x2a4c] sm:$0xf]  ;;  %v10638_v60 = vpop.f32.mrf.mxu1 }
 0x4ac   :  { %10876 = vmatpush.bf16.msrb.mxu0 %v17127_v62  ;;  %v10649_v62 = vpop.f32.mrf.mxu2  ;;  %v17696_v17 = vld [vmem:[%s28127_s1 + $0x228] sm:$0xf0] }
 0x4ad   :  { %10889 = vmatpush.bf16.msrb.mxu1 %v17351_v21  ;;  %v12147_v21 = vor.u32 %v17710_v13, %v12146_v56  ;;  %v10650_v10 = vadd.f32 %v10649_v62, %v10637_v36  ;;  %v18917_v56 = vld [vmem:[%s28127_s1 + $0x2854] sm:$0xf]  ;;  %v16984_v13 = vld [vmem:[%s28127_s1 + $0x286c] sm:$0xf0]  ;;  %v17239_v36 = vor.u32 %v18980_v15, %v17236_v0 }
 0x4ae   :  { %10902 = vmatpush.bf16.msrb.mxu2 %v11979_v4  ;;  %v17264_v4 = vld [vmem:[%s28127_s1 + $0x2a9c] sm:$0xf0]  ;;  %v17633_v62 = vld [vmem:[%s28127_s1 + $0x30] sm:$0xf0]  ;;  %v16987_v32 = vor.u32 %v18917_v56, %v16984_v13  ;;  %v12902_v56 = vld [vmem:[%s28127_s1 + $0x868] sm:$0xf] }
 0x4af   :  { %10915 = vmatpush.bf16.msrb.mxu3 %v12203_v2  ;;  %v10662_v2 = vpop.f32.mrf.mxu3  ;;  %v17899_v13 = vld [vmem:[%s28127_s1 + $0x880] sm:$0xf0] }
 0x4b0   :  { %10877 = vmatpush.bf16.msrb.mxu0 %v17099_v9  ;;  %v26745_v52 = vadd.f32 %v10662_v2, %v10650_v10  ;;  %v17267_v9 = vor.u32 %v18987_v47, %v17264_v4  ;;  %v12091_v47 = vor.u32 %v17696_v17, %v12090_v24  ;;  %v17689_v4 = vld [vmem:[%s28127_s1 + $0x1f0] sm:$0xf0]  ;;  %v17794_v10 = vld [vmem:[%s28127_s1 + $0x538] sm:$0xf0]  ;;  %v12706_v2 = vld [vmem:[%s28127_s1 + $0x6e0] sm:$0xf] }
 0x4b1   :  { %10890 = vmatpush.bf16.msrb.mxu1 %v17323_v14  ;;  %v18924_v14 = vld [vmem:[%s28127_s1 + $0x288c] sm:$0xf]  ;;  %v12483_v60 = vor.u32 %v17794_v10, %v12482_v8  ;;  %v12678_v24 = vld [vmem:[%s28127_s1 + $0x6a8] sm:$0xf]  ;;  %v13098_v10 = vld [vmem:[%s28127_s1 + $0x9f0] sm:$0xf] }
 0x4b2   :  { %10903 = vmatpush.bf16.msrb.mxu2 %v11951_v5  ;;  %v17012_v5 = vld [vmem:[%s28127_s1 + $0x28a4] sm:$0xf0]  ;;  %v17892_v8 = vld [vmem:[%s28127_s1 + $0x848] sm:$0xf0] }
 0x4b3   :  { %10916 = vmatpush.bf16.msrb.mxu3 %v12175_v27  ;;  %v17640_v27 = vld [vmem:[%s28127_s1 + $0x68] sm:$0xf0]  ;;  %v17015_v51 = vor.u32 %v18924_v14, %v17012_v5  ;;  %v13154_v14 = vld [vmem:[%s28127_s1 + $0xa60] sm:$0xf]  ;;  %v17962_v5 = vld [vmem:[%s28127_s1 + $0xa78] sm:$0xf0] }
 0x4b4   :  { %10878 = vmatpush.bf16.msrb.mxu0 %v17071_v57  ;;  %v11867_v57 = vor.u32 %v17640_v27, %v11866_v43  ;;  %v10651_v59 = vpop.f32.mrf.mxu2  ;;  %v12454_v43 = vld [vmem:[%s28127_s1 + $0x4e8] sm:$0xf]  ;;  %v17787_v27 = vld [vmem:[%s28127_s1 + $0x500] sm:$0xf0]  ;;  %v13155_v17 = vor.u32 %v17962_v5, %v13154_v14  ;;  %v12846_v14 = vld [vmem:[%s28127_s1 + $0x7f8] sm:$0xf] }
 0x4b5   :  { %10891 = vmatpush.bf16.msrb.mxu1 %v17295_v55  ;;  %v18973_v55 = vld [vmem:[%s28127_s1 + $0x2a14] sm:$0xf]  ;;  %v12426_v59 = vld [vmem:[%s28127_s1 + $0x4b0] sm:$0xf] }
 0x4b6   :  { %10904 = vmatpush.bf16.msrb.mxu2 %v11923_v48  ;;  %v17208_v48 = vld [vmem:[%s28127_s1 + $0x2a2c] sm:$0xf0]  ;;  %v17885_v5 = vld [vmem:[%s28127_s1 + $0x810] sm:$0xf0] }
 0x4b7   :  { %10917 = vmatpush.bf16.msrb.mxu3 %v12147_v21  ;;  %v12062_v21 = vld [vmem:[%s28127_s1 + $0x1d8] sm:$0xf]  ;;  %v10664_v50 = vpop.f32.mrf.mxu3 }
 0x4b8   :  { %10879 = vmatpush.bf16.msrb.mxu0 %v17043_v26  ;;  %v12930_v26 = vld [vmem:[%s28127_s1 + $0x8a0] sm:$0xf]  ;;  %v12063_v15 = vor.u32 %v17689_v4, %v12062_v21  ;;  %v17836_v4 = vld [vmem:[%s28127_s1 + $0x688] sm:$0xf0]  ;;  %v12874_v50 = vld [vmem:[%s28127_s1 + $0x830] sm:$0xf] }
 0x4b9   :  { %10892 = vmatpush.bf16.msrb.mxu1 %v17267_v9  ;;  %v17211_v9 = vor.u32 %v18973_v55, %v17208_v48  ;;  %v12931_v0 = vor.u32 %v17906_v6, %v12930_v26  ;;  %v12455_v55 = vor.u32 %v17787_v27, %v12454_v43  ;;  %v12875_v26 = vor.u32 %v17892_v8, %v12874_v50  ;;  %v12398_v6 = vld [vmem:[%s28127_s1 + $0x478] sm:$0xf]  ;;  %v17759_v50 = vld [vmem:[%s28127_s1 + $0x420] sm:$0xf0]  ;;  %v12566_v8 = vld [vmem:[%s28127_s1 + $0x5c8] sm:$0xf] }
 0x4ba   :  { %10905 = vmatpush.bf16.msrb.mxu2 %v11895_v40  ;;  %v11839_v40 = vor.u32 %v17633_v62, %v11838_v58  ;;  %v12903_v58 = vor.u32 %v17899_v13, %v12902_v56  ;;  %v12650_v62 = vld [vmem:[%s28127_s1 + $0x670] sm:$0xf]  ;;  %v17766_v56 = vld [vmem:[%s28127_s1 + $0x458] sm:$0xf0]  ;;  %v12594_v13 = vld [vmem:[%s28127_s1 + $0x600] sm:$0xf] }
 0x4bb   :  { %10918 = vmatpush.bf16.msrb.mxu3 %v12119_v34  ;;  %v12707_v34 = vor.u32 %v17850_v63, %v12706_v2  ;;  %v17948_v2 = vld [vmem:[%s28127_s1 + $0xa08] sm:$0xf0]  ;;  %v12651_v63 = vor.u32 %v17836_v4, %v12650_v62  ;;  %v12342_v4 = vld [vmem:[%s28127_s1 + $0x408] sm:$0xf] }
 0x4bc   :  { %10880 = vmatpush.bf16.msrb.mxu0 %v17015_v51  ;;  %v17843_v51 = vld [vmem:[%s28127_s1 + $0x6c0] sm:$0xf0] }
 0x4bd   :  { %10893 = vmatpush.bf16.msrb.mxu1 %v17239_v36  ;;  %v13126_v36 = vld [vmem:[%s28127_s1 + $0xa28] sm:$0xf]  ;;  %v12679_v48 = vor.u32 %v17843_v51, %v12678_v24  ;;  %v12370_v51 = vld [vmem:[%s28127_s1 + $0x440] sm:$0xf] }
 0x4be   :  { %10906 = vmatpush.bf16.msrb.mxu2 %v11867_v57  ;;  %v17955_v57 = vld [vmem:[%s28127_s1 + $0xa40] sm:$0xf0] }
 0x4bf   :  { %10919 = vmatpush.bf16.msrb.mxu3 %v12091_v47  ;;  %v17780_v47 = vld [vmem:[%s28127_s1 + $0x4c8] sm:$0xf0]  ;;  %v13127_v21 = vor.u32 %v17955_v57, %v13126_v36  ;;  %v17822_v57 = vld [vmem:[%s28127_s1 + $0x618] sm:$0xf0] }
 0x4c0   :  { %10881 = vmatpush.bf16.msrb.mxu0 %v16987_v32  ;;  %v12427_v32 = vor.u32 %v17780_v47, %v12426_v59  ;;  %v17934_v59 = vld [vmem:[%s28127_s1 + $0x998] sm:$0xf0]  ;;  %v12371_v47 = vor.u32 %v17766_v56, %v12370_v51  ;;  %v12595_v62 = vor.u32 %v17822_v57, %v12594_v13  ;;  %v12762_v51 = vld [vmem:[%s28127_s1 + $0x750] sm:$0xf]  ;;  %v17864_v56 = vld [vmem:[%s28127_s1 + $0x768] sm:$0xf0] }
 0x4c1   :  { %10894 = vmatpush.bf16.msrb.mxu1 %v17211_v9  ;;  %v17773_v9 = vld [vmem:[%s28127_s1 + $0x490] sm:$0xf0]  ;;  %v10688_v27 = vpop.f32.mrf.mxu1  ;;  %v12986_v13 = vld [vmem:[%s28127_s1 + $0x910] sm:$0xf]  ;;  %v12286_v57 = vld [vmem:[%s28127_s1 + $0x398] sm:$0xf] }
 0x4c2   :  { %10907 = vmatpush.bf16.msrb.mxu2 %v11839_v40  ;;  %v13099_v40 = vor.u32 %v17948_v2, %v13098_v10  ;;  %v12399_v43 = vor.u32 %v17773_v9, %v12398_v6 }
 0x4c3   :  { %10920 = vmatpush.bf16.msrb.mxu3 %v12063_v15  ;;  %10882 = vmatmul.bf16.vlgmr.msrb.gmra.mxu0 %v20446_v16  ;;  %v10675_v15 = vpop.f32.mrf.mxu0 }
 0x4c4   :  { %10926 = vmatpush.bf16.msra.mxu0 %v12483_v60  ;;  %10895 = vmatmul.bf16.vlgmr.msrb.gmra.mxu1 %v20635_v1  ;;  %v13070_v60 = vld [vmem:[%s28127_s1 + $0x9b8] sm:$0xf] }
 0x4c5   :  { %10939 = vmatpush.bf16.msra.mxu1 %v12707_v34  ;;  %10908 = vmatmul.bf16.vlgmr.msrb.gmra.mxu2 %v19435_v19  ;;  %v12622_v19 = vld [vmem:[%s28127_s1 + $0x638] sm:$0xf]  ;;  %v17941_v34 = vld [vmem:[%s28127_s1 + $0x9d0] sm:$0xf0] }
 0x4c6   :  { %10952 = vmatpush.bf16.msra.mxu2 %v12931_v0  ;;  %10921 = vmatmul.bf16.vlgmr.msrb.gmra.mxu3 %v19439_v22  ;;  %v17829_v22 = vld [vmem:[%s28127_s1 + $0x650] sm:$0xf0]  ;;  %v10676_v0 = vadd.f32 %v10675_v15, %v26745_v52  ;;  %v13071_v52 = vor.u32 %v17941_v34, %v13070_v60 }
 0x4c7   :  { %10965 = vmatpush.bf16.msra.mxu3 %v13155_v17  ;;  %v12623_v24 = vor.u32 %v17829_v22, %v12622_v19  ;;  %v12847_v17 = vor.u32 %v17885_v5, %v12846_v14  ;;  %v13014_v19 = vld [vmem:[%s28127_s1 + $0x948] sm:$0xf]  ;;  %v12343_v14 = vor.u32 %v17759_v50, %v12342_v4  ;;  %v17857_v4 = vld [vmem:[%s28127_s1 + $0x730] sm:$0xf0]  ;;  %v12958_v50 = vld [vmem:[%s28127_s1 + $0x8d8] sm:$0xf] }
 0x4c8   :  { %10927 = vmatpush.bf16.msra.mxu0 %v12455_v55  ;;  %v10689_v36 = vadd.f32 %v10688_v27, %v10676_v0  ;;  %v12818_v55 = vld [vmem:[%s28127_s1 + $0x7c0] sm:$0xf]  ;;  %v10701_v2 = vpop.f32.mrf.mxu2  ;;  %v12314_v0 = vld [vmem:[%s28127_s1 + $0x3d0] sm:$0xf] }
 0x4c9   :  { %10940 = vmatpush.bf16.msra.mxu1 %v12679_v48  ;;  %v17878_v48 = vld [vmem:[%s28127_s1 + $0x7d8] sm:$0xf0]  ;;  %v10714_v9 = vpop.f32.mrf.mxu3  ;;  %v10690_v5 = vpop.f32.mrf.mxu1  ;;  %v12538_v27 = vld [vmem:[%s28127_s1 + $0x590] sm:$0xf] }
 0x4ca   :  { %10953 = vmatpush.bf16.msra.mxu2 %v12903_v58  ;;  %v13042_v58 = vld [vmem:[%s28127_s1 + $0x980] sm:$0xf]  ;;  %v10702_v6 = vadd.f32 %v10701_v2, %v10689_v36 }
 0x4cb   :  { %10966 = vmatpush.bf16.msra.mxu3 %v13127_v21  ;;  %v12819_v21 = vor.u32 %v17878_v48, %v12818_v55  ;;  %v13043_v10 = vor.u32 %v17934_v59, %v13042_v58  ;;  %v10677_v22 = vpop.f32.mrf.mxu0  ;;  %v17745_v55 = vld [vmem:[%s28127_s1 + $0x3b0] sm:$0xf0]  ;;  %v12763_v58 = vor.u32 %v17864_v56, %v12762_v51  ;;  %v12510_v59 = vld [vmem:[%s28127_s1 + $0x558] sm:$0xf]  ;;  %v13378_v2 = vld [vmem:[%s28127_s1 + $0xc20] sm:$0xf] }
 0x4cc   :  { %10928 = vmatpush.bf16.msra.mxu0 %v12427_v32  ;;  %v17815_v32 = vld [vmem:[%s28127_s1 + $0x5e0] sm:$0xf0]  ;;  %v26944_v15 = vadd.f32 %v10714_v9, %v10702_v6  ;;  %v12287_v6 = vor.u32 %v17745_v55, %v12286_v57  ;;  %v18074_v9 = vld [vmem:[%s28127_s1 + $0xdf8] sm:$0xf0]  ;;  %v14050_v5 = vld [vmem:[%s28127_s1 + $0x1160] sm:$0xf] }
 0x4cd   :  { %10941 = vmatpush.bf16.msra.mxu1 %v12651_v63  ;;  %v12790_v63 = vld [vmem:[%s28127_s1 + $0x788] sm:$0xf]  ;;  %v12567_v60 = vor.u32 %v17815_v32, %v12566_v8  ;;  %v17913_v8 = vld [vmem:[%s28127_s1 + $0x8f0] sm:$0xf0]  ;;  %v18018_v32 = vld [vmem:[%s28127_s1 + $0xc38] sm:$0xf0] }
 0x4ce   :  { %10954 = vmatpush.bf16.msra.mxu2 %v12875_v26  ;;  %v17871_v26 = vld [vmem:[%s28127_s1 + $0x7a0] sm:$0xf0]  ;;  %v13574_v51 = vld [vmem:[%s28127_s1 + $0xda8] sm:$0xf] }
 0x4cf   :  { %10967 = vmatpush.bf16.msra.mxu3 %v13099_v40  ;;  %v17927_v40 = vld [vmem:[%s28127_s1 + $0x960] sm:$0xf0]  ;;  %v12791_v34 = vor.u32 %v17871_v26, %v12790_v63  ;;  %v13602_v63 = vld [vmem:[%s28127_s1 + $0xde0] sm:$0xf]  ;;  %v14022_v57 = vld [vmem:[%s28127_s1 + $0x1128] sm:$0xf] }
 0x4d0   :  { %10929 = vmatpush.bf16.msra.mxu0 %v12399_v43  ;;  %v17752_v43 = vld [vmem:[%s28127_s1 + $0x3e8] sm:$0xf0]  ;;  %v18179_v55 = vld [vmem:[%s28127_s1 + $0x1140] sm:$0xf0] }
 0x4d1   :  { %10942 = vmatpush.bf16.msra.mxu1 %v12623_v24  ;;  %v13015_v24 = vor.u32 %v17927_v40, %v13014_v19  ;;  %v12315_v36 = vor.u32 %v17752_v43, %v12314_v0  ;;  %v10716_v26 = vpop.f32.mrf.mxu3  ;;  %v13826_v19 = vld [vmem:[%s28127_s1 + $0xfa0] sm:$0xf]  ;;  %v18130_v40 = vld [vmem:[%s28127_s1 + $0xfb8] sm:$0xf0]  ;;  %v13379_v0 = vor.u32 %v18018_v32, %v13378_v2  ;;  %v13603_v43 = vor.u32 %v18074_v9, %v13602_v63  ;;  %v13994_v2 = vld [vmem:[%s28127_s1 + $0x10f0] sm:$0xf] }
 0x4d2   :  { %10955 = vmatpush.bf16.msra.mxu2 %v12847_v17  ;;  %v17808_v17 = vld [vmem:[%s28127_s1 + $0x5a8] sm:$0xf0]  ;;  %v17997_v9 = vld [vmem:[%s28127_s1 + $0xb90] sm:$0xf0] }
 0x4d3   :  { %10968 = vmatpush.bf16.msra.mxu3 %v13071_v52  ;;  %v17920_v52 = vld [vmem:[%s28127_s1 + $0x928] sm:$0xf0]  ;;  %v12539_v48 = vor.u32 %v17808_v17, %v12538_v27  ;;  %v13827_v27 = vor.u32 %v18130_v40, %v13826_v19  ;;  %v18011_v17 = vld [vmem:[%s28127_s1 + $0xc00] sm:$0xf0]  ;;  %v13742_v19 = vld [vmem:[%s28127_s1 + $0xef8] sm:$0xf] }
 0x4d4   :  { %10930 = vmatpush.bf16.msra.mxu0 %v12371_v47  ;;  %v17801_v47 = vld [vmem:[%s28127_s1 + $0x570] sm:$0xf0] }
 0x4d5   :  { %10943 = vmatpush.bf16.msra.mxu1 %v12595_v62  ;;  %v12734_v62 = vld [vmem:[%s28127_s1 + $0x718] sm:$0xf]  ;;  %v12511_v22 = vor.u32 %v17801_v47, %v12510_v59  ;;  %v13322_v47 = vld [vmem:[%s28127_s1 + $0xbb0] sm:$0xf]  ;;  %v18109_v40 = vld [vmem:[%s28127_s1 + $0xf10] sm:$0xf0] }
 0x4d6   :  { %10956 = vmatpush.bf16.msra.mxu2 %v12819_v21  ;;  %v12987_v21 = vor.u32 %v17920_v52, %v12986_v13  ;;  %v18067_v13 = vld [vmem:[%s28127_s1 + $0xdc0] sm:$0xf0]  ;;  %v13798_v52 = vld [vmem:[%s28127_s1 + $0xf68] sm:$0xf] }
 0x4d7   :  { %10969 = vmatpush.bf16.msra.mxu3 %v13043_v10  ;;  %v10703_v10 = vpop.f32.mrf.mxu2 }
 0x4d8   :  { %10931 = vmatpush.bf16.msra.mxu0 %v12343_v14  ;;  %v12735_v14 = vor.u32 %v17857_v4, %v12734_v62  ;;  %v18004_v62 = vld [vmem:[%s28127_s1 + $0xbc8] sm:$0xf0]  ;;  %v14023_v4 = vor.u32 %v18179_v55, %v14022_v57  ;;  %v13938_v57 = vld [vmem:[%s28127_s1 + $0x1080] sm:$0xf]  ;;  %v18158_v55 = vld [vmem:[%s28127_s1 + $0x1098] sm:$0xf0] }
 0x4d9   :  { %10944 = vmatpush.bf16.msra.mxu1 %v12567_v60  ;;  %v18186_v60 = vld [vmem:[%s28127_s1 + $0x1178] sm:$0xf0]  ;;  %v18116_v10 = vld [vmem:[%s28127_s1 + $0xf48] sm:$0xf0]  ;;  %v13323_v32 = vor.u32 %v18004_v62, %v13322_v47  ;;  %v13238_v47 = vld [vmem:[%s28127_s1 + $0xb08] sm:$0xf] }
 0x4da   :  { %10957 = vmatpush.bf16.msra.mxu2 %v12791_v34  ;;  %v12959_v34 = vor.u32 %v17913_v8, %v12958_v50  ;;  %v14051_v56 = vor.u32 %v18186_v60, %v14050_v5  ;;  %v18060_v50 = vld [vmem:[%s28127_s1 + $0xd88] sm:$0xf0]  ;;  %v13770_v8 = vld [vmem:[%s28127_s1 + $0xf30] sm:$0xf]  ;;  %v18165_v5 = vld [vmem:[%s28127_s1 + $0x10d0] sm:$0xf0] }
 0x4db   :  { %10970 = vmatpush.bf16.msra.mxu3 %v13015_v24  ;;  %v13350_v24 = vld [vmem:[%s28127_s1 + $0xbe8] sm:$0xf]  ;;  %v13771_v26 = vor.u32 %v18116_v10, %v13770_v8  ;;  %v17983_v62 = vld [vmem:[%s28127_s1 + $0xb20] sm:$0xf0] }
 0x4dc   :  { %10932 = vmatpush.bf16.msra.mxu0 %v12315_v36  ;;  %v18123_v36 = vld [vmem:[%s28127_s1 + $0xf80] sm:$0xf0]  ;;  %v13686_v10 = vld [vmem:[%s28127_s1 + $0xe88] sm:$0xf] }
 0x4dd   :  { %10945 = vmatpush.bf16.msra.mxu1 %v12539_v48  ;;  %v13351_v48 = vor.u32 %v18011_v17, %v13350_v24  ;;  %v13799_v59 = vor.u32 %v18123_v36, %v13798_v52  ;;  %v13266_v24 = vld [vmem:[%s28127_s1 + $0xb40] sm:$0xf]  ;;  %v17990_v17 = vld [vmem:[%s28127_s1 + $0xb58] sm:$0xf0]  ;;  %v18039_v8 = vld [vmem:[%s28127_s1 + $0xce0] sm:$0xf0] }
 0x4de   :  { %10958 = vmatpush.bf16.msra.mxu2 %v12763_v58  ;;  %v13575_v58 = vor.u32 %v18067_v13, %v13574_v51  ;;  %v13490_v51 = vld [vmem:[%s28127_s1 + $0xd00] sm:$0xf]  ;;  %v18046_v13 = vld [vmem:[%s28127_s1 + $0xd18] sm:$0xf0] }
 0x4df   :  { %10971 = vmatpush.bf16.msra.mxu3 %v12987_v21  ;;  %v13546_v21 = vld [vmem:[%s28127_s1 + $0xd70] sm:$0xf]  ;;  %v13714_v52 = vld [vmem:[%s28127_s1 + $0xec0] sm:$0xf]  ;;  %v18102_v36 = vld [vmem:[%s28127_s1 + $0xed8] sm:$0xf0] }
 0x4e0   :  { %10933 = vmatpush.bf16.msra.mxu0 %v12287_v6  ;;  %v13547_v63 = vor.u32 %v18060_v50, %v13546_v21  ;;  %v13294_v6 = vld [vmem:[%s28127_s1 + $0xb78] sm:$0xf]  ;;  %v13462_v21 = vld [vmem:[%s28127_s1 + $0xcc8] sm:$0xf] }
 0x4e1   :  { %10946 = vmatpush.bf16.msra.mxu1 %v12511_v22  ;;  %v10727_v22 = vpop.f32.mrf.mxu0 }
 0x4e2   :  { %10959 = vmatpush.bf16.msra.mxu2 %v12735_v14  ;;  %v13966_v14 = vld [vmem:[%s28127_s1 + $0x10b8] sm:$0xf]  ;;  %v10728_v60 = vadd.f32 %v10727_v22, %v26944_v15  ;;  %v17976_v22 = vld [vmem:[%s28127_s1 + $0xae8] sm:$0xf0] }
 0x4e3   :  { %10972 = vmatpush.bf16.msra.mxu3 %v12959_v34  ;;  %10934 = vmatmul.bf16.vlgmr.msra.gmra.mxu0 %v19433_v18  ;;  %v13518_v18 = vld [vmem:[%s28127_s1 + $0xd38] sm:$0xf]  ;;  %v13295_v34 = vor.u32 %v17997_v9, %v13294_v6  ;;  %v13967_v15 = vor.u32 %v18165_v5, %v13966_v14  ;;  %v13239_v9 = vor.u32 %v17983_v62, %v13238_v47  ;;  %v13434_v14 = vld [vmem:[%s28127_s1 + $0xc90] sm:$0xf]  ;;  %v14274_v47 = vld [vmem:[%s28127_s1 + $0x1320] sm:$0xf] }
 0x4e4   :  { %10978 = vmatpush.bf16.msrb.mxu0 %v13379_v0  ;;  %10947 = vmatmul.bf16.vlgmr.msra.gmra.mxu1 %v19437_v20  ;;  %v18053_v20 = vld [vmem:[%s28127_s1 + $0xd50] sm:$0xf0]  ;;  %v10740_v0 = vpop.f32.mrf.mxu1  ;;  %v18242_v62 = vld [vmem:[%s28127_s1 + $0x1338] sm:$0xf0] }
 0x4e5   :  { %10991 = vmatpush.bf16.msrb.mxu1 %v13603_v43  ;;  %10960 = vmatmul.bf16.vlgmr.msra.gmra.mxu2 %v19597_v41  ;;  %v18172_v41 = vld [vmem:[%s28127_s1 + $0x1108] sm:$0xf0]  ;;  %v13519_v43 = vor.u32 %v18053_v20, %v13518_v18  ;;  %v13463_v20 = vor.u32 %v18039_v8, %v13462_v21  ;;  %v14498_v21 = vld [vmem:[%s28127_s1 + $0x14e0] sm:$0xf]  ;;  %v18298_v8 = vld [vmem:[%s28127_s1 + $0x14f8] sm:$0xf0] }
 0x4e6   :  { %11004 = vmatpush.bf16.msrb.mxu2 %v13827_v27  ;;  %10973 = vmatmul.bf16.vlgmr.msra.gmra.mxu3 %v19601_v44  ;;  %v13995_v44 = vor.u32 %v18172_v41, %v13994_v2  ;;  %v13743_v27 = vor.u32 %v18109_v40, %v13742_v19  ;;  %v18095_v2 = vld [vmem:[%s28127_s1 + $0xea0] sm:$0xf0]  ;;  %v13210_v40 = vld [vmem:[%s28127_s1 + $0xad0] sm:$0xf] }
 0x4e7   :  { %11017 = vmatpush.bf16.msrb.mxu3 %v14051_v56  ;;  %v10741_v56 = vadd.f32 %v10740_v0, %v10728_v60  ;;  %v13687_v19 = vor.u32 %v18095_v2, %v13686_v10  ;;  %v18032_v60 = vld [vmem:[%s28127_s1 + $0xca8] sm:$0xf0]  ;;  %v14722_v10 = vld [vmem:[%s28127_s1 + $0x16a0] sm:$0xf]  ;;  %v18354_v2 = vld [vmem:[%s28127_s1 + $0x16b8] sm:$0xf0] }
 0x4e8   :  { %10979 = vmatpush.bf16.msrb.mxu0 %v13351_v48  ;;  %v13267_v48 = vor.u32 %v17990_v17, %v13266_v24  ;;  %v10753_v50 = vpop.f32.mrf.mxu2  ;;  %v18088_v0 = vld [vmem:[%s28127_s1 + $0xe68] sm:$0xf0]  ;;  %v13211_v24 = vor.u32 %v17976_v22, %v13210_v40  ;;  %v13182_v17 = vld [vmem:[%s28127_s1 + $0xa98] sm:$0xf]  ;;  %v18235_v40 = vld [vmem:[%s28127_s1 + $0x1300] sm:$0xf0] }
 0x4e9   :  { %10992 = vmatpush.bf16.msrb.mxu1 %v13575_v58  ;;  %v13491_v58 = vor.u32 %v18046_v13, %v13490_v51  ;;  %v10754_v41 = vadd.f32 %v10753_v50, %v10741_v56  ;;  %v10729_v6 = vpop.f32.mrf.mxu0  ;;  %v17969_v51 = vld [vmem:[%s28127_s1 + $0xab0] sm:$0xf0]  ;;  %v13406_v13 = vld [vmem:[%s28127_s1 + $0xc58] sm:$0xf]  ;;  %v14470_v22 = vld [vmem:[%s28127_s1 + $0x14a8] sm:$0xf] }
 0x4ea   :  { %11005 = vmatpush.bf16.msrb.mxu2 %v13799_v59  ;;  %v13715_v59 = vor.u32 %v18102_v36, %v13714_v52  ;;  %v18025_v52 = vld [vmem:[%s28127_s1 + $0xc70] sm:$0xf0]  ;;  %v13630_v36 = vld [vmem:[%s28127_s1 + $0xe18] sm:$0xf]  ;;  %v13183_v50 = vor.u32 %v17969_v51, %v13182_v17  ;;  %v14218_v51 = vld [vmem:[%s28127_s1 + $0x12b0] sm:$0xf] }
 0x4eb   :  { %11018 = vmatpush.bf16.msrb.mxu3 %v14023_v4  ;;  %v13939_v4 = vor.u32 %v18158_v55, %v13938_v57  ;;  %v18081_v55 = vld [vmem:[%s28127_s1 + $0xe30] sm:$0xf0] }
 0x4ec   :  { %10980 = vmatpush.bf16.msrb.mxu0 %v13323_v32  ;;  %v10766_v32 = vpop.f32.mrf.mxu3  ;;  %v10742_v18 = vpop.f32.mrf.mxu1 }
 0x4ed   :  { %10993 = vmatpush.bf16.msrb.mxu1 %v13547_v63  ;;  %v13910_v63 = vld [vmem:[%s28127_s1 + $0x1048] sm:$0xf]  ;;  %v14499_v18 = vor.u32 %v18298_v8, %v14498_v21  ;;  %v14638_v21 = vld [vmem:[%s28127_s1 + $0x15f8] sm:$0xf] }
 0x4ee   :  { %11006 = vmatpush.bf16.msrb.mxu2 %v13771_v26  ;;  %v18151_v26 = vld [vmem:[%s28127_s1 + $0x1060] sm:$0xf0]  ;;  %v14862_v8 = vld [vmem:[%s28127_s1 + $0x17b8] sm:$0xf] }
 0x4ef   :  { %11019 = vmatpush.bf16.msrb.mxu3 %v13995_v44  ;;  %v27143_v44 = vadd.f32 %v10766_v32, %v10754_v41  ;;  %v13911_v5 = vor.u32 %v18151_v26, %v13910_v63  ;;  %v13407_v41 = vor.u32 %v18025_v52, %v13406_v13  ;;  %v13631_v32 = vor.u32 %v18081_v55, %v13630_v36  ;;  %v14946_v63 = vld [vmem:[%s28127_s1 + $0x1860] sm:$0xf]  ;;  %v18410_v26 = vld [vmem:[%s28127_s1 + $0x1878] sm:$0xf0]  ;;  %v18284_v52 = vld [vmem:[%s28127_s1 + $0x1488] sm:$0xf0] }
 0x4f0   :  { %10981 = vmatpush.bf16.msrb.mxu0 %v13295_v34  ;;  %v13658_v34 = vld [vmem:[%s28127_s1 + $0xe50] sm:$0xf]  ;;  %v18396_v55 = vld [vmem:[%s28127_s1 + $0x1808] sm:$0xf0] }
 0x4f1   :  { %10994 = vmatpush.bf16.msrb.mxu1 %v13519_v43  ;;  %v13882_v43 = vld [vmem:[%s28127_s1 + $0x1010] sm:$0xf]  ;;  %v13659_v56 = vor.u32 %v18088_v0, %v13658_v34  ;;  %v18347_v34 = vld [vmem:[%s28127_s1 + $0x1680] sm:$0xf0]  ;;  %v14918_v0 = vld [vmem:[%s28127_s1 + $0x1828] sm:$0xf] }
 0x4f2   :  { %11007 = vmatpush.bf16.msrb.mxu2 %v13743_v27  ;;  %v18144_v27 = vld [vmem:[%s28127_s1 + $0x1028] sm:$0xf0]  ;;  %v14666_v36 = vld [vmem:[%s28127_s1 + $0x1630] sm:$0xf] }
 0x4f3   :  { %11020 = vmatpush.bf16.msrb.mxu3 %v13967_v15  ;;  %v13435_v15 = vor.u32 %v18032_v60, %v13434_v14  ;;  %v13883_v57 = vor.u32 %v18144_v27, %v13882_v43  ;;  %v14947_v14 = vor.u32 %v18410_v26, %v14946_v63  ;;  %v14694_v60 = vld [vmem:[%s28127_s1 + $0x1668] sm:$0xf]  ;;  %v18403_v43 = vld [vmem:[%s28127_s1 + $0x1840] sm:$0xf0] }
 0x4f4   :  { %10982 = vmatpush.bf16.msrb.mxu0 %v13267_v48  ;;  %v13854_v48 = vld [vmem:[%s28127_s1 + $0xfd8] sm:$0xf]  ;;  %v14695_v17 = vor.u32 %v18347_v34, %v14694_v60  ;;  %v14919_v13 = vor.u32 %v18403_v43, %v14918_v0  ;;  %v14134_v43 = vld [vmem:[%s28127_s1 + $0x1208] sm:$0xf] }
 0x4f5   :  { %10995 = vmatpush.bf16.msrb.mxu1 %v13491_v58  ;;  %v18137_v58 = vld [vmem:[%s28127_s1 + $0xff0] sm:$0xf0] }
 0x4f6   :  { %11008 = vmatpush.bf16.msrb.mxu2 %v13715_v59  ;;  %v10755_v59 = vpop.f32.mrf.mxu2  ;;  %v13855_v6 = vor.u32 %v18137_v58, %v13854_v48 }
 0x4f7   :  { %11021 = vmatpush.bf16.msrb.mxu3 %v13939_v4  ;;  %v10768_v4 = vpop.f32.mrf.mxu3 }
 0x4f8   :  { %10983 = vmatpush.bf16.msrb.mxu0 %v13239_v9  ;;  %v14275_v9 = vor.u32 %v18242_v62, %v14274_v47  ;;  %v14414_v47 = vld [vmem:[%s28127_s1 + $0x1438] sm:$0xf]  ;;  %v18277_v62 = vld [vmem:[%s28127_s1 + $0x1450] sm:$0xf0] }
 0x4f9   :  { %10996 = vmatpush.bf16.msrb.mxu1 %v13463_v20  ;;  %v14723_v20 = vor.u32 %v18354_v2, %v14722_v10  ;;  %v18333_v4 = vld [vmem:[%s28127_s1 + $0x1610] sm:$0xf0]  ;;  %v14415_v63 = vor.u32 %v18277_v62, %v14414_v47  ;;  %v14106_v47 = vld [vmem:[%s28127_s1 + $0x11d0] sm:$0xf] }
 0x4fa   :  { %11009 = vmatpush.bf16.msrb.mxu2 %v13687_v19  ;;  %v14246_v19 = vld [vmem:[%s28127_s1 + $0x12e8] sm:$0xf]  ;;  %v18389_v10 = vld [vmem:[%s28127_s1 + $0x17d0] sm:$0xf0]  ;;  %v14639_v26 = vor.u32 %v18333_v4, %v14638_v21  ;;  %v14330_v62 = vld [vmem:[%s28127_s1 + $0x1390] sm:$0xf] }
 0x4fb   :  { %11022 = vmatpush.bf16.msrb.mxu3 %v13911_v5  ;;  %v18291_v5 = vld [vmem:[%s28127_s1 + $0x14c0] sm:$0xf0]  ;;  %v14247_v27 = vor.u32 %v18235_v40, %v14246_v19  ;;  %v18270_v19 = vld [vmem:[%s28127_s1 + $0x1418] sm:$0xf0]  ;;  %v14610_v40 = vld [vmem:[%s28127_s1 + $0x15c0] sm:$0xf] }
 0x4fc   :  { %10984 = vmatpush.bf16.msrb.mxu0 %v13211_v24  ;;  %v14471_v24 = vor.u32 %v18291_v5, %v14470_v22  ;;  %v18326_v22 = vld [vmem:[%s28127_s1 + $0x15d8] sm:$0xf0]  ;;  %v18256_v4 = vld [vmem:[%s28127_s1 + $0x13a8] sm:$0xf0] }
 0x4fd   :  { %10997 = vmatpush.bf16.msrb.mxu1 %v13435_v15  ;;  %v18228_v15 = vld [vmem:[%s28127_s1 + $0x12c8] sm:$0xf0]  ;;  %v18382_v5 = vld [vmem:[%s28127_s1 + $0x1798] sm:$0xf0]  ;;  %v14611_v0 = vor.u32 %v18326_v22, %v14610_v40  ;;  %v14750_v40 = vld [vmem:[%s28127_s1 + $0x16d8] sm:$0xf] }
 0x4fe   :  { %11010 = vmatpush.bf16.msrb.mxu2 %v13659_v56  ;;  %v14442_v56 = vld [vmem:[%s28127_s1 + $0x1470] sm:$0xf]  ;;  %v14219_v48 = vor.u32 %v18228_v15, %v14218_v51  ;;  %v18263_v15 = vld [vmem:[%s28127_s1 + $0x13e0] sm:$0xf0]  ;;  %v18361_v22 = vld [vmem:[%s28127_s1 + $0x16f0] sm:$0xf0] }
 0x4ff   :  { %11023 = vmatpush.bf16.msrb.mxu3 %v13883_v57  ;;  %v18340_v57 = vld [vmem:[%s28127_s1 + $0x1648] sm:$0xf0]  ;;  %v14443_v58 = vor.u32 %v18284_v52, %v14442_v56  ;;  %v14582_v56 = vld [vmem:[%s28127_s1 + $0x1588] sm:$0xf] }
 0x500   :  { %10985 = vmatpush.bf16.msrb.mxu0 %v13183_v50  ;;  %v14667_v59 = vor.u32 %v18340_v57, %v14666_v36  ;;  %v10779_v50 = vpop.f32.mrf.mxu0  ;;  %v14806_v57 = vld [vmem:[%s28127_s1 + $0x1748] sm:$0xf] }
 0x501   :  { %10998 = vmatpush.bf16.msrb.mxu1 %v13407_v41  ;;  %v10780_v2 = vadd.f32 %v10779_v50, %v27143_v44  ;;  %v14863_v44 = vor.u32 %v18389_v10, %v14862_v8  ;;  %v14554_v50 = vld [vmem:[%s28127_s1 + $0x1550] sm:$0xf]  ;;  %v18312_v8 = vld [vmem:[%s28127_s1 + $0x1568] sm:$0xf0] }
 0x502   :  { %11011 = vmatpush.bf16.msrb.mxu2 %v13631_v32  ;;  %v10792_v32 = vpop.f32.mrf.mxu1  ;;  %v14778_v10 = vld [vmem:[%s28127_s1 + $0x1710] sm:$0xf] }
 0x503   :  { %11024 = vmatpush.bf16.msrb.mxu3 %v13855_v6  ;;  %10986 = vmatmul.bf16.vlgmr.msrb.gmra.mxu0 %v19589_v38  ;;  %v14890_v38 = vld [vmem:[%s28127_s1 + $0x17f0] sm:$0xf]  ;;  %v14162_v6 = vld [vmem:[%s28127_s1 + $0x1240] sm:$0xf] }
 0x504   :  { %11030 = vmatpush.bf16.msra.mxu0 %v14275_v9  ;;  %10999 = vmatmul.bf16.vlgmr.msrb.gmra.mxu1 %v19599_v42  ;;  %v14190_v42 = vld [vmem:[%s28127_s1 + $0x1278] sm:$0xf]  ;;  %v18214_v9 = vld [vmem:[%s28127_s1 + $0x1258] sm:$0xf0] }
 0x505   :  { %11043 = vmatpush.bf16.msra.mxu1 %v14499_v18  ;;  %11012 = vmatmul.bf16.vlgmr.msrb.gmra.mxu2 %v19790_v25  ;;  %v18221_v25 = vld [vmem:[%s28127_s1 + $0x1290] sm:$0xf0]  ;;  %v14386_v18 = vld [vmem:[%s28127_s1 + $0x1400] sm:$0xf]  ;;  %v14163_v60 = vor.u32 %v18214_v9, %v14162_v6  ;;  %v14555_v6 = vor.u32 %v18312_v8, %v14554_v50  ;;  %v14302_v9 = vld [vmem:[%s28127_s1 + $0x1358] sm:$0xf] }
 0x506   :  { %11056 = vmatpush.bf16.msra.mxu2 %v14723_v20  ;;  %11025 = vmatmul.bf16.vlgmr.msrb.gmra.mxu3 %v19803_v30  ;;  %v14891_v30 = vor.u32 %v18396_v55, %v14890_v38  ;;  %v14191_v41 = vor.u32 %v18221_v25, %v14190_v42  ;;  %v10793_v20 = vadd.f32 %v10792_v32, %v10780_v2  ;;  %v18375_v38 = vld [vmem:[%s28127_s1 + $0x1760] sm:$0xf0]  ;;  %v18368_v2 = vld [vmem:[%s28127_s1 + $0x1728] sm:$0xf0]  ;;  %v14078_v32 = vld [vmem:[%s28127_s1 + $0x1198] sm:$0xf] }
 0x507   :  { %11069 = vmatpush.bf16.msra.mxu3 %v14947_v14  ;;  %v14834_v14 = vld [vmem:[%s28127_s1 + $0x1780] sm:$0xf]  ;;  %v14387_v34 = vor.u32 %v18270_v19, %v14386_v18  ;;  %v14807_v21 = vor.u32 %v18375_v38, %v14806_v57  ;;  %v18249_v18 = vld [vmem:[%s28127_s1 + $0x1370] sm:$0xf0] }
 0x508   :  { %11031 = vmatpush.bf16.msra.mxu0 %v14247_v27  ;;  %v18207_v27 = vld [vmem:[%s28127_s1 + $0x1220] sm:$0xf0]  ;;  %v10805_v51 = vpop.f32.mrf.mxu2  ;;  %v10781_v55 = vpop.f32.mrf.mxu0  ;;  %v18305_v19 = vld [vmem:[%s28127_s1 + $0x1530] sm:$0xf0] }
 0x509   :  { %11044 = vmatpush.bf16.msra.mxu1 %v14471_v24  ;;  %v14358_v24 = vld [vmem:[%s28127_s1 + $0x13c8] sm:$0xf]  ;;  %v10806_v52 = vadd.f32 %v10805_v51, %v10793_v20  ;;  %v10818_v36 = vpop.f32.mrf.mxu3  ;;  %v14779_v20 = vor.u32 %v18368_v2, %v14778_v10  ;;  %v14303_v51 = vor.u32 %v18249_v18, %v14302_v9  ;;  %v15114_v10 = vld [vmem:[%s28127_s1 + $0x19b0] sm:$0xf]  ;;  %v18452_v2 = vld [vmem:[%s28127_s1 + $0x19c8] sm:$0xf0] }
 0x50a   :  { %11057 = vmatpush.bf16.msra.mxu2 %v14695_v17  ;;  %v14835_v17 = vor.u32 %v18382_v5, %v14834_v14  ;;  %v14359_v42 = vor.u32 %v18263_v15, %v14358_v24  ;;  %v15170_v5 = vld [vmem:[%s28127_s1 + $0x1a20] sm:$0xf]  ;;  %v15142_v55 = vld [vmem:[%s28127_s1 + $0x19e8] sm:$0xf]  ;;  %v18620_v9 = vld [vmem:[%s28127_s1 + $0x1f08] sm:$0xf0]  ;;  %v15115_v18 = vor.u32 %v18452_v2, %v15114_v10 }
 0x50b   :  { %11070 = vmatpush.bf16.msra.mxu3 %v14919_v13  ;;  %v18319_v13 = vld [vmem:[%s28127_s1 + $0x15a0] sm:$0xf0]  ;;  %v15618_v24 = vld [vmem:[%s28127_s1 + $0x1da0] sm:$0xf] }
 0x50c   :  { %11032 = vmatpush.bf16.msra.mxu0 %v14219_v48  ;;  %v14135_v48 = vor.u32 %v18207_v27, %v14134_v43  ;;  %v14583_v25 = vor.u32 %v18319_v13, %v14582_v56  ;;  %v18522_v27 = vld [vmem:[%s28127_s1 + $0x1bf8] sm:$0xf0]  ;;  %v15842_v56 = vld [vmem:[%s28127_s1 + $0x1f60] sm:$0xf] }
 0x50d   :  { %11045 = vmatpush.bf16.msra.mxu1 %v14443_v58  ;;  %v10794_v58 = vpop.f32.mrf.mxu1  ;;  %v18634_v13 = vld [vmem:[%s28127_s1 + $0x1f78] sm:$0xf0] }
 0x50e   :  { %11058 = vmatpush.bf16.msra.mxu2 %v14667_v59  ;;  %v27342_v59 = vadd.f32 %v10818_v36, %v10806_v52  ;;  %v14751_v52 = vor.u32 %v18361_v22, %v14750_v40  ;;  %v15366_v58 = vld [vmem:[%s28127_s1 + $0x1ba8] sm:$0xf]  ;;  %v18501_v40 = vld [vmem:[%s28127_s1 + $0x1b50] sm:$0xf0]  ;;  %v15534_v22 = vld [vmem:[%s28127_s1 + $0x1cf8] sm:$0xf] }
 0x50f   :  { %11071 = vmatpush.bf16.msra.mxu3 %v14891_v30  ;;  %v18200_v30 = vld [vmem:[%s28127_s1 + $0x11e8] sm:$0xf0] }
 0x510   :  { %11033 = vmatpush.bf16.msra.mxu0 %v14191_v41  ;;  %v14107_v41 = vor.u32 %v18200_v30, %v14106_v47  ;;  %v10807_v14 = vpop.f32.mrf.mxu2  ;;  %v15590_v47 = vld [vmem:[%s28127_s1 + $0x1d68] sm:$0xf]  ;;  %v18571_v30 = vld [vmem:[%s28127_s1 + $0x1d80] sm:$0xf0] }
 0x511   :  { %11046 = vmatpush.bf16.msra.mxu1 %v14415_v63  ;;  %v18193_v63 = vld [vmem:[%s28127_s1 + $0x11b0] sm:$0xf0]  ;;  %v15591_v8 = vor.u32 %v18571_v30, %v15590_v47  ;;  %v18431_v47 = vld [vmem:[%s28127_s1 + $0x1920] sm:$0xf0]  ;;  %v15254_v30 = vld [vmem:[%s28127_s1 + $0x1ac8] sm:$0xf] }
 0x512   :  { %11059 = vmatpush.bf16.msra.mxu2 %v14639_v26  ;;  %v14331_v26 = vor.u32 %v18256_v4, %v14330_v62  ;;  %v14079_v43 = vor.u32 %v18193_v63, %v14078_v32  ;;  %v15814_v62 = vld [vmem:[%s28127_s1 + $0x1f28] sm:$0xf]  ;;  %v18508_v63 = vld [vmem:[%s28127_s1 + $0x1b88] sm:$0xf0]  ;;  %v18557_v14 = vld [vmem:[%s28127_s1 + $0x1d10] sm:$0xf0] }
 0x513   :  { %11072 = vmatpush.bf16.msra.mxu3 %v14863_v44  ;;  %v14526_v44 = vld [vmem:[%s28127_s1 + $0x1518] sm:$0xf] }
 0x514   :  { %11034 = vmatpush.bf16.msra.mxu0 %v14163_v60  ;;  %v18466_v60 = vld [vmem:[%s28127_s1 + $0x1a38] sm:$0xf0]  ;;  %v14527_v15 = vor.u32 %v18305_v19, %v14526_v44  ;;  %v15310_v19 = vld [vmem:[%s28127_s1 + $0x1b38] sm:$0xf] }
 0x515   :  { %11047 = vmatpush.bf16.msra.mxu1 %v14387_v34  ;;  %v15394_v34 = vld [vmem:[%s28127_s1 + $0x1be0] sm:$0xf]  ;;  %v15171_v36 = vor.u32 %v18466_v60, %v15170_v5  ;;  %v15758_v60 = vld [vmem:[%s28127_s1 + $0x1eb8] sm:$0xf] }
 0x516   :  { %11060 = vmatpush.bf16.msra.mxu2 %v14611_v0  ;;  %v10820_v0 = vpop.f32.mrf.mxu3  ;;  %v15395_v57 = vor.u32 %v18522_v27, %v15394_v34  ;;  %v18613_v34 = vld [vmem:[%s28127_s1 + $0x1ed0] sm:$0xf0] }
 0x517   :  { %11073 = vmatpush.bf16.msra.mxu3 %v14835_v17  ;;  %v18578_v17 = vld [vmem:[%s28127_s1 + $0x1db8] sm:$0xf0] }
 0x518   :  { %11035 = vmatpush.bf16.msra.mxu0 %v14135_v48  ;;  %v15619_v38 = vor.u32 %v18578_v17, %v15618_v24  ;;  %v18459_v48 = vld [vmem:[%s28127_s1 + $0x1a00] sm:$0xf0]  ;;  %v15311_v24 = vor.u32 %v18501_v40, %v15310_v19  ;;  %v15535_v17 = vor.u32 %v18557_v14, %v15534_v22  ;;  %v18480_v19 = vld [vmem:[%s28127_s1 + $0x1aa8] sm:$0xf0]  ;;  %v15674_v22 = vld [vmem:[%s28127_s1 + $0x1e10] sm:$0xf] }
 0x519   :  { %11048 = vmatpush.bf16.msra.mxu1 %v14359_v42  ;;  %v15843_v42 = vor.u32 %v18634_v13, %v15842_v56  ;;  %v15143_v4 = vor.u32 %v18459_v48, %v15142_v55  ;;  %v15282_v56 = vld [vmem:[%s28127_s1 + $0x1b00] sm:$0xf]  ;;  %v18606_v55 = vld [vmem:[%s28127_s1 + $0x1e98] sm:$0xf0]  ;;  %v18536_v40 = vld [vmem:[%s28127_s1 + $0x1c68] sm:$0xf0] }
 0x51a   :  { %11061 = vmatpush.bf16.msra.mxu2 %v14583_v25  ;;  %v18515_v25 = vld [vmem:[%s28127_s1 + $0x1bc0] sm:$0xf0]  ;;  %v18592_v14 = vld [vmem:[%s28127_s1 + $0x1e28] sm:$0xf0] }
 0x51b   :  { %11074 = vmatpush.bf16.msra.mxu3 %v14807_v21  ;;  %v18627_v21 = vld [vmem:[%s28127_s1 + $0x1f40] sm:$0xf0]  ;;  %v15367_v50 = vor.u32 %v18515_v25, %v15366_v58  ;;  %v15030_v25 = vld [vmem:[%s28127_s1 + $0x1908] sm:$0xf] }
 0x51c   :  { %11036 = vmatpush.bf16.msra.mxu0 %v14107_v41  ;;  %v15338_v41 = vld [vmem:[%s28127_s1 + $0x1b70] sm:$0xf]  ;;  %v15815_v32 = vor.u32 %v18627_v21, %v15814_v62 }
 0x51d   :  { %11049 = vmatpush.bf16.msra.mxu1 %v14331_v26  ;;  %v15562_v26 = vld [vmem:[%s28127_s1 + $0x1d30] sm:$0xf]  ;;  %v15339_v44 = vor.u32 %v18508_v63, %v15338_v41  ;;  %v15702_v41 = vld [vmem:[%s28127_s1 + $0x1e48] sm:$0xf] }
 0x51e   :  { %11062 = vmatpush.bf16.msra.mxu2 %v14555_v6  ;;  %v18564_v6 = vld [vmem:[%s28127_s1 + $0x1d48] sm:$0xf0] }
 0x51f   :  { %11075 = vmatpush.bf16.msra.mxu3 %v14779_v20  ;;  %v15563_v20 = vor.u32 %v18564_v6, %v15562_v26  ;;  %v15031_v26 = vor.u32 %v18431_v47, %v15030_v25 }
 0x520   :  { %11037 = vmatpush.bf16.msra.mxu0 %v14079_v43  ;;  %v10831_v5 = vpop.f32.mrf.mxu0 }
 0x521   :  { %11050 = vmatpush.bf16.msra.mxu1 %v14303_v51  ;;  %v10832_v0 = vadd.f32 %v10831_v5, %v27342_v59  ;;  %v10844_v27 = vpop.f32.mrf.mxu1  ;;  %v15058_v51 = vld [vmem:[%s28127_s1 + $0x1940] sm:$0xf]  ;;  %v15759_v59 = vor.u32 %v18613_v34, %v15758_v60  ;;  %v14974_v60 = vld [vmem:[%s28127_s1 + $0x1898] sm:$0xf]  ;;  %v18417_v34 = vld [vmem:[%s28127_s1 + $0x18b0] sm:$0xf0] }
 0x522   :  { %11063 = vmatpush.bf16.msra.mxu2 %v14527_v15  ;;  %v18438_v15 = vld [vmem:[%s28127_s1 + $0x1958] sm:$0xf0] }
 0x523   :  { %11076 = vmatpush.bf16.msra.mxu3 %v14751_v52  ;;  %11038 = vmatmul.bf16.vlgmr.msra.gmra.mxu0 %v19801_v29  ;;  %v15786_v29 = vld [vmem:[%s28127_s1 + $0x1ef0] sm:$0xf]  ;;  %v10845_v13 = vadd.f32 %v10844_v27, %v10832_v0  ;;  %v18494_v52 = vld [vmem:[%s28127_s1 + $0x1b18] sm:$0xf0]  ;;  %v15059_v48 = vor.u32 %v18438_v15, %v15058_v51  ;;  %v15198_v27 = vld [vmem:[%s28127_s1 + $0x1a58] sm:$0xf]  ;;  %v15675_v51 = vor.u32 %v18592_v14, %v15674_v22 }
 0x524   :  { %11082 = vmatpush.bf16.msrb.mxu0 %v15171_v36  ;;  %11051 = vmatmul.bf16.vlgmr.msra.gmra.mxu1 %v19811_v33  ;;  %v15086_v33 = vld [vmem:[%s28127_s1 + $0x1978] sm:$0xf]  ;;  %v15506_v36 = vld [vmem:[%s28127_s1 + $0x1cc0] sm:$0xf]  ;;  %v15283_v58 = vor.u32 %v18494_v52, %v15282_v56  ;;  %v18529_v15 = vld [vmem:[%s28127_s1 + $0x1c30] sm:$0xf0] }
 0x525   :  { %11095 = vmatpush.bf16.msrb.mxu1 %v15395_v57  ;;  %11064 = vmatmul.bf16.vlgmr.msra.gmra.mxu2 %v20000_v23  ;;  %v18445_v23 = vld [vmem:[%s28127_s1 + $0x1990] sm:$0xf0]  ;;  %v18550_v57 = vld [vmem:[%s28127_s1 + $0x1cd8] sm:$0xf0]  ;;  %v15646_v56 = vld [vmem:[%s28127_s1 + $0x1dd8] sm:$0xf] }
 0x526   :  { %11108 = vmatpush.bf16.msrb.mxu2 %v15619_v38  ;;  %11077 = vmatmul.bf16.vlgmr.msra.gmra.mxu3 %v20013_v31  ;;  %v15787_v31 = vor.u32 %v18620_v9, %v15786_v29  ;;  %v15087_v43 = vor.u32 %v18445_v23, %v15086_v33  ;;  %v15730_v38 = vld [vmem:[%s28127_s1 + $0x1e80] sm:$0xf]  ;;  %v15226_v33 = vld [vmem:[%s28127_s1 + $0x1a90] sm:$0xf]  ;;  %v18732_v22 = vld [vmem:[%s28127_s1 + $0x2288] sm:$0xf0] }
 0x527   :  { %11121 = vmatpush.bf16.msrb.mxu3 %v15843_v42  ;;  %v15507_v42 = vor.u32 %v18550_v57, %v15506_v36  ;;  %v15731_v62 = vor.u32 %v18606_v55, %v15730_v38  ;;  %v15227_v0 = vor.u32 %v18480_v19, %v15226_v33  ;;  %v16066_v52 = vld [vmem:[%s28127_s1 + $0x2120] sm:$0xf]  ;;  %v18690_v36 = vld [vmem:[%s28127_s1 + $0x2138] sm:$0xf0]  ;;  %v14975_v55 = vor.u32 %v18417_v34, %v14974_v60  ;;  %v18676_v19 = vld [vmem:[%s28127_s1 + $0x20c8] sm:$0xf0] }
 0x528   :  { %11083 = vmatpush.bf16.msrb.mxu0 %v15143_v4  ;;  %v10857_v21 = vpop.f32.mrf.mxu2  ;;  %v18487_v4 = vld [vmem:[%s28127_s1 + $0x1ae0] sm:$0xf0]  ;;  %v10833_v63 = vpop.f32.mrf.mxu0  ;;  %v16290_v57 = vld [vmem:[%s28127_s1 + $0x22e0] sm:$0xf]  ;;  %v16458_v14 = vld [vmem:[%s28127_s1 + $0x2430] sm:$0xf] }
 0x529   :  { %11096 = vmatpush.bf16.msrb.mxu1 %v15367_v50  ;;  %v15478_v50 = vld [vmem:[%s28127_s1 + $0x1c88] sm:$0xf]  ;;  %v10858_v10 = vadd.f32 %v10857_v21, %v10845_v13  ;;  %v10870_v2 = vpop.f32.mrf.mxu3  ;;  %v10846_v6 = vpop.f32.mrf.mxu1  ;;  %v15255_v9 = vor.u32 %v18487_v4, %v15254_v30  ;;  %v16738_v30 = vld [vmem:[%s28127_s1 + $0x2660] sm:$0xf]  ;;  %v16067_v4 = vor.u32 %v18690_v36, %v16066_v52  ;;  %v18739_v63 = vld [vmem:[%s28127_s1 + $0x22c0] sm:$0xf0] }
 0x52a   :  { %11109 = vmatpush.bf16.msrb.mxu2 %v15591_v8  ;;  %v18543_v8 = vld [vmem:[%s28127_s1 + $0x1ca0] sm:$0xf0]  ;;  %v18844_v60 = vld [vmem:[%s28127_s1 + $0x2608] sm:$0xf0] }
 0x52b   :  { %11122 = vmatpush.bf16.msrb.mxu3 %v15815_v32  ;;  %v18599_v32 = vld [vmem:[%s28127_s1 + $0x1e60] sm:$0xf0]  ;;  %v27541_v29 = vadd.f32 %v10870_v2, %v10858_v10  ;;  %v16038_v10 = vld [vmem:[%s28127_s1 + $0x20e8] sm:$0xf] }
 0x52c   :  { %11084 = vmatpush.bf16.msrb.mxu0 %v15115_v18  ;;  %v15479_v18 = vor.u32 %v18543_v8, %v15478_v50  ;;  %v15703_v23 = vor.u32 %v18599_v32, %v15702_v41  ;;  %v18683_v2 = vld [vmem:[%s28127_s1 + $0x2100] sm:$0xf0]  ;;  %v16262_v41 = vld [vmem:[%s28127_s1 + $0x22a8] sm:$0xf] }
 0x52d   :  { %11097 = vmatpush.bf16.msrb.mxu1 %v15339_v44  ;;  %v15002_v44 = vld [vmem:[%s28127_s1 + $0x18d0] sm:$0xf]  ;;  %v18795_v6 = vld [vmem:[%s28127_s1 + $0x2480] sm:$0xf0] }
 0x52e   :  { %11110 = vmatpush.bf16.msrb.mxu2 %v15563_v20  ;;  %v18424_v20 = vld [vmem:[%s28127_s1 + $0x18e8] sm:$0xf0] }
 0x52f   :  { %11123 = vmatpush.bf16.msrb.mxu3 %v15787_v31  ;;  %v15450_v31 = vld [vmem:[%s28127_s1 + $0x1c50] sm:$0xf]  ;;  %v15003_v5 = vor.u32 %v18424_v20, %v15002_v44  ;;  %v16039_v44 = vor.u32 %v18683_v2, %v16038_v10  ;;  %v16263_v20 = vor.u32 %v18739_v63, %v16262_v41  ;;  %v15926_v41 = vld [vmem:[%s28127_s1 + $0x2008] sm:$0xf] }
 0x530   :  { %11085 = vmatpush.bf16.msrb.mxu0 %v15087_v43  ;;  %v15451_v43 = vor.u32 %v18536_v40, %v15450_v31  ;;  %v10859_v13 = vpop.f32.mrf.mxu2  ;;  %v16234_v31 = vld [vmem:[%s28127_s1 + $0x2270] sm:$0xf]  ;;  %v16150_v63 = vld [vmem:[%s28127_s1 + $0x21c8] sm:$0xf] }
 0x531   :  { %11098 = vmatpush.bf16.msrb.mxu1 %v15311_v24  ;;  %v18473_v24 = vld [vmem:[%s28127_s1 + $0x1a70] sm:$0xf0]  ;;  %v10872_v38 = vpop.f32.mrf.mxu3 }
 0x532   :  { %11111 = vmatpush.bf16.msrb.mxu2 %v15535_v17  ;;  %v15422_v17 = vld [vmem:[%s28127_s1 + $0x1c18] sm:$0xf]  ;;  %v15199_v25 = vor.u32 %v18473_v24, %v15198_v27  ;;  %v18725_v24 = vld [vmem:[%s28127_s1 + $0x2250] sm:$0xf0] }
 0x533   :  { %11124 = vmatpush.bf16.msrb.mxu3 %v15759_v59  ;;  %v18585_v59 = vld [vmem:[%s28127_s1 + $0x1df0] sm:$0xf0]  ;;  %v15423_v47 = vor.u32 %v18529_v15, %v15422_v17  ;;  %v16206_v27 = vld [vmem:[%s28127_s1 + $0x2238] sm:$0xf] }
 0x534   :  { %11086 = vmatpush.bf16.msrb.mxu0 %v15059_v48  ;;  %v18746_v48 = vld [vmem:[%s28127_s1 + $0x22f8] sm:$0xf0]  ;;  %v15647_v21 = vor.u32 %v18585_v59, %v15646_v56  ;;  %v16430_v17 = vld [vmem:[%s28127_s1 + $0x23f8] sm:$0xf]  ;;  %v18837_v59 = vld [vmem:[%s28127_s1 + $0x25d0] sm:$0xf0] }
 0x535   :  { %11099 = vmatpush.bf16.msrb.mxu1 %v15283_v58  ;;  %v16514_v58 = vld [vmem:[%s28127_s1 + $0x24a0] sm:$0xf]  ;;  %v16291_v50 = vor.u32 %v18746_v48, %v16290_v57  ;;  %v16654_v56 = vld [vmem:[%s28127_s1 + $0x25b8] sm:$0xf]  ;;  %v16207_v57 = vor.u32 %v18725_v24, %v16206_v27  ;;  %v18662_v48 = vld [vmem:[%s28127_s1 + $0x2058] sm:$0xf0] }
 0x536   :  { %11112 = vmatpush.bf16.msrb.mxu2 %v15507_v42  ;;  %v18802_v42 = vld [vmem:[%s28127_s1 + $0x24b8] sm:$0xf0]  ;;  %v18760_v27 = vld [vmem:[%s28127_s1 + $0x2368] sm:$0xf0] }
 0x537   :  { %11125 = vmatpush.bf16.msrb.mxu3 %v15731_v62  ;;  %v18858_v62 = vld [vmem:[%s28127_s1 + $0x2678] sm:$0xf0]  ;;  %v16515_v8 = vor.u32 %v18802_v42, %v16514_v58  ;;  %v16178_v58 = vld [vmem:[%s28127_s1 + $0x2200] sm:$0xf]  ;;  %v18816_v24 = vld [vmem:[%s28127_s1 + $0x2528] sm:$0xf0] }
 0x538   :  { %11087 = vmatpush.bf16.msrb.mxu0 %v15031_v26  ;;  %v16739_v32 = vor.u32 %v18858_v62, %v16738_v30  ;;  %v16486_v26 = vld [vmem:[%s28127_s1 + $0x2468] sm:$0xf]  ;;  %v18774_v30 = vld [vmem:[%s28127_s1 + $0x23d8] sm:$0xf0]  ;;  %v16626_v62 = vld [vmem:[%s28127_s1 + $0x2580] sm:$0xf] }
 0x539   :  { %11100 = vmatpush.bf16.msrb.mxu1 %v15255_v9  ;;  %v16710_v9 = vld [vmem:[%s28127_s1 + $0x2628] sm:$0xf]  ;;  %v16487_v33 = vor.u32 %v18795_v6, %v16486_v26  ;;  %v18711_v6 = vld [vmem:[%s28127_s1 + $0x21e0] sm:$0xf0] }
 0x53a   :  { %11113 = vmatpush.bf16.msrb.mxu2 %v15479_v18  ;;  %v18851_v18 = vld [vmem:[%s28127_s1 + $0x2640] sm:$0xf0] }
 0x53b   :  { %11126 = vmatpush.bf16.msrb.mxu3 %v15703_v23  ;;  %v16010_v23 = vld [vmem:[%s28127_s1 + $0x20b0] sm:$0xf]  ;;  %v16711_v40 = vor.u32 %v18851_v18, %v16710_v9  ;;  %v16374_v9 = vld [vmem:[%s28127_s1 + $0x2388] sm:$0xf]  ;;  %v18767_v18 = vld [vmem:[%s28127_s1 + $0x23a0] sm:$0xf0] }
 0x53c   :  { %11088 = vmatpush.bf16.msrb.mxu0 %v15003_v5  ;;  %v18788_v5 = vld [vmem:[%s28127_s1 + $0x2448] sm:$0xf0]  ;;  %v16011_v34 = vor.u32 %v18676_v19, %v16010_v23 }
 0x53d   :  { %11101 = vmatpush.bf16.msrb.mxu1 %v15227_v0  ;;  %v16235_v0 = vor.u32 %v18732_v22, %v16234_v31 }
 0x53e   :  { %11114 = vmatpush.bf16.msrb.mxu2 %v15451_v43  ;;  %v16459_v43 = vor.u32 %v18788_v5, %v16458_v14  ;;  %v16151_v14 = vor.u32 %v18711_v6, %v16150_v63  ;;  %v16375_v5 = vor.u32 %v18767_v18, %v16374_v9  ;;  %v16934_v6 = vld [vmem:[%s28127_s1 + $0x27e8] sm:$0xf]  ;;  %v18907_v9 = vld [vmem:[%s28127_s1 + $0x2800] sm:$0xf0] }
 0x53f   :  { %11127 = vmatpush.bf16.msrb.mxu3 %v15675_v51  ;;  %v18781_v51 = vld [vmem:[%s28127_s1 + $0x2410] sm:$0xf0]  ;;  %v17158_v18 = vld [vmem:[%s28127_s1 + $0x29a8] sm:$0xf] }
 0x540   :  { %11089 = vmatpush.bf16.msrb.mxu0 %v14975_v55  ;;  %v10883_v15 = vpop.f32.mrf.mxu0  ;;  %v16431_v38 = vor.u32 %v18781_v51, %v16430_v17  ;;  %v15954_v55 = vld [vmem:[%s28127_s1 + $0x2040] sm:$0xf]  ;;  %v15870_v51 = vld [vmem:[%s28127_s1 + $0x1f98] sm:$0xf] }
 0x541   :  { %11102 = vmatpush.bf16.msrb.mxu1 %v15199_v25  ;;  %v10884_v13 = vadd.f32 %v10883_v15, %v27541_v29  ;;  %v10896_v36 = vpop.f32.mrf.mxu1  ;;  %v16655_v29 = vor.u32 %v18837_v59, %v16654_v56  ;;  %v18718_v25 = vld [vmem:[%s28127_s1 + $0x2218] sm:$0xf0]  ;;  %v18641_v15 = vld [vmem:[%s28127_s1 + $0x1fb0] sm:$0xf0] }
 0x542   :  { %11115 = vmatpush.bf16.msrb.mxu2 %v15423_v47  ;;  %v16402_v47 = vld [vmem:[%s28127_s1 + $0x23c0] sm:$0xf]  ;;  %v16179_v10 = vor.u32 %v18718_v25, %v16178_v58  ;;  %v18914_v25 = vld [vmem:[%s28127_s1 + $0x2838] sm:$0xf0] }
 0x543   :  { %11128 = vmatpush.bf16.msrb.mxu3 %v15647_v21  ;;  %11090 = vmatmul.bf16.vlgmr.msrb.gmra.mxu0 %v20011_v28  ;;  %v16682_v28 = vld [vmem:[%s28127_s1 + $0x25f0] sm:$0xf]  ;;  %v27701_v42 = vadd.f32 %v10896_v36, %v10884_v13  ;;  %v18830_v21 = vld [vmem:[%s28127_s1 + $0x2598] sm:$0xf0]  ;;  %v16403_v2 = vor.u32 %v18774_v30, %v16402_v47  ;;  %v16094_v13 = vld [vmem:[%s28127_s1 + $0x2158] sm:$0xf] }
 0x544   :  { %11134 = vmatpush.bf16.msra.mxu0 %v16067_v4  ;;  %11103 = vmatmul.bf16.vlgmr.msrb.gmra.mxu1 %v20021_v35  ;;  %v15982_v35 = vld [vmem:[%s28127_s1 + $0x2078] sm:$0xf]  ;;  %v19088_v4 = vld [vmem:[%s28129_s2] sm:$0x7f]  ;;  %v16627_v26 = vor.u32 %v18830_v21, %v16626_v62  ;;  %v15871_v62 = vor.u32 %v18641_v15, %v15870_v51  ;;  %v18970_v21 = vld [vmem:[%s28127_s1 + $0x29f8] sm:$0xf0] }
 0x545   :  { %11147 = vmatpush.bf16.msra.mxu1 %v16291_v50  ;;  %11116 = vmatmul.bf16.vlgmr.msrb.gmra.mxu2 %v20210_v37  ;;  %v18669_v37 = vld [vmem:[%s28127_s1 + $0x2090] sm:$0xf0]  ;;  %v1654_v50 = vperm.slane %v19088_v4, 6  ;;  %v16318_v36 = vld [vmem:[%s28127_s1 + $0x2318] sm:$0xf]  ;;  %v19031_v51 = vld [vmem:[%s28130_s3 + $0x20] sm:$0xff] }
 0x546   :  { %11160 = vmatpush.bf16.msra.mxu2 %v16515_v8  ;;  %11129 = vmatmul.bf16.vlgmr.msrb.gmra.mxu3 %v20223_v46  ;;  %v16683_v46 = vor.u32 %v18844_v60, %v16682_v28  ;;  %v15983_v52 = vor.u32 %v18669_v37, %v15982_v35  ;;  %v15955_v8 = vor.u32 %v18662_v48, %v15954_v55  ;;  %v15898_v28 = vld [vmem:[%s28127_s1 + $0x1fd0] sm:$0xf]  ;;  %v18648_v60 = vld [vmem:[%s28127_s1 + $0x1fe8] sm:$0xf0]  ;;  %v16542_v55 = vld [vmem:[%s28127_s1 + $0x24d8] sm:$0xf] }
 0x547   :  { %11173 = vmatpush.bf16.msra.mxu3 %v16739_v32  ;;  %v18655_v32 = vld [vmem:[%s28127_s1 + $0x2020] sm:$0xf0]  ;;  %v18704_v35 = vld [vmem:[%s28127_s1 + $0x21a8] sm:$0xf0]  ;;  %v16346_v37 = vld [vmem:[%s28127_s1 + $0x2350] sm:$0xf]  ;;  %v15899_v17 = vor.u32 %v18648_v60, %v15898_v28 }
 0x548   :  { %11135 = vmatpush.bf16.msra.mxu0 %v16039_v44  ;;  %v10909_v44 = vpop.f32.mrf.mxu2  ;;  %v10885_v31 = vpop.f32.mrf.mxu0  ;;  %v16347_v59 = vor.u32 %v18760_v27, %v16346_v37  ;;  %v18809_v48 = vld [vmem:[%s28127_s1 + $0x24f0] sm:$0xf0]  ;;  %v17186_v47 = vld [vmem:[%s28127_s1 + $0x29e0] sm:$0xf]  ;;  %v18956_v28 = vld [vmem:[%s28127_s1 + $0x2988] sm:$0xf0] }
 0x549   :  { %11148 = vmatpush.bf16.msra.mxu1 %v16263_v20  ;;  %v16598_v20 = vld [vmem:[%s28127_s1 + $0x2548] sm:$0xf]  ;;  %v10910_v23 = vadd.f32 %v10909_v44, %v1654_v50  ;;  %v10922_v19 = vpop.f32.mrf.mxu3  ;;  %v10898_v22 = vpop.f32.mrf.mxu1  ;;  %v17410_v4 = vld [vmem:[%s28127_s1 + $0x2ba0] sm:$0xf]  ;;  %v19026_v50 = vld [vmem:[%s28127_s1 + $0x2bb8] sm:$0xf0]  ;;  %v17187_v63 = vor.u32 %v18970_v21, %v17186_v47 }
 0x54a   :  { %11161 = vmatpush.bf16.msra.mxu2 %v16487_v33  ;;  %v18823_v33 = vld [vmem:[%s28127_s1 + $0x2560] sm:$0xf0]  ;;  %v16906_v22 = vld [vmem:[%s28127_s1 + $0x27b0] sm:$0xf]  ;;  %v16878_v27 = vld [vmem:[%s28127_s1 + $0x2778] sm:$0xf] }
 0x54b   :  { %11174 = vmatpush.bf16.msra.mxu3 %v16711_v40  ;;  %v15927_v40 = vor.u32 %v18655_v32, %v15926_v41  ;;  %v19034_v32 = vld [vmem:[%s28130_s3 + $0x38] sm:$0xff]  ;;  %v18963_v44 = vld [vmem:[%s28127_s1 + $0x29c0] sm:$0xf0]  ;;  %v17354_v60 = vld [vmem:[%s28127_s1 + $0x2b30] sm:$0xf] }
 0x54c   :  { %11136 = vmatpush.bf16.msra.mxu0 %v16011_v34  ;;  %v16122_v34 = vld [vmem:[%s28127_s1 + $0x2190] sm:$0xf]  ;;  %v17159_v31 = vor.u32 %v18963_v44, %v17158_v18  ;;  %v18879_v21 = vld [vmem:[%s28127_s1 + $0x2720] sm:$0xf0] }
 0x54d   :  { %11149 = vmatpush.bf16.msra.mxu1 %v16235_v0  ;;  %v27754_v0 = vadd.f32 %v10922_v19, %v10910_v23  ;;  %v16123_v56 = vor.u32 %v18704_v35, %v16122_v34  ;;  %v16935_v23 = vor.u32 %v18907_v9, %v16934_v6  ;;  %v19033_v19 = vld [vmem:[%s28130_s3 + $0x30] sm:$0xff]  ;;  %v19012_v34 = vld [vmem:[%s28127_s1 + $0x2b48] sm:$0xf0] }
 0x54e   :  { %11162 = vmatpush.bf16.msra.mxu2 %v16459_v43  ;;  %v16599_v43 = vor.u32 %v18823_v33, %v16598_v20  ;;  %v17382_v20 = vld [vmem:[%s28127_s1 + $0x2b68] sm:$0xf]  ;;  %v19019_v33 = vld [vmem:[%s28127_s1 + $0x2b80] sm:$0xf0]  ;;  %v17355_v37 = vor.u32 %v19012_v34, %v17354_v60  ;;  %v16766_v34 = vld [vmem:[%s28127_s1 + $0x2698] sm:$0xf] }
 0x54f   :  { %11175 = vmatpush.bf16.msra.mxu3 %v16683_v46  ;;  %v16570_v46 = vld [vmem:[%s28127_s1 + $0x2510] sm:$0xf] }
 0x550   :  { %11137 = vmatpush.bf16.msra.mxu0 %v15983_v52  ;;  %v18697_v52 = vld [vmem:[%s28127_s1 + $0x2170] sm:$0xf0]  ;;  %v10911_v58 = vpop.f32.mrf.mxu2 }
 0x551   :  { %11150 = vmatpush.bf16.msra.mxu1 %v16207_v57  ;;  %v16571_v57 = vor.u32 %v18816_v24, %v16570_v46  ;;  %v10924_v30 = vpop.f32.mrf.mxu3  ;;  %v17326_v46 = vld [vmem:[%s28127_s1 + $0x2af8] sm:$0xf]  ;;  %v19005_v24 = vld [vmem:[%s28127_s1 + $0x2b10] sm:$0xf0]  ;;  %v18998_v58 = vld [vmem:[%s28127_s1 + $0x2ad8] sm:$0xf0] }
 0x552   :  { %11163 = vmatpush.bf16.msra.mxu2 %v16431_v38  ;;  %v18753_v38 = vld [vmem:[%s28127_s1 + $0x2330] sm:$0xf0] }
 0x553   :  { %11176 = vmatpush.bf16.msra.mxu3 %v16655_v29  ;;  %v16962_v29 = vld [vmem:[%s28127_s1 + $0x2820] sm:$0xf] }
 0x554   :  { %11138 = vmatpush.bf16.msra.mxu0 %v15955_v8  ;;  %v16095_v8 = vor.u32 %v18697_v52, %v16094_v13  ;;  %v16963_v41 = vor.u32 %v18914_v25, %v16962_v29  ;;  %v16850_v13 = vld [vmem:[%s28127_s1 + $0x2740] sm:$0xf]  ;;  %v18886_v52 = vld [vmem:[%s28127_s1 + $0x2758] sm:$0xf0] }
 0x555   :  { %11151 = vmatpush.bf16.msra.mxu1 %v16179_v10  ;;  %v16319_v10 = vor.u32 %v18753_v38, %v16318_v36  ;;  %v17074_v36 = vld [vmem:[%s28127_s1 + $0x2900] sm:$0xf]  ;;  %v16851_v25 = vor.u32 %v18886_v52, %v16850_v13  ;;  %v19066_v13 = vld [vmem:[%s28130_s3 + $0x138] sm:$0xff]  ;;  %v19041_v52 = vld [vmem:[%s28130_s3 + $0x70] sm:$0xff] }
 0x556   :  { %11164 = vmatpush.bf16.msra.mxu2 %v16403_v2  ;;  %v16543_v2 = vor.u32 %v18809_v48, %v16542_v55  ;;  %v18942_v55 = vld [vmem:[%s28127_s1 + $0x2918] sm:$0xf0]  ;;  %v17298_v48 = vld [vmem:[%s28127_s1 + $0x2ac0] sm:$0xf] }
 0x557   :  { %11177 = vmatpush.bf16.msra.mxu3 %v16627_v26  ;;  %v17411_v26 = vor.u32 %v19026_v50, %v17410_v4  ;;  %v17075_v47 = vor.u32 %v18942_v55, %v17074_v36  ;;  %v17299_v30 = vor.u32 %v18998_v58, %v17298_v48  ;;  %v17046_v4 = vld [vmem:[%s28127_s1 + $0x28c8] sm:$0xf]  ;;  %v19049_v36 = vld [vmem:[%s28130_s3 + $0xb0] sm:$0xff] }
 0x558   :  { %11139 = vmatpush.bf16.msra.mxu0 %v15927_v40  ;;  %v17383_v40 = vor.u32 %v19019_v33, %v17382_v20  ;;  %v16794_v20 = vld [vmem:[%s28127_s1 + $0x26d0] sm:$0xf]  ;;  %v18872_v33 = vld [vmem:[%s28127_s1 + $0x26e8] sm:$0xf0] }
 0x559   :  { %11152 = vmatpush.bf16.msra.mxu1 %v16151_v14  ;;  %v18900_v14 = vld [vmem:[%s28127_s1 + $0x27c8] sm:$0xf0] }
 0x55a   :  { %11165 = vmatpush.bf16.msra.mxu2 %v16375_v5  ;;  %v17130_v5 = vld [vmem:[%s28127_s1 + $0x2970] sm:$0xf]  ;;  %v19040_v55 = vld [vmem:[%s28130_s3 + $0x68] sm:$0xff] }
 0x55b   :  { %11178 = vmatpush.bf16.msra.mxu3 %v16599_v43  ;;  %v19032_v43 = vld [vmem:[%s28130_s3 + $0x28] sm:$0xff]  ;;  %v17131_v35 = vor.u32 %v18956_v28, %v17130_v5 }
 0x55c   :  { %11140 = vmatpush.bf16.msra.mxu0 %v15899_v17  ;;  %v19028_v5 = vld [vmem:[%s28130_s3 + $0x8] sm:$0xff] }
 0x55d   :  { %11153 = vmatpush.bf16.msra.mxu1 %v16123_v56  ;;  %v19056_v48 = vld [vmem:[%s28130_s3 + $0xe8] sm:$0xff] }
 0x55e   :  { %11166 = vmatpush.bf16.msra.mxu2 %v16347_v59  ;;  %v17327_v59 = vor.u32 %v19005_v24, %v17326_v46 }
 0x55f   :  { %11179 = vmatpush.bf16.msra.mxu3 %v16571_v57 }
 0x560   :  { %11141 = vmatpush.bf16.msra.mxu0 %v15871_v62  ;;  %v10935_v15 = vpop.f32.mrf.mxu0  ;;  %v16822_v62 = vld [vmem:[%s28127_s1 + $0x2708] sm:$0xf] }
 0x561   :  { %11154 = vmatpush.bf16.msra.mxu1 %v16095_v8  ;;  %v10936_v57 = vadd.f32 %v10935_v15, %v27754_v0  ;;  %v10948_v38 = vpop.f32.mrf.mxu1  ;;  %v19030_v0 = vld [vmem:[%s28130_s3 + $0x18] sm:$0xff]  ;;  %v18935_v8 = vld [vmem:[%s28127_s1 + $0x28e0] sm:$0xf0] }
 0x562   :  { %11167 = vmatpush.bf16.msra.mxu2 %v16319_v10  ;;  %v17270_v10 = vld [vmem:[%s28127_s1 + $0x2a88] sm:$0xf]  ;;  %v17047_v18 = vor.u32 %v18935_v8, %v17046_v4  ;;  %v19050_v15 = vld [vmem:[%s28130_s3 + $0xb8] sm:$0xff] }
 0x563   :  { %11180 = vmatpush.bf16.msra.mxu3 %v16543_v2  ;;  %11142 = vmatmul.bf16.vlgmr.msra.gmra.mxu0 %v20221_v45  ;;  %v16907_v45 = vor.u32 %v18900_v14, %v16906_v22  ;;  %v10949_v29 = vadd.f32 %v10948_v38, %v10936_v57  ;;  %v18991_v2 = vld [vmem:[%s28127_s1 + $0x2aa0] sm:$0xf0]  ;;  %v18984_v22 = vld [vmem:[%s28127_s1 + $0x2a68] sm:$0xf0]  ;;  %v16795_v14 = vor.u32 %v18872_v33, %v16794_v20  ;;  %v19065_v38 = vld [vmem:[%s28130_s3 + $0x130] sm:$0xff] }
 0x564   :  { %11186 = vmatpush.bf16.msrb.mxu0 %v16963_v41  ;;  %11155 = vmatmul.bf16.vlgmr.msra.gmra.mxu1 %v20231_v49  ;;  %v18893_v49 = vld [vmem:[%s28127_s1 + $0x2790] sm:$0xf0]  ;;  %v17271_v44 = vor.u32 %v18991_v2, %v17270_v10  ;;  %v19046_v4 = vld [vmem:[%s28130_s3 + $0x98] sm:$0xff]  ;;  %v19036_v20 = vld [vmem:[%s28130_s3 + $0x48] sm:$0xff] }
 0x565   :  { %11199 = vmatpush.bf16.msrb.mxu1 %v17187_v63  ;;  %11168 = vmatmul.bf16.vlgmr.msra.gmra.mxu2 %v20425_v7  ;;  %v17102_v7 = vld [vmem:[%s28127_s1 + $0x2938] sm:$0xf]  ;;  %v16879_v17 = vor.u32 %v18893_v49, %v16878_v27  ;;  %v16823_v63 = vor.u32 %v18879_v21, %v16822_v62  ;;  %v18977_v49 = vld [vmem:[%s28127_s1 + $0x2a30] sm:$0xf0]  ;;  %v19044_v33 = vld [vmem:[%s28130_s3 + $0x88] sm:$0xff] }
 0x566   :  { %11212 = vmatpush.bf16.msrb.mxu2 %v17411_v26  ;;  %11181 = vmatmul.bf16.vlgmr.msra.gmra.mxu3 %v20438_v12  ;;  %v18949_v12 = vld [vmem:[%s28127_s1 + $0x2950] sm:$0xf0]  ;;  %v17214_v27 = vld [vmem:[%s28127_s1 + $0x2a18] sm:$0xf] }
 0x567   :  { %11639 = vmatpush.bf16.msrb.mxu3 %v19034_v32  ;;  %v17103_v56 = vor.u32 %v18949_v12, %v17102_v7  ;;  %v19029_v26 = vld [vmem:[%s28130_s3 + $0x10] sm:$0xff]  ;;  %v17215_v24 = vor.u32 %v18977_v49, %v17214_v27  ;;  %v19038_v21 = vld [vmem:[%s28130_s3 + $0x58] sm:$0xff] }
 0x568   :  { %11187 = vmatpush.bf16.msrb.mxu0 %v16935_v23  ;;  %v10961_v50 = vpop.f32.mrf.mxu2  ;;  %v10937_v9 = vpop.f32.mrf.mxu0  ;;  %v17018_v23 = vld [vmem:[%s28127_s1 + $0x2890] sm:$0xf]  ;;  %v19062_v8 = vld [vmem:[%s28130_s3 + $0x118] sm:$0xff] }
 0x569   :  { %11200 = vmatpush.bf16.msrb.mxu1 %v17159_v31  ;;  %v10962_v41 = vadd.f32 %v10961_v50, %v10949_v29  ;;  %v10974_v32 = vpop.f32.mrf.mxu3  ;;  %v18928_v31 = vld [vmem:[%s28127_s1 + $0x28a8] sm:$0xf0]  ;;  %v19039_v29 = vld [vmem:[%s28130_s3 + $0x60] sm:$0xff]  ;;  %v19054_v50 = vld [vmem:[%s28130_s3 + $0xd8] sm:$0xff] }
 0x56a   :  { %11213 = vmatpush.bf16.msrb.mxu2 %v17383_v40  ;;  %v17242_v40 = vld [vmem:[%s28127_s1 + $0x2a50] sm:$0xf]  ;;  %v17019_v28 = vor.u32 %v18928_v31, %v17018_v23  ;;  %v19052_v23 = vld [vmem:[%s28130_s3 + $0xc8] sm:$0xff] }
 0x56b   :  { %11640 = vmatpush.bf16.msrb.mxu3 %v19033_v19  ;;  %v27926_v6 = vadd.f32 %v10974_v32, %v10962_v41  ;;  %v10950_v19 = vpop.f32.mrf.mxu1  ;;  %v17243_v60 = vor.u32 %v18984_v22, %v17242_v40  ;;  %v19045_v9 = vld [vmem:[%s28130_s3 + $0x90] sm:$0xff]  ;;  %v19035_v22 = vld [vmem:[%s28130_s3 + $0x40] sm:$0xff] }
 0x56c   :  { %11188 = vmatpush.bf16.msrb.mxu0 %v16907_v45  ;;  %v18865_v45 = vld [vmem:[%s28127_s1 + $0x26b0] sm:$0xf0]  ;;  %v19060_v19 = vld [vmem:[%s28130_s3 + $0x108] sm:$0xff] }
 0x56d   :  { %11201 = vmatpush.bf16.msrb.mxu1 %v17131_v35  ;;  %v16767_v12 = vor.u32 %v18865_v45, %v16766_v34  ;;  %v11228_v34 = vmax.f32 %v25146_v61, 0.0  ;;  %v19059_v45 = vld [vmem:[%s28130_s3 + $0x100] sm:$0xff] }
 0x56e   :  { %11214 = vmatpush.bf16.msrb.mxu2 %v17355_v37  ;;  %v18921_v37 = vld [vmem:[%s28127_s1 + $0x2870] sm:$0xf0] }
 0x56f   :  { %11641 = vmatpush.bf16.msrb.mxu3 %v19032_v43  ;;  %v16990_v43 = vld [vmem:[%s28127_s1 + $0x2858] sm:$0xf]  ;;  %v11235_v27 = vpack.c.bf16 %v11228_v34, %v11228_v34 }
 0x570   :  { %11189 = vmatpush.bf16.msrb.mxu0 %v16879_v17  ;;  %v10963_v35 = vpop.f32.mrf.mxu2  ;;  %v16991_v46 = vor.u32 %v18921_v37, %v16990_v43  ;;  %v19027_v17 = vld [vmem:[%s28130_s3] sm:$0xff]  ;;  %v11229_v43 = vmax.f32 %v26496_v53, 0.0  ;;  %v19072_v53 = vld [vmem:[%s28130_s3 + $0x168] sm:$0xff] }
 0x571   :  { %11202 = vmatpush.bf16.msrb.mxu1 %v17103_v56  ;;  %v10976_v7 = vpop.f32.mrf.mxu3  ;;  %v19058_v56 = vld [vmem:[%s28130_s3 + $0xf8] sm:$0xff] }
 0x572   :  { %11215 = vmatpush.bf16.msrb.mxu2 %v17327_v59  ;;  %v11225_v59 = vmax.f32 %v21504_v3, 0.0  ;;  %v19057_v3 = vld [vmem:[%s28130_s3 + $0xf0] sm:$0xff]  ;;  %v11236_v61 = vpack.c.bf16 %v11229_v43, %v11229_v43  ;;  %v19080_v43 = vld [vmem:[%s28131_s4] ss:$0 sm:$0xff] }
 0x573   :  { %11642 = vmatpush.bf16.msrb.mxu3 %v19031_v51  ;;  %v19042_v51 = vld [vmem:[%s28130_s3 + $0x78] sm:$0xff] }
 0x574   :  { %11190 = vmatpush.bf16.msrb.mxu0 %v16851_v25  ;;  %v11232_v57 = vpack.c.bf16 %v11225_v59, %v11225_v59 }
 0x575   :  { %11203 = vmatpush.bf16.msrb.mxu1 %v17075_v47  ;;  %v19055_v47 = vld [vmem:[%s28130_s3 + $0xe0] sm:$0xff] }
 0x576   :  { %11216 = vmatpush.bf16.msrb.mxu2 %v17299_v30  ;;  %v19063_v30 = vld [vmem:[%s28130_s3 + $0x120] sm:$0xff] }
 0x577   :  { %11643 = vmatpush.bf16.msrb.mxu3 %v19030_v0  ;;  %v19047_v0 = vld [vmem:[%s28130_s3 + $0xa0] sm:$0xff] }
 0x578   :  { %11191 = vmatpush.bf16.msrb.mxu0 %v16823_v63  ;;  %v19037_v63 = vld [vmem:[%s28130_s3 + $0x50] sm:$0xff] }
 0x579   :  { %11204 = vmatpush.bf16.msrb.mxu1 %v17047_v18  ;;  %v19053_v18 = vld [vmem:[%s28130_s3 + $0xd0] sm:$0xff] }
 0x57a   :  { %11217 = vmatpush.bf16.msrb.mxu2 %v17271_v44  ;;  %v19061_v44 = vld [vmem:[%s28130_s3 + $0x110] sm:$0xff] }
 0x57b   :  { %11644 = vmatpush.bf16.msrb.mxu3 %v19029_v26 }
 0x57c   :  { %11192 = vmatpush.bf16.msrb.mxu0 %v16795_v14  ;;  %v11226_v14 = vmax.f32 %v22709_v39, 0.0  ;;  %v19074_v39 = vld [vmem:[%s28130_s3 + $0x178] sm:$0xff] }
 0x57d   :  { %11205 = vmatpush.bf16.msrb.mxu1 %v17019_v28  ;;  %v19051_v28 = vld [vmem:[%s28130_s3 + $0xc0] sm:$0xff] }
 0x57e   :  { %11218 = vmatpush.bf16.msrb.mxu2 %v17243_v60  ;;  %v11227_v60 = vmax.f32 %v23941_v54, 0.0  ;;  %v11233_v35 = vpack.c.bf16 %v11226_v14, %v11226_v14  ;;  %v19073_v54 = vld [vmem:[%s28130_s3 + $0x170] sm:$0xff] }
 0x57f   :  { %11645 = vmatpush.bf16.msrb.mxu3 %v19028_v5  ;;  %v19043_v5 = vld [vmem:[%s28130_s3 + $0x80] sm:$0xff] }
 0x580   :  { %11193 = vmatpush.bf16.msrb.mxu0 %v16767_v12  ;;  %v11234_v37 = vpack.c.bf16 %v11227_v60, %v11227_v60  ;;  %v19071_v12 = vld [vmem:[%s28130_s3 + $0x160] sm:$0xff] }
 0x581   :  { %11206 = vmatpush.bf16.msrb.mxu1 %v16991_v46  ;;  %v11000_v25 = vpop.f32.mrf.mxu1 }
 0x582   :  { %11219 = vmatpush.bf16.msrb.mxu2 %v17215_v24 }
 0x583   :  { %11646 = vmatpush.bf16.msrb.mxu3 %v19027_v17  ;;  %11194 = vmatmul.bf16.vlgmr.msrb.gmra.mxu0 %v20436_v11  ;;  %v19048_v11 = vld [vmem:[%s28130_s3 + $0xa8] sm:$0xff]  ;;  %v19070_v17 = vld [vmem:[%s28130_s3 + $0x158] sm:$0xff] }
 0x584   :  { %11652 = vmatpush.bf16.msra.mxu0 %v19042_v51  ;;  %11207 = vmatmul.bf16.vlgmr.msrb.gmra.mxu1 %v20446_v16  ;;  %v19064_v16 = vld [vmem:[%s28130_s3 + $0x128] sm:$0xff] }
 0x585   :  { %11665 = vmatpush.bf16.msra.mxu1 %v19050_v15  ;;  %11220 = vmatmul.bf16.vlgmr.msrb.gmra.mxu2 %v20635_v1  ;;  %v10987_v1 = vpop.f32.mrf.mxu0 }
 0x586   :  { %11678 = vmatpush.bf16.msra.mxu2 %v19058_v56  ;;  %11647 = vmatmul.bf16.vlgmr.msrb.gmra.mxu3 %v11232_v57  ;;  %v10988_v58 = vadd.f32 %v10987_v1, %v27926_v6 }
 0x587   :  { %11691 = vmatpush.bf16.msra.mxu3 %v19066_v13  ;;  %v19069_v13 = vld [vmem:[%s28130_s3 + $0x150] sm:$0xff] }
 0x588   :  { %11653 = vmatpush.bf16.msra.mxu0 %v19041_v52  ;;  %v11001_v62 = vadd.f32 %v11000_v25, %v10988_v58  ;;  %v11013_v10 = vpop.f32.mrf.mxu2 }
 0x589   :  { %11666 = vmatpush.bf16.msra.mxu1 %v19049_v36  ;;  %v11026_v41 = vpop.f32.mrf.mxu3  ;;  %v11002_v26 = vpop.f32.mrf.mxu1 }
 0x58a   :  { %11679 = vmatpush.bf16.msra.mxu2 %v19057_v3  ;;  %v11014_v2 = vadd.f32 %v11013_v10, %v11001_v62  ;;  %v19068_v3 = vld [vmem:[%s28130_s3 + $0x148] sm:$0xff] }
 0x58b   :  { %11692 = vmatpush.bf16.msra.mxu3 %v19065_v38 }
 0x58c   :  { %11654 = vmatpush.bf16.msra.mxu0 %v19040_v55  ;;  %v11027_v6 = vadd.f32 %v11026_v41, %v11014_v2  ;;  %v19067_v55 = vld [vmem:[%s28130_s3 + $0x140] sm:$0xff] }
 0x58d   :  { %11667 = vmatpush.bf16.msra.mxu1 %v19048_v11  ;;  %v10989_v32 = vpop.f32.mrf.mxu0  ;;  %v11230_v11 = vmax.f32 %v27701_v42, 0.0 }
 0x58e   :  { %11680 = vmatpush.bf16.msra.mxu2 %v19056_v48 }
 0x58f   :  { %11693 = vmatpush.bf16.msra.mxu3 %v19064_v16  ;;  %v11237_v48 = vpack.c.bf16 %v11230_v11, %v11230_v11 }
 0x590   :  { %11655 = vmatpush.bf16.msra.mxu0 %v19039_v29  ;;  %v11015_v31 = vpop.f32.mrf.mxu2 }
 0x591   :  { %11668 = vmatpush.bf16.msra.mxu1 %v19047_v0  ;;  %v11028_v40 = vpop.f32.mrf.mxu3 }
 0x592   :  { %11681 = vmatpush.bf16.msra.mxu2 %v19055_v47  ;;  %v19075_v47 = vld [vmem:[%s28130_s3 + $0x180] sm:$0xff] }
 0x593   :  { %11694 = vmatpush.bf16.msra.mxu3 %v19063_v30 }
 0x594   :  { %11656 = vmatpush.bf16.msra.mxu0 %v19038_v21 }
 0x595   :  { %11669 = vmatpush.bf16.msra.mxu1 %v19046_v4 }
 0x596   :  { %11682 = vmatpush.bf16.msra.mxu2 %v19054_v50 }
 0x597   :  { %11695 = vmatpush.bf16.msra.mxu3 %v19062_v8 }
 0x598   :  { %11657 = vmatpush.bf16.msra.mxu0 %v19037_v63 }
 0x599   :  { %11670 = vmatpush.bf16.msra.mxu1 %v19045_v9 }
 0x59a   :  { %11683 = vmatpush.bf16.msra.mxu2 %v19053_v18 }
 0x59b   :  { %11696 = vmatpush.bf16.msra.mxu3 %v19061_v44 }
 0x59c   :  { %11658 = vmatpush.bf16.msra.mxu0 %v19036_v20 }
 0x59d   :  { %11671 = vmatpush.bf16.msra.mxu1 %v19044_v33 }
 0x59e   :  { %11684 = vmatpush.bf16.msra.mxu2 %v19052_v23 }
 0x59f   :  { %11697 = vmatpush.bf16.msra.mxu3 %v19060_v19 }
 0x5a0   :  { %11659 = vmatpush.bf16.msra.mxu0 %v19035_v22  ;;  %v11039_v49 = vpop.f32.mrf.mxu0 }
 0x5a1   :  { %11672 = vmatpush.bf16.msra.mxu1 %v19043_v5  ;;  %v11040_v7 = vadd.f32 %v11039_v49, %v11027_v6  ;;  %v11052_v46 = vpop.f32.mrf.mxu1 }
 0x5a2   :  { %11685 = vmatpush.bf16.msra.mxu2 %v19051_v28 }
 0x5a3   :  { %11698 = vmatpush.bf16.msra.mxu3 %v19059_v45  ;;  %11660 = vmatmul.bf16.vlgmr.msra.gmra.mxu0 %v11233_v35  ;;  %v11053_v24 = vadd.f32 %v11052_v46, %v11040_v7 }
 0x5a4   :  { %11704 = vmatpush.bf16.msrb.mxu0 %v19074_v39  ;;  %11673 = vmatmul.bf16.vlgmr.msra.gmra.mxu1 %v11234_v37 }
 0x5a5   :  { %11686 = vmatmul.bf16.vlgmr.msra.gmra.mxu2 %v11235_v27  ;;  %11724 = vmatpush.bf16.msrb.mxu1 %v19075_v47  ;;  %v19082_v47 = vld [vmem:[%s28135_s8] ss:$0 sm:$0xff] }
 0x5a6   :  { %11699 = vmatmul.bf16.vlgmr.msra.gmra.mxu3 %v11236_v61 }
 0x5a8   :  { %11705 = vmatpush.bf16.msrb.mxu0 %v19073_v54  ;;  %v11065_v51 = vpop.f32.mrf.mxu2  ;;  %v11041_v59 = vpop.f32.mrf.mxu0 }
 0x5a9   :  { %v11066_v15 = vadd.f32 %v11065_v51, %v11053_v24  ;;  %v11078_v56 = vpop.f32.mrf.mxu3  ;;  %v11054_v52 = vpop.f32.mrf.mxu1  ;;  %v19076_v24 = vld [vmem:[%s28133_s5] sm:$0xff] }
 0x5ab   :  { %v11079_v36 = vadd.f32 %v11078_v56, %v11066_v15 }
 0x5ac   :  { %11706 = vmatpush.bf16.msrb.mxu0 %v19072_v53  ;;  %v19077_v53 = vld [vmem:[%s28133_s5 + $0x8] sm:$0xff] }
 0x5ad   :  { %11762 = vmatpush.bf16.msrb.mxu2 %v19077_v53 }
 0x5b0   :  { %11707 = vmatpush.bf16.msrb.mxu0 %v19071_v12  ;;  %v11067_v57 = vpop.f32.mrf.mxu2 }
 0x5b1   :  { %v11080_v38 = vpop.f32.mrf.mxu3  ;;  %11763 = vmatpush.bf16.msrb.mxu2 %v19076_v24 }
 0x5b4   :  { %11708 = vmatpush.bf16.msrb.mxu0 %v19070_v17 }
 0x5b8   :  { %11709 = vmatpush.bf16.msrb.mxu0 %v19069_v13 }
 0x5bc   :  { %11710 = vmatpush.bf16.msrb.mxu0 %v19068_v3  ;;  %v19078_v3 = vld [vmem:[%s28134_s7] sm:$0xff] }
 0x5c0   :  { %11711 = vmatpush.bf16.msrb.mxu0 %v19067_v55  ;;  %v11091_v16 = vpop.f32.mrf.mxu0 }
 0x5c1   :  { %v11104_v1 = vpop.f32.mrf.mxu1  ;;  %v11092_v42 = vadd.f32 %v11091_v16, %v11079_v36  ;;  %v19079_v36 = vld [vmem:[%s28134_s7 + $0x8] sm:$0xff]  ;;  %v19081_v16 = vld [vmem:[%s28132_s6] ss:$0 sm:$0xff] }
 0x5c2   :  { %11800 = vmatpush.bf16.msrb.mxu3 %v19079_v36 }
 0x5c3   :  { %11712 = vmatmul.bf16.vlgmr.msrb.gmra.mxu0 %v11237_v48  ;;  %v11105_v41 = vadd.f32 %v11104_v1, %v11092_v42 }
 0x5c6   :  { %11801 = vmatpush.bf16.msrb.mxu3 %v19078_v3 }
 0x5c8   :  { %v11117_v58 = vpop.f32.mrf.mxu2  ;;  %v11093_v25 = vpop.f32.mrf.mxu0 }
 0x5c9   :  { %v11130_v29 = vpop.f32.mrf.mxu3  ;;  %v11106_v0 = vpop.f32.mrf.mxu1  ;;  %v11118_v32 = vadd.f32 %v11117_v58, %v11105_v41 }
 0x5cb   :  { %v11131_v6 = vadd.f32 %v11130_v29, %v11118_v32 }
 0x5d0   :  { %v11119_v30 = vpop.f32.mrf.mxu2 }
 0x5d1   :  { %v11132_v62 = vpop.f32.mrf.mxu3 }
 0x5e0   :  { %v11143_v21 = vpop.f32.mrf.mxu0 }
 0x5e1   :  { %v11156_v4 = vpop.f32.mrf.mxu1  ;;  %v11144_v9 = vadd.f32 %v11143_v21, %v11131_v6 }
 0x5e3   :  { %v11157_v18 = vadd.f32 %v11156_v4, %v11144_v9 }
 0x5e8   :  { %v11169_v50 = vpop.f32.mrf.mxu2  ;;  %v11145_v10 = vpop.f32.mrf.mxu0 }
 0x5e9   :  { %v11182_v8 = vpop.f32.mrf.mxu3  ;;  %v11158_v2 = vpop.f32.mrf.mxu1  ;;  %v11170_v44 = vadd.f32 %v11169_v50, %v11157_v18 }
 0x5eb   :  { %v11183_v20 = vadd.f32 %v11182_v8, %v11170_v44 }
 0x5f0   :  { %v11171_v63 = vpop.f32.mrf.mxu2 }
 0x5f1   :  { %v11184_v26 = vpop.f32.mrf.mxu3 }
 0x600   :  { %v11195_v33 = vpop.f32.mrf.mxu0 }
 0x601   :  { %v11208_v23 = vpop.f32.mrf.mxu1  ;;  %v11196_v19 = vadd.f32 %v11195_v33, %v11183_v20 }
 0x603   :  { %v11209_v31 = vadd.f32 %v11208_v23, %v11196_v19 }
 0x608   :  { %v11221_v40 = vpop.f32.mrf.mxu2  ;;  %v11197_v5 = vpop.f32.mrf.mxu0 }
 0x609   :  { %v11222_v22 = vadd.f32 %v11221_v40, %v11209_v31  ;;  %v11648_v14 = vpop.f32.mrf.mxu3  ;;  %v11210_v28 = vpop.f32.mrf.mxu1 }
 0x60a   :  { %v11649_v35 = vadd.f32 %v19080_v43, %v11648_v14 }
 0x60b   :  { %v11231_v60 = vmax.f32 %v11222_v22, 0.0 }
 0x60d   :  { %v11238_v34 = vpack.c.bf16 %v11231_v60, %v11231_v60 }
 0x60f   :  { %17608 = vmatmul.msk.bf16.vlgmr.msrb.gmra.mxu1 %vm11635_vm0, %v11238_v34 }
 0x610   :  { %v11223_v45 = vpop.f32.mrf.mxu2 }
 0x611   :  { %v11650_v39 = vpop.f32.mrf.mxu3 }
 0x620   :  { %v11661_v37 = vpop.f32.mrf.mxu0 }
 0x621   :  { %v11662_v27 = vadd.f32 %v11661_v37, %v11649_v35  ;;  %v11674_v54 = vpop.f32.mrf.mxu1 }
 0x623   :  { %v11675_v61 = vadd.f32 %v11674_v54, %v11662_v27 }
 0x628   :  { %v11687_v49 = vpop.f32.mrf.mxu2  ;;  %v11663_v46 = vpop.f32.mrf.mxu0 }
 0x629   :  { %v11688_v7 = vadd.f32 %v11687_v49, %v11675_v61  ;;  %v11700_v12 = vpop.f32.mrf.mxu3  ;;  %v11676_v17 = vpop.f32.mrf.mxu1 }
 0x62b   :  { %v11701_v51 = vadd.f32 %v11700_v12, %v11688_v7 }
 0x630   :  { %v11689_v15 = vpop.f32.mrf.mxu2 }
 0x631   :  { %v11702_v56 = vpop.f32.mrf.mxu3 }
 0x640   :  { %v11713_v59 = vpop.f32.mrf.mxu0 }
 0x641   :  { %v11714_v13 = vadd.f32 %v11713_v59, %v11701_v51 }
 0x648   :  { %v11715_v52 = vpop.f32.mrf.mxu0 }
 0x68c   :  { %v11726_v57 = vpop.f32.mrf.mxu1 }
 0x68d   :  { %v11727_v38 = vadd.f32 %v11726_v57, %v11714_v13 }
 0x68f   :  { %v11730_v55 = vmax.f32 %v11727_v38, 0.0 }
 0x691   :  { %v11731_v11 = vpack.c.bf16 %v11730_v55, %v11730_v55 }
 0x693   :  { %17617 = vmatmul.msk.bf16.vlgmr.msrb.gmra.mxu2 %vm11752_vm1, %v11731_v11 }
 0x694   :  { %v11728_v48 = vpop.f32.mrf.mxu1 }
 0x716   :  { %v11765_v1 = vpop.f32.mrf.mxu2 }
 0x717   :  { %v11766_v58 = vadd.f32 %v19081_v16, %v11765_v1 }
 0x719   :  { %v11769_v29 = vmax.f32 %v11766_v58, 0.0 }
 0x71b   :  { %v11770_v25 = vpack.c.bf16 %v11769_v29, %v11769_v29 }
 0x71d   :  { %17626 = vmatmul.msk.bf16.vlgmr.msrb.gmra.mxu3 %vm11752_vm1, %v11770_v25 }
 0x71e   :  { %v11767_v0 = vpop.f32.mrf.mxu2 }
 0x7a0   :  { %v11803_v30 = vpop.f32.mrf.mxu3 }
 0x7a1   :  { %v11804_v62 = vadd.f32 %v19082_v47, %v11803_v30 }
 0x7a3   :  { %11807 = vst [vmem:[%s28136_s9] sm:$0xff] %v11804_v62 }
 0x7a8   :  { %v11805_v21 = vpop.f32.mrf.mxu3 }

</bundles_post_ra>
